<compile_context>
chip_gen: v7x
topology: tpu7x:2x2x1
jax: 0.10.0
libtpu: 0.0.40
codegen_flags: <defaults>
</compile_context>

<pallas_src>
import functools

import jax
import jax.numpy as jnp
from jax.experimental import pallas as pl
from jax.experimental.pallas import tpu as pltpu

NZ = 100
BN_EPS = 1e-5

_LAYER_CFG = [
    # (Cin, Cout, K, stride, pad)
    (NZ,  512, 4, 1, 0),
    (512, 256, 4, 2, 1),
    (256, 128, 4, 2, 1),
    (128,  64, 4, 2, 1),
    (64,    3, 4, 2, 1),
]


def _round_up(x, m):
    return ((x + m - 1) // m) * m


# ----------------------------------------------------------------------------
# Pallas kernels
# ----------------------------------------------------------------------------
def _matmul_kernel(a_ref, b_ref, o_ref, *, activation):
    """(tm, K) @ (K, tn) -> (tm, tn), bf16 inputs, f32 accumulation.

    Whole K is a single block, so no K grid axis / accumulator is needed.
    `activation == "tanh"` fuses the final-layer tanh into the epilogue.
    """
    acc = jnp.dot(a_ref[...], b_ref[...], preferred_element_type=jnp.float32)
    if activation == "tanh":
        acc = jnp.tanh(acc)
    o_ref[...] = acc


def _bn_stats_kernel(x_ref, stat_ref):
    """Accumulate per-channel sum / sum-of-squares over row blocks.

    stat_ref: (2, C) resident accumulator (row 0 = sum, row 1 = sum of sq).
    """
    @pl.when(pl.program_id(0) == 0)
    def _():
        stat_ref[...] = jnp.zeros_like(stat_ref)

    x = x_ref[...]
    s = jnp.sum(x, axis=0, keepdims=True)
    ss = jnp.sum(x * x, axis=0, keepdims=True)
    stat_ref[...] += jnp.concatenate([s, ss], axis=0)


def _bn_apply_relu_kernel(x_ref, stat_ref, gamma_ref, beta_ref, o_ref, *,
                          inv_count):
    """Apply BatchNorm (batch stats, biased var) + ReLU to one row block."""
    mean = stat_ref[0:1, :] * inv_count
    var = stat_ref[1:2, :] * inv_count - mean * mean
    inv = jax.lax.rsqrt(var + BN_EPS)
    y = (x_ref[...] - mean) * (inv * gamma_ref[...]) + beta_ref[...]
    o_ref[...] = jnp.maximum(y, 0.0)


# ----------------------------------------------------------------------------
# Pallas wrappers
# ----------------------------------------------------------------------------
def pallas_matmul(a, b, n_out=None, activation=None):
    """a: (M, K) any float dtype; b: (K, N) pre-padded so K % 128 == N % 128 == 0.

    Returns f32 (M, n_out).  Operands are cast to bf16; accumulation is f32.
    """
    M, K = a.shape
    Kb, N = b.shape
    assert K == Kb, (K, Kb)
    assert K % 128 == 0 and N % 128 == 0, (K, N)
    n_out = N if n_out is None else n_out

    tm = min(256, _round_up(M, 8))
    tn = min(256, N)
    Mp = _round_up(M, tm)

    a = a.astype(jnp.bfloat16)
    b = b.astype(jnp.bfloat16)
    if Mp != M:
        a = jnp.pad(a, ((0, Mp - M), (0, 0)))

    out = pl.pallas_call(
        functools.partial(_matmul_kernel, activation=activation),
        out_shape=jax.ShapeDtypeStruct((Mp, N), jnp.float32),
        grid_spec=pltpu.PrefetchScalarGridSpec(
            num_scalar_prefetch=0,
            grid=(Mp // tm, N // tn),
            in_specs=[
                pl.BlockSpec((tm, K), lambda i, j: (i, 0)),
                pl.BlockSpec((K, tn), lambda i, j: (0, j)),
            ],
            out_specs=pl.BlockSpec((tm, tn), lambda i, j: (i, j)),
        ),
        compiler_params=pltpu.CompilerParams(
            dimension_semantics=("parallel", "parallel")),
    )(a, b)

    if Mp != M or n_out != N:
        out = out[:M, :n_out]
    return out


def pallas_bn_relu(x, gamma, beta):
    """x: (M, C) f32; gamma/beta: (1, C).  Row-blocked, pipelined, two passes."""
    M, C = x.shape
    tm = min(1024, _round_up(M, 8))
    Mp = _round_up(M, tm)
    xp = jnp.pad(x, ((0, Mp - M), (0, 0))) if Mp != M else x  # zero rows: no
    nm = Mp // tm                                             # effect on sums

    stats = pl.pallas_call(
        _bn_stats_kernel,
        out_shape=jax.ShapeDtypeStruct((2, C), jnp.float32),
        grid_spec=pltpu.PrefetchScalarGridSpec(
            num_scalar_prefetch=0,
            grid=(nm,),
            in_specs=[pl.BlockSpec((tm, C), lambda r: (r, 0))],
            out_specs=pl.BlockSpec((2, C), lambda r: (0, 0)),
        ),
        compiler_params=pltpu.CompilerParams(
            dimension_semantics=("arbitrary",)),
    )(xp)

    out = pl.pallas_call(
        functools.partial(_bn_apply_relu_kernel, inv_count=1.0 / M),
        out_shape=jax.ShapeDtypeStruct((Mp, C), jnp.float32),
        grid_spec=pltpu.PrefetchScalarGridSpec(
            num_scalar_prefetch=0,
            grid=(nm,),
            in_specs=[
                pl.BlockSpec((tm, C), lambda r: (r, 0)),
                pl.BlockSpec((2, C), lambda r: (0, 0)),
                pl.BlockSpec((1, C), lambda r: (0, 0)),
                pl.BlockSpec((1, C), lambda r: (0, 0)),
            ],
            out_specs=pl.BlockSpec((tm, C), lambda r: (r, 0)),
        ),
        compiler_params=pltpu.CompilerParams(
            dimension_semantics=("parallel",)),
    )(xp, stats, gamma, beta)

    return out[:M] if Mp != M else out


# ----------------------------------------------------------------------------
# Sub-pixel ConvTranspose2d(K=4, stride=2, pad=1) lowering helpers (JAX glue)
# ----------------------------------------------------------------------------
def _make_subpixel_weight(w):
    """w: (Cin, Cout, 4, 4) PyTorch ConvTranspose2d weight -> (4*Cin, 4*Cout).

    Row block (th, tw)  = 2x2 input tap over the 1-padded input.
    Col block (dh, dw)  = output sub-pixel phase (oh = 2m+dh, ow = 2n+dw).
    Block[(th,tw),(dh,dw)] = w[:, :, 3 - dh - 2*th, 3 - dw - 2*tw].
    """
    rows = []
    for th in range(2):
        for tw in range(2):
            cols = [w[:, :, 3 - dh - 2 * th, 3 - dw - 2 * tw]
                    for dh in range(2) for dw in range(2)]
            rows.append(jnp.concatenate(cols, axis=1))
    return jnp.concatenate(rows, axis=0)


def _subpixel_im2col(x):
    """x: (B, H, W, Cin) -> A: (B*(H+1)*(W+1), 4*Cin) of 2x2 taps of pad-1 x."""
    B, H, W, Cin = x.shape
    x_p = jnp.pad(x, ((0, 0), (1, 1), (1, 1), (0, 0)))
    taps = [x_p[:, th:th + H + 1, tw:tw + W + 1, :]
            for th in range(2) for tw in range(2)]
    a = jnp.concatenate(taps, axis=-1)
    return a.reshape(B * (H + 1) * (W + 1), 4 * Cin)


def _assemble_subpixel(y, B, H, W, cout):
    """Pixel-shuffle the phase-blocked matmul output back to (B, 2H, 2W, Cout)."""
    y = y.reshape(B, H + 1, W + 1, 4, cout)
    ee = y[:, 0:H,     0:W,     0, :]
    eo = y[:, 0:H,     1:W + 1, 1, :]
    oe = y[:, 1:H + 1, 0:W,     2, :]
    oo = y[:, 1:H + 1, 1:W + 1, 3, :]
    t = jnp.stack([ee, eo, oe, oo], axis=3).reshape(B, H, W, 2, 2, cout)
    return jnp.transpose(t, (0, 1, 3, 2, 4, 5)).reshape(B, 2 * H, 2 * W, cout)


# ----------------------------------------------------------------------------
# Parameters (weight matrices precomputed / padded / bf16-cast once)
# ----------------------------------------------------------------------------
def init_params(key):
    params = {}
    keys = jax.random.split(key, 3 * len(_LAYER_CFG))
    for i, (cin, cout, k, _, _) in enumerate(_LAYER_CFG):
        w = 0.02 * jax.random.normal(keys[3 * i], (cin, cout, k, k), jnp.float32)
        if i == 0:
            # 1x1 input, stride 1, pad 0: dense z @ W, W[ci, (kh*4+kw)*Cout+co]
            wm = jnp.transpose(w, (0, 2, 3, 1)).reshape(cin, k * k * cout)
            wm = jnp.pad(wm, ((0, _round_up(cin, 128) - cin), (0, 0)))
        else:
            wm = _make_subpixel_weight(w)                       # (4*Cin, 4*Cout)
            n = wm.shape[1]
            wm = jnp.pad(wm, ((0, 0), (0, _round_up(n, 128) - n)))
        params[f"w{i}"] = wm.astype(jnp.bfloat16)
        if i < len(_LAYER_CFG) - 1:   # BN params for all but the last layer
            params[f"g{i}"] = 1.0 + 0.02 * jax.random.normal(
                keys[3 * i + 1], (1, cout), jnp.float32)
            params[f"b{i}"] = 0.02 * jax.random.normal(
                keys[3 * i + 2], (1, cout), jnp.float32)
    return params


# ----------------------------------------------------------------------------
# Generator forward
# ----------------------------------------------------------------------------
@jax.jit
def generator_forward(z_nchw, params):
    B = z_nchw.shape[0]

    # ---- layer 0: ConvT(nz->512, 4, 1, 0) as a dense matmul -----------------
    z = z_nchw.reshape(B, NZ).astype(jnp.float32)
    z = jnp.pad(z, ((0, 0), (0, params["w0"].shape[0] - NZ)))   # NZ -> 128
    cout0 = _LAYER_CFG[0][1]
    y = pallas_matmul(z, params["w0"])                          # (B, 16*512)
    x2d = pallas_bn_relu(y.reshape(B * 16, cout0), params["g0"], params["b0"])
    x = x2d.reshape(B, 4, 4, cout0)

    # ---- layers 1..4: sub-pixel ConvT(4, 2, 1) ------------------------------
    for i in range(1, len(_LAYER_CFG)):
        cout = _LAYER_CFG[i][1]
        _, H, W, _ = x.shape
        a = _subpixel_im2col(x)                                 # (B*(H+1)^2, 4*Cin)
        act = "tanh" if i == len(_LAYER_CFG) - 1 else None      # fused tanh
        y = pallas_matmul(a, params[f"w{i}"], n_out=4 * cout, activation=act)
        x = _assemble_subpixel(y, B, H, W, cout)                # (B, 2H, 2W, Cout)
        if i < len(_LAYER_CFG) - 1:
            x2d = pallas_bn_relu(x.reshape(B * 2 * H * 2 * W, cout),
                                 params[f"g{i}"], params[f"b{i}"])
            x = x2d.reshape(B, 2 * H, 2 * W, cout)

    # NHWC -> NCHW
    return jnp.transpose(x, (0, 3, 1, 2))


if __name__ == "__main__":
    key = jax.random.PRNGKey(0)
    k_param, k_input = jax.random.split(key)

    params = init_params(k_param)
    z = jax.random.normal(k_input, (2, NZ, 1, 1), jnp.float32)  # (B, nz, 1, 1)

    out = generator_forward(z, params)
    out = jax.block_until_ready(out)

    assert out.shape == (2, 3, 64, 64), out.shape
    assert out.dtype == jnp.float32
    assert bool(jnp.all(jnp.isfinite(out)))
    print("KERNEL_OK")
</pallas_src>

<mosaic_0001>
module attributes {stable_mosaic.version = 11 : i64} {
  func.func @_matmul_kernel(%arg0: i32, %arg1: i32, %arg2: memref<8x128xbf16, #tpu.memory_space<vmem>>, %arg3: memref<128x256xbf16, #tpu.memory_space<vmem>>, %arg4: memref<8x256xf32, #tpu.memory_space<vmem>>) attributes {dimension_semantics = [#tpu.dimension_semantics<parallel>, #tpu.dimension_semantics<parallel>], iteration_bounds = array<i64: 1, 32>, scalar_prefetch = 0 : i64, scratch_operands = 0 : i64, tpu.core_type = #tpu.core_type<tc>, window_params = [{transform_indices = @transform_0, window_bounds = array<i64: 8, 128>}, {transform_indices = @transform_1, window_bounds = array<i64: 128, 256>}, {transform_indices = @transform_2, window_bounds = array<i64: 8, 256>}]} {
    %c0 = arith.constant 0 : index
    %c0_0 = arith.constant 0 : index
    %0 = vector.load %arg2[%c0, %c0_0] : memref<8x128xbf16, #tpu.memory_space<vmem>>, vector<8x128xbf16>
    %c0_1 = arith.constant 0 : index
    %c0_2 = arith.constant 0 : index
    %1 = vector.load %arg3[%c0_1, %c0_2] : memref<128x256xbf16, #tpu.memory_space<vmem>>, vector<128x256xbf16>
    %cst = arith.constant dense<0.000000e+00> : vector<8x256xf32>
    %2 = tpu.matmul %0, %1, %cst {dimension_numbers = #tpu.dot_dimension_numbers<[1], [0], [0], [1], [0, 0, 1, 1], [], []>} : vector<8x128xbf16>, vector<128x256xbf16>, vector<8x256xf32> -> vector<8x256xf32>
    %c0_3 = arith.constant 0 : index
    %c0_4 = arith.constant 0 : index
    %3 = vector.load %arg4[%c0_3, %c0_4] : memref<8x256xf32, #tpu.memory_space<vmem>>, vector<8x256xf32>
    tpu.vector_store %arg4[%c0_3, %c0_4], %2 {strides = array<i32>} : memref<8x256xf32, #tpu.memory_space<vmem>>, vector<8x256xf32>,
    return
  }
  func.func @transform_0(%arg0: i32, %arg1: i32) -> (i32, i32) {
    %c0_i32 = arith.constant 0 : i32
    %c0_i32_0 = arith.constant 0 : i32
    return %arg0, %c0_i32 : i32, i32
  }
  func.func @transform_1(%arg0: i32, %arg1: i32) -> (i32, i32) {
    %c0_i32 = arith.constant 0 : i32
    %c0_i32_0 = arith.constant 0 : i32
    return %c0_i32, %arg1 : i32, i32
  }
  func.func @transform_2(%arg0: i32, %arg1: i32) -> (i32, i32) {
    %c0_i32 = arith.constant 0 : i32
    return %arg0, %arg1 : i32, i32
  }
}

module attributes {stable_mosaic.version = 11 : i64} {
  func.func @_bn_stats_kernel(%arg0: i32, %arg1: memref<32x512xf32, #tpu.memory_space<vmem>>, %arg2: memref<2x512xf32, #tpu.memory_space<vmem>>) attributes {dimension_semantics = [#tpu.dimension_semantics<arbitrary>], iteration_bounds = array<i64: 1>, scalar_prefetch = 0 : i64, scratch_operands = 0 : i64, tpu.core_type = #tpu.core_type<tc>, window_params = [{transform_indices = @transform_0, window_bounds = array<i64: 32, 512>}, {pipeline_mode = #tpu.pipeline_mode<synchronous>, transform_indices = @transform_1, window_bounds = array<i64: 2, 512>}]} {
    %c0_i32 = arith.constant 0 : i32
    %0 = arith.cmpi eq, %arg0, %c0_i32 : i32
    %1 = arith.extui %0 : i1 to i32
    %c0_i32_0 = arith.constant 0 : i32
    %2 = arith.cmpi ne, %1, %c0_i32_0 : i32
    scf.if %2 {
      %cst_7 = arith.constant 0.000000e+00 : f32
      %13 = vector.broadcast %cst_7 : f32 to vector<2x512xf32>
      %c0_8 = arith.constant 0 : index
      %c0_9 = arith.constant 0 : index
      %14 = vector.load %arg2[%c0_8, %c0_9] : memref<2x512xf32, #tpu.memory_space<vmem>>, vector<2x512xf32>
      tpu.vector_store %arg2[%c0_8, %c0_9], %13 {strides = array<i32>} : memref<2x512xf32, #tpu.memory_space<vmem>>, vector<2x512xf32>,
    } else {
    }
    %c0 = arith.constant 0 : index
    %c0_1 = arith.constant 0 : index
    %3 = vector.load %arg1[%c0, %c0_1] : memref<32x512xf32, #tpu.memory_space<vmem>>, vector<32x512xf32>
    %cst = arith.constant dense<0.000000e+00> : vector<512xf32>
    %4 = vector.multi_reduction <add>, %3, %cst [0] : vector<32x512xf32> to vector<512xf32>
    %5 = vector.shape_cast %4 : vector<512xf32> to vector<1x512xf32>
    %6 = arith.mulf %3, %3 : vector<32x512xf32>
    %cst_2 = arith.constant dense<0.000000e+00> : vector<512xf32>
    %7 = vector.multi_reduction <add>, %6, %cst_2 [0] : vector<32x512xf32> to vector<512xf32>
    %8 = vector.shape_cast %7 : vector<512xf32> to vector<1x512xf32>
    %c0_3 = arith.constant 0 : index
    %c0_4 = arith.constant 0 : index
    %9 = vector.load %arg2[%c0_3, %c0_4] : memref<2x512xf32, #tpu.memory_space<vmem>>, vector<2x512xf32>
    %10 = tpu.concatenate %5, %8 in 0 : vector<1x512xf32>, vector<1x512xf32> -> vector<2x512xf32>
    %11 = arith.addf %9, %10 : vector<2x512xf32>
    %c0_5 = arith.constant 0 : index
    %c0_6 = arith.constant 0 : index
    %12 = vector.load %arg2[%c0_5, %c0_6] : memref<2x512xf32, #tpu.memory_space<vmem>>, vector<2x512xf32>
    tpu.vector_store %arg2[%c0_5, %c0_6], %11 {strides = array<i32>} : memref<2x512xf32, #tpu.memory_space<vmem>>, vector<2x512xf32>,
    return
  }
  func.func @transform_0(%arg0: i32) -> (i32, i32) {
    %c0_i32 = arith.constant 0 : i32
    %c0_i32_0 = arith.constant 0 : i32
    return %arg0, %c0_i32 : i32, i32
  }
  func.func @transform_1(%arg0: i32) -> (i32, i32) {
    %c0_i32 = arith.constant 0 : i32
    %c0_i32_0 = arith.constant 0 : i32
    %c0_i32_1 = arith.constant 0 : i32
    return %c0_i32, %c0_i32_0 : i32, i32
  }
}

module attributes {stable_mosaic.version = 11 : i64} {
  func.func @_bn_apply_relu_kernel(%arg0: i32, %arg1: memref<32x512xf32, #tpu.memory_space<vmem>>, %arg2: memref<2x512xf32, #tpu.memory_space<vmem>>, %arg3: memref<1x512xf32, #tpu.memory_space<vmem>>, %arg4: memref<1x512xf32, #tpu.memory_space<vmem>>, %arg5: memref<32x512xf32, #tpu.memory_space<vmem>>) attributes {dimension_semantics = [#tpu.dimension_semantics<parallel>], iteration_bounds = array<i64: 1>, scalar_prefetch = 0 : i64, scratch_operands = 0 : i64, tpu.core_type = #tpu.core_type<tc>, window_params = [{transform_indices = @transform_0, window_bounds = array<i64: 32, 512>}, {pipeline_mode = #tpu.pipeline_mode<synchronous>, transform_indices = @transform_1, window_bounds = array<i64: 2, 512>}, {pipeline_mode = #tpu.pipeline_mode<synchronous>, transform_indices = @transform_2, window_bounds = array<i64: 1, 512>}, {pipeline_mode = #tpu.pipeline_mode<synchronous>, transform_indices = @transform_3, window_bounds = array<i64: 1, 512>}, {transform_indices = @transform_4, window_bounds = array<i64: 32, 512>}]} {
    %c0 = arith.constant 0 : index
    %c0_0 = arith.constant 0 : index
    %0 = vector.load %arg2[%c0, %c0_0] : memref<2x512xf32, #tpu.memory_space<vmem>>, vector<1x512xf32>
    %cst = arith.constant 3.125000e-02 : f32
    %1 = vector.broadcast %cst : f32 to vector<1x512xf32>
    %2 = arith.mulf %0, %1 : vector<1x512xf32>
    %c1 = arith.constant 1 : index
    %c0_1 = arith.constant 0 : index
    %3 = vector.load %arg2[%c1, %c0_1] : memref<2x512xf32, #tpu.memory_space<vmem>>, vector<1x512xf32>
    %cst_2 = arith.constant 3.125000e-02 : f32
    %4 = vector.broadcast %cst_2 : f32 to vector<1x512xf32>
    %5 = arith.mulf %3, %4 : vector<1x512xf32>
    %6 = arith.mulf %2, %2 : vector<1x512xf32>
    %7 = arith.subf %5, %6 : vector<1x512xf32>
    %cst_3 = arith.constant 9.99999974E-6 : f32
    %8 = vector.broadcast %cst_3 : f32 to vector<1x512xf32>
    %9 = arith.addf %7, %8 : vector<1x512xf32>
    %10 = math.rsqrt %9 : vector<1x512xf32>
    %c0_4 = arith.constant 0 : index
    %c0_5 = arith.constant 0 : index
    %11 = vector.load %arg1[%c0_4, %c0_5] : memref<32x512xf32, #tpu.memory_space<vmem>>, vector<32x512xf32>
    %12 = vector.broadcast %2 : vector<1x512xf32> to vector<32x512xf32>
    %13 = arith.subf %11, %12 : vector<32x512xf32>
    %c0_6 = arith.constant 0 : index
    %c0_7 = arith.constant 0 : index
    %14 = vector.load %arg3[%c0_6, %c0_7] : memref<1x512xf32, #tpu.memory_space<vmem>>, vector<1x512xf32>
    %15 = arith.mulf %10, %14 : vector<1x512xf32>
    %16 = vector.broadcast %15 : vector<1x512xf32> to vector<32x512xf32>
    %17 = arith.mulf %13, %16 : vector<32x512xf32>
    %c0_8 = arith.constant 0 : index
    %c0_9 = arith.constant 0 : index
    %18 = vector.load %arg4[%c0_8, %c0_9] : memref<1x512xf32, #tpu.memory_space<vmem>>, vector<1x512xf32>
    %19 = vector.broadcast %18 : vector<1x512xf32> to vector<32x512xf32>
    %20 = arith.addf %17, %19 : vector<32x512xf32>
    %cst_10 = arith.constant 0.000000e+00 : f32
    %21 = vector.broadcast %cst_10 : f32 to vector<32x512xf32>
    %22 = arith.maximumf %20, %21 : vector<32x512xf32>
    %c0_11 = arith.constant 0 : index
    %c0_12 = arith.constant 0 : index
    %23 = vector.load %arg5[%c0_11, %c0_12] : memref<32x512xf32, #tpu.memory_space<vmem>>, vector<32x512xf32>
    tpu.vector_store %arg5[%c0_11, %c0_12], %22 {strides = array<i32>} : memref<32x512xf32, #tpu.memory_space<vmem>>, vector<32x512xf32>,
    return
  }
  func.func @transform_0(%arg0: i32) -> (i32, i32) {
    %c0_i32 = arith.constant 0 : i32
    %c0_i32_0 = arith.constant 0 : i32
    return %arg0, %c0_i32 : i32, i32
  }
  func.func @transform_1(%arg0: i32) -> (i32, i32) {
    %c0_i32 = arith.constant 0 : i32
    %c0_i32_0 = arith.constant 0 : i32
    %c0_i32_1 = arith.constant 0 : i32
    return %c0_i32, %c0_i32_0 : i32, i32
  }
  func.func @transform_2(%arg0: i32) -> (i32, i32) {
    %c0_i32 = arith.constant 0 : i32
    %c0_i32_0 = arith.constant 0 : i32
    %c0_i32_1 = arith.constant 0 : i32
    return %c0_i32, %c0_i32_0 : i32, i32
  }
  func.func @transform_3(%arg0: i32) -> (i32, i32) {
    %c0_i32 = arith.constant 0 : i32
    %c0_i32_0 = arith.constant 0 : i32
    %c0_i32_1 = arith.constant 0 : i32
    return %c0_i32, %c0_i32_0 : i32, i32
  }
  func.func @transform_4(%arg0: i32) -> (i32, i32) {
    %c0_i32 = arith.constant 0 : i32
    %c0_i32_0 = arith.constant 0 : i32
    return %arg0, %c0_i32 : i32, i32
  }
}

module attributes {stable_mosaic.version = 11 : i64} {
  func.func @_matmul_kernel(%arg0: i32, %arg1: i32, %arg2: memref<56x2048xbf16, #tpu.memory_space<vmem>>, %arg3: memref<2048x256xbf16, #tpu.memory_space<vmem>>, %arg4: memref<56x256xf32, #tpu.memory_space<vmem>>) attributes {dimension_semantics = [#tpu.dimension_semantics<parallel>, #tpu.dimension_semantics<parallel>], iteration_bounds = array<i64: 1, 4>, scalar_prefetch = 0 : i64, scratch_operands = 0 : i64, tpu.core_type = #tpu.core_type<tc>, window_params = [{transform_indices = @transform_0, window_bounds = array<i64: 56, 2048>}, {transform_indices = @transform_1, window_bounds = array<i64: 2048, 256>}, {transform_indices = @transform_2, window_bounds = array<i64: 56, 256>}]} {
    %c0 = arith.constant 0 : index
    %c0_0 = arith.constant 0 : index
    %0 = vector.load %arg2[%c0, %c0_0] : memref<56x2048xbf16, #tpu.memory_space<vmem>>, vector<56x2048xbf16>
    %c0_1 = arith.constant 0 : index
    %c0_2 = arith.constant 0 : index
    %1 = vector.load %arg3[%c0_1, %c0_2] : memref<2048x256xbf16, #tpu.memory_space<vmem>>, vector<2048x256xbf16>
    %cst = arith.constant dense<0.000000e+00> : vector<56x256xf32>
    %2 = tpu.matmul %0, %1, %cst {dimension_numbers = #tpu.dot_dimension_numbers<[1], [0], [0], [1], [0, 0, 1, 1], [], []>} : vector<56x2048xbf16>, vector<2048x256xbf16>, vector<56x256xf32> -> vector<56x256xf32>
    %c0_3 = arith.constant 0 : index
    %c0_4 = arith.constant 0 : index
    %3 = vector.load %arg4[%c0_3, %c0_4] : memref<56x256xf32, #tpu.memory_space<vmem>>, vector<56x256xf32>
    tpu.vector_store %arg4[%c0_3, %c0_4], %2 {strides = array<i32>} : memref<56x256xf32, #tpu.memory_space<vmem>>, vector<56x256xf32>,
    return
  }
  func.func @transform_0(%arg0: i32, %arg1: i32) -> (i32, i32) {
    %c0_i32 = arith.constant 0 : i32
    %c0_i32_0 = arith.constant 0 : i32
    return %arg0, %c0_i32 : i32, i32
  }
  func.func @transform_1(%arg0: i32, %arg1: i32) -> (i32, i32) {
    %c0_i32 = arith.constant 0 : i32
    %c0_i32_0 = arith.constant 0 : i32
    return %c0_i32, %arg1 : i32, i32
  }
  func.func @transform_2(%arg0: i32, %arg1: i32) -> (i32, i32) {
    %c0_i32 = arith.constant 0 : i32
    return %arg0, %arg1 : i32, i32
  }
}

module attributes {stable_mosaic.version = 11 : i64} {
  func.func @_bn_apply_relu_kernel(%arg0: i32, %arg1: memref<128x256xf32, #tpu.memory_space<vmem>>, %arg2: memref<2x256xf32, #tpu.memory_space<vmem>>, %arg3: memref<1x256xf32, #tpu.memory_space<vmem>>, %arg4: memref<1x256xf32, #tpu.memory_space<vmem>>, %arg5: memref<128x256xf32, #tpu.memory_space<vmem>>) attributes {dimension_semantics = [#tpu.dimension_semantics<parallel>], iteration_bounds = array<i64: 1>, scalar_prefetch = 0 : i64, scratch_operands = 0 : i64, tpu.core_type = #tpu.core_type<tc>, window_params = [{transform_indices = @transform_0, window_bounds = array<i64: 128, 256>}, {pipeline_mode = #tpu.pipeline_mode<synchronous>, transform_indices = @transform_1, window_bounds = array<i64: 2, 256>}, {pipeline_mode = #tpu.pipeline_mode<synchronous>, transform_indices = @transform_2, window_bounds = array<i64: 1, 256>}, {pipeline_mode = #tpu.pipeline_mode<synchronous>, transform_indices = @transform_3, window_bounds = array<i64: 1, 256>}, {transform_indices = @transform_4, window_bounds = array<i64: 128, 256>}]} {
    %c0 = arith.constant 0 : index
    %c0_0 = arith.constant 0 : index
    %0 = vector.load %arg2[%c0, %c0_0] : memref<2x256xf32, #tpu.memory_space<vmem>>, vector<1x256xf32>
    %cst = arith.constant 7.812500e-03 : f32
    %1 = vector.broadcast %cst : f32 to vector<1x256xf32>
    %2 = arith.mulf %0, %1 : vector<1x256xf32>
    %c1 = arith.constant 1 : index
    %c0_1 = arith.constant 0 : index
    %3 = vector.load %arg2[%c1, %c0_1] : memref<2x256xf32, #tpu.memory_space<vmem>>, vector<1x256xf32>
    %cst_2 = arith.constant 7.812500e-03 : f32
    %4 = vector.broadcast %cst_2 : f32 to vector<1x256xf32>
    %5 = arith.mulf %3, %4 : vector<1x256xf32>
    %6 = arith.mulf %2, %2 : vector<1x256xf32>
    %7 = arith.subf %5, %6 : vector<1x256xf32>
    %cst_3 = arith.constant 9.99999974E-6 : f32
    %8 = vector.broadcast %cst_3 : f32 to vector<1x256xf32>
    %9 = arith.addf %7, %8 : vector<1x256xf32>
    %10 = math.rsqrt %9 : vector<1x256xf32>
    %c0_4 = arith.constant 0 : index
    %c0_5 = arith.constant 0 : index
    %11 = vector.load %arg1[%c0_4, %c0_5] : memref<128x256xf32, #tpu.memory_space<vmem>>, vector<128x256xf32>
    %12 = vector.broadcast %2 : vector<1x256xf32> to vector<128x256xf32>
    %13 = arith.subf %11, %12 : vector<128x256xf32>
    %c0_6 = arith.constant 0 : index
    %c0_7 = arith.constant 0 : index
    %14 = vector.load %arg3[%c0_6, %c0_7] : memref<1x256xf32, #tpu.memory_space<vmem>>, vector<1x256xf32>
    %15 = arith.mulf %10, %14 : vector<1x256xf32>
    %16 = vector.broadcast %15 : vector<1x256xf32> to vector<128x256xf32>
    %17 = arith.mulf %13, %16 : vector<128x256xf32>
    %c0_8 = arith.constant 0 : index
    %c0_9 = arith.constant 0 : index
    %18 = vector.load %arg4[%c0_8, %c0_9] : memref<1x256xf32, #tpu.memory_space<vmem>>, vector<1x256xf32>
    %19 = vector.broadcast %18 : vector<1x256xf32> to vector<128x256xf32>
    %20 = arith.addf %17, %19 : vector<128x256xf32>
    %cst_10 = arith.constant 0.000000e+00 : f32
    %21 = vector.broadcast %cst_10 : f32 to vector<128x256xf32>
    %22 = arith.maximumf %20, %21 : vector<128x256xf32>
    %c0_11 = arith.constant 0 : index
    %c0_12 = arith.constant 0 : index
    %23 = vector.load %arg5[%c0_11, %c0_12] : memref<128x256xf32, #tpu.memory_space<vmem>>, vector<128x256xf32>
    tpu.vector_store %arg5[%c0_11, %c0_12], %22 {strides = array<i32>} : memref<128x256xf32, #tpu.memory_space<vmem>>, vector<128x256xf32>,
    return
  }
  func.func @transform_0(%arg0: i32) -> (i32, i32) {
    %c0_i32 = arith.constant 0 : i32
    %c0_i32_0 = arith.constant 0 : i32
    return %arg0, %c0_i32 : i32, i32
  }
  func.func @transform_1(%arg0: i32) -> (i32, i32) {
    %c0_i32 = arith.constant 0 : i32
    %c0_i32_0 = arith.constant 0 : i32
    %c0_i32_1 = arith.constant 0 : i32
    return %c0_i32, %c0_i32_0 : i32, i32
  }
  func.func @transform_2(%arg0: i32) -> (i32, i32) {
    %c0_i32 = arith.constant 0 : i32
    %c0_i32_0 = arith.constant 0 : i32
    %c0_i32_1 = arith.constant 0 : i32
    return %c0_i32, %c0_i32_0 : i32, i32
  }
  func.func @transform_3(%arg0: i32) -> (i32, i32) {
    %c0_i32 = arith.constant 0 : i32
    %c0_i32_0 = arith.constant 0 : i32
    %c0_i32_1 = arith.constant 0 : i32
    return %c0_i32, %c0_i32_0 : i32, i32
  }
  func.func @transform_4(%arg0: i32) -> (i32, i32) {
    %c0_i32 = arith.constant 0 : i32
    %c0_i32_0 = arith.constant 0 : i32
    return %arg0, %c0_i32 : i32, i32
  }
}

module attributes {stable_mosaic.version = 11 : i64} {
  func.func @_bn_stats_kernel(%arg0: i32, %arg1: memref<128x256xf32, #tpu.memory_space<vmem>>, %arg2: memref<2x256xf32, #tpu.memory_space<vmem>>) attributes {dimension_semantics = [#tpu.dimension_semantics<arbitrary>], iteration_bounds = array<i64: 1>, scalar_prefetch = 0 : i64, scratch_operands = 0 : i64, tpu.core_type = #tpu.core_type<tc>, window_params = [{transform_indices = @transform_0, window_bounds = array<i64: 128, 256>}, {pipeline_mode = #tpu.pipeline_mode<synchronous>, transform_indices = @transform_1, window_bounds = array<i64: 2, 256>}]} {
    %c0_i32 = arith.constant 0 : i32
    %0 = arith.cmpi eq, %arg0, %c0_i32 : i32
    %1 = arith.extui %0 : i1 to i32
    %c0_i32_0 = arith.constant 0 : i32
    %2 = arith.cmpi ne, %1, %c0_i32_0 : i32
    scf.if %2 {
      %cst_7 = arith.constant 0.000000e+00 : f32
      %13 = vector.broadcast %cst_7 : f32 to vector<2x256xf32>
      %c0_8 = arith.constant 0 : index
      %c0_9 = arith.constant 0 : index
      %14 = vector.load %arg2[%c0_8, %c0_9] : memref<2x256xf32, #tpu.memory_space<vmem>>, vector<2x256xf32>
      tpu.vector_store %arg2[%c0_8, %c0_9], %13 {strides = array<i32>} : memref<2x256xf32, #tpu.memory_space<vmem>>, vector<2x256xf32>,
    } else {
    }
    %c0 = arith.constant 0 : index
    %c0_1 = arith.constant 0 : index
    %3 = vector.load %arg1[%c0, %c0_1] : memref<128x256xf32, #tpu.memory_space<vmem>>, vector<128x256xf32>
    %cst = arith.constant dense<0.000000e+00> : vector<256xf32>
    %4 = vector.multi_reduction <add>, %3, %cst [0] : vector<128x256xf32> to vector<256xf32>
    %5 = vector.shape_cast %4 : vector<256xf32> to vector<1x256xf32>
    %6 = arith.mulf %3, %3 : vector<128x256xf32>
    %cst_2 = arith.constant dense<0.000000e+00> : vector<256xf32>
    %7 = vector.multi_reduction <add>, %6, %cst_2 [0] : vector<128x256xf32> to vector<256xf32>
    %8 = vector.shape_cast %7 : vector<256xf32> to vector<1x256xf32>
    %c0_3 = arith.constant 0 : index
    %c0_4 = arith.constant 0 : index
    %9 = vector.load %arg2[%c0_3, %c0_4] : memref<2x256xf32, #tpu.memory_space<vmem>>, vector<2x256xf32>
    %10 = tpu.concatenate %5, %8 in 0 : vector<1x256xf32>, vector<1x256xf32> -> vector<2x256xf32>
    %11 = arith.addf %9, %10 : vector<2x256xf32>
    %c0_5 = arith.constant 0 : index
    %c0_6 = arith.constant 0 : index
    %12 = vector.load %arg2[%c0_5, %c0_6] : memref<2x256xf32, #tpu.memory_space<vmem>>, vector<2x256xf32>
    tpu.vector_store %arg2[%c0_5, %c0_6], %11 {strides = array<i32>} : memref<2x256xf32, #tpu.memory_space<vmem>>, vector<2x256xf32>,
    return
  }
  func.func @transform_0(%arg0: i32) -> (i32, i32) {
    %c0_i32 = arith.constant 0 : i32
    %c0_i32_0 = arith.constant 0 : i32
    return %arg0, %c0_i32 : i32, i32
  }
  func.func @transform_1(%arg0: i32) -> (i32, i32) {
    %c0_i32 = arith.constant 0 : i32
    %c0_i32_0 = arith.constant 0 : i32
    %c0_i32_1 = arith.constant 0 : i32
    return %c0_i32, %c0_i32_0 : i32, i32
  }
}

module attributes {stable_mosaic.version = 11 : i64} {
  func.func @_matmul_kernel(%arg0: i32, %arg1: i32, %arg2: memref<168x1024xbf16, #tpu.memory_space<vmem>>, %arg3: memref<1024x256xbf16, #tpu.memory_space<vmem>>, %arg4: memref<168x256xf32, #tpu.memory_space<vmem>>) attributes {dimension_semantics = [#tpu.dimension_semantics<parallel>, #tpu.dimension_semantics<parallel>], iteration_bounds = array<i64: 1, 2>, scalar_prefetch = 0 : i64, scratch_operands = 0 : i64, tpu.core_type = #tpu.core_type<tc>, window_params = [{transform_indices = @transform_0, window_bounds = array<i64: 168, 1024>}, {transform_indices = @transform_1, window_bounds = array<i64: 1024, 256>}, {transform_indices = @transform_2, window_bounds = array<i64: 168, 256>}]} {
    %c0 = arith.constant 0 : index
    %c0_0 = arith.constant 0 : index
    %0 = vector.load %arg2[%c0, %c0_0] : memref<168x1024xbf16, #tpu.memory_space<vmem>>, vector<168x1024xbf16>
    %c0_1 = arith.constant 0 : index
    %c0_2 = arith.constant 0 : index
    %1 = vector.load %arg3[%c0_1, %c0_2] : memref<1024x256xbf16, #tpu.memory_space<vmem>>, vector<1024x256xbf16>
    %cst = arith.constant dense<0.000000e+00> : vector<168x256xf32>
    %2 = tpu.matmul %0, %1, %cst {dimension_numbers = #tpu.dot_dimension_numbers<[1], [0], [0], [1], [0, 0, 1, 1], [], []>} : vector<168x1024xbf16>, vector<1024x256xbf16>, vector<168x256xf32> -> vector<168x256xf32>
    %c0_3 = arith.constant 0 : index
    %c0_4 = arith.constant 0 : index
    %3 = vector.load %arg4[%c0_3, %c0_4] : memref<168x256xf32, #tpu.memory_space<vmem>>, vector<168x256xf32>
    tpu.vector_store %arg4[%c0_3, %c0_4], %2 {strides = array<i32>} : memref<168x256xf32, #tpu.memory_space<vmem>>, vector<168x256xf32>,
    return
  }
  func.func @transform_0(%arg0: i32, %arg1: i32) -> (i32, i32) {
    %c0_i32 = arith.constant 0 : i32
    %c0_i32_0 = arith.constant 0 : i32
    return %arg0, %c0_i32 : i32, i32
  }
  func.func @transform_1(%arg0: i32, %arg1: i32) -> (i32, i32) {
    %c0_i32 = arith.constant 0 : i32
    %c0_i32_0 = arith.constant 0 : i32
    return %c0_i32, %arg1 : i32, i32
  }
  func.func @transform_2(%arg0: i32, %arg1: i32) -> (i32, i32) {
    %c0_i32 = arith.constant 0 : i32
    return %arg0, %arg1 : i32, i32
  }
}

module attributes {stable_mosaic.version = 11 : i64} {
  func.func @_bn_stats_kernel(%arg0: i32, %arg1: memref<512x128xf32, #tpu.memory_space<vmem>>, %arg2: memref<2x128xf32, #tpu.memory_space<vmem>>) attributes {dimension_semantics = [#tpu.dimension_semantics<arbitrary>], iteration_bounds = array<i64: 1>, scalar_prefetch = 0 : i64, scratch_operands = 0 : i64, tpu.core_type = #tpu.core_type<tc>, window_params = [{transform_indices = @transform_0, window_bounds = array<i64: 512, 128>}, {pipeline_mode = #tpu.pipeline_mode<synchronous>, transform_indices = @transform_1, window_bounds = array<i64: 2, 128>}]} {
    %c0_i32 = arith.constant 0 : i32
    %0 = arith.cmpi eq, %arg0, %c0_i32 : i32
    %1 = arith.extui %0 : i1 to i32
    %c0_i32_0 = arith.constant 0 : i32
    %2 = arith.cmpi ne, %1, %c0_i32_0 : i32
    scf.if %2 {
      %cst_7 = arith.constant 0.000000e+00 : f32
      %13 = vector.broadcast %cst_7 : f32 to vector<2x128xf32>
      %c0_8 = arith.constant 0 : index
      %c0_9 = arith.constant 0 : index
      %14 = vector.load %arg2[%c0_8, %c0_9] : memref<2x128xf32, #tpu.memory_space<vmem>>, vector<2x128xf32>
      tpu.vector_store %arg2[%c0_8, %c0_9], %13 {strides = array<i32>} : memref<2x128xf32, #tpu.memory_space<vmem>>, vector<2x128xf32>,
    } else {
    }
    %c0 = arith.constant 0 : index
    %c0_1 = arith.constant 0 : index
    %3 = vector.load %arg1[%c0, %c0_1] : memref<512x128xf32, #tpu.memory_space<vmem>>, vector<512x128xf32>
    %cst = arith.constant dense<0.000000e+00> : vector<128xf32>
    %4 = vector.multi_reduction <add>, %3, %cst [0] : vector<512x128xf32> to vector<128xf32>
    %5 = vector.shape_cast %4 : vector<128xf32> to vector<1x128xf32>
    %6 = arith.mulf %3, %3 : vector<512x128xf32>
    %cst_2 = arith.constant dense<0.000000e+00> : vector<128xf32>
    %7 = vector.multi_reduction <add>, %6, %cst_2 [0] : vector<512x128xf32> to vector<128xf32>
    %8 = vector.shape_cast %7 : vector<128xf32> to vector<1x128xf32>
    %c0_3 = arith.constant 0 : index
    %c0_4 = arith.constant 0 : index
    %9 = vector.load %arg2[%c0_3, %c0_4] : memref<2x128xf32, #tpu.memory_space<vmem>>, vector<2x128xf32>
    %10 = tpu.concatenate %5, %8 in 0 : vector<1x128xf32>, vector<1x128xf32> -> vector<2x128xf32>
    %11 = arith.addf %9, %10 : vector<2x128xf32>
    %c0_5 = arith.constant 0 : index
    %c0_6 = arith.constant 0 : index
    %12 = vector.load %arg2[%c0_5, %c0_6] : memref<2x128xf32, #tpu.memory_space<vmem>>, vector<2x128xf32>
    tpu.vector_store %arg2[%c0_5, %c0_6], %11 {strides = array<i32>} : memref<2x128xf32, #tpu.memory_space<vmem>>, vector<2x128xf32>,
    return
  }
  func.func @transform_0(%arg0: i32) -> (i32, i32) {
    %c0_i32 = arith.constant 0 : i32
    %c0_i32_0 = arith.constant 0 : i32
    return %arg0, %c0_i32 : i32, i32
  }
  func.func @transform_1(%arg0: i32) -> (i32, i32) {
    %c0_i32 = arith.constant 0 : i32
    %c0_i32_0 = arith.constant 0 : i32
    %c0_i32_1 = arith.constant 0 : i32
    return %c0_i32, %c0_i32_0 : i32, i32
  }
}

module attributes {stable_mosaic.version = 11 : i64} {
  func.func @_bn_apply_relu_kernel(%arg0: i32, %arg1: memref<512x128xf32, #tpu.memory_space<vmem>>, %arg2: memref<2x128xf32, #tpu.memory_space<vmem>>, %arg3: memref<1x128xf32, #tpu.memory_space<vmem>>, %arg4: memref<1x128xf32, #tpu.memory_space<vmem>>, %arg5: memref<512x128xf32, #tpu.memory_space<vmem>>) attributes {dimension_semantics = [#tpu.dimension_semantics<parallel>], iteration_bounds = array<i64: 1>, scalar_prefetch = 0 : i64, scratch_operands = 0 : i64, tpu.core_type = #tpu.core_type<tc>, window_params = [{transform_indices = @transform_0, window_bounds = array<i64: 512, 128>}, {pipeline_mode = #tpu.pipeline_mode<synchronous>, transform_indices = @transform_1, window_bounds = array<i64: 2, 128>}, {pipeline_mode = #tpu.pipeline_mode<synchronous>, transform_indices = @transform_2, window_bounds = array<i64: 1, 128>}, {pipeline_mode = #tpu.pipeline_mode<synchronous>, transform_indices = @transform_3, window_bounds = array<i64: 1, 128>}, {transform_indices = @transform_4, window_bounds = array<i64: 512, 128>}]} {
    %c0 = arith.constant 0 : index
    %c0_0 = arith.constant 0 : index
    %0 = vector.load %arg2[%c0, %c0_0] : memref<2x128xf32, #tpu.memory_space<vmem>>, vector<1x128xf32>
    %cst = arith.constant 0.001953125 : f32
    %1 = vector.broadcast %cst : f32 to vector<1x128xf32>
    %2 = arith.mulf %0, %1 : vector<1x128xf32>
    %c1 = arith.constant 1 : index
    %c0_1 = arith.constant 0 : index
    %3 = vector.load %arg2[%c1, %c0_1] : memref<2x128xf32, #tpu.memory_space<vmem>>, vector<1x128xf32>
    %cst_2 = arith.constant 0.001953125 : f32
    %4 = vector.broadcast %cst_2 : f32 to vector<1x128xf32>
    %5 = arith.mulf %3, %4 : vector<1x128xf32>
    %6 = arith.mulf %2, %2 : vector<1x128xf32>
    %7 = arith.subf %5, %6 : vector<1x128xf32>
    %cst_3 = arith.constant 9.99999974E-6 : f32
    %8 = vector.broadcast %cst_3 : f32 to vector<1x128xf32>
    %9 = arith.addf %7, %8 : vector<1x128xf32>
    %10 = math.rsqrt %9 : vector<1x128xf32>
    %c0_4 = arith.constant 0 : index
    %c0_5 = arith.constant 0 : index
    %11 = vector.load %arg1[%c0_4, %c0_5] : memref<512x128xf32, #tpu.memory_space<vmem>>, vector<512x128xf32>
    %12 = vector.broadcast %2 : vector<1x128xf32> to vector<512x128xf32>
    %13 = arith.subf %11, %12 : vector<512x128xf32>
    %c0_6 = arith.constant 0 : index
    %c0_7 = arith.constant 0 : index
    %14 = vector.load %arg3[%c0_6, %c0_7] : memref<1x128xf32, #tpu.memory_space<vmem>>, vector<1x128xf32>
    %15 = arith.mulf %10, %14 : vector<1x128xf32>
    %16 = vector.broadcast %15 : vector<1x128xf32> to vector<512x128xf32>
    %17 = arith.mulf %13, %16 : vector<512x128xf32>
    %c0_8 = arith.constant 0 : index
    %c0_9 = arith.constant 0 : index
    %18 = vector.load %arg4[%c0_8, %c0_9] : memref<1x128xf32, #tpu.memory_space<vmem>>, vector<1x128xf32>
    %19 = vector.broadcast %18 : vector<1x128xf32> to vector<512x128xf32>
    %20 = arith.addf %17, %19 : vector<512x128xf32>
    %cst_10 = arith.constant 0.000000e+00 : f32
    %21 = vector.broadcast %cst_10 : f32 to vector<512x128xf32>
    %22 = arith.maximumf %20, %21 : vector<512x128xf32>
    %c0_11 = arith.constant 0 : index
    %c0_12 = arith.constant 0 : index
    %23 = vector.load %arg5[%c0_11, %c0_12] : memref<512x128xf32, #tpu.memory_space<vmem>>, vector<512x128xf32>
    tpu.vector_store %arg5[%c0_11, %c0_12], %22 {strides = array<i32>} : memref<512x128xf32, #tpu.memory_space<vmem>>, vector<512x128xf32>,
    return
  }
  func.func @transform_0(%arg0: i32) -> (i32, i32) {
    %c0_i32 = arith.constant 0 : i32
    %c0_i32_0 = arith.constant 0 : i32
    return %arg0, %c0_i32 : i32, i32
  }
  func.func @transform_1(%arg0: i32) -> (i32, i32) {
    %c0_i32 = arith.constant 0 : i32
    %c0_i32_0 = arith.constant 0 : i32
    %c0_i32_1 = arith.constant 0 : i32
    return %c0_i32, %c0_i32_0 : i32, i32
  }
  func.func @transform_2(%arg0: i32) -> (i32, i32) {
    %c0_i32 = arith.constant 0 : i32
    %c0_i32_0 = arith.constant 0 : i32
    %c0_i32_1 = arith.constant 0 : i32
    return %c0_i32, %c0_i32_0 : i32, i32
  }
  func.func @transform_3(%arg0: i32) -> (i32, i32) {
    %c0_i32 = arith.constant 0 : i32
    %c0_i32_0 = arith.constant 0 : i32
    %c0_i32_1 = arith.constant 0 : i32
    return %c0_i32, %c0_i32_0 : i32, i32
  }
  func.func @transform_4(%arg0: i32) -> (i32, i32) {
    %c0_i32 = arith.constant 0 : i32
    %c0_i32_0 = arith.constant 0 : i32
    return %arg0, %c0_i32 : i32, i32
  }
}

module attributes {stable_mosaic.version = 11 : i64} {
  func.func @_matmul_kernel(%arg0: i32, %arg1: i32, %arg2: memref<256x512xbf16, #tpu.memory_space<vmem>>, %arg3: memref<512x256xbf16, #tpu.memory_space<vmem>>, %arg4: memref<256x256xf32, #tpu.memory_space<vmem>>) attributes {dimension_semantics = [#tpu.dimension_semantics<parallel>, #tpu.dimension_semantics<parallel>], iteration_bounds = array<i64: 3, 1>, scalar_prefetch = 0 : i64, scratch_operands = 0 : i64, tpu.core_type = #tpu.core_type<tc>, window_params = [{transform_indices = @transform_0, window_bounds = array<i64: 256, 512>}, {transform_indices = @transform_1, window_bounds = array<i64: 512, 256>}, {transform_indices = @transform_2, window_bounds = array<i64: 256, 256>}]} {
    %c0 = arith.constant 0 : index
    %c0_0 = arith.constant 0 : index
    %0 = vector.load %arg2[%c0, %c0_0] : memref<256x512xbf16, #tpu.memory_space<vmem>>, vector<256x512xbf16>
    %c0_1 = arith.constant 0 : index
    %c0_2 = arith.constant 0 : index
    %1 = vector.load %arg3[%c0_1, %c0_2] : memref<512x256xbf16, #tpu.memory_space<vmem>>, vector<512x256xbf16>
    %cst = arith.constant dense<0.000000e+00> : vector<256x256xf32>
    %2 = tpu.matmul %0, %1, %cst {dimension_numbers = #tpu.dot_dimension_numbers<[1], [0], [0], [1], [0, 0, 1, 1], [], []>} : vector<256x512xbf16>, vector<512x256xbf16>, vector<256x256xf32> -> vector<256x256xf32>
    %c0_3 = arith.constant 0 : index
    %c0_4 = arith.constant 0 : index
    %3 = vector.load %arg4[%c0_3, %c0_4] : memref<256x256xf32, #tpu.memory_space<vmem>>, vector<256x256xf32>
    tpu.vector_store %arg4[%c0_3, %c0_4], %2 {strides = array<i32>} : memref<256x256xf32, #tpu.memory_space<vmem>>, vector<256x256xf32>,
    return
  }
  func.func @transform_0(%arg0: i32, %arg1: i32) -> (i32, i32) {
    %c0_i32 = arith.constant 0 : i32
    %c0_i32_0 = arith.constant 0 : i32
    return %arg0, %c0_i32 : i32, i32
  }
  func.func @transform_1(%arg0: i32, %arg1: i32) -> (i32, i32) {
    %c0_i32 = arith.constant 0 : i32
    %c0_i32_0 = arith.constant 0 : i32
    return %c0_i32, %arg1 : i32, i32
  }
  func.func @transform_2(%arg0: i32, %arg1: i32) -> (i32, i32) {
    %c0_i32 = arith.constant 0 : i32
    return %arg0, %arg1 : i32, i32
  }
}

module attributes {stable_mosaic.version = 11 : i64} {
  func.func @_bn_stats_kernel(%arg0: i32, %arg1: memref<1024x64xf32, #tpu.memory_space<vmem>>, %arg2: memref<2x64xf32, #tpu.memory_space<vmem>>) attributes {dimension_semantics = [#tpu.dimension_semantics<arbitrary>], iteration_bounds = array<i64: 2>, scalar_prefetch = 0 : i64, scratch_operands = 0 : i64, tpu.core_type = #tpu.core_type<tc>, window_params = [{transform_indices = @transform_0, window_bounds = array<i64: 1024, 64>}, {pipeline_mode = #tpu.pipeline_mode<synchronous>, transform_indices = @transform_1, window_bounds = array<i64: 2, 64>}]} {
    %c0_i32 = arith.constant 0 : i32
    %0 = arith.cmpi eq, %arg0, %c0_i32 : i32
    %1 = arith.extui %0 : i1 to i32
    %c0_i32_0 = arith.constant 0 : i32
    %2 = arith.cmpi ne, %1, %c0_i32_0 : i32
    scf.if %2 {
      %cst_7 = arith.constant 0.000000e+00 : f32
      %13 = vector.broadcast %cst_7 : f32 to vector<2x64xf32>
      %c0_8 = arith.constant 0 : index
      %c0_9 = arith.constant 0 : index
      %14 = vector.load %arg2[%c0_8, %c0_9] : memref<2x64xf32, #tpu.memory_space<vmem>>, vector<2x64xf32>
      tpu.vector_store %arg2[%c0_8, %c0_9], %13 {strides = array<i32>} : memref<2x64xf32, #tpu.memory_space<vmem>>, vector<2x64xf32>,
    } else {
    }
    %c0 = arith.constant 0 : index
    %c0_1 = arith.constant 0 : index
    %3 = vector.load %arg1[%c0, %c0_1] : memref<1024x64xf32, #tpu.memory_space<vmem>>, vector<1024x64xf32>
    %cst = arith.constant dense<0.000000e+00> : vector<64xf32>
    %4 = vector.multi_reduction <add>, %3, %cst [0] : vector<1024x64xf32> to vector<64xf32>
    %5 = vector.shape_cast %4 : vector<64xf32> to vector<1x64xf32>
    %6 = arith.mulf %3, %3 : vector<1024x64xf32>
    %cst_2 = arith.constant dense<0.000000e+00> : vector<64xf32>
    %7 = vector.multi_reduction <add>, %6, %cst_2 [0] : vector<1024x64xf32> to vector<64xf32>
    %8 = vector.shape_cast %7 : vector<64xf32> to vector<1x64xf32>
    %c0_3 = arith.constant 0 : index
    %c0_4 = arith.constant 0 : index
    %9 = vector.load %arg2[%c0_3, %c0_4] : memref<2x64xf32, #tpu.memory_space<vmem>>, vector<2x64xf32>
    %10 = tpu.concatenate %5, %8 in 0 : vector<1x64xf32>, vector<1x64xf32> -> vector<2x64xf32>
    %11 = arith.addf %9, %10 : vector<2x64xf32>
    %c0_5 = arith.constant 0 : index
    %c0_6 = arith.constant 0 : index
    %12 = vector.load %arg2[%c0_5, %c0_6] : memref<2x64xf32, #tpu.memory_space<vmem>>, vector<2x64xf32>
    tpu.vector_store %arg2[%c0_5, %c0_6], %11 {strides = array<i32>} : memref<2x64xf32, #tpu.memory_space<vmem>>, vector<2x64xf32>,
    return
  }
  func.func @transform_0(%arg0: i32) -> (i32, i32) {
    %c0_i32 = arith.constant 0 : i32
    %c0_i32_0 = arith.constant 0 : i32
    return %arg0, %c0_i32 : i32, i32
  }
  func.func @transform_1(%arg0: i32) -> (i32, i32) {
    %c0_i32 = arith.constant 0 : i32
    %c0_i32_0 = arith.constant 0 : i32
    %c0_i32_1 = arith.constant 0 : i32
    return %c0_i32, %c0_i32_0 : i32, i32
  }
}

module attributes {stable_mosaic.version = 11 : i64} {
  func.func @_bn_apply_relu_kernel(%arg0: i32, %arg1: memref<1024x64xf32, #tpu.memory_space<vmem>>, %arg2: memref<2x64xf32, #tpu.memory_space<vmem>>, %arg3: memref<1x64xf32, #tpu.memory_space<vmem>>, %arg4: memref<1x64xf32, #tpu.memory_space<vmem>>, %arg5: memref<1024x64xf32, #tpu.memory_space<vmem>>) attributes {dimension_semantics = [#tpu.dimension_semantics<parallel>], iteration_bounds = array<i64: 2>, scalar_prefetch = 0 : i64, scratch_operands = 0 : i64, tpu.core_type = #tpu.core_type<tc>, window_params = [{transform_indices = @transform_0, window_bounds = array<i64: 1024, 64>}, {pipeline_mode = #tpu.pipeline_mode<synchronous>, transform_indices = @transform_1, window_bounds = array<i64: 2, 64>}, {pipeline_mode = #tpu.pipeline_mode<synchronous>, transform_indices = @transform_2, window_bounds = array<i64: 1, 64>}, {pipeline_mode = #tpu.pipeline_mode<synchronous>, transform_indices = @transform_3, window_bounds = array<i64: 1, 64>}, {transform_indices = @transform_4, window_bounds = array<i64: 1024, 64>}]} {
    %c0 = arith.constant 0 : index
    %c0_0 = arith.constant 0 : index
    %0 = vector.load %arg2[%c0, %c0_0] : memref<2x64xf32, #tpu.memory_space<vmem>>, vector<1x64xf32>
    %cst = arith.constant 4.8828125E-4 : f32
    %1 = vector.broadcast %cst : f32 to vector<1x64xf32>
    %2 = arith.mulf %0, %1 : vector<1x64xf32>
    %c1 = arith.constant 1 : index
    %c0_1 = arith.constant 0 : index
    %3 = vector.load %arg2[%c1, %c0_1] : memref<2x64xf32, #tpu.memory_space<vmem>>, vector<1x64xf32>
    %cst_2 = arith.constant 4.8828125E-4 : f32
    %4 = vector.broadcast %cst_2 : f32 to vector<1x64xf32>
    %5 = arith.mulf %3, %4 : vector<1x64xf32>
    %6 = arith.mulf %2, %2 : vector<1x64xf32>
    %7 = arith.subf %5, %6 : vector<1x64xf32>
    %cst_3 = arith.constant 9.99999974E-6 : f32
    %8 = vector.broadcast %cst_3 : f32 to vector<1x64xf32>
    %9 = arith.addf %7, %8 : vector<1x64xf32>
    %10 = math.rsqrt %9 : vector<1x64xf32>
    %c0_4 = arith.constant 0 : index
    %c0_5 = arith.constant 0 : index
    %11 = vector.load %arg1[%c0_4, %c0_5] : memref<1024x64xf32, #tpu.memory_space<vmem>>, vector<1024x64xf32>
    %12 = vector.broadcast %2 : vector<1x64xf32> to vector<1024x64xf32>
    %13 = arith.subf %11, %12 : vector<1024x64xf32>
    %c0_6 = arith.constant 0 : index
    %c0_7 = arith.constant 0 : index
    %14 = vector.load %arg3[%c0_6, %c0_7] : memref<1x64xf32, #tpu.memory_space<vmem>>, vector<1x64xf32>
    %15 = arith.mulf %10, %14 : vector<1x64xf32>
    %16 = vector.broadcast %15 : vector<1x64xf32> to vector<1024x64xf32>
    %17 = arith.mulf %13, %16 : vector<1024x64xf32>
    %c0_8 = arith.constant 0 : index
    %c0_9 = arith.constant 0 : index
    %18 = vector.load %arg4[%c0_8, %c0_9] : memref<1x64xf32, #tpu.memory_space<vmem>>, vector<1x64xf32>
    %19 = vector.broadcast %18 : vector<1x64xf32> to vector<1024x64xf32>
    %20 = arith.addf %17, %19 : vector<1024x64xf32>
    %cst_10 = arith.constant 0.000000e+00 : f32
    %21 = vector.broadcast %cst_10 : f32 to vector<1024x64xf32>
    %22 = arith.maximumf %20, %21 : vector<1024x64xf32>
    %c0_11 = arith.constant 0 : index
    %c0_12 = arith.constant 0 : index
    %23 = vector.load %arg5[%c0_11, %c0_12] : memref<1024x64xf32, #tpu.memory_space<vmem>>, vector<1024x64xf32>
    tpu.vector_store %arg5[%c0_11, %c0_12], %22 {strides = array<i32>} : memref<1024x64xf32, #tpu.memory_space<vmem>>, vector<1024x64xf32>,
    return
  }
  func.func @transform_0(%arg0: i32) -> (i32, i32) {
    %c0_i32 = arith.constant 0 : i32
    %c0_i32_0 = arith.constant 0 : i32
    return %arg0, %c0_i32 : i32, i32
  }
  func.func @transform_1(%arg0: i32) -> (i32, i32) {
    %c0_i32 = arith.constant 0 : i32
    %c0_i32_0 = arith.constant 0 : i32
    %c0_i32_1 = arith.constant 0 : i32
    return %c0_i32, %c0_i32_0 : i32, i32
  }
  func.func @transform_2(%arg0: i32) -> (i32, i32) {
    %c0_i32 = arith.constant 0 : i32
    %c0_i32_0 = arith.constant 0 : i32
    %c0_i32_1 = arith.constant 0 : i32
    return %c0_i32, %c0_i32_0 : i32, i32
  }
  func.func @transform_3(%arg0: i32) -> (i32, i32) {
    %c0_i32 = arith.constant 0 : i32
    %c0_i32_0 = arith.constant 0 : i32
    %c0_i32_1 = arith.constant 0 : i32
    return %c0_i32, %c0_i32_0 : i32, i32
  }
  func.func @transform_4(%arg0: i32) -> (i32, i32) {
    %c0_i32 = arith.constant 0 : i32
    %c0_i32_0 = arith.constant 0 : i32
    return %arg0, %c0_i32 : i32, i32
  }
}

module attributes {stable_mosaic.version = 11 : i64} {
  func.func @_matmul_kernel(%arg0: i32, %arg1: i32, %arg2: memref<256x256xbf16, #tpu.memory_space<vmem>>, %arg3: memref<256x128xbf16, #tpu.memory_space<vmem>>, %arg4: memref<256x128xf32, #tpu.memory_space<vmem>>) attributes {dimension_semantics = [#tpu.dimension_semantics<parallel>, #tpu.dimension_semantics<parallel>], iteration_bounds = array<i64: 9, 1>, scalar_prefetch = 0 : i64, scratch_operands = 0 : i64, tpu.core_type = #tpu.core_type<tc>, window_params = [{transform_indices = @transform_0, window_bounds = array<i64: 256, 256>}, {transform_indices = @transform_1, window_bounds = array<i64: 256, 128>}, {transform_indices = @transform_2, window_bounds = array<i64: 256, 128>}]} {
    %c0 = arith.constant 0 : index
    %c0_0 = arith.constant 0 : index
    %0 = vector.load %arg2[%c0, %c0_0] : memref<256x256xbf16, #tpu.memory_space<vmem>>, vector<256x256xbf16>
    %c0_1 = arith.constant 0 : index
    %c0_2 = arith.constant 0 : index
    %1 = vector.load %arg3[%c0_1, %c0_2] : memref<256x128xbf16, #tpu.memory_space<vmem>>, vector<256x128xbf16>
    %cst = arith.constant dense<0.000000e+00> : vector<256x128xf32>
    %2 = tpu.matmul %0, %1, %cst {dimension_numbers = #tpu.dot_dimension_numbers<[1], [0], [0], [1], [0, 0, 1, 1], [], []>} : vector<256x256xbf16>, vector<256x128xbf16>, vector<256x128xf32> -> vector<256x128xf32>
    %3 = math.tanh %2 : vector<256x128xf32>
    %c0_3 = arith.constant 0 : index
    %c0_4 = arith.constant 0 : index
    %4 = vector.load %arg4[%c0_3, %c0_4] : memref<256x128xf32, #tpu.memory_space<vmem>>, vector<256x128xf32>
    tpu.vector_store %arg4[%c0_3, %c0_4], %3 {strides = array<i32>} : memref<256x128xf32, #tpu.memory_space<vmem>>, vector<256x128xf32>,
    return
  }
  func.func @transform_0(%arg0: i32, %arg1: i32) -> (i32, i32) {
    %c0_i32 = arith.constant 0 : i32
    %c0_i32_0 = arith.constant 0 : i32
    return %arg0, %c0_i32 : i32, i32
  }
  func.func @transform_1(%arg0: i32, %arg1: i32) -> (i32, i32) {
    %c0_i32 = arith.constant 0 : i32
    %c0_i32_0 = arith.constant 0 : i32
    return %c0_i32, %arg1 : i32, i32
  }
  func.func @transform_2(%arg0: i32, %arg1: i32) -> (i32, i32) {
    %c0_i32 = arith.constant 0 : i32
    return %arg0, %arg1 : i32, i32
  }
}

</mosaic_0001>

<bundles_post_ra>
// kernel: generator_forward.13
= control target key start
LH: loop header
LB: loop body
LE: loop exit
PB: predicated region body
PF: predicated region fallthrough
CT: control target
= control target key end

     0   :  { %7 = vsyncpa [#allocation3], 0  ;;  %s815_s0 = inlined_call_operand.vmem [shape: bf16[8,128], index: 0, kind: input, shape index: {}]   ;;  %s816_s1 = inlined_call_operand.hbm [shape: bf16[128,8192], index: 1, kind: input, shape index: {}]   ;;  %s817_s2 = inlined_call_operand.vmem [shape: f32[8,8192], index: 2, kind: output, shape index: {}]  }
   0x1   :  { %9 = vsyncpa [#allocation3 + $0x1], 0  ;;  %s669_s9 = smov 0   ;;  %s671_s10 = smov 0  }
   0x2   :  { %s673_s11 = smov 0   ;;  %s675_s12 = smov 0  }
   0x3   :  { %s677_s13 = smov 0   ;;  %s679_s14 = smov 0  }
   0x4 LB: > { %s453_s15 = sadd.s32 4294967295, %s647_s14   ;;  %s24_s16 = sadd.s32 1, %s643_s13  ;;  %s647_s14 = sphi %s679_s14, %s15_s14   ;;  %s643_s13 = sphi %s677_s13, %s826_s13   ;;  %s639_s12 = sphi %s675_s12, %s825_s12   ;;  %s635_s11 = sphi %s673_s11, %s824_s11   ;;  %s631_s10 = sphi %s671_s10, %s823_s10   ;;  %s627_s9 = sphi %s669_s9, %s822_s9  }
   0x5   : > { %p25_p0 = scmp.ge.s32.totalorder %s24_s16, 32  ;;  %s60_s17 = sadd.s32 1, %s635_s11 }
   0x6   : > { %p67_p1 = scmp.ne.s32.totalorder %s635_s11, %s631_s10  ;;  %p68_p2 = scmp.eq.s32.totalorder %s647_s14, 0 }
   0x7   : > { %s828_s16 = smov (%p25_p0, %s24_s16), 0  ;;  %p73_p4 = scmp.ne.s32.totalorder %s631_s10, %s627_s9 }
   0x8   : > { %p705_p3 = por %p68_p2, %p67_p1  ;;  %s57_s19 = ssub.s32 %s643_s13, %s828_s16 }
   0x9   : > { %p74_p5 = scmp.eq.s32.totalorder %s453_s15, 0  ;;  %p58_p6 = scmp.eq.s32.totalorder %s57_s19, 0 }
   0xa   : > { %p490_p8 = scmp.lt.s32.totalorder %s647_s14, 32  ;;  %s132_s22 = sand.u32 1, %s635_s11  }
   0xb   : > { %p712_p7 = por %p74_p5, %p73_p4  ;;  %s483_s23 = sshll.u32 %s643_s13, 7 }
   0xc   : > { %s718_s21 = scalar_select %p58_p6, %s635_s11, %s60_s17  }
   0xd   : > { %s458_s24 = sshll.u32 %s132_s22, 7  ;;  %s725_s27 = scalar_lea.hbm %s816_s1, %s483_s23 }
   0xe   : > { %s136_s28 = scalar_lea.vmem [#allocation2], %s458_s24  ;;  %p729_p9 = pnand %p490_p8, %p705_p3 }
   0xf   : > { %s143_s29 = sshll.u32 %s136_s28, 4  ;;  %s736_s3 = scalar_lea.sflag [#allocation3], %s132_s22  ;;  %s733_s29 = int_to_ptr.vmem [resolvable:$true] %s143_s29 }
  0x10   : > { %s567_s4 = scalar_lea.hbm %s725_s27, 2048  ;;  %p569_p12 = pneg %p729_p9 }
  0x11   : > { %p568_p11 = scmp.ne.s32.totalorder %s725_s27, %s567_s4  ;;  %s572_s7 = scalar_lea.hbm %s816_s1, 65536 }
  0x12   : > { %p573_p1 = scmp.lt.u32.totalorder %s725_s27, %s816_s1  ;;  %p574_p2 = scmp.lt.u32.totalorder %s572_s7, %s567_s4 }
  0x13   : > { %p570_p13 = pnand %p569_p12, %p568_p11  ;;  %p576_p4 = scmp.lt.u32.totalorder %s567_s4, %s725_s27 }
  0x14   : > { %p575_p3 = por %p574_p2, %p573_p1 }
  0x15   : > { %p571_p0 = pneg %p570_p13 }
  0x16   : > { %p577_p5 = por %p576_p4, %p575_p3 }
  0x18   : > { %p578_p6 = pnand %p577_p5, %p571_p0 }
  0x1a   : > { %581 = shalt.err (!%p578_p6)
}
  0x1b   : > { %s582_s15 = scalar_lea.vmem %s733_s29, 2048  ;;  %s649_s17 = smov [#allocation2]  }
  0x1c   : > { %p583_p8 = scmp.ne.s32.totalorder %s733_s29, %s582_s15  ;;  %s587_s18 = sshll.u32 %s649_s17, 4  ;;  %s588_s18 = int_to_ptr.vmem [resolvable:$false] %s587_s18 }
  0x1d   : > { %s589_s19 = scalar_lea.vmem %s588_s18, 4096  ;;  %p590_p10 = scmp.lt.s32.totalorder %s733_s29, %s588_s18 }
  0x1e   : > { %p585_p11 = pnand %p583_p8, %p569_p12  ;;  %p591_p1 = scmp.lt.s32.totalorder %s589_s19, %s582_s15 }
  0x20   : > { %p586_p13 = pneg %p585_p11  ;;  %p592_p2 = por %p591_p1, %p590_p10 }
  0x22   : > { %p593_p3 = pnand %p592_p2, %p586_p13 }
  0x24   : > { %596 = shalt.err (!%p593_p3)
}
  0x25   : > { %s650_s22 = smov 4096   ;;  %s651_s23 = smov 128  }
  0x26   : > { %s652_s24 = smov 8   ;;  %p151_p12 = scmp.lt.s32.totalorder %s647_s14, 33 }
  0x27   : > { %489 = dma.hbm_to_vmem [thread:$0]  (!%p729_p9), %s725_s27, 2048, %s733_s29, %s736_s3, %s650_s22, %s651_s23, %s652_s24  }
  0x28   : > { %p821_p0 = scmp.ge.s32.totalorder %s647_s14, 1 }
  0x2a   : > { %p152_p4 = pnand %p821_p0, %p151_p12 }
  0x2b   : > { %s157_s25 = sand.u32 (!%p152_p4), 1, %s631_s10  }
  0x2c   : > { %155 = sbr.rel (%p152_p4) target bundleno = 300 (0x12c), region = 28  ;;  %s462_s26 = sshll.u32 (!%p152_p4), %s157_s25, 7 }
  0x2d   : > { %s158_s28 = scalar_lea.sflag (!%p152_p4), [#allocation3], %s157_s25  ;;  %s768_s4 = scalar_lea.vmem (!%p152_p4), [#allocation2], %s462_s26 }
  0x33   : > { %622 = dma.done.wait (%p712_p7), %s158_s28, 2048  }
  0x34   : > { %624 = vsyncadd (%p712_p7), %s158_s28, 4294965248  ;;  %v653_v0 = vmov 0   ;;  %v543_v1 = vld [vmem:[%s768_s4 + $0x4] ss:$8 sps:$4 sm:$0xff]   ;;  %v545_v2 = vld [vmem:[%s768_s4] ss:$8 sps:$4 sm:$0xff]  }
  0x35   : > { %335 = vmatprep.mubr.bf16.mxu0 %v653_v0  ;;  %303 = vmatprep.subr.bf16.mxu0 %v543_v1  ;;  %v546_v3 = vld [vmem:[%s768_s4 + $0x14] ss:$8 sps:$4 sm:$0xff]   ;;  %v548_v4 = vld [vmem:[%s768_s4 + $0x10] ss:$8 sps:$4 sm:$0xff]   ;;  %v549_v5 = vld [vmem:[%s768_s4 + $0x24] ss:$8 sps:$4 sm:$0xff]  }
  0x36   : > { %304 = vmatpush1.bf16.msra.mxu0 %v545_v2  ;;  %v551_v6 = vld [vmem:[%s768_s4 + $0x20] ss:$8 sps:$4 sm:$0xff]   ;;  %v552_v7 = vld [vmem:[%s768_s4 + $0x34] ss:$8 sps:$4 sm:$0xff]   ;;  %v554_v8 = vld [vmem:[%s768_s4 + $0x30] ss:$8 sps:$4 sm:$0xff]  }
  0x37   : > { %305 = vmatprep.subr.bf16.mxu0 %v546_v3  ;;  %v555_v9 = vld [vmem:[%s768_s4 + $0x44] ss:$8 sps:$4 sm:$0xff]   ;;  %v557_v10 = vld [vmem:[%s768_s4 + $0x40] ss:$8 sps:$4 sm:$0xff]   ;;  %v558_v11 = vld [vmem:[%s768_s4 + $0x54] ss:$8 sps:$4 sm:$0xff]  }
  0x38   : > { %v560_v12 = vld [vmem:[%s768_s4 + $0x50] ss:$8 sps:$4 sm:$0xff]   ;;  %v561_v13 = vld [vmem:[%s768_s4 + $0x64] ss:$8 sps:$4 sm:$0xff]   ;;  %v563_v14 = vld [vmem:[%s768_s4 + $0x60] ss:$8 sps:$4 sm:$0xff]  }
  0x39   : > { %v564_v15 = vld [vmem:[%s768_s4 + $0x74] ss:$8 sps:$4 sm:$0xff]   ;;  %v566_v16 = vld [vmem:[%s768_s4 + $0x70] ss:$8 sps:$4 sm:$0xff]   ;;  %v206_v17 = vld [vmem:[%s815_s0] sm:$0xf] }
  0x3a   : > { %306 = vmatpush1.bf16.msra.mxu0 %v548_v4  ;;  %s463_s29 = sshll.u32 %s639_s12, 1 }
  0x3b   : > { %307 = vmatprep.subr.bf16.mxu0 %v549_v5  ;;  %p198_p7 = scmp.lt.s32.totalorder %s463_s29, 63 }
  0x3d   : > { %s830_s29 = smov (!%p198_p7, %s463_s29), 63 }
  0x3e   : > { %308 = vmatpush1.bf16.msra.mxu0 %v551_v6  ;;  %s464_s30 = sshll.u32 %s830_s29, 3 }
  0x3f   : > { %309 = vmatprep.subr.bf16.mxu0 %v552_v7  ;;  %s203_s6 = scalar_lea.vmem %s817_s2, %s464_s30 }
  0x42   : > { %310 = vmatpush1.bf16.msra.mxu0 %v554_v8 }
  0x43   : > { %311 = vmatprep.subr.bf16.mxu0 %v555_v9 }
  0x46   : > { %312 = vmatpush1.bf16.msra.mxu0 %v557_v10 }
  0x47   : > { %313 = vmatprep.subr.bf16.mxu0 %v558_v11 }
  0x4a   : > { %314 = vmatpush1.bf16.msra.mxu0 %v560_v12 }
  0x4b   : > { %315 = vmatprep.subr.bf16.mxu0 %v561_v13 }
  0x4e   : > { %316 = vmatpush1.bf16.msra.mxu0 %v563_v14 }
  0x4f   : > { %317 = vmatprep.subr.bf16.mxu0 %v564_v15 }
  0x52   : > { %318 = vmatpush1.bf16.msra.mxu0 %v566_v16 }
  0x55   : > { %336 = vmatmul.mubr.bf16.vlgmr.msra.gmra.mrb[0].mxu0 %v206_v17 }
 0x128   : > { %v337_v18 = vpop.f32.mrb[0].mxu0 }
 0x129   : > { %344 = vst [vmem:[%s203_s6] sm:$0xff] %v337_v18  ;;  %v339_v19 = vpop.f32.mrb[1].mxu0 }
 0x12a   : > { %345 = vst [vmem:[%s203_s6 + $0x8] sm:$0xff] %v339_v19  ;;  %v341_v20 = vpop.f32.mrb[2].mxu0 }
 0x12b   : > { %v342_v21 = vpop.f32.mrb[3].mxu0 }
 0x12c PF: > { %s15_s14 = sadd.s32 1, %s647_s14   ;;  %s822_s9 = smov %s631_s10 }
 0x12d   : > { %p12_p9 = scmp.ge.s32.totalorder %s15_s14, 34   ;;  %s823_s10 = smov %s635_s11 }
 0x12e   : > { %s824_s11 = smov %s718_s21  ;;  %s825_s12 = smov %s643_s13 }
 0x12f   : > { %s826_s13 = smov %s828_s16  ;;  %14 = sbr.rel (!%p12_p9) target bundleno = 4 (0x4), region = 71 }
 0x136   :  { %376 = vsyncpa [#allocation3], 1 }
 0x137   :  { %378 = vsyncpa [#allocation3 + $0x1], 1 }

// kernel: generator_forward.14
= control target key start
LH: loop header
LB: loop body
LE: loop exit
PB: predicated region body
PF: predicated region fallthrough
CT: control target
= control target key end

     0   :  { %vm118_vm0 = vcmask 1040384   ;;  %s219_s0 = inlined_call_operand.vmem [shape: f32[32,512], index: 0, kind: input, shape index: {}]   ;;  %s220_s1 = inlined_call_operand.vmem [shape: f32[2,512], index: 1, kind: output, shape index: {}]  }
   0x1   :  { %v13_v0 = vld [vmem:[%s219_s0] sm:$0xff]  ;;  %v14_v1 = vld [vmem:[%s219_s0 + $0x8] sm:$0xff]  ;;  %v15_v2 = vld [vmem:[%s219_s0 + $0x10] sm:$0xff] }
   0x2   :  { %v16_v3 = vld [vmem:[%s219_s0 + $0x18] sm:$0xff]  ;;  %v17_v4 = vld [vmem:[%s219_s0 + $0x20] sm:$0xff]  ;;  %v18_v5 = vld [vmem:[%s219_s0 + $0x28] sm:$0xff]  ;;  %v65_v6 = vmul.f32 %v13_v0, %v13_v0  ;;  %v66_v7 = vmul.f32 %v14_v1, %v14_v1  ;;  %v67_v8 = vmul.f32 %v15_v2, %v15_v2 }
   0x3   :  { %v19_v9 = vld [vmem:[%s219_s0 + $0x30] sm:$0xff]  ;;  %v20_v10 = vld [vmem:[%s219_s0 + $0x38] sm:$0xff]  ;;  %v21_v11 = vld [vmem:[%s219_s0 + $0x40] sm:$0xff]  ;;  %v29_v12 = vadd.f32 %v17_v4, %v13_v0  ;;  %v38_v13 = vadd.f32 %v18_v5, %v14_v1  ;;  %v68_v14 = vmul.f32 %v16_v3, %v16_v3  ;;  %v69_v15 = vmul.f32 %v17_v4, %v17_v4 }
   0x4   :  { %v22_v16 = vld [vmem:[%s219_s0 + $0x48] sm:$0xff]  ;;  %v23_v17 = vld [vmem:[%s219_s0 + $0x50] sm:$0xff]  ;;  %v24_v18 = vld [vmem:[%s219_s0 + $0x58] sm:$0xff]  ;;  %v47_v19 = vadd.f32 %v19_v9, %v15_v2  ;;  %v56_v20 = vadd.f32 %v20_v10, %v16_v3  ;;  %v70_v21 = vmul.f32 %v18_v5, %v18_v5  ;;  %v71_v22 = vmul.f32 %v19_v9, %v19_v9 }
   0x5   :  { %v25_v23 = vld [vmem:[%s219_s0 + $0x60] sm:$0xff]  ;;  %v26_v24 = vld [vmem:[%s219_s0 + $0x68] sm:$0xff]  ;;  %v27_v25 = vld [vmem:[%s219_s0 + $0x70] sm:$0xff]  ;;  %v30_v26 = vadd.f32 %v29_v12, %v21_v11  ;;  %v39_v27 = vadd.f32 %v38_v13, %v22_v16  ;;  %v72_v28 = vmul.f32 %v20_v10, %v20_v10  ;;  %v73_v29 = vmul.f32 %v21_v11, %v21_v11 }
   0x6   :  { %v28_v30 = vld [vmem:[%s219_s0 + $0x78] sm:$0xff]  ;;  %v48_v31 = vadd.f32 %v47_v19, %v23_v17  ;;  %v57_v32 = vadd.f32 %v56_v20, %v24_v18  ;;  %v74_v33 = vmul.f32 %v22_v16, %v22_v16  ;;  %v75_v34 = vmul.f32 %v23_v17, %v23_v17 }
   0x7   :  { %v31_v35 = vadd.f32 %v30_v26, %v25_v23  ;;  %v40_v36 = vadd.f32 %v39_v27, %v26_v24  ;;  %v76_v37 = vmul.f32 %v24_v18, %v24_v18  ;;  %v77_v38 = vmul.f32 %v25_v23, %v25_v23 }
   0x8   :  { %v49_v39 = vadd.f32 %v48_v31, %v27_v25  ;;  %v58_v40 = vadd.f32 %v57_v32, %v28_v30  ;;  %v78_v41 = vmul.f32 %v26_v24, %v26_v24  ;;  %v79_v42 = vmul.f32 %v27_v25, %v27_v25 }
   0x9   :  { %v32_v43 = vrot.slane %v31_v35, 4  ;;  %v41_v44 = vrot.slane %v40_v36, 4  ;;  %v80_v45 = vmul.f32 %v28_v30, %v28_v30  ;;  %v81_v46 = vadd.f32 %v69_v15, %v65_v6 }
   0xa   :  { %v50_v47 = vrot.slane %v49_v39, 4  ;;  %v59_v48 = vrot.slane %v58_v40, 4  ;;  %v90_v49 = vadd.f32 %v70_v21, %v66_v7  ;;  %v99_v50 = vadd.f32 %v71_v22, %v67_v8 }
   0xb   :  { %v33_v51 = vadd.f32 %v32_v43, %v31_v35  ;;  %v42_v52 = vadd.f32 %v41_v44, %v40_v36  ;;  %v82_v53 = vadd.f32 %v81_v46, %v73_v29  ;;  %v108_v54 = vadd.f32 %v72_v28, %v68_v14 }
   0xc   :  { %v51_v55 = vadd.f32 %v50_v47, %v49_v39  ;;  %v60_v56 = vadd.f32 %v59_v48, %v58_v40  ;;  %v91_v57 = vadd.f32 %v90_v49, %v74_v33  ;;  %v100_v58 = vadd.f32 %v99_v50, %v75_v34 }
   0xd   :  { %v34_v59 = vrot.slane %v33_v51, 2  ;;  %v43_v60 = vrot.slane %v42_v52, 2  ;;  %v83_v61 = vadd.f32 %v82_v53, %v77_v38  ;;  %v109_v62 = vadd.f32 %v108_v54, %v76_v37 }
   0xe   :  { %v52_v63 = vrot.slane %v51_v55, 2  ;;  %v61_v0 = vrot.slane %v60_v56, 2  ;;  %v92_v1 = vadd.f32 %v91_v57, %v78_v41  ;;  %v101_v2 = vadd.f32 %v100_v58, %v79_v42 }
   0xf   :  { %v35_v3 = vadd.f32 %v34_v59, %v33_v51  ;;  %v84_v4 = vrot.slane %v83_v61, 4  ;;  %v110_v5 = vadd.f32 %v109_v62, %v80_v45  ;;  %v44_v6 = vadd.f32 %v43_v60, %v42_v52 }
  0x10   :  { %v53_v7 = vadd.f32 %v52_v63, %v51_v55  ;;  %v93_v8 = vrot.slane %v92_v1, 4  ;;  %v102_v9 = vrot.slane %v101_v2, 4  ;;  %v62_v10 = vadd.f32 %v61_v0, %v60_v56 }
  0x11   :  { %v85_v11 = vadd.f32 %v84_v4, %v83_v61  ;;  %v111_v12 = vrot.slane %v110_v5, 4  ;;  %v132_v15 = vlaneseq  ;;  %v36_v16 = vrot.slane %v35_v3, 1 }
  0x12   :  { %v94_v13 = vadd.f32 %v93_v8, %v92_v1  ;;  %v103_v14 = vadd.f32 %v102_v9, %v101_v2  ;;  %v153_v19 = vmov 1983009808   ;;  %v45_v21 = vrot.slane %v44_v6, 1 }
  0x13   :  { %v86_v17 = vrot.slane %v85_v11, 2  ;;  %v112_v18 = vadd.f32 %v111_v12, %v110_v5  ;;  %v130_v20 = vunpack.c.l.s4 %v153_v19  ;;  %v54_v22 = vrot.slane %v53_v7, 1 }
  0x14   :  { %v95_v23 = vrot.slane %v94_v13, 2  ;;  %v104_v24 = vrot.slane %v103_v14, 2  ;;  %v63_v25 = vrot.slane %v62_v10, 1  ;;  %v133_v30 = vshrl.u32 %v132_v15, 7 }
  0x15   :  { %v87_v26 = vadd.f32 %v86_v17, %v85_v11  ;;  %v113_v27 = vrot.slane %v112_v18, 2  ;;  %v37_v31 = vadd.f32 %v36_v16, %v35_v3  ;;  %v131_v34 = vunpack.c.0.s8 %v130_v20 }
  0x16   :  { %v96_v28 = vadd.f32 %v95_v23, %v94_v13  ;;  %v105_v29 = vadd.f32 %v104_v24, %v103_v14  ;;  %v46_v35 = vadd.f32 %v45_v21, %v44_v6  ;;  %v55_v36 = vadd.f32 %v54_v22, %v53_v7 }
  0x17   :  { %v88_v32 = vrot.slane %v87_v26, 1  ;;  %v114_v33 = vadd.f32 %v113_v27, %v112_v18  ;;  %v64_v39 = vadd.f32 %v63_v25, %v62_v10  ;;  %v134_v46 = vsub.s32 %v131_v34, %v133_v30 }
  0x18   :  { %v97_v37 = vrot.slane %v96_v28, 1  ;;  %v106_v38 = vrot.slane %v105_v29, 1 }
  0x19   :  { %v89_v40 = vadd.f32 %v88_v32, %v87_v26  ;;  %v115_v41 = vrot.slane %v114_v33, 1 }
  0x1a   :  { %v98_v42 = vadd.f32 %v97_v37, %v96_v28  ;;  %v107_v43 = vadd.f32 %v106_v38, %v105_v29 }
  0x1b   :  { %v116_v44 = vadd.f32 %v115_v41, %v114_v33  ;;  %v119_v45 = vsel %vm118_vm0, %v37_v31, %v89_v40 }
  0x1c   :  { %v120_v47 = vsel %vm118_vm0, %v46_v35, %v98_v42  ;;  %v121_v48 = vsel %vm118_vm0, %v55_v36, %v107_v43 }
  0x1d   :  { %v122_v49 = vsel %vm118_vm0, %v64_v39, %v116_v44  ;;  %v127_v50 = vcombine.low %v119_v45, %v120_v47 }
  0x1e   :  { %v128_v51 = vcombine.low %v121_v48, %v122_v49 }
  0x1f   :  { %v135_v52 = vrot.slane %v127_v50, %v134_v46 }
  0x20   :  { %v142_v53 = vrot.slane %v128_v51, %v134_v46 }
  0x22   :  { %v143_v54 = vcombine.low %v135_v52, %v142_v53 }
  0x24   :  { %146 = vst [vmem:[%s220_s1] sm:$0xff] %v143_v54 }

// kernel: generator_forward.15
= control target key start
LH: loop header
LB: loop body
LE: loop exit
PB: predicated region body
PF: predicated region fallthrough
CT: control target
= control target key end

     0   :  { %v43_v4 = vlaneseq  ;;  %s379_s1 = inlined_call_operand.vmem [shape: f32[2,512], index: 1, kind: input, shape index: {}]   ;;  %s380_s0 = inlined_call_operand.vmem [shape: f32[32,512], index: 0, kind: input, shape index: {}]   ;;  %s381_s3 = inlined_call_operand.vmem [shape: f32[1,512], index: 3, kind: input, shape index: {}]   ;;  %s382_s2 = inlined_call_operand.vmem [shape: f32[1,512], index: 2, kind: input, shape index: {}]   ;;  %s383_s4 = inlined_call_operand.vmem [shape: f32[32,512], index: 4, kind: output, shape index: {}]  }
   0x1   :  { %v17_v0 = vld [vmem:[%s379_s1] ss:$2 sm:$0xf]  ;;  %v192_v1 = vld [vmem:[%s379_s1 + $0x1] ss:$2 sm:$0xf] }
   0x2   :  { %v18_v2 = vmul.f32 0.03125, %v17_v0  ;;  %v21_v3 = vmul.f32 0.03125, %v192_v1  ;;  %v44_v7 = vshrl.u32 %v43_v4, 7  ;;  %v26_v13 = vld [vmem:[%s380_s0] sm:$0xff]  ;;  %v27_v18 = vld [vmem:[%s380_s0 + $0x8] sm:$0xff]  ;;  %v28_v19 = vld [vmem:[%s380_s0 + $0x10] sm:$0xff] }
   0x3   :  { %v118_v15 = vld [vmem:[%s381_s3] sm:$0xf]  ;;  %v29_v22 = vld [vmem:[%s380_s0 + $0x18] sm:$0xff]  ;;  %v31_v24 = vld [vmem:[%s380_s0 + $0x28] sm:$0xff] }
   0x4   :  { %v22_v5 = vmul.f32 %v18_v2, %v18_v2  ;;  %v45_v9 = vsub.s32 0, %v44_v7  ;;  %v49_v10 = vsub.s32 1, %v44_v7  ;;  %v53_v11 = vsub.s32 2, %v44_v7  ;;  %v79_v17 = vld [vmem:[%s382_s2] sm:$0xf]  ;;  %v32_v26 = vld [vmem:[%s380_s0 + $0x30] sm:$0xff] }
   0x5   :  { %v57_v12 = vsub.s32 3, %v44_v7  ;;  %v30_v23 = vld [vmem:[%s380_s0 + $0x20] sm:$0xff]  ;;  %v33_v27 = vld [vmem:[%s380_s0 + $0x38] sm:$0xff]  ;;  %v35_v33 = vld [vmem:[%s380_s0 + $0x48] sm:$0xff] }
   0x6   :  { %v23_v6 = vsub.f32 %v21_v3, %v22_v5  ;;  %v229_v14 = vrot.slane %v18_v2, %v45_v9  ;;  %v234_v16 = vrot.slane %v18_v2, %v49_v10  ;;  %v245_v20 = vrot.slane %v18_v2, %v53_v11  ;;  %v269_v28 = vld [vmem:[%s380_s0 + $0x40] sm:$0xff]  ;;  %v36_v34 = vld [vmem:[%s380_s0 + $0x50] sm:$0xff]  ;;  %v37_v35 = vld [vmem:[%s380_s0 + $0x58] sm:$0xff] }
   0x7   :  { %v247_v21 = vrot.slane %v18_v2, %v57_v12  ;;  %v258_v25 = vrot.slane %v118_v15, %v45_v9  ;;  %v273_v31 = vrot.slane %v118_v15, %v49_v10  ;;  %v275_v32 = vrot.slane %v118_v15, %v53_v11  ;;  %v38_v41 = vld [vmem:[%s380_s0 + $0x60] sm:$0xff]  ;;  %v39_v46 = vld [vmem:[%s380_s0 + $0x68] sm:$0xff]  ;;  %v40_v47 = vld [vmem:[%s380_s0 + $0x70] sm:$0xff] }
   0x8   :  { %v24_v8 = vadd.f32 1e-05, %v23_v6  ;;  %v63_v29 = vsub.f32 %v26_v13, %v229_v14  ;;  %v64_v30 = vsub.f32 %v27_v18, %v234_v16  ;;  %v65_v37 = vsub.f32 %v28_v19, %v245_v20  ;;  %v41_v48 = vld [vmem:[%s380_s0 + $0x78] sm:$0xff] }
   0x9   :  { %v66_v38 = vsub.f32 %v29_v22, %v247_v21  ;;  %v288_v39 = vrot.slane %v118_v15, %v57_v12  ;;  %v67_v40 = vsub.f32 %v30_v23, %v229_v14  ;;  %v68_v43 = vsub.f32 %v31_v24, %v234_v16 }
   0xa   :  { %193 = vrsqrt.f32 %v24_v8  ;;  %v69_v44 = vsub.f32 %v32_v26, %v245_v20  ;;  %v70_v45 = vsub.f32 %v33_v27, %v247_v21  ;;  %v71_v49 = vsub.f32 %v269_v28, %v229_v14 }
   0xb   :  { %v72_v50 = vsub.f32 %v35_v33, %v234_v16  ;;  %v73_v51 = vsub.f32 %v36_v34, %v245_v20  ;;  %v74_v52 = vsub.f32 %v37_v35, %v247_v21  ;;  %v75_v57 = vsub.f32 %v38_v41, %v229_v14 }
   0xc   :  { %v76_v58 = vsub.f32 %v39_v46, %v234_v16  ;;  %v77_v59 = vsub.f32 %v40_v47, %v245_v20  ;;  %v78_v60 = vsub.f32 %v41_v48, %v247_v21 }
  0x14   :  { %v194_v36 = vpop.eup %193 }
  0x15   :  { %v80_v42 = vmul.f32 %v194_v36, %v79_v17 }
  0x17   :  { %v85_v53 = vrot.slane %v80_v42, %v45_v9  ;;  %v89_v54 = vrot.slane %v80_v42, %v49_v10  ;;  %v93_v55 = vrot.slane %v80_v42, %v53_v11  ;;  %v97_v56 = vrot.slane %v80_v42, %v57_v12 }
  0x19   :  { %v102_v61 = vmul.f32 %v85_v53, %v63_v29  ;;  %v103_v62 = vmul.f32 %v89_v54, %v64_v30  ;;  %v104_v63 = vmul.f32 %v93_v55, %v65_v37  ;;  %v105_v0 = vmul.f32 %v97_v56, %v66_v38 }
  0x1a   :  { %v106_v1 = vmul.f32 %v85_v53, %v67_v40  ;;  %v107_v2 = vmul.f32 %v89_v54, %v68_v43  ;;  %v108_v3 = vmul.f32 %v93_v55, %v69_v44  ;;  %v109_v4 = vmul.f32 %v97_v56, %v70_v45 }
  0x1b   :  { %v140_v5 = vadd.f32 %v258_v25, %v102_v61  ;;  %v141_v6 = vadd.f32 %v273_v31, %v103_v62  ;;  %v142_v7 = vadd.f32 %v275_v32, %v104_v63  ;;  %v143_v8 = vadd.f32 %v288_v39, %v105_v0 }
  0x1c   :  { %v144_v9 = vadd.f32 %v258_v25, %v106_v1  ;;  %v145_v10 = vadd.f32 %v273_v31, %v107_v2  ;;  %v146_v11 = vadd.f32 %v275_v32, %v108_v3  ;;  %v147_v12 = vadd.f32 %v288_v39, %v109_v4 }
  0x1d   :  { %v156_v13 = vmax.f32 %v140_v5, 0.0  ;;  %v157_v14 = vmax.f32 %v141_v6, 0.0  ;;  %v158_v15 = vmax.f32 %v142_v7, 0.0  ;;  %v159_v16 = vmax.f32 %v143_v8, 0.0 }
  0x1e   :  { %v160_v17 = vmax.f32 %v144_v9, 0.0  ;;  %v161_v18 = vmax.f32 %v145_v10, 0.0  ;;  %v162_v19 = vmax.f32 %v146_v11, 0.0  ;;  %v163_v20 = vmax.f32 %v147_v12, 0.0 }
  0x1f   :  { %172 = vst [vmem:[%s383_s4] sm:$0xff] %v156_v13  ;;  %173 = vst [vmem:[%s383_s4 + $0x8] sm:$0xff] %v157_v14  ;;  %v110_v21 = vmul.f32 %v85_v53, %v71_v49  ;;  %v111_v22 = vmul.f32 %v89_v54, %v72_v50  ;;  %v112_v23 = vmul.f32 %v93_v55, %v73_v51 }
  0x20   :  { %174 = vst [vmem:[%s383_s4 + $0x10] sm:$0xff] %v158_v15  ;;  %175 = vst [vmem:[%s383_s4 + $0x18] sm:$0xff] %v159_v16  ;;  %v113_v24 = vmul.f32 %v97_v56, %v74_v52  ;;  %v114_v26 = vmul.f32 %v85_v53, %v75_v57  ;;  %v115_v27 = vmul.f32 %v89_v54, %v76_v58 }
  0x21   :  { %176 = vst [vmem:[%s383_s4 + $0x20] sm:$0xff] %v160_v17  ;;  %177 = vst [vmem:[%s383_s4 + $0x28] sm:$0xff] %v161_v18  ;;  %v116_v28 = vmul.f32 %v93_v55, %v77_v59  ;;  %v117_v29 = vmul.f32 %v97_v56, %v78_v60  ;;  %v148_v30 = vadd.f32 %v258_v25, %v110_v21 }
  0x22   :  { %178 = vst [vmem:[%s383_s4 + $0x30] sm:$0xff] %v162_v19  ;;  %179 = vst [vmem:[%s383_s4 + $0x38] sm:$0xff] %v163_v20  ;;  %v149_v33 = vadd.f32 %v273_v31, %v111_v22  ;;  %v150_v34 = vadd.f32 %v275_v32, %v112_v23  ;;  %v151_v35 = vadd.f32 %v288_v39, %v113_v24 }
  0x23   :  { %v152_v36 = vadd.f32 %v258_v25, %v114_v26  ;;  %v153_v37 = vadd.f32 %v273_v31, %v115_v27  ;;  %v154_v38 = vadd.f32 %v275_v32, %v116_v28  ;;  %v155_v40 = vadd.f32 %v288_v39, %v117_v29 }
  0x24   :  { %v164_v41 = vmax.f32 %v148_v30, 0.0  ;;  %v165_v42 = vmax.f32 %v149_v33, 0.0  ;;  %v166_v43 = vmax.f32 %v150_v34, 0.0  ;;  %v167_v44 = vmax.f32 %v151_v35, 0.0 }
  0x25   :  { %v168_v45 = vmax.f32 %v152_v36, 0.0  ;;  %v169_v46 = vmax.f32 %v153_v37, 0.0  ;;  %v170_v47 = vmax.f32 %v154_v38, 0.0  ;;  %v171_v48 = vmax.f32 %v155_v40, 0.0 }
  0x26   :  { %180 = vst [vmem:[%s383_s4 + $0x40] sm:$0xff] %v164_v41  ;;  %181 = vst [vmem:[%s383_s4 + $0x48] sm:$0xff] %v165_v42 }
  0x27   :  { %182 = vst [vmem:[%s383_s4 + $0x50] sm:$0xff] %v166_v43  ;;  %183 = vst [vmem:[%s383_s4 + $0x58] sm:$0xff] %v167_v44 }
  0x28   :  { %184 = vst [vmem:[%s383_s4 + $0x60] sm:$0xff] %v168_v45  ;;  %185 = vst [vmem:[%s383_s4 + $0x68] sm:$0xff] %v169_v46 }
  0x29   :  { %186 = vst [vmem:[%s383_s4 + $0x70] sm:$0xff] %v170_v47  ;;  %187 = vst [vmem:[%s383_s4 + $0x78] sm:$0xff] %v171_v48 }

// kernel: generator_forward.17
= control target key start
LH: loop header
LB: loop body
LE: loop exit
PB: predicated region body
PF: predicated region fallthrough
CT: control target
= control target key end

     0   :  { %v184_v0 = vmov 0.0   ;;  %vm162_vm0 = vcmask 1040384   ;;  %s301_s0 = inlined_call_operand.vmem [shape: f32[128,256], index: 0, kind: input, shape index: {}]   ;;  %s302_s1 = inlined_call_operand.vmem [shape: f32[2,256], index: 1, kind: output, shape index: {}]  }
   0x1   :  { %12 = vst [vmem:[%s302_s1] sm:$0xf] %v184_v0  ;;  %v13_v1 = vld [vmem:[%s301_s0] sm:$0xff]  ;;  %v15_v2 = vld [vmem:[%s301_s0 + $0x10] sm:$0xff]  ;;  %v14_v3 = vld [vmem:[%s301_s0 + $0x8] sm:$0xff] }
   0x2   :  { %v16_v4 = vld [vmem:[%s301_s0 + $0x18] sm:$0xff]  ;;  %v45_v5 = vadd.f32 %v15_v2, %v13_v1  ;;  %v17_v6 = vld [vmem:[%s301_s0 + $0x20] sm:$0xff]  ;;  %v18_v8 = vld [vmem:[%s301_s0 + $0x28] sm:$0xff]  ;;  %v87_v18 = vmul.f32 %v13_v1, %v13_v1  ;;  %v89_v19 = vmul.f32 %v15_v2, %v15_v2  ;;  %v88_v22 = vmul.f32 %v14_v3, %v14_v3 }
   0x3   :  { %v66_v7 = vadd.f32 %v16_v4, %v14_v3  ;;  %v19_v10 = vld [vmem:[%s301_s0 + $0x30] sm:$0xff]  ;;  %v20_v12 = vld [vmem:[%s301_s0 + $0x38] sm:$0xff]  ;;  %v21_v14 = vld [vmem:[%s301_s0 + $0x40] sm:$0xff]  ;;  %v90_v23 = vmul.f32 %v16_v4, %v16_v4  ;;  %v91_v26 = vmul.f32 %v17_v6, %v17_v6  ;;  %v92_v29 = vmul.f32 %v18_v8, %v18_v8 }
   0x4   :  { %v46_v9 = vadd.f32 %v45_v5, %v17_v6  ;;  %v22_v16 = vld [vmem:[%s301_s0 + $0x48] sm:$0xff]  ;;  %v23_v20 = vld [vmem:[%s301_s0 + $0x50] sm:$0xff]  ;;  %v24_v24 = vld [vmem:[%s301_s0 + $0x58] sm:$0xff]  ;;  %v93_v32 = vmul.f32 %v19_v10, %v19_v10  ;;  %v119_v33 = vadd.f32 %v89_v19, %v87_v18  ;;  %v94_v36 = vmul.f32 %v20_v12, %v20_v12 }
   0x5   :  { %v67_v11 = vadd.f32 %v66_v7, %v18_v8  ;;  %v25_v27 = vld [vmem:[%s301_s0 + $0x60] sm:$0xff]  ;;  %v26_v30 = vld [vmem:[%s301_s0 + $0x68] sm:$0xff]  ;;  %v27_v34 = vld [vmem:[%s301_s0 + $0x70] sm:$0xff]  ;;  %v140_v37 = vadd.f32 %v90_v23, %v88_v22  ;;  %v95_v40 = vmul.f32 %v21_v14, %v21_v14  ;;  %v96_v44 = vmul.f32 %v22_v16, %v22_v16 }
   0x6   :  { %v47_v13 = vadd.f32 %v46_v9, %v19_v10  ;;  %v28_v38 = vld [vmem:[%s301_s0 + $0x78] sm:$0xff]  ;;  %v120_v41 = vadd.f32 %v119_v33, %v91_v26  ;;  %v29_v42 = vld [vmem:[%s301_s0 + $0x80] sm:$0xff]  ;;  %v30_v46 = vld [vmem:[%s301_s0 + $0x88] sm:$0xff]  ;;  %v97_v48 = vmul.f32 %v23_v20, %v23_v20  ;;  %v98_v52 = vmul.f32 %v24_v24, %v24_v24 }
   0x7   :  { %v68_v15 = vadd.f32 %v67_v11, %v20_v12  ;;  %v141_v45 = vadd.f32 %v140_v37, %v92_v29  ;;  %v31_v50 = vld [vmem:[%s301_s0 + $0x90] sm:$0xff]  ;;  %v32_v54 = vld [vmem:[%s301_s0 + $0x98] sm:$0xff]  ;;  %v99_v56 = vmul.f32 %v25_v27, %v25_v27  ;;  %v33_v58 = vld [vmem:[%s301_s0 + $0xa0] sm:$0xff]  ;;  %v100_v60 = vmul.f32 %v26_v30, %v26_v30 }
   0x8   :  { %v48_v17 = vadd.f32 %v47_v13, %v21_v14  ;;  %v121_v49 = vadd.f32 %v120_v41, %v93_v32  ;;  %v34_v62 = vld [vmem:[%s301_s0 + $0xa8] sm:$0xff]  ;;  %v101_v0 = vmul.f32 %v27_v34, %v27_v34  ;;  %v35_v2 = vld [vmem:[%s301_s0 + $0xb0] sm:$0xff]  ;;  %v102_v4 = vmul.f32 %v28_v38, %v28_v38  ;;  %v36_v6 = vld [vmem:[%s301_s0 + $0xb8] sm:$0xff] }
   0x9   :  { %v69_v21 = vadd.f32 %v68_v15, %v22_v16  ;;  %v142_v53 = vadd.f32 %v141_v45, %v94_v36  ;;  %v103_v8 = vmul.f32 %v29_v42, %v29_v42  ;;  %v37_v10 = vld [vmem:[%s301_s0 + $0xc0] sm:$0xff]  ;;  %v104_v12 = vmul.f32 %v30_v46, %v30_v46  ;;  %v38_v14 = vld [vmem:[%s301_s0 + $0xc8] sm:$0xff]  ;;  %v39_v18 = vld [vmem:[%s301_s0 + $0xd0] sm:$0xff] }
   0xa   :  { %v49_v25 = vadd.f32 %v48_v17, %v23_v20  ;;  %v122_v57 = vadd.f32 %v121_v49, %v95_v40  ;;  %v105_v16 = vmul.f32 %v31_v50, %v31_v50  ;;  %v106_v20 = vmul.f32 %v32_v54, %v32_v54  ;;  %v40_v22 = vld [vmem:[%s301_s0 + $0xd8] sm:$0xff]  ;;  %v41_v26 = vld [vmem:[%s301_s0 + $0xe0] sm:$0xff] }
   0xb   :  { %v70_v28 = vadd.f32 %v69_v21, %v24_v24  ;;  %v143_v61 = vadd.f32 %v142_v53, %v96_v44  ;;  %v107_v24 = vmul.f32 %v33_v58, %v33_v58  ;;  %v109_v32 = vmul.f32 %v35_v2, %v35_v2 }
   0xc   :  { %v50_v31 = vadd.f32 %v49_v25, %v25_v27  ;;  %v123_v1 = vadd.f32 %v122_v57, %v97_v48  ;;  %v110_v36 = vmul.f32 %v36_v6, %v36_v6  ;;  %v111_v40 = vmul.f32 %v37_v10, %v37_v10 }
   0xd   :  { %v71_v35 = vadd.f32 %v70_v28, %v26_v30  ;;  %v144_v5 = vadd.f32 %v143_v61, %v98_v52  ;;  %v108_v28 = vmul.f32 %v34_v62, %v34_v62  ;;  %v42_v30 = vld [vmem:[%s301_s0 + $0xe8] sm:$0xff]  ;;  %v114_v49 = vmul.f32 %v40_v22, %v40_v22 }
   0xe   :  { %v51_v39 = vadd.f32 %v50_v31, %v27_v34  ;;  %v124_v9 = vadd.f32 %v123_v1, %v99_v56  ;;  %v43_v34 = vld [vmem:[%s301_s0 + $0xf0] sm:$0xff]  ;;  %v115_v52 = vmul.f32 %v41_v26, %v41_v26 }
   0xf   :  { %v72_v43 = vadd.f32 %v71_v35, %v28_v38  ;;  %v145_v13 = vadd.f32 %v144_v5, %v100_v60  ;;  %v44_v38 = vld [vmem:[%s301_s0 + $0xf8] sm:$0xff]  ;;  %v117_v57 = vmul.f32 %v43_v34, %v43_v34 }
  0x10   :  { %v52_v47 = vadd.f32 %v51_v39, %v29_v42  ;;  %v125_v17 = vadd.f32 %v124_v9, %v101_v0 }
  0x11   :  { %v73_v51 = vadd.f32 %v72_v43, %v30_v46  ;;  %v146_v21 = vadd.f32 %v145_v13, %v102_v4  ;;  %v112_v43 = vmul.f32 %v38_v14, %v38_v14  ;;  %v113_v46 = vmul.f32 %v39_v18, %v39_v18 }
  0x12   :  { %v53_v55 = vadd.f32 %v52_v47, %v31_v50  ;;  %v126_v25 = vadd.f32 %v125_v17, %v103_v8  ;;  %v171_v13 = vlaneseq }
  0x13   :  { %v74_v59 = vadd.f32 %v73_v51, %v32_v54  ;;  %v147_v29 = vadd.f32 %v146_v21, %v104_v12 }
  0x14   :  { %v54_v63 = vadd.f32 %v53_v55, %v33_v58  ;;  %v127_v33 = vadd.f32 %v126_v25, %v105_v16  ;;  %v116_v55 = vmul.f32 %v42_v30, %v42_v30  ;;  %v172_v21 = vshrl.u32 %v171_v13, 7 }
  0x15   :  { %v75_v3 = vadd.f32 %v74_v59, %v34_v62  ;;  %v148_v37 = vadd.f32 %v147_v29, %v106_v20  ;;  %v118_v59 = vmul.f32 %v44_v38, %v44_v38 }
  0x16   :  { %v55_v7 = vadd.f32 %v54_v63, %v35_v2  ;;  %v128_v41 = vadd.f32 %v127_v33, %v107_v24 }
  0x17   :  { %v76_v11 = vadd.f32 %v75_v3, %v36_v6  ;;  %v149_v44 = vadd.f32 %v148_v37, %v108_v28 }
  0x18   :  { %v56_v15 = vadd.f32 %v55_v7, %v37_v10  ;;  %v129_v47 = vadd.f32 %v128_v41, %v109_v32 }
  0x19   :  { %v77_v19 = vadd.f32 %v76_v11, %v38_v14  ;;  %v150_v50 = vadd.f32 %v149_v44, %v110_v36  ;;  %v185_v11 = vmov 1983009808  }
  0x1a   :  { %v57_v23 = vadd.f32 %v56_v15, %v39_v18  ;;  %v130_v53 = vadd.f32 %v129_v47, %v111_v40  ;;  %v169_v12 = vunpack.c.l.s4 %v185_v11 }
  0x1b   :  { %v78_v27 = vadd.f32 %v77_v19, %v40_v22  ;;  %v151_v56 = vadd.f32 %v150_v50, %v112_v43 }
  0x1c   :  { %v58_v31 = vadd.f32 %v57_v23, %v41_v26  ;;  %v131_v58 = vadd.f32 %v130_v53, %v113_v46  ;;  %v170_v20 = vunpack.c.0.s8 %v169_v12 }
  0x1d   :  { %v79_v35 = vadd.f32 %v78_v27, %v42_v30  ;;  %v152_v60 = vadd.f32 %v151_v56, %v114_v49  ;;  %v161_v30 = vld [vmem:[%s302_s1] sm:$0xf] }
  0x1e   :  { %v59_v39 = vadd.f32 %v58_v31, %v43_v34  ;;  %v132_v62 = vadd.f32 %v131_v58, %v115_v52  ;;  %v173_v27 = vsub.s32 %v170_v20, %v172_v21 }
  0x1f   :  { %v80_v42 = vadd.f32 %v79_v35, %v44_v38  ;;  %v153_v0 = vadd.f32 %v152_v60, %v116_v55 }
  0x20   :  { %v60_v45 = vrot.slane %v59_v39, 4  ;;  %v133_v1 = vadd.f32 %v132_v62, %v117_v57 }
  0x21   :  { %v81_v48 = vrot.slane %v80_v42, 4  ;;  %v154_v2 = vadd.f32 %v153_v0, %v118_v59 }
  0x22   :  { %v61_v51 = vadd.f32 %v60_v45, %v59_v39  ;;  %v134_v4 = vrot.slane %v133_v1, 4 }
  0x23   :  { %v82_v54 = vadd.f32 %v81_v48, %v80_v42  ;;  %v155_v6 = vrot.slane %v154_v2, 4 }
  0x24   :  { %v62_v61 = vrot.slane %v61_v51, 2  ;;  %v135_v7 = vadd.f32 %v134_v4, %v133_v1 }
  0x25   :  { %v83_v63 = vrot.slane %v82_v54, 2  ;;  %v156_v8 = vadd.f32 %v155_v6, %v154_v2 }
  0x26   :  { %v63_v3 = vadd.f32 %v62_v61, %v61_v51  ;;  %v136_v10 = vrot.slane %v135_v7, 2 }
  0x27   :  { %v84_v5 = vadd.f32 %v83_v63, %v82_v54  ;;  %v157_v15 = vrot.slane %v156_v8, 2 }
  0x28   :  { %v64_v9 = vrot.slane %v63_v3, 1  ;;  %v137_v16 = vadd.f32 %v136_v10, %v135_v7 }
  0x29   :  { %v85_v14 = vrot.slane %v84_v5, 1  ;;  %v158_v17 = vadd.f32 %v157_v15, %v156_v8 }
  0x2a   :  { %v65_v18 = vadd.f32 %v64_v9, %v63_v3  ;;  %v138_v19 = vrot.slane %v137_v16, 1 }
  0x2b   :  { %v86_v22 = vadd.f32 %v85_v14, %v84_v5  ;;  %v159_v23 = vrot.slane %v158_v17, 1 }
  0x2c   :  { %v139_v24 = vadd.f32 %v138_v19, %v137_v16 }
  0x2d   :  { %v160_v25 = vadd.f32 %v159_v23, %v158_v17 }
  0x2e   :  { %v163_v26 = vsel %vm162_vm0, %v65_v18, %v139_v24 }
  0x2f   :  { %v164_v28 = vsel %vm162_vm0, %v86_v22, %v160_v25 }
  0x30   :  { %v167_v29 = vcombine.low %v163_v26, %v164_v28 }
  0x32   :  { %v174_v31 = vrot.slane %v167_v29, %v173_v27 }
  0x34   :  { %v176_v32 = vadd.f32 %v174_v31, %v161_v30 }
  0x36   :  { %177 = vst [vmem:[%s302_s1] sm:$0xf] %v176_v32 }

// kernel: generator_forward.18
= control target key start
LH: loop header
LB: loop body
LE: loop exit
PB: predicated region body
PF: predicated region fallthrough
CT: control target
= control target key end

     0   :  { %v59_v0 = vlaneseq  ;;  %s776_s1 = inlined_call_operand.vmem [shape: f32[2,256], index: 1, kind: input, shape index: {}]   ;;  %s777_s0 = inlined_call_operand.vmem [shape: f32[128,256], index: 0, kind: input, shape index: {}]   ;;  %s778_s3 = inlined_call_operand.vmem [shape: f32[1,256], index: 3, kind: input, shape index: {}]   ;;  %s779_s2 = inlined_call_operand.vmem [shape: f32[1,256], index: 2, kind: input, shape index: {}]   ;;  %s780_s4 = inlined_call_operand.vmem [shape: f32[128,256], index: 4, kind: output, shape index: {}]  }
   0x1   :  { %v17_v1 = vld [vmem:[%s776_s1] ss:$2 sm:$0x3]  ;;  %v258_v2 = vld [vmem:[%s776_s1 + $0x1] ss:$2 sm:$0x3] }
   0x2   :  { %v18_v3 = vmul.f32 0.0078125, %v17_v1  ;;  %v21_v4 = vmul.f32 0.0078125, %v258_v2  ;;  %v60_v6 = vshrl.u32 %v59_v0, 7  ;;  %v299_v11 = vld [vmem:[%s777_s0] sm:$0xff]  ;;  %v307_v13 = vld [vmem:[%s777_s0 + $0x8] sm:$0xff]  ;;  %v318_v16 = vld [vmem:[%s777_s0 + $0x10] sm:$0xff] }
   0x3   :  { %v146_v12 = vld [vmem:[%s778_s3] sm:$0x3]  ;;  %v323_v17 = vld [vmem:[%s777_s0 + $0x18] sm:$0xff]  ;;  %v333_v19 = vld [vmem:[%s777_s0 + $0x28] sm:$0xff] }
   0x4   :  { %v22_v5 = vmul.f32 %v18_v3, %v18_v3  ;;  %v292_v9 = vsub.s32 0, %v60_v6  ;;  %v294_v10 = vsub.s32 1, %v60_v6  ;;  %v328_v18 = vld [vmem:[%s777_s0 + $0x20] sm:$0xff]  ;;  %v338_v20 = vld [vmem:[%s777_s0 + $0x30] sm:$0xff]  ;;  %v343_v21 = vld [vmem:[%s777_s0 + $0x38] sm:$0xff] }
   0x5   :  { %v348_v22 = vld [vmem:[%s777_s0 + $0x40] sm:$0xff]  ;;  %v353_v23 = vld [vmem:[%s777_s0 + $0x48] sm:$0xff]  ;;  %v358_v24 = vld [vmem:[%s777_s0 + $0x50] sm:$0xff] }
   0x6   :  { %v23_v7 = vsub.f32 %v21_v4, %v22_v5  ;;  %v310_v14 = vrot.slane %v18_v3, %v292_v9  ;;  %v313_v15 = vrot.slane %v18_v3, %v294_v10  ;;  %v361_v25 = vrot.slane %v146_v12, %v292_v9  ;;  %v366_v26 = vld [vmem:[%s777_s0 + $0x58] sm:$0xff]  ;;  %v371_v27 = vld [vmem:[%s777_s0 + $0x60] sm:$0xff]  ;;  %v376_v28 = vld [vmem:[%s777_s0 + $0x68] sm:$0xff] }
   0x7   :  { %v101_v30 = vld [vmem:[%s779_s2] sm:$0x3]  ;;  %v386_v32 = vrot.slane %v146_v12, %v294_v10  ;;  %v393_v34 = vld [vmem:[%s777_s0 + $0x70] sm:$0xff]  ;;  %v398_v35 = vld [vmem:[%s777_s0 + $0x78] sm:$0xff] }
   0x8   :  { %v24_v8 = vadd.f32 1e-05, %v23_v7  ;;  %v69_v29 = vsub.f32 %v299_v11, %v310_v14  ;;  %v70_v31 = vsub.f32 %v307_v13, %v313_v15  ;;  %v71_v33 = vsub.f32 %v318_v16, %v310_v14  ;;  %v403_v36 = vld [vmem:[%s777_s0 + $0x80] sm:$0xff]  ;;  %v416_v41 = vld [vmem:[%s777_s0 + $0x88] sm:$0xff]  ;;  %v421_v42 = vld [vmem:[%s777_s0 + $0x90] sm:$0xff] }
   0x9   :  { %v72_v37 = vsub.f32 %v323_v17, %v313_v15  ;;  %v73_v38 = vsub.f32 %v328_v18, %v310_v14  ;;  %v74_v39 = vsub.f32 %v333_v19, %v313_v15  ;;  %v75_v40 = vsub.f32 %v338_v20, %v310_v14  ;;  %v426_v43 = vld [vmem:[%s777_s0 + $0x98] sm:$0xff]  ;;  %v439_v48 = vld [vmem:[%s777_s0 + $0xa0] sm:$0xff]  ;;  %v444_v49 = vld [vmem:[%s777_s0 + $0xa8] sm:$0xff] }
   0xa   :  { %259 = vrsqrt.f32 %v24_v8  ;;  %v76_v44 = vsub.f32 %v343_v21, %v313_v15  ;;  %v77_v45 = vsub.f32 %v348_v22, %v310_v14  ;;  %v78_v46 = vsub.f32 %v353_v23, %v313_v15  ;;  %v449_v50 = vld [vmem:[%s777_s0 + $0xb0] sm:$0xff]  ;;  %v462_v55 = vld [vmem:[%s777_s0 + $0xb8] sm:$0xff]  ;;  %v467_v56 = vld [vmem:[%s777_s0 + $0xc0] sm:$0xff] }
   0xb   :  { %v79_v47 = vsub.f32 %v358_v24, %v310_v14  ;;  %v80_v51 = vsub.f32 %v366_v26, %v313_v15  ;;  %v81_v52 = vsub.f32 %v371_v27, %v310_v14  ;;  %v82_v53 = vsub.f32 %v376_v28, %v313_v15  ;;  %v472_v57 = vld [vmem:[%s777_s0 + $0xc8] sm:$0xff]  ;;  %v485_v63 = vld [vmem:[%s777_s0 + $0xd0] sm:$0xff]  ;;  %v490_v0 = vld [vmem:[%s777_s0 + $0xd8] sm:$0xff] }
   0xc   :  { %v83_v54 = vsub.f32 %v393_v34, %v310_v14  ;;  %v84_v59 = vsub.f32 %v398_v35, %v313_v15  ;;  %v85_v60 = vsub.f32 %v403_v36, %v310_v14  ;;  %v86_v61 = vsub.f32 %v416_v41, %v313_v15  ;;  %v495_v1 = vld [vmem:[%s777_s0 + $0xe0] sm:$0xff]  ;;  %v506_v6 = vld [vmem:[%s777_s0 + $0xe8] sm:$0xff]  ;;  %v511_v7 = vld [vmem:[%s777_s0 + $0xf0] sm:$0xff] }
   0xd   :  { %v87_v62 = vsub.f32 %v421_v42, %v310_v14  ;;  %v88_v3 = vsub.f32 %v426_v43, %v313_v15  ;;  %v516_v8 = vld [vmem:[%s777_s0 + $0xf8] sm:$0xff]  ;;  %v781_v36 = vsub.f32 %v439_v48, %v310_v14  ;;  %v782_v42 = vsub.f32 %v444_v49, %v313_v15 }
  0x14   :  { %v260_v58 = vpop.eup %259 }
  0x15   :  { %v102_v2 = vmul.f32 %v260_v58, %v101_v30 }
  0x17   :  { %v527_v17 = vrot.slane %v102_v2, %v292_v9  ;;  %v530_v18 = vrot.slane %v102_v2, %v294_v10 }
  0x19   :  { %v114_v10 = vmul.f32 %v527_v17, %v69_v29  ;;  %v115_v2 = vmul.f32 %v530_v18, %v70_v31  ;;  %v116_v19 = vmul.f32 %v527_v17, %v71_v33  ;;  %v117_v20 = vmul.f32 %v530_v18, %v72_v37 }
  0x1a   :  { %v118_v16 = vmul.f32 %v527_v17, %v73_v38  ;;  %v119_v21 = vmul.f32 %v530_v18, %v74_v39  ;;  %v120_v30 = vmul.f32 %v527_v17, %v75_v40  ;;  %v121_v13 = vmul.f32 %v530_v18, %v76_v44 }
  0x1b   :  { %v158_v58 = vadd.f32 %v361_v25, %v114_v10  ;;  %v159_v9 = vadd.f32 %v386_v32, %v115_v2  ;;  %v160_v29 = vadd.f32 %v361_v25, %v116_v19  ;;  %v161_v31 = vadd.f32 %v386_v32, %v117_v20 }
  0x1c   :  { %v162_v33 = vadd.f32 %v361_v25, %v118_v16  ;;  %v163_v37 = vadd.f32 %v386_v32, %v119_v21  ;;  %v164_v38 = vadd.f32 %v361_v25, %v120_v30  ;;  %v165_v39 = vadd.f32 %v386_v32, %v121_v13 }
  0x1d   :  { %v190_v12 = vmax.f32 %v158_v58, 0.0  ;;  %v191_v40 = vmax.f32 %v159_v9, 0.0  ;;  %v192_v11 = vmax.f32 %v160_v29, 0.0  ;;  %v193_v44 = vmax.f32 %v161_v31, 0.0 }
  0x1e   :  { %v194_v5 = vmax.f32 %v162_v33, 0.0  ;;  %v195_v10 = vmax.f32 %v163_v37, 0.0  ;;  %v196_v4 = vmax.f32 %v164_v38, 0.0  ;;  %v197_v2 = vmax.f32 %v165_v39, 0.0 }
  0x1f   :  { %222 = vst [vmem:[%s780_s4] sm:$0xff] %v190_v12  ;;  %223 = vst [vmem:[%s780_s4 + $0x8] sm:$0xff] %v191_v40  ;;  %v122_v13 = vmul.f32 %v527_v17, %v77_v45  ;;  %v123_v12 = vmul.f32 %v530_v18, %v78_v46  ;;  %v124_v16 = vmul.f32 %v527_v17, %v79_v47 }
  0x20   :  { %224 = vst [vmem:[%s780_s4 + $0x10] sm:$0xff] %v192_v11  ;;  %225 = vst [vmem:[%s780_s4 + $0x18] sm:$0xff] %v193_v44  ;;  %v125_v11 = vmul.f32 %v530_v18, %v80_v51  ;;  %v126_v22 = vmul.f32 %v527_v17, %v81_v52  ;;  %v127_v23 = vmul.f32 %v530_v18, %v82_v53 }
  0x21   :  { %226 = vst [vmem:[%s780_s4 + $0x20] sm:$0xff] %v194_v5  ;;  %227 = vst [vmem:[%s780_s4 + $0x28] sm:$0xff] %v195_v10  ;;  %v128_v24 = vmul.f32 %v527_v17, %v83_v54  ;;  %v129_v26 = vmul.f32 %v530_v18, %v84_v59  ;;  %v166_v45 = vadd.f32 %v361_v25, %v122_v13 }
  0x22   :  { %228 = vst [vmem:[%s780_s4 + $0x30] sm:$0xff] %v196_v4  ;;  %229 = vst [vmem:[%s780_s4 + $0x38] sm:$0xff] %v197_v2  ;;  %v167_v27 = vadd.f32 %v386_v32, %v123_v12  ;;  %v168_v46 = vadd.f32 %v361_v25, %v124_v16  ;;  %v169_v28 = vadd.f32 %v386_v32, %v125_v11 }
  0x23   :  { %v170_v47 = vadd.f32 %v361_v25, %v126_v22  ;;  %v171_v51 = vadd.f32 %v386_v32, %v127_v23  ;;  %v172_v34 = vadd.f32 %v361_v25, %v128_v24  ;;  %v173_v52 = vadd.f32 %v386_v32, %v129_v26 }
  0x24   :  { %v198_v53 = vmax.f32 %v166_v45, 0.0  ;;  %v199_v35 = vmax.f32 %v167_v27, 0.0  ;;  %v200_v54 = vmax.f32 %v168_v46, 0.0  ;;  %v201_v59 = vmax.f32 %v169_v28, 0.0 }
  0x25   :  { %v202_v4 = vmax.f32 %v170_v47, 0.0  ;;  %v203_v5 = vmax.f32 %v171_v51, 0.0  ;;  %v204_v19 = vmax.f32 %v172_v34, 0.0  ;;  %v205_v20 = vmax.f32 %v173_v52, 0.0 }
  0x26   :  { %230 = vst [vmem:[%s780_s4 + $0x40] sm:$0xff] %v198_v53  ;;  %231 = vst [vmem:[%s780_s4 + $0x48] sm:$0xff] %v199_v35  ;;  %v130_v21 = vmul.f32 %v527_v17, %v85_v60  ;;  %v131_v30 = vmul.f32 %v530_v18, %v86_v61  ;;  %v132_v58 = vmul.f32 %v527_v17, %v87_v62 }
  0x27   :  { %232 = vst [vmem:[%s780_s4 + $0x50] sm:$0xff] %v200_v54  ;;  %233 = vst [vmem:[%s780_s4 + $0x58] sm:$0xff] %v201_v59  ;;  %v133_v9 = vmul.f32 %v530_v18, %v88_v3  ;;  %v134_v41 = vmul.f32 %v527_v17, %v781_v36  ;;  %v135_v43 = vmul.f32 %v530_v18, %v782_v42 }
  0x28   :  { %234 = vst [vmem:[%s780_s4 + $0x60] sm:$0xff] %v202_v4  ;;  %235 = vst [vmem:[%s780_s4 + $0x68] sm:$0xff] %v203_v5  ;;  %v783_v60 = vsub.f32 %v449_v50, %v310_v14  ;;  %v784_v62 = vsub.f32 %v462_v55, %v313_v15  ;;  %v174_v29 = vadd.f32 %v361_v25, %v130_v21 }
  0x29   :  { %236 = vst [vmem:[%s780_s4 + $0x70] sm:$0xff] %v204_v19  ;;  %237 = vst [vmem:[%s780_s4 + $0x78] sm:$0xff] %v205_v20  ;;  %v175_v48 = vadd.f32 %v386_v32, %v131_v30  ;;  %v176_v31 = vadd.f32 %v361_v25, %v132_v58  ;;  %v177_v49 = vadd.f32 %v386_v32, %v133_v9 }
  0x2a   :  { %v136_v61 = vmul.f32 %v527_v17, %v783_v60  ;;  %v137_v3 = vmul.f32 %v530_v18, %v784_v62  ;;  %v178_v33 = vadd.f32 %v361_v25, %v134_v41  ;;  %v179_v37 = vadd.f32 %v386_v32, %v135_v43 }
  0x2b   :  { %v206_v39 = vmax.f32 %v174_v29, 0.0  ;;  %v207_v55 = vmax.f32 %v175_v48, 0.0  ;;  %v208_v40 = vmax.f32 %v176_v31, 0.0  ;;  %v209_v44 = vmax.f32 %v177_v49, 0.0 }
  0x2c   :  { %v180_v50 = vadd.f32 %v361_v25, %v136_v61  ;;  %v181_v38 = vadd.f32 %v386_v32, %v137_v3  ;;  %v210_v10 = vmax.f32 %v178_v33, 0.0  ;;  %v211_v2 = vmax.f32 %v179_v37, 0.0 }
  0x2d   :  { %238 = vst [vmem:[%s780_s4 + $0x80] sm:$0xff] %v206_v39  ;;  %239 = vst [vmem:[%s780_s4 + $0x88] sm:$0xff] %v207_v55  ;;  %v785_v16 = vsub.f32 %v467_v56, %v310_v14  ;;  %v786_v22 = vsub.f32 %v472_v57, %v313_v15  ;;  %v787_v24 = vsub.f32 %v485_v63, %v310_v14 }
  0x2e   :  { %v212_v13 = vmax.f32 %v180_v50, 0.0  ;;  %v213_v12 = vmax.f32 %v181_v38, 0.0  ;;  %240 = vst [vmem:[%s780_s4 + $0x90] sm:$0xff] %v208_v40  ;;  %241 = vst [vmem:[%s780_s4 + $0x98] sm:$0xff] %v209_v44  ;;  %v788_v45 = vsub.f32 %v490_v0, %v313_v15  ;;  %v789_v56 = vsub.f32 %v495_v1, %v310_v14 }
  0x2f   :  { %v138_v11 = vmul.f32 %v527_v17, %v785_v16  ;;  %v139_v23 = vmul.f32 %v530_v18, %v786_v22  ;;  %v140_v26 = vmul.f32 %v527_v17, %v787_v24  ;;  %242 = vst [vmem:[%s780_s4 + $0xa0] sm:$0xff] %v210_v10  ;;  %243 = vst [vmem:[%s780_s4 + $0xa8] sm:$0xff] %v211_v2 }
  0x30   :  { %v141_v27 = vmul.f32 %v530_v18, %v788_v45  ;;  %244 = vst [vmem:[%s780_s4 + $0xb0] sm:$0xff] %v212_v13  ;;  %245 = vst [vmem:[%s780_s4 + $0xb8] sm:$0xff] %v213_v12  ;;  %v142_v57 = vmul.f32 %v527_v17, %v789_v56  ;;  %v790_v63 = vsub.f32 %v506_v6, %v313_v15 }
  0x31   :  { %v791_v46 = vsub.f32 %v511_v7, %v310_v14  ;;  %v792_v47 = vsub.f32 %v516_v8, %v313_v15  ;;  %v182_v34 = vadd.f32 %v361_v25, %v138_v11  ;;  %v183_v1 = vadd.f32 %v386_v32, %v139_v23 }
  0x32   :  { %v143_v0 = vmul.f32 %v530_v18, %v790_v63  ;;  %v184_v52 = vadd.f32 %v361_v25, %v140_v26  ;;  %v185_v6 = vadd.f32 %v386_v32, %v141_v27  ;;  %v186_v53 = vadd.f32 %v361_v25, %v142_v57 }
  0x33   :  { %v144_v28 = vmul.f32 %v527_v17, %v791_v46  ;;  %v145_v51 = vmul.f32 %v530_v18, %v792_v47  ;;  %v214_v17 = vmax.f32 %v182_v34, 0.0  ;;  %v215_v15 = vmax.f32 %v183_v1, 0.0 }
  0x34   :  { %v187_v35 = vadd.f32 %v386_v32, %v143_v0  ;;  %v216_v8 = vmax.f32 %v184_v52, 0.0  ;;  %v217_v18 = vmax.f32 %v185_v6, 0.0  ;;  %v218_v54 = vmax.f32 %v186_v53, 0.0 }
  0x35   :  { %v188_v14 = vadd.f32 %v361_v25, %v144_v28  ;;  %v189_v7 = vadd.f32 %v386_v32, %v145_v51  ;;  %246 = vst [vmem:[%s780_s4 + $0xc0] sm:$0xff] %v214_v17  ;;  %247 = vst [vmem:[%s780_s4 + $0xc8] sm:$0xff] %v215_v15 }
  0x36   :  { %v219_v59 = vmax.f32 %v187_v35, 0.0  ;;  %248 = vst [vmem:[%s780_s4 + $0xd0] sm:$0xff] %v216_v8  ;;  %249 = vst [vmem:[%s780_s4 + $0xd8] sm:$0xff] %v217_v18 }
  0x37   :  { %v220_v4 = vmax.f32 %v188_v14, 0.0  ;;  %v221_v5 = vmax.f32 %v189_v7, 0.0  ;;  %250 = vst [vmem:[%s780_s4 + $0xe0] sm:$0xff] %v218_v54 }
  0x38   :  { %251 = vst [vmem:[%s780_s4 + $0xe8] sm:$0xff] %v219_v59 }
  0x39   :  { %252 = vst [vmem:[%s780_s4 + $0xf0] sm:$0xff] %v220_v4  ;;  %253 = vst [vmem:[%s780_s4 + $0xf8] sm:$0xff] %v221_v5 }

// kernel: generator_forward.16
= control target key start
LH: loop header
LB: loop body
LE: loop exit
PB: predicated region body
PF: predicated region fallthrough
CT: control target
= control target key end

     0   :  { %s4786_s9 = smov 0   ;;  %s4788_s10 = smov 0   ;;  %s5904_s0 = inlined_call_operand.vmem [shape: bf16[56,2048], index: 0, kind: input, shape index: {}]   ;;  %s5905_s1 = inlined_call_operand.vmem [shape: bf16[2048,1024], index: 1, kind: input, shape index: {}]   ;;  %s5906_s2 = inlined_call_operand.vmem [shape: f32[56,1024], index: 2, kind: output, shape index: {}]  }
   0x1   :  { %s4790_s11 = smov 0   ;;  %s4792_s12 = smov 0  }
   0x2   :  { %s4794_s13 = smov 0  }
   0x3 LB: > { %s21_s14 = sadd.s32 1, %s4765_s12  ;;  %s3844_s15 = sadd.s32 4294967295, %s4769_s13   ;;  %s4769_s13 = sphi %s4794_s13, %s12_s13   ;;  %s4765_s12 = sphi %s4792_s12, %s5911_s12   ;;  %s4761_s11 = sphi %s4790_s11, %s5910_s11   ;;  %s4757_s10 = sphi %s4788_s10, %s5909_s10   ;;  %s4753_s9 = sphi %s4786_s9, %s5908_s9  }
   0x4   : > { %p22_p0 = scmp.ge.s32.totalorder %s21_s14, 4  ;;  %p64_p1 = scmp.ne.s32.totalorder %s4757_s10, %s4753_s9 }
   0x5   : > { %p65_p2 = scmp.eq.s32.totalorder %s4769_s13, 0  ;;  %p96_p4 = scmp.eq.s32.totalorder %s3844_s15, 3 }
   0x6   : > { %s5913_s14 = smov (%p22_p0, %s21_s14), 0  ;;  %s57_s17 = sadd.s32 1, %s4757_s10 }
   0x7   : > { %p66_p3 = por %p65_p2, %p64_p1  ;;  %s54_s16 = ssub.s32 %s4765_s12, %s5913_s14 }
   0x8   : > { %p55_p5 = scmp.eq.s32.totalorder %s54_s16, 0  ;;  %p4821_p6 = por %p96_p4, %p64_p1 }
   0x9   : > { %p3848_p7 = scmp.ge.s32.totalorder %s4769_s13, 4 }
   0xa   : > { %s4826_s19 = scalar_select %p55_p5, %s4757_s10, %s57_s17  }
   0xb   : > { %128 = sbr.rel (%p3848_p7) target bundleno = 278 (0x116), region = 20 }
  0x12   : > { %131 = sbr.rel (!%p66_p3) target bundleno = 278 (0x116), region = 24  ;;  %s133_s20 = sand.u32 (%p66_p3), 1, %s4757_s10  }
  0x13   : > { %s4178_s21 = sshll.u32 (%p66_p3), %s4765_s12, 3  ;;  %s3849_s22 = sshll.u32 (%p66_p3), %s133_s20, 11 }
  0x14   : > { %s4834_s25 = scalar_lea.vmem (%p66_p3), %s5905_s1, %s4178_s21  ;;  %s4839_s26 = scalar_lea.vmem (%p66_p3), [#allocation2], %s3849_s22 }
  0x15   : > { %v676_v0 = vld [vmem:[%s4834_s25] sm:$0xff] (%p66_p3) }
  0x16   : > { %v678_v1 = vld [vmem:[%s4834_s25 + $0x20] sm:$0xff] (%p66_p3)  ;;  %677 = vst [vmem:[%s4839_s26] sm:$0xff] (%p66_p3), %v676_v0 }
  0x17   : > { %v680_v2 = vld [vmem:[%s4834_s25 + $0x40] sm:$0xff] (%p66_p3)  ;;  %679 = vst [vmem:[%s4839_s26 + $0x8] sm:$0xff] (%p66_p3), %v678_v1 }
  0x18   : > { %681 = vst [vmem:[%s4839_s26 + $0x10] sm:$0xff] (%p66_p3), %v680_v2  ;;  %v682_v3 = vld [vmem:[%s4834_s25 + $0x60] sm:$0xff] (%p66_p3) }
  0x19   : > { %v684_v4 = vld [vmem:[%s4834_s25 + $0x80] sm:$0xff]  ;;  %683 = vst [vmem:[%s4839_s26 + $0x18] sm:$0xff] %v682_v3 }
  0x1a   : > { %v686_v5 = vld [vmem:[%s4834_s25 + $0xa0] sm:$0xff]  ;;  %685 = vst [vmem:[%s4839_s26 + $0x20] sm:$0xff] %v684_v4 }
  0x1b   : > { %687 = vst [vmem:[%s4839_s26 + $0x28] sm:$0xff] %v686_v5  ;;  %v688_v6 = vld [vmem:[%s4834_s25 + $0xc0] sm:$0xff] }
  0x1c   : > { %v690_v7 = vld [vmem:[%s4834_s25 + $0xe0] sm:$0xff]  ;;  %689 = vst [vmem:[%s4839_s26 + $0x30] sm:$0xff] %v688_v6 }
  0x1d   : > { %v692_v8 = vld [vmem:[%s4834_s25 + $0x100] sm:$0xff]  ;;  %691 = vst [vmem:[%s4839_s26 + $0x38] sm:$0xff] %v690_v7 }
  0x1e   : > { %693 = vst [vmem:[%s4839_s26 + $0x40] sm:$0xff] %v692_v8  ;;  %v694_v9 = vld [vmem:[%s4834_s25 + $0x120] sm:$0xff] }
  0x1f   : > { %v696_v10 = vld [vmem:[%s4834_s25 + $0x140] sm:$0xff]  ;;  %695 = vst [vmem:[%s4839_s26 + $0x48] sm:$0xff] %v694_v9 }
  0x20   : > { %v698_v11 = vld [vmem:[%s4834_s25 + $0x160] sm:$0xff]  ;;  %697 = vst [vmem:[%s4839_s26 + $0x50] sm:$0xff] %v696_v10 }
  0x21   : > { %699 = vst [vmem:[%s4839_s26 + $0x58] sm:$0xff] %v698_v11  ;;  %v700_v12 = vld [vmem:[%s4834_s25 + $0x180] sm:$0xff] }
  0x22   : > { %v702_v13 = vld [vmem:[%s4834_s25 + $0x1a0] sm:$0xff]  ;;  %701 = vst [vmem:[%s4839_s26 + $0x60] sm:$0xff] %v700_v12 }
  0x23   : > { %v704_v14 = vld [vmem:[%s4834_s25 + $0x1c0] sm:$0xff]  ;;  %703 = vst [vmem:[%s4839_s26 + $0x68] sm:$0xff] %v702_v13 }
  0x24   : > { %705 = vst [vmem:[%s4839_s26 + $0x70] sm:$0xff] %v704_v14  ;;  %v706_v15 = vld [vmem:[%s4834_s25 + $0x1e0] sm:$0xff] }
  0x25   : > { %v708_v16 = vld [vmem:[%s4834_s25 + $0x200] sm:$0xff]  ;;  %707 = vst [vmem:[%s4839_s26 + $0x78] sm:$0xff] %v706_v15 }
  0x26   : > { %v710_v17 = vld [vmem:[%s4834_s25 + $0x220] sm:$0xff]  ;;  %709 = vst [vmem:[%s4839_s26 + $0x80] sm:$0xff] %v708_v16 }
  0x27   : > { %711 = vst [vmem:[%s4839_s26 + $0x88] sm:$0xff] %v710_v17  ;;  %v712_v18 = vld [vmem:[%s4834_s25 + $0x240] sm:$0xff] }
  0x28   : > { %v714_v19 = vld [vmem:[%s4834_s25 + $0x260] sm:$0xff]  ;;  %713 = vst [vmem:[%s4839_s26 + $0x90] sm:$0xff] %v712_v18 }
  0x29   : > { %v716_v20 = vld [vmem:[%s4834_s25 + $0x280] sm:$0xff]  ;;  %715 = vst [vmem:[%s4839_s26 + $0x98] sm:$0xff] %v714_v19 }
  0x2a   : > { %717 = vst [vmem:[%s4839_s26 + $0xa0] sm:$0xff] %v716_v20  ;;  %v718_v21 = vld [vmem:[%s4834_s25 + $0x2a0] sm:$0xff] }
  0x2b   : > { %v720_v22 = vld [vmem:[%s4834_s25 + $0x2c0] sm:$0xff]  ;;  %719 = vst [vmem:[%s4839_s26 + $0xa8] sm:$0xff] %v718_v21 }
  0x2c   : > { %v722_v23 = vld [vmem:[%s4834_s25 + $0x2e0] sm:$0xff]  ;;  %721 = vst [vmem:[%s4839_s26 + $0xb0] sm:$0xff] %v720_v22 }
  0x2d   : > { %723 = vst [vmem:[%s4839_s26 + $0xb8] sm:$0xff] %v722_v23  ;;  %v724_v24 = vld [vmem:[%s4834_s25 + $0x300] sm:$0xff] }
  0x2e   : > { %v726_v25 = vld [vmem:[%s4834_s25 + $0x320] sm:$0xff]  ;;  %725 = vst [vmem:[%s4839_s26 + $0xc0] sm:$0xff] %v724_v24 }
  0x2f   : > { %v728_v26 = vld [vmem:[%s4834_s25 + $0x340] sm:$0xff]  ;;  %727 = vst [vmem:[%s4839_s26 + $0xc8] sm:$0xff] %v726_v25 }
  0x30   : > { %729 = vst [vmem:[%s4839_s26 + $0xd0] sm:$0xff] %v728_v26  ;;  %v730_v27 = vld [vmem:[%s4834_s25 + $0x360] sm:$0xff] }
  0x31   : > { %v732_v28 = vld [vmem:[%s4834_s25 + $0x380] sm:$0xff]  ;;  %731 = vst [vmem:[%s4839_s26 + $0xd8] sm:$0xff] %v730_v27 }
  0x32   : > { %v734_v29 = vld [vmem:[%s4834_s25 + $0x3a0] sm:$0xff]  ;;  %733 = vst [vmem:[%s4839_s26 + $0xe0] sm:$0xff] %v732_v28 }
  0x33   : > { %735 = vst [vmem:[%s4839_s26 + $0xe8] sm:$0xff] %v734_v29  ;;  %v736_v30 = vld [vmem:[%s4834_s25 + $0x3c0] sm:$0xff] }
  0x34   : > { %v738_v31 = vld [vmem:[%s4834_s25 + $0x3e0] sm:$0xff]  ;;  %737 = vst [vmem:[%s4839_s26 + $0xf0] sm:$0xff] %v736_v30 }
  0x35   : > { %v740_v32 = vld [vmem:[%s4834_s25 + $0x400] sm:$0xff]  ;;  %739 = vst [vmem:[%s4839_s26 + $0xf8] sm:$0xff] %v738_v31 }
  0x36   : > { %741 = vst [vmem:[%s4839_s26 + $0x100] sm:$0xff] %v740_v32  ;;  %v742_v33 = vld [vmem:[%s4834_s25 + $0x420] sm:$0xff] }
  0x37   : > { %v744_v34 = vld [vmem:[%s4834_s25 + $0x440] sm:$0xff]  ;;  %743 = vst [vmem:[%s4839_s26 + $0x108] sm:$0xff] %v742_v33 }
  0x38   : > { %v746_v35 = vld [vmem:[%s4834_s25 + $0x460] sm:$0xff]  ;;  %745 = vst [vmem:[%s4839_s26 + $0x110] sm:$0xff] %v744_v34 }
  0x39   : > { %747 = vst [vmem:[%s4839_s26 + $0x118] sm:$0xff] %v746_v35  ;;  %v748_v36 = vld [vmem:[%s4834_s25 + $0x480] sm:$0xff] }
  0x3a   : > { %v750_v37 = vld [vmem:[%s4834_s25 + $0x4a0] sm:$0xff]  ;;  %749 = vst [vmem:[%s4839_s26 + $0x120] sm:$0xff] %v748_v36 }
  0x3b   : > { %v752_v38 = vld [vmem:[%s4834_s25 + $0x4c0] sm:$0xff]  ;;  %751 = vst [vmem:[%s4839_s26 + $0x128] sm:$0xff] %v750_v37 }
  0x3c   : > { %753 = vst [vmem:[%s4839_s26 + $0x130] sm:$0xff] %v752_v38  ;;  %v754_v39 = vld [vmem:[%s4834_s25 + $0x4e0] sm:$0xff] }
  0x3d   : > { %v756_v40 = vld [vmem:[%s4834_s25 + $0x500] sm:$0xff]  ;;  %755 = vst [vmem:[%s4839_s26 + $0x138] sm:$0xff] %v754_v39 }
  0x3e   : > { %v758_v41 = vld [vmem:[%s4834_s25 + $0x520] sm:$0xff]  ;;  %757 = vst [vmem:[%s4839_s26 + $0x140] sm:$0xff] %v756_v40 }
  0x3f   : > { %759 = vst [vmem:[%s4839_s26 + $0x148] sm:$0xff] %v758_v41  ;;  %v760_v42 = vld [vmem:[%s4834_s25 + $0x540] sm:$0xff] }
  0x40   : > { %v762_v43 = vld [vmem:[%s4834_s25 + $0x560] sm:$0xff]  ;;  %761 = vst [vmem:[%s4839_s26 + $0x150] sm:$0xff] %v760_v42 }
  0x41   : > { %v764_v44 = vld [vmem:[%s4834_s25 + $0x580] sm:$0xff]  ;;  %763 = vst [vmem:[%s4839_s26 + $0x158] sm:$0xff] %v762_v43 }
  0x42   : > { %765 = vst [vmem:[%s4839_s26 + $0x160] sm:$0xff] %v764_v44  ;;  %v766_v45 = vld [vmem:[%s4834_s25 + $0x5a0] sm:$0xff] }
  0x43   : > { %v768_v46 = vld [vmem:[%s4834_s25 + $0x5c0] sm:$0xff]  ;;  %767 = vst [vmem:[%s4839_s26 + $0x168] sm:$0xff] %v766_v45 }
  0x44   : > { %v770_v47 = vld [vmem:[%s4834_s25 + $0x5e0] sm:$0xff]  ;;  %769 = vst [vmem:[%s4839_s26 + $0x170] sm:$0xff] %v768_v46 }
  0x45   : > { %771 = vst [vmem:[%s4839_s26 + $0x178] sm:$0xff] %v770_v47  ;;  %v772_v48 = vld [vmem:[%s4834_s25 + $0x600] sm:$0xff] }
  0x46   : > { %v774_v49 = vld [vmem:[%s4834_s25 + $0x620] sm:$0xff]  ;;  %773 = vst [vmem:[%s4839_s26 + $0x180] sm:$0xff] %v772_v48 }
  0x47   : > { %v776_v50 = vld [vmem:[%s4834_s25 + $0x640] sm:$0xff]  ;;  %775 = vst [vmem:[%s4839_s26 + $0x188] sm:$0xff] %v774_v49 }
  0x48   : > { %777 = vst [vmem:[%s4839_s26 + $0x190] sm:$0xff] %v776_v50  ;;  %v778_v51 = vld [vmem:[%s4834_s25 + $0x660] sm:$0xff] }
  0x49   : > { %v780_v52 = vld [vmem:[%s4834_s25 + $0x680] sm:$0xff]  ;;  %779 = vst [vmem:[%s4839_s26 + $0x198] sm:$0xff] %v778_v51 }
  0x4a   : > { %v782_v53 = vld [vmem:[%s4834_s25 + $0x6a0] sm:$0xff]  ;;  %781 = vst [vmem:[%s4839_s26 + $0x1a0] sm:$0xff] %v780_v52 }
  0x4b   : > { %783 = vst [vmem:[%s4839_s26 + $0x1a8] sm:$0xff] %v782_v53  ;;  %v784_v54 = vld [vmem:[%s4834_s25 + $0x6c0] sm:$0xff] }
  0x4c   : > { %v786_v55 = vld [vmem:[%s4834_s25 + $0x6e0] sm:$0xff]  ;;  %785 = vst [vmem:[%s4839_s26 + $0x1b0] sm:$0xff] %v784_v54 }
  0x4d   : > { %v788_v56 = vld [vmem:[%s4834_s25 + $0x700] sm:$0xff]  ;;  %787 = vst [vmem:[%s4839_s26 + $0x1b8] sm:$0xff] %v786_v55 }
  0x4e   : > { %789 = vst [vmem:[%s4839_s26 + $0x1c0] sm:$0xff] %v788_v56  ;;  %v790_v57 = vld [vmem:[%s4834_s25 + $0x720] sm:$0xff] }
  0x4f   : > { %v792_v58 = vld [vmem:[%s4834_s25 + $0x740] sm:$0xff]  ;;  %791 = vst [vmem:[%s4839_s26 + $0x1c8] sm:$0xff] %v790_v57 }
  0x50   : > { %v794_v59 = vld [vmem:[%s4834_s25 + $0x760] sm:$0xff]  ;;  %793 = vst [vmem:[%s4839_s26 + $0x1d0] sm:$0xff] %v792_v58 }
  0x51   : > { %795 = vst [vmem:[%s4839_s26 + $0x1d8] sm:$0xff] %v794_v59  ;;  %v796_v60 = vld [vmem:[%s4834_s25 + $0x780] sm:$0xff] }
  0x52   : > { %v798_v61 = vld [vmem:[%s4834_s25 + $0x7a0] sm:$0xff]  ;;  %797 = vst [vmem:[%s4839_s26 + $0x1e0] sm:$0xff] %v796_v60 }
  0x53   : > { %v800_v62 = vld [vmem:[%s4834_s25 + $0x7c0] sm:$0xff]  ;;  %799 = vst [vmem:[%s4839_s26 + $0x1e8] sm:$0xff] %v798_v61 }
  0x54   : > { %801 = vst [vmem:[%s4839_s26 + $0x1f0] sm:$0xff] %v800_v62  ;;  %v802_v63 = vld [vmem:[%s4834_s25 + $0x7e0] sm:$0xff] }
  0x55   : > { %v804_v0 = vld [vmem:[%s4834_s25 + $0x800] sm:$0xff]  ;;  %803 = vst [vmem:[%s4839_s26 + $0x1f8] sm:$0xff] %v802_v63 }
  0x56   : > { %v806_v1 = vld [vmem:[%s4834_s25 + $0x820] sm:$0xff]  ;;  %805 = vst [vmem:[%s4839_s26 + $0x200] sm:$0xff] %v804_v0 }
  0x57   : > { %807 = vst [vmem:[%s4839_s26 + $0x208] sm:$0xff] %v806_v1  ;;  %v808_v2 = vld [vmem:[%s4834_s25 + $0x840] sm:$0xff] }
  0x58   : > { %v810_v3 = vld [vmem:[%s4834_s25 + $0x860] sm:$0xff]  ;;  %809 = vst [vmem:[%s4839_s26 + $0x210] sm:$0xff] %v808_v2 }
  0x59   : > { %v812_v4 = vld [vmem:[%s4834_s25 + $0x880] sm:$0xff]  ;;  %811 = vst [vmem:[%s4839_s26 + $0x218] sm:$0xff] %v810_v3 }
  0x5a   : > { %813 = vst [vmem:[%s4839_s26 + $0x220] sm:$0xff] %v812_v4  ;;  %v814_v5 = vld [vmem:[%s4834_s25 + $0x8a0] sm:$0xff] }
  0x5b   : > { %v816_v6 = vld [vmem:[%s4834_s25 + $0x8c0] sm:$0xff]  ;;  %815 = vst [vmem:[%s4839_s26 + $0x228] sm:$0xff] %v814_v5 }
  0x5c   : > { %v818_v7 = vld [vmem:[%s4834_s25 + $0x8e0] sm:$0xff]  ;;  %817 = vst [vmem:[%s4839_s26 + $0x230] sm:$0xff] %v816_v6 }
  0x5d   : > { %819 = vst [vmem:[%s4839_s26 + $0x238] sm:$0xff] %v818_v7  ;;  %v820_v8 = vld [vmem:[%s4834_s25 + $0x900] sm:$0xff] }
  0x5e   : > { %v822_v9 = vld [vmem:[%s4834_s25 + $0x920] sm:$0xff]  ;;  %821 = vst [vmem:[%s4839_s26 + $0x240] sm:$0xff] %v820_v8 }
  0x5f   : > { %v824_v10 = vld [vmem:[%s4834_s25 + $0x940] sm:$0xff]  ;;  %823 = vst [vmem:[%s4839_s26 + $0x248] sm:$0xff] %v822_v9 }
  0x60   : > { %825 = vst [vmem:[%s4839_s26 + $0x250] sm:$0xff] %v824_v10  ;;  %v826_v11 = vld [vmem:[%s4834_s25 + $0x960] sm:$0xff] }
  0x61   : > { %v828_v12 = vld [vmem:[%s4834_s25 + $0x980] sm:$0xff]  ;;  %827 = vst [vmem:[%s4839_s26 + $0x258] sm:$0xff] %v826_v11 }
  0x62   : > { %v830_v13 = vld [vmem:[%s4834_s25 + $0x9a0] sm:$0xff]  ;;  %829 = vst [vmem:[%s4839_s26 + $0x260] sm:$0xff] %v828_v12 }
  0x63   : > { %831 = vst [vmem:[%s4839_s26 + $0x268] sm:$0xff] %v830_v13  ;;  %v832_v14 = vld [vmem:[%s4834_s25 + $0x9c0] sm:$0xff] }
  0x64   : > { %v834_v15 = vld [vmem:[%s4834_s25 + $0x9e0] sm:$0xff]  ;;  %833 = vst [vmem:[%s4839_s26 + $0x270] sm:$0xff] %v832_v14 }
  0x65   : > { %v836_v16 = vld [vmem:[%s4834_s25 + $0xa00] sm:$0xff]  ;;  %835 = vst [vmem:[%s4839_s26 + $0x278] sm:$0xff] %v834_v15 }
  0x66   : > { %837 = vst [vmem:[%s4839_s26 + $0x280] sm:$0xff] %v836_v16  ;;  %v838_v17 = vld [vmem:[%s4834_s25 + $0xa20] sm:$0xff] }
  0x67   : > { %v840_v18 = vld [vmem:[%s4834_s25 + $0xa40] sm:$0xff]  ;;  %839 = vst [vmem:[%s4839_s26 + $0x288] sm:$0xff] %v838_v17 }
  0x68   : > { %v842_v19 = vld [vmem:[%s4834_s25 + $0xa60] sm:$0xff]  ;;  %841 = vst [vmem:[%s4839_s26 + $0x290] sm:$0xff] %v840_v18 }
  0x69   : > { %843 = vst [vmem:[%s4839_s26 + $0x298] sm:$0xff] %v842_v19  ;;  %v844_v20 = vld [vmem:[%s4834_s25 + $0xa80] sm:$0xff] }
  0x6a   : > { %v846_v21 = vld [vmem:[%s4834_s25 + $0xaa0] sm:$0xff]  ;;  %845 = vst [vmem:[%s4839_s26 + $0x2a0] sm:$0xff] %v844_v20 }
  0x6b   : > { %v848_v22 = vld [vmem:[%s4834_s25 + $0xac0] sm:$0xff]  ;;  %847 = vst [vmem:[%s4839_s26 + $0x2a8] sm:$0xff] %v846_v21 }
  0x6c   : > { %849 = vst [vmem:[%s4839_s26 + $0x2b0] sm:$0xff] %v848_v22  ;;  %v850_v23 = vld [vmem:[%s4834_s25 + $0xae0] sm:$0xff] }
  0x6d   : > { %v852_v24 = vld [vmem:[%s4834_s25 + $0xb00] sm:$0xff]  ;;  %851 = vst [vmem:[%s4839_s26 + $0x2b8] sm:$0xff] %v850_v23 }
  0x6e   : > { %v854_v25 = vld [vmem:[%s4834_s25 + $0xb20] sm:$0xff]  ;;  %853 = vst [vmem:[%s4839_s26 + $0x2c0] sm:$0xff] %v852_v24 }
  0x6f   : > { %855 = vst [vmem:[%s4839_s26 + $0x2c8] sm:$0xff] %v854_v25  ;;  %v856_v26 = vld [vmem:[%s4834_s25 + $0xb40] sm:$0xff] }
  0x70   : > { %v858_v27 = vld [vmem:[%s4834_s25 + $0xb60] sm:$0xff]  ;;  %857 = vst [vmem:[%s4839_s26 + $0x2d0] sm:$0xff] %v856_v26 }
  0x71   : > { %v860_v28 = vld [vmem:[%s4834_s25 + $0xb80] sm:$0xff]  ;;  %859 = vst [vmem:[%s4839_s26 + $0x2d8] sm:$0xff] %v858_v27 }
  0x72   : > { %861 = vst [vmem:[%s4839_s26 + $0x2e0] sm:$0xff] %v860_v28  ;;  %v862_v29 = vld [vmem:[%s4834_s25 + $0xba0] sm:$0xff] }
  0x73   : > { %v864_v30 = vld [vmem:[%s4834_s25 + $0xbc0] sm:$0xff]  ;;  %863 = vst [vmem:[%s4839_s26 + $0x2e8] sm:$0xff] %v862_v29 }
  0x74   : > { %v866_v31 = vld [vmem:[%s4834_s25 + $0xbe0] sm:$0xff]  ;;  %865 = vst [vmem:[%s4839_s26 + $0x2f0] sm:$0xff] %v864_v30 }
  0x75   : > { %867 = vst [vmem:[%s4839_s26 + $0x2f8] sm:$0xff] %v866_v31  ;;  %v868_v32 = vld [vmem:[%s4834_s25 + $0xc00] sm:$0xff] }
  0x76   : > { %v870_v33 = vld [vmem:[%s4834_s25 + $0xc20] sm:$0xff]  ;;  %869 = vst [vmem:[%s4839_s26 + $0x300] sm:$0xff] %v868_v32 }
  0x77   : > { %v872_v34 = vld [vmem:[%s4834_s25 + $0xc40] sm:$0xff]  ;;  %871 = vst [vmem:[%s4839_s26 + $0x308] sm:$0xff] %v870_v33 }
  0x78   : > { %873 = vst [vmem:[%s4839_s26 + $0x310] sm:$0xff] %v872_v34  ;;  %v874_v35 = vld [vmem:[%s4834_s25 + $0xc60] sm:$0xff] }
  0x79   : > { %v876_v36 = vld [vmem:[%s4834_s25 + $0xc80] sm:$0xff]  ;;  %875 = vst [vmem:[%s4839_s26 + $0x318] sm:$0xff] %v874_v35 }
  0x7a   : > { %v878_v37 = vld [vmem:[%s4834_s25 + $0xca0] sm:$0xff]  ;;  %877 = vst [vmem:[%s4839_s26 + $0x320] sm:$0xff] %v876_v36 }
  0x7b   : > { %879 = vst [vmem:[%s4839_s26 + $0x328] sm:$0xff] %v878_v37  ;;  %v880_v38 = vld [vmem:[%s4834_s25 + $0xcc0] sm:$0xff] }
  0x7c   : > { %v882_v39 = vld [vmem:[%s4834_s25 + $0xce0] sm:$0xff]  ;;  %881 = vst [vmem:[%s4839_s26 + $0x330] sm:$0xff] %v880_v38 }
  0x7d   : > { %v884_v40 = vld [vmem:[%s4834_s25 + $0xd00] sm:$0xff]  ;;  %883 = vst [vmem:[%s4839_s26 + $0x338] sm:$0xff] %v882_v39 }
  0x7e   : > { %885 = vst [vmem:[%s4839_s26 + $0x340] sm:$0xff] %v884_v40  ;;  %v886_v41 = vld [vmem:[%s4834_s25 + $0xd20] sm:$0xff] }
  0x7f   : > { %v888_v42 = vld [vmem:[%s4834_s25 + $0xd40] sm:$0xff]  ;;  %887 = vst [vmem:[%s4839_s26 + $0x348] sm:$0xff] %v886_v41 }
  0x80   : > { %v890_v43 = vld [vmem:[%s4834_s25 + $0xd60] sm:$0xff]  ;;  %889 = vst [vmem:[%s4839_s26 + $0x350] sm:$0xff] %v888_v42 }
  0x81   : > { %891 = vst [vmem:[%s4839_s26 + $0x358] sm:$0xff] %v890_v43  ;;  %v892_v44 = vld [vmem:[%s4834_s25 + $0xd80] sm:$0xff] }
  0x82   : > { %v894_v45 = vld [vmem:[%s4834_s25 + $0xda0] sm:$0xff]  ;;  %893 = vst [vmem:[%s4839_s26 + $0x360] sm:$0xff] %v892_v44 }
  0x83   : > { %v896_v46 = vld [vmem:[%s4834_s25 + $0xdc0] sm:$0xff]  ;;  %895 = vst [vmem:[%s4839_s26 + $0x368] sm:$0xff] %v894_v45 }
  0x84   : > { %897 = vst [vmem:[%s4839_s26 + $0x370] sm:$0xff] %v896_v46  ;;  %v898_v47 = vld [vmem:[%s4834_s25 + $0xde0] sm:$0xff] }
  0x85   : > { %v900_v48 = vld [vmem:[%s4834_s25 + $0xe00] sm:$0xff]  ;;  %899 = vst [vmem:[%s4839_s26 + $0x378] sm:$0xff] %v898_v47 }
  0x86   : > { %v902_v49 = vld [vmem:[%s4834_s25 + $0xe20] sm:$0xff]  ;;  %901 = vst [vmem:[%s4839_s26 + $0x380] sm:$0xff] %v900_v48 }
  0x87   : > { %903 = vst [vmem:[%s4839_s26 + $0x388] sm:$0xff] %v902_v49  ;;  %v904_v50 = vld [vmem:[%s4834_s25 + $0xe40] sm:$0xff] }
  0x88   : > { %v906_v51 = vld [vmem:[%s4834_s25 + $0xe60] sm:$0xff]  ;;  %905 = vst [vmem:[%s4839_s26 + $0x390] sm:$0xff] %v904_v50 }
  0x89   : > { %v908_v52 = vld [vmem:[%s4834_s25 + $0xe80] sm:$0xff]  ;;  %907 = vst [vmem:[%s4839_s26 + $0x398] sm:$0xff] %v906_v51 }
  0x8a   : > { %909 = vst [vmem:[%s4839_s26 + $0x3a0] sm:$0xff] %v908_v52  ;;  %v910_v53 = vld [vmem:[%s4834_s25 + $0xea0] sm:$0xff] }
  0x8b   : > { %v912_v54 = vld [vmem:[%s4834_s25 + $0xec0] sm:$0xff]  ;;  %911 = vst [vmem:[%s4839_s26 + $0x3a8] sm:$0xff] %v910_v53 }
  0x8c   : > { %v914_v55 = vld [vmem:[%s4834_s25 + $0xee0] sm:$0xff]  ;;  %913 = vst [vmem:[%s4839_s26 + $0x3b0] sm:$0xff] %v912_v54 }
  0x8d   : > { %915 = vst [vmem:[%s4839_s26 + $0x3b8] sm:$0xff] %v914_v55  ;;  %v916_v56 = vld [vmem:[%s4834_s25 + $0xf00] sm:$0xff] }
  0x8e   : > { %v918_v57 = vld [vmem:[%s4834_s25 + $0xf20] sm:$0xff]  ;;  %917 = vst [vmem:[%s4839_s26 + $0x3c0] sm:$0xff] %v916_v56 }
  0x8f   : > { %v920_v58 = vld [vmem:[%s4834_s25 + $0xf40] sm:$0xff]  ;;  %919 = vst [vmem:[%s4839_s26 + $0x3c8] sm:$0xff] %v918_v57 }
  0x90   : > { %921 = vst [vmem:[%s4839_s26 + $0x3d0] sm:$0xff] %v920_v58  ;;  %v922_v59 = vld [vmem:[%s4834_s25 + $0xf60] sm:$0xff] }
  0x91   : > { %v924_v60 = vld [vmem:[%s4834_s25 + $0xf80] sm:$0xff]  ;;  %923 = vst [vmem:[%s4839_s26 + $0x3d8] sm:$0xff] %v922_v59 }
  0x92   : > { %v926_v61 = vld [vmem:[%s4834_s25 + $0xfa0] sm:$0xff]  ;;  %925 = vst [vmem:[%s4839_s26 + $0x3e0] sm:$0xff] %v924_v60 }
  0x93   : > { %927 = vst [vmem:[%s4839_s26 + $0x3e8] sm:$0xff] %v926_v61  ;;  %v928_v62 = vld [vmem:[%s4834_s25 + $0xfc0] sm:$0xff] }
  0x94   : > { %v930_v63 = vld [vmem:[%s4834_s25 + $0xfe0] sm:$0xff]  ;;  %929 = vst [vmem:[%s4839_s26 + $0x3f0] sm:$0xff] %v928_v62 }
  0x95   : > { %v932_v0 = vld [vmem:[%s4834_s25 + $0x1000] sm:$0xff]  ;;  %931 = vst [vmem:[%s4839_s26 + $0x3f8] sm:$0xff] %v930_v63 }
  0x96   : > { %933 = vst [vmem:[%s4839_s26 + $0x400] sm:$0xff] %v932_v0  ;;  %v934_v1 = vld [vmem:[%s4834_s25 + $0x1020] sm:$0xff] }
  0x97   : > { %v936_v2 = vld [vmem:[%s4834_s25 + $0x1040] sm:$0xff]  ;;  %935 = vst [vmem:[%s4839_s26 + $0x408] sm:$0xff] %v934_v1 }
  0x98   : > { %v938_v3 = vld [vmem:[%s4834_s25 + $0x1060] sm:$0xff]  ;;  %937 = vst [vmem:[%s4839_s26 + $0x410] sm:$0xff] %v936_v2 }
  0x99   : > { %939 = vst [vmem:[%s4839_s26 + $0x418] sm:$0xff] %v938_v3  ;;  %v940_v4 = vld [vmem:[%s4834_s25 + $0x1080] sm:$0xff] }
  0x9a   : > { %v942_v5 = vld [vmem:[%s4834_s25 + $0x10a0] sm:$0xff]  ;;  %941 = vst [vmem:[%s4839_s26 + $0x420] sm:$0xff] %v940_v4 }
  0x9b   : > { %v944_v6 = vld [vmem:[%s4834_s25 + $0x10c0] sm:$0xff]  ;;  %943 = vst [vmem:[%s4839_s26 + $0x428] sm:$0xff] %v942_v5 }
  0x9c   : > { %945 = vst [vmem:[%s4839_s26 + $0x430] sm:$0xff] %v944_v6  ;;  %v946_v7 = vld [vmem:[%s4834_s25 + $0x10e0] sm:$0xff] }
  0x9d   : > { %v948_v8 = vld [vmem:[%s4834_s25 + $0x1100] sm:$0xff]  ;;  %947 = vst [vmem:[%s4839_s26 + $0x438] sm:$0xff] %v946_v7 }
  0x9e   : > { %v950_v9 = vld [vmem:[%s4834_s25 + $0x1120] sm:$0xff]  ;;  %949 = vst [vmem:[%s4839_s26 + $0x440] sm:$0xff] %v948_v8 }
  0x9f   : > { %951 = vst [vmem:[%s4839_s26 + $0x448] sm:$0xff] %v950_v9  ;;  %v952_v10 = vld [vmem:[%s4834_s25 + $0x1140] sm:$0xff] }
  0xa0   : > { %v954_v11 = vld [vmem:[%s4834_s25 + $0x1160] sm:$0xff]  ;;  %953 = vst [vmem:[%s4839_s26 + $0x450] sm:$0xff] %v952_v10 }
  0xa1   : > { %v956_v12 = vld [vmem:[%s4834_s25 + $0x1180] sm:$0xff]  ;;  %955 = vst [vmem:[%s4839_s26 + $0x458] sm:$0xff] %v954_v11 }
  0xa2   : > { %957 = vst [vmem:[%s4839_s26 + $0x460] sm:$0xff] %v956_v12  ;;  %v958_v13 = vld [vmem:[%s4834_s25 + $0x11a0] sm:$0xff] }
  0xa3   : > { %v960_v14 = vld [vmem:[%s4834_s25 + $0x11c0] sm:$0xff]  ;;  %959 = vst [vmem:[%s4839_s26 + $0x468] sm:$0xff] %v958_v13 }
  0xa4   : > { %v962_v15 = vld [vmem:[%s4834_s25 + $0x11e0] sm:$0xff]  ;;  %961 = vst [vmem:[%s4839_s26 + $0x470] sm:$0xff] %v960_v14 }
  0xa5   : > { %963 = vst [vmem:[%s4839_s26 + $0x478] sm:$0xff] %v962_v15  ;;  %v964_v16 = vld [vmem:[%s4834_s25 + $0x1200] sm:$0xff] }
  0xa6   : > { %v966_v17 = vld [vmem:[%s4834_s25 + $0x1220] sm:$0xff]  ;;  %965 = vst [vmem:[%s4839_s26 + $0x480] sm:$0xff] %v964_v16 }
  0xa7   : > { %v968_v18 = vld [vmem:[%s4834_s25 + $0x1240] sm:$0xff]  ;;  %967 = vst [vmem:[%s4839_s26 + $0x488] sm:$0xff] %v966_v17 }
  0xa8   : > { %969 = vst [vmem:[%s4839_s26 + $0x490] sm:$0xff] %v968_v18  ;;  %v970_v19 = vld [vmem:[%s4834_s25 + $0x1260] sm:$0xff] }
  0xa9   : > { %v972_v20 = vld [vmem:[%s4834_s25 + $0x1280] sm:$0xff]  ;;  %971 = vst [vmem:[%s4839_s26 + $0x498] sm:$0xff] %v970_v19 }
  0xaa   : > { %v974_v21 = vld [vmem:[%s4834_s25 + $0x12a0] sm:$0xff]  ;;  %973 = vst [vmem:[%s4839_s26 + $0x4a0] sm:$0xff] %v972_v20 }
  0xab   : > { %975 = vst [vmem:[%s4839_s26 + $0x4a8] sm:$0xff] %v974_v21  ;;  %v976_v22 = vld [vmem:[%s4834_s25 + $0x12c0] sm:$0xff] }
  0xac   : > { %v978_v23 = vld [vmem:[%s4834_s25 + $0x12e0] sm:$0xff]  ;;  %977 = vst [vmem:[%s4839_s26 + $0x4b0] sm:$0xff] %v976_v22 }
  0xad   : > { %v980_v24 = vld [vmem:[%s4834_s25 + $0x1300] sm:$0xff]  ;;  %979 = vst [vmem:[%s4839_s26 + $0x4b8] sm:$0xff] %v978_v23 }
  0xae   : > { %981 = vst [vmem:[%s4839_s26 + $0x4c0] sm:$0xff] %v980_v24  ;;  %v982_v25 = vld [vmem:[%s4834_s25 + $0x1320] sm:$0xff] }
  0xaf   : > { %v984_v26 = vld [vmem:[%s4834_s25 + $0x1340] sm:$0xff]  ;;  %983 = vst [vmem:[%s4839_s26 + $0x4c8] sm:$0xff] %v982_v25 }
  0xb0   : > { %v986_v27 = vld [vmem:[%s4834_s25 + $0x1360] sm:$0xff]  ;;  %985 = vst [vmem:[%s4839_s26 + $0x4d0] sm:$0xff] %v984_v26 }
  0xb1   : > { %987 = vst [vmem:[%s4839_s26 + $0x4d8] sm:$0xff] %v986_v27  ;;  %v988_v28 = vld [vmem:[%s4834_s25 + $0x1380] sm:$0xff] }
  0xb2   : > { %v990_v29 = vld [vmem:[%s4834_s25 + $0x13a0] sm:$0xff]  ;;  %989 = vst [vmem:[%s4839_s26 + $0x4e0] sm:$0xff] %v988_v28 }
  0xb3   : > { %v992_v30 = vld [vmem:[%s4834_s25 + $0x13c0] sm:$0xff]  ;;  %991 = vst [vmem:[%s4839_s26 + $0x4e8] sm:$0xff] %v990_v29 }
  0xb4   : > { %993 = vst [vmem:[%s4839_s26 + $0x4f0] sm:$0xff] %v992_v30  ;;  %v994_v31 = vld [vmem:[%s4834_s25 + $0x13e0] sm:$0xff] }
  0xb5   : > { %v996_v32 = vld [vmem:[%s4834_s25 + $0x1400] sm:$0xff]  ;;  %995 = vst [vmem:[%s4839_s26 + $0x4f8] sm:$0xff] %v994_v31 }
  0xb6   : > { %v998_v33 = vld [vmem:[%s4834_s25 + $0x1420] sm:$0xff]  ;;  %997 = vst [vmem:[%s4839_s26 + $0x500] sm:$0xff] %v996_v32 }
  0xb7   : > { %999 = vst [vmem:[%s4839_s26 + $0x508] sm:$0xff] %v998_v33  ;;  %v1000_v34 = vld [vmem:[%s4834_s25 + $0x1440] sm:$0xff] }
  0xb8   : > { %v1002_v35 = vld [vmem:[%s4834_s25 + $0x1460] sm:$0xff]  ;;  %1001 = vst [vmem:[%s4839_s26 + $0x510] sm:$0xff] %v1000_v34 }
  0xb9   : > { %v1004_v36 = vld [vmem:[%s4834_s25 + $0x1480] sm:$0xff]  ;;  %1003 = vst [vmem:[%s4839_s26 + $0x518] sm:$0xff] %v1002_v35 }
  0xba   : > { %1005 = vst [vmem:[%s4839_s26 + $0x520] sm:$0xff] %v1004_v36  ;;  %v1006_v37 = vld [vmem:[%s4834_s25 + $0x14a0] sm:$0xff] }
  0xbb   : > { %v1008_v38 = vld [vmem:[%s4834_s25 + $0x14c0] sm:$0xff]  ;;  %1007 = vst [vmem:[%s4839_s26 + $0x528] sm:$0xff] %v1006_v37 }
  0xbc   : > { %v1010_v39 = vld [vmem:[%s4834_s25 + $0x14e0] sm:$0xff]  ;;  %1009 = vst [vmem:[%s4839_s26 + $0x530] sm:$0xff] %v1008_v38 }
  0xbd   : > { %1011 = vst [vmem:[%s4839_s26 + $0x538] sm:$0xff] %v1010_v39  ;;  %v1012_v40 = vld [vmem:[%s4834_s25 + $0x1500] sm:$0xff] }
  0xbe   : > { %v1014_v41 = vld [vmem:[%s4834_s25 + $0x1520] sm:$0xff]  ;;  %1013 = vst [vmem:[%s4839_s26 + $0x540] sm:$0xff] %v1012_v40 }
  0xbf   : > { %v1016_v42 = vld [vmem:[%s4834_s25 + $0x1540] sm:$0xff]  ;;  %1015 = vst [vmem:[%s4839_s26 + $0x548] sm:$0xff] %v1014_v41 }
  0xc0   : > { %1017 = vst [vmem:[%s4839_s26 + $0x550] sm:$0xff] %v1016_v42  ;;  %v1018_v43 = vld [vmem:[%s4834_s25 + $0x1560] sm:$0xff] }
  0xc1   : > { %v1020_v44 = vld [vmem:[%s4834_s25 + $0x1580] sm:$0xff]  ;;  %1019 = vst [vmem:[%s4839_s26 + $0x558] sm:$0xff] %v1018_v43 }
  0xc2   : > { %v1022_v45 = vld [vmem:[%s4834_s25 + $0x15a0] sm:$0xff]  ;;  %1021 = vst [vmem:[%s4839_s26 + $0x560] sm:$0xff] %v1020_v44 }
  0xc3   : > { %1023 = vst [vmem:[%s4839_s26 + $0x568] sm:$0xff] %v1022_v45  ;;  %v1024_v46 = vld [vmem:[%s4834_s25 + $0x15c0] sm:$0xff] }
  0xc4   : > { %v1026_v47 = vld [vmem:[%s4834_s25 + $0x15e0] sm:$0xff]  ;;  %1025 = vst [vmem:[%s4839_s26 + $0x570] sm:$0xff] %v1024_v46 }
  0xc5   : > { %v1028_v48 = vld [vmem:[%s4834_s25 + $0x1600] sm:$0xff]  ;;  %1027 = vst [vmem:[%s4839_s26 + $0x578] sm:$0xff] %v1026_v47 }
  0xc6   : > { %1029 = vst [vmem:[%s4839_s26 + $0x580] sm:$0xff] %v1028_v48  ;;  %v1030_v49 = vld [vmem:[%s4834_s25 + $0x1620] sm:$0xff] }
  0xc7   : > { %v1032_v50 = vld [vmem:[%s4834_s25 + $0x1640] sm:$0xff]  ;;  %1031 = vst [vmem:[%s4839_s26 + $0x588] sm:$0xff] %v1030_v49 }
  0xc8   : > { %v1034_v51 = vld [vmem:[%s4834_s25 + $0x1660] sm:$0xff]  ;;  %1033 = vst [vmem:[%s4839_s26 + $0x590] sm:$0xff] %v1032_v50 }
  0xc9   : > { %1035 = vst [vmem:[%s4839_s26 + $0x598] sm:$0xff] %v1034_v51  ;;  %v1036_v52 = vld [vmem:[%s4834_s25 + $0x1680] sm:$0xff] }
  0xca   : > { %v1038_v53 = vld [vmem:[%s4834_s25 + $0x16a0] sm:$0xff]  ;;  %1037 = vst [vmem:[%s4839_s26 + $0x5a0] sm:$0xff] %v1036_v52 }
  0xcb   : > { %v1040_v54 = vld [vmem:[%s4834_s25 + $0x16c0] sm:$0xff]  ;;  %1039 = vst [vmem:[%s4839_s26 + $0x5a8] sm:$0xff] %v1038_v53 }
  0xcc   : > { %1041 = vst [vmem:[%s4839_s26 + $0x5b0] sm:$0xff] %v1040_v54  ;;  %v1042_v55 = vld [vmem:[%s4834_s25 + $0x16e0] sm:$0xff] }
  0xcd   : > { %v1044_v56 = vld [vmem:[%s4834_s25 + $0x1700] sm:$0xff]  ;;  %1043 = vst [vmem:[%s4839_s26 + $0x5b8] sm:$0xff] %v1042_v55 }
  0xce   : > { %v1046_v57 = vld [vmem:[%s4834_s25 + $0x1720] sm:$0xff]  ;;  %1045 = vst [vmem:[%s4839_s26 + $0x5c0] sm:$0xff] %v1044_v56 }
  0xcf   : > { %1047 = vst [vmem:[%s4839_s26 + $0x5c8] sm:$0xff] %v1046_v57  ;;  %v1048_v58 = vld [vmem:[%s4834_s25 + $0x1740] sm:$0xff] }
  0xd0   : > { %v1050_v59 = vld [vmem:[%s4834_s25 + $0x1760] sm:$0xff]  ;;  %1049 = vst [vmem:[%s4839_s26 + $0x5d0] sm:$0xff] %v1048_v58 }
  0xd1   : > { %v1052_v60 = vld [vmem:[%s4834_s25 + $0x1780] sm:$0xff]  ;;  %1051 = vst [vmem:[%s4839_s26 + $0x5d8] sm:$0xff] %v1050_v59 }
  0xd2   : > { %1053 = vst [vmem:[%s4839_s26 + $0x5e0] sm:$0xff] %v1052_v60  ;;  %v1054_v61 = vld [vmem:[%s4834_s25 + $0x17a0] sm:$0xff] }
  0xd3   : > { %v1056_v62 = vld [vmem:[%s4834_s25 + $0x17c0] sm:$0xff]  ;;  %1055 = vst [vmem:[%s4839_s26 + $0x5e8] sm:$0xff] %v1054_v61 }
  0xd4   : > { %v1058_v63 = vld [vmem:[%s4834_s25 + $0x17e0] sm:$0xff]  ;;  %1057 = vst [vmem:[%s4839_s26 + $0x5f0] sm:$0xff] %v1056_v62 }
  0xd5   : > { %1059 = vst [vmem:[%s4839_s26 + $0x5f8] sm:$0xff] %v1058_v63  ;;  %v1060_v0 = vld [vmem:[%s4834_s25 + $0x1800] sm:$0xff] }
  0xd6   : > { %v1062_v1 = vld [vmem:[%s4834_s25 + $0x1820] sm:$0xff]  ;;  %1061 = vst [vmem:[%s4839_s26 + $0x600] sm:$0xff] %v1060_v0 }
  0xd7   : > { %v1064_v2 = vld [vmem:[%s4834_s25 + $0x1840] sm:$0xff]  ;;  %1063 = vst [vmem:[%s4839_s26 + $0x608] sm:$0xff] %v1062_v1 }
  0xd8   : > { %1065 = vst [vmem:[%s4839_s26 + $0x610] sm:$0xff] %v1064_v2  ;;  %v1066_v3 = vld [vmem:[%s4834_s25 + $0x1860] sm:$0xff] }
  0xd9   : > { %v1068_v4 = vld [vmem:[%s4834_s25 + $0x1880] sm:$0xff]  ;;  %1067 = vst [vmem:[%s4839_s26 + $0x618] sm:$0xff] %v1066_v3 }
  0xda   : > { %v1070_v5 = vld [vmem:[%s4834_s25 + $0x18a0] sm:$0xff]  ;;  %1069 = vst [vmem:[%s4839_s26 + $0x620] sm:$0xff] %v1068_v4 }
  0xdb   : > { %1071 = vst [vmem:[%s4839_s26 + $0x628] sm:$0xff] %v1070_v5  ;;  %v1072_v6 = vld [vmem:[%s4834_s25 + $0x18c0] sm:$0xff] }
  0xdc   : > { %v1074_v7 = vld [vmem:[%s4834_s25 + $0x18e0] sm:$0xff]  ;;  %1073 = vst [vmem:[%s4839_s26 + $0x630] sm:$0xff] %v1072_v6 }
  0xdd   : > { %v1076_v8 = vld [vmem:[%s4834_s25 + $0x1900] sm:$0xff]  ;;  %1075 = vst [vmem:[%s4839_s26 + $0x638] sm:$0xff] %v1074_v7 }
  0xde   : > { %1077 = vst [vmem:[%s4839_s26 + $0x640] sm:$0xff] %v1076_v8  ;;  %v1078_v9 = vld [vmem:[%s4834_s25 + $0x1920] sm:$0xff] }
  0xdf   : > { %v1080_v10 = vld [vmem:[%s4834_s25 + $0x1940] sm:$0xff]  ;;  %1079 = vst [vmem:[%s4839_s26 + $0x648] sm:$0xff] %v1078_v9 }
  0xe0   : > { %v1082_v11 = vld [vmem:[%s4834_s25 + $0x1960] sm:$0xff]  ;;  %1081 = vst [vmem:[%s4839_s26 + $0x650] sm:$0xff] %v1080_v10 }
  0xe1   : > { %1083 = vst [vmem:[%s4839_s26 + $0x658] sm:$0xff] %v1082_v11  ;;  %v1084_v12 = vld [vmem:[%s4834_s25 + $0x1980] sm:$0xff] }
  0xe2   : > { %v1086_v13 = vld [vmem:[%s4834_s25 + $0x19a0] sm:$0xff]  ;;  %1085 = vst [vmem:[%s4839_s26 + $0x660] sm:$0xff] %v1084_v12 }
  0xe3   : > { %v1088_v14 = vld [vmem:[%s4834_s25 + $0x19c0] sm:$0xff]  ;;  %1087 = vst [vmem:[%s4839_s26 + $0x668] sm:$0xff] %v1086_v13 }
  0xe4   : > { %1089 = vst [vmem:[%s4839_s26 + $0x670] sm:$0xff] %v1088_v14  ;;  %v1090_v15 = vld [vmem:[%s4834_s25 + $0x19e0] sm:$0xff] }
  0xe5   : > { %v1092_v16 = vld [vmem:[%s4834_s25 + $0x1a00] sm:$0xff]  ;;  %1091 = vst [vmem:[%s4839_s26 + $0x678] sm:$0xff] %v1090_v15 }
  0xe6   : > { %v1094_v17 = vld [vmem:[%s4834_s25 + $0x1a20] sm:$0xff]  ;;  %1093 = vst [vmem:[%s4839_s26 + $0x680] sm:$0xff] %v1092_v16 }
  0xe7   : > { %1095 = vst [vmem:[%s4839_s26 + $0x688] sm:$0xff] %v1094_v17  ;;  %v1096_v18 = vld [vmem:[%s4834_s25 + $0x1a40] sm:$0xff] }
  0xe8   : > { %v1098_v19 = vld [vmem:[%s4834_s25 + $0x1a60] sm:$0xff]  ;;  %1097 = vst [vmem:[%s4839_s26 + $0x690] sm:$0xff] %v1096_v18 }
  0xe9   : > { %v1100_v20 = vld [vmem:[%s4834_s25 + $0x1a80] sm:$0xff]  ;;  %1099 = vst [vmem:[%s4839_s26 + $0x698] sm:$0xff] %v1098_v19 }
  0xea   : > { %1101 = vst [vmem:[%s4839_s26 + $0x6a0] sm:$0xff] %v1100_v20  ;;  %v1102_v21 = vld [vmem:[%s4834_s25 + $0x1aa0] sm:$0xff] }
  0xeb   : > { %v1104_v22 = vld [vmem:[%s4834_s25 + $0x1ac0] sm:$0xff]  ;;  %1103 = vst [vmem:[%s4839_s26 + $0x6a8] sm:$0xff] %v1102_v21 }
  0xec   : > { %v1106_v23 = vld [vmem:[%s4834_s25 + $0x1ae0] sm:$0xff]  ;;  %1105 = vst [vmem:[%s4839_s26 + $0x6b0] sm:$0xff] %v1104_v22 }
  0xed   : > { %1107 = vst [vmem:[%s4839_s26 + $0x6b8] sm:$0xff] %v1106_v23  ;;  %v1108_v24 = vld [vmem:[%s4834_s25 + $0x1b00] sm:$0xff] }
  0xee   : > { %v1110_v25 = vld [vmem:[%s4834_s25 + $0x1b20] sm:$0xff]  ;;  %1109 = vst [vmem:[%s4839_s26 + $0x6c0] sm:$0xff] %v1108_v24 }
  0xef   : > { %v1112_v26 = vld [vmem:[%s4834_s25 + $0x1b40] sm:$0xff]  ;;  %1111 = vst [vmem:[%s4839_s26 + $0x6c8] sm:$0xff] %v1110_v25 }
  0xf0   : > { %1113 = vst [vmem:[%s4839_s26 + $0x6d0] sm:$0xff] %v1112_v26  ;;  %v1114_v27 = vld [vmem:[%s4834_s25 + $0x1b60] sm:$0xff] }
  0xf1   : > { %v1116_v28 = vld [vmem:[%s4834_s25 + $0x1b80] sm:$0xff]  ;;  %1115 = vst [vmem:[%s4839_s26 + $0x6d8] sm:$0xff] %v1114_v27 }
  0xf2   : > { %v1118_v29 = vld [vmem:[%s4834_s25 + $0x1ba0] sm:$0xff]  ;;  %1117 = vst [vmem:[%s4839_s26 + $0x6e0] sm:$0xff] %v1116_v28 }
  0xf3   : > { %1119 = vst [vmem:[%s4839_s26 + $0x6e8] sm:$0xff] %v1118_v29  ;;  %v1120_v30 = vld [vmem:[%s4834_s25 + $0x1bc0] sm:$0xff] }
  0xf4   : > { %v1122_v31 = vld [vmem:[%s4834_s25 + $0x1be0] sm:$0xff]  ;;  %1121 = vst [vmem:[%s4839_s26 + $0x6f0] sm:$0xff] %v1120_v30 }
  0xf5   : > { %v1124_v32 = vld [vmem:[%s4834_s25 + $0x1c00] sm:$0xff]  ;;  %1123 = vst [vmem:[%s4839_s26 + $0x6f8] sm:$0xff] %v1122_v31 }
  0xf6   : > { %1125 = vst [vmem:[%s4839_s26 + $0x700] sm:$0xff] %v1124_v32  ;;  %v1126_v33 = vld [vmem:[%s4834_s25 + $0x1c20] sm:$0xff] }
  0xf7   : > { %v1128_v34 = vld [vmem:[%s4834_s25 + $0x1c40] sm:$0xff]  ;;  %1127 = vst [vmem:[%s4839_s26 + $0x708] sm:$0xff] %v1126_v33 }
  0xf8   : > { %v1130_v35 = vld [vmem:[%s4834_s25 + $0x1c60] sm:$0xff]  ;;  %1129 = vst [vmem:[%s4839_s26 + $0x710] sm:$0xff] %v1128_v34 }
  0xf9   : > { %1131 = vst [vmem:[%s4839_s26 + $0x718] sm:$0xff] %v1130_v35  ;;  %v1132_v36 = vld [vmem:[%s4834_s25 + $0x1c80] sm:$0xff] }
  0xfa   : > { %v1134_v37 = vld [vmem:[%s4834_s25 + $0x1ca0] sm:$0xff]  ;;  %1133 = vst [vmem:[%s4839_s26 + $0x720] sm:$0xff] %v1132_v36 }
  0xfb   : > { %v1136_v38 = vld [vmem:[%s4834_s25 + $0x1cc0] sm:$0xff]  ;;  %1135 = vst [vmem:[%s4839_s26 + $0x728] sm:$0xff] %v1134_v37 }
  0xfc   : > { %1137 = vst [vmem:[%s4839_s26 + $0x730] sm:$0xff] %v1136_v38  ;;  %v1138_v39 = vld [vmem:[%s4834_s25 + $0x1ce0] sm:$0xff] }
  0xfd   : > { %v1140_v40 = vld [vmem:[%s4834_s25 + $0x1d00] sm:$0xff]  ;;  %1139 = vst [vmem:[%s4839_s26 + $0x738] sm:$0xff] %v1138_v39 }
  0xfe   : > { %v1142_v41 = vld [vmem:[%s4834_s25 + $0x1d20] sm:$0xff]  ;;  %1141 = vst [vmem:[%s4839_s26 + $0x740] sm:$0xff] %v1140_v40 }
  0xff   : > { %1143 = vst [vmem:[%s4839_s26 + $0x748] sm:$0xff] %v1142_v41  ;;  %v1144_v42 = vld [vmem:[%s4834_s25 + $0x1d40] sm:$0xff] }
 0x100   : > { %v1146_v43 = vld [vmem:[%s4834_s25 + $0x1d60] sm:$0xff]  ;;  %1145 = vst [vmem:[%s4839_s26 + $0x750] sm:$0xff] %v1144_v42 }
 0x101   : > { %v1148_v44 = vld [vmem:[%s4834_s25 + $0x1d80] sm:$0xff]  ;;  %1147 = vst [vmem:[%s4839_s26 + $0x758] sm:$0xff] %v1146_v43 }
 0x102   : > { %1149 = vst [vmem:[%s4839_s26 + $0x760] sm:$0xff] %v1148_v44  ;;  %v1150_v45 = vld [vmem:[%s4834_s25 + $0x1da0] sm:$0xff] }
 0x103   : > { %v1152_v46 = vld [vmem:[%s4834_s25 + $0x1dc0] sm:$0xff]  ;;  %1151 = vst [vmem:[%s4839_s26 + $0x768] sm:$0xff] %v1150_v45 }
 0x104   : > { %v1154_v47 = vld [vmem:[%s4834_s25 + $0x1de0] sm:$0xff]  ;;  %1153 = vst [vmem:[%s4839_s26 + $0x770] sm:$0xff] %v1152_v46 }
 0x105   : > { %1155 = vst [vmem:[%s4839_s26 + $0x778] sm:$0xff] %v1154_v47  ;;  %v1156_v48 = vld [vmem:[%s4834_s25 + $0x1e00] sm:$0xff] }
 0x106   : > { %v1158_v49 = vld [vmem:[%s4834_s25 + $0x1e20] sm:$0xff]  ;;  %1157 = vst [vmem:[%s4839_s26 + $0x780] sm:$0xff] %v1156_v48 }
 0x107   : > { %v1160_v50 = vld [vmem:[%s4834_s25 + $0x1e40] sm:$0xff]  ;;  %1159 = vst [vmem:[%s4839_s26 + $0x788] sm:$0xff] %v1158_v49 }
 0x108   : > { %1161 = vst [vmem:[%s4839_s26 + $0x790] sm:$0xff] %v1160_v50  ;;  %v1162_v51 = vld [vmem:[%s4834_s25 + $0x1e60] sm:$0xff] }
 0x109   : > { %v1164_v52 = vld [vmem:[%s4834_s25 + $0x1e80] sm:$0xff]  ;;  %1163 = vst [vmem:[%s4839_s26 + $0x798] sm:$0xff] %v1162_v51 }
 0x10a   : > { %v1166_v53 = vld [vmem:[%s4834_s25 + $0x1ea0] sm:$0xff]  ;;  %1165 = vst [vmem:[%s4839_s26 + $0x7a0] sm:$0xff] %v1164_v52 }
 0x10b   : > { %1167 = vst [vmem:[%s4839_s26 + $0x7a8] sm:$0xff] %v1166_v53  ;;  %v1168_v54 = vld [vmem:[%s4834_s25 + $0x1ec0] sm:$0xff] }
 0x10c   : > { %v1170_v55 = vld [vmem:[%s4834_s25 + $0x1ee0] sm:$0xff]  ;;  %1169 = vst [vmem:[%s4839_s26 + $0x7b0] sm:$0xff] %v1168_v54 }
 0x10d   : > { %v1172_v56 = vld [vmem:[%s4834_s25 + $0x1f00] sm:$0xff]  ;;  %1171 = vst [vmem:[%s4839_s26 + $0x7b8] sm:$0xff] %v1170_v55 }
 0x10e   : > { %1173 = vst [vmem:[%s4839_s26 + $0x7c0] sm:$0xff] %v1172_v56  ;;  %v1174_v57 = vld [vmem:[%s4834_s25 + $0x1f20] sm:$0xff] }
 0x10f   : > { %v1176_v58 = vld [vmem:[%s4834_s25 + $0x1f40] sm:$0xff]  ;;  %1175 = vst [vmem:[%s4839_s26 + $0x7c8] sm:$0xff] %v1174_v57 }
 0x110   : > { %v1178_v59 = vld [vmem:[%s4834_s25 + $0x1f60] sm:$0xff]  ;;  %1177 = vst [vmem:[%s4839_s26 + $0x7d0] sm:$0xff] %v1176_v58 }
 0x111   : > { %1179 = vst [vmem:[%s4839_s26 + $0x7d8] sm:$0xff] %v1178_v59  ;;  %v1180_v60 = vld [vmem:[%s4834_s25 + $0x1f80] sm:$0xff] }
 0x112   : > { %v1182_v61 = vld [vmem:[%s4834_s25 + $0x1fa0] sm:$0xff]  ;;  %1181 = vst [vmem:[%s4839_s26 + $0x7e0] sm:$0xff] %v1180_v60 }
 0x113   : > { %v1184_v62 = vld [vmem:[%s4834_s25 + $0x1fc0] sm:$0xff]  ;;  %1183 = vst [vmem:[%s4839_s26 + $0x7e8] sm:$0xff] %v1182_v61 }
 0x114   : > { %1185 = vst [vmem:[%s4839_s26 + $0x7f0] sm:$0xff] %v1184_v62  ;;  %v1186_v63 = vld [vmem:[%s4834_s25 + $0x1fe0] sm:$0xff] }
 0x115   : > { %1187 = vst [vmem:[%s4839_s26 + $0x7f8] sm:$0xff] %v1186_v63 }
 0x116 PF: > { %p3852_p8 = scmp.ge.s32.totalorder %s4769_s13, 1  ;;  %p1192_p9 = scmp.lt.s32.totalorder %s4769_s13, 5 }
 0x118   : > { %p1193_p10 = pnand %p3852_p8, %p1192_p9 }
 0x119   : > { %s1199_s27 = sand.u32 (!%p1193_p10), 1, %s4753_s9   ;;  %v5356_v0 = vld [vmem:[%s5904_s0] sm:$0xff] (!%p1193_p10) }
 0x11a   : > { %1196 = sbr.rel (%p1193_p10) target bundleno = 791 (0x317), region = 62  ;;  %v5361_v1 = vld [vmem:[%s5904_s0 + $0x40] sm:$0xff] (!%p1193_p10)  ;;  %s3853_s6 = sshll.u32 (!%p1193_p10), %s1199_s27, 11 }
 0x11b   : > { %v5366_v2 = vld [vmem:[%s5904_s0 + $0x20] sm:$0xff] (!%p1193_p10)  ;;  %v3854_v3 = vcombine.low (!%p1193_p10), %v5356_v0, %v5361_v1  ;;  %v3855_v4 = vcombine.high (!%p1193_p10), %v5356_v0, %v5361_v1  ;;  %s5383_s15 = scalar_lea.vmem (!%p1193_p10), [#allocation2], %s3853_s6  ;;  %s4290_s4 = smul.u32 (!%p1193_p10), 112, %s1199_s27 }
 0x11c   : > { %v5377_v5 = vld [vmem:[%s5904_s0 + $0x60] sm:$0xff] (!%p1193_p10)  ;;  %v4337_v12 = vld [vmem:[%s5383_s15 + $0x14] ss:$8 sps:$4 sm:$0xff] (!%p1193_p10)   ;;  %v4341_v14 = vld [vmem:[%s5383_s15 + $0x10] ss:$8 sps:$4 sm:$0xff] (!%p1193_p10)  }
 0x11d   : > { %v3862_v6 = vcombine.low (!%p1193_p10), %v5366_v2, %v5377_v5  ;;  %v3863_v7 = vcombine.high (!%p1193_p10), %v5366_v2, %v5377_v5  ;;  %v4331_v8 = vld [vmem:[%s5383_s15 + $0x4] ss:$8 sps:$4 sm:$0xff] (!%p1193_p10)   ;;  %3155 = vmatprep.mubr.bf16.mxu1 (!%p1193_p10), %v3855_v4  ;;  %v4335_v10 = vld [vmem:[%s5383_s15] ss:$8 sps:$4 sm:$0xff] (!%p1193_p10)   ;;  %v4339_v13 = vld [vmem:[%s5383_s15 + $0x414] ss:$8 sps:$4 sm:$0xff] (!%p1193_p10)  }
 0x11e   : > { %v4333_v9 = vld [vmem:[%s5383_s15 + $0x404] ss:$8 sps:$4 sm:$0xff] (!%p1193_p10)   ;;  %3123 = vmatprep.subr.bf16.mxu1 (!%p1193_p10), %v4331_v8  ;;  %v4336_v11 = vld [vmem:[%s5383_s15 + $0x400] ss:$8 sps:$4 sm:$0xff] (!%p1193_p10)   ;;  %v4342_v15 = vld [vmem:[%s5383_s15 + $0x410] ss:$8 sps:$4 sm:$0xff] (!%p1193_p10)  }
 0x11f   : > { %3439 = vmatprep.mubr.bf16.mxu0 (!%p1193_p10), %v3863_v7  ;;  %3407 = vmatprep.subr.bf16.mxu0 (!%p1193_p10), %v4333_v9  ;;  %v4343_v16 = vld [vmem:[%s5383_s15 + $0x24] ss:$8 sps:$4 sm:$0xff] (!%p1193_p10)   ;;  %v4347_v18 = vld [vmem:[%s5383_s15 + $0x20] ss:$8 sps:$4 sm:$0xff] (!%p1193_p10)   ;;  %v4349_v20 = vld [vmem:[%s5383_s15 + $0x34] ss:$8 sps:$4 sm:$0xff] (!%p1193_p10)  }
 0x120   : > { %3124 = vmatpush1.bf16.msra.mxu1 (!%p1193_p10), %v4335_v10  ;;  %3408 = vmatpush1.bf16.msra.mxu0 (!%p1193_p10), %v4336_v11  ;;  %v4345_v17 = vld [vmem:[%s5383_s15 + $0x424] ss:$8 sps:$4 sm:$0xff] (!%p1193_p10)   ;;  %v4348_v19 = vld [vmem:[%s5383_s15 + $0x420] ss:$8 sps:$4 sm:$0xff] (!%p1193_p10)   ;;  %v4351_v21 = vld [vmem:[%s5383_s15 + $0x434] ss:$8 sps:$4 sm:$0xff] (!%p1193_p10)  }
 0x121   : > { %3125 = vmatprep.subr.bf16.mxu1 %v4337_v12  ;;  %3409 = vmatprep.subr.bf16.mxu0 %v4339_v13  ;;  %v4353_v22 = vld [vmem:[%s5383_s15 + $0x30] ss:$8 sps:$4 sm:$0xff]   ;;  %v4355_v24 = vld [vmem:[%s5383_s15 + $0x44] ss:$8 sps:$4 sm:$0xff]   ;;  %v4359_v26 = vld [vmem:[%s5383_s15 + $0x40] ss:$8 sps:$4 sm:$0xff]  }
 0x122   : > { %v4354_v23 = vld [vmem:[%s5383_s15 + $0x430] ss:$8 sps:$4 sm:$0xff]   ;;  %v4357_v25 = vld [vmem:[%s5383_s15 + $0x444] ss:$8 sps:$4 sm:$0xff]   ;;  %v4360_v27 = vld [vmem:[%s5383_s15 + $0x440] ss:$8 sps:$4 sm:$0xff]  }
 0x123   : > { %v4361_v28 = vld [vmem:[%s5383_s15 + $0x54] ss:$8 sps:$4 sm:$0xff]   ;;  %v4365_v30 = vld [vmem:[%s5383_s15 + $0x50] ss:$8 sps:$4 sm:$0xff]   ;;  %v4367_v32 = vld [vmem:[%s5383_s15 + $0x64] ss:$8 sps:$4 sm:$0xff]  }
 0x124   : > { %3126 = vmatpush1.bf16.msra.mxu1 %v4341_v14  ;;  %3410 = vmatpush1.bf16.msra.mxu0 %v4342_v15  ;;  %v4363_v29 = vld [vmem:[%s5383_s15 + $0x454] ss:$8 sps:$4 sm:$0xff]   ;;  %v4366_v31 = vld [vmem:[%s5383_s15 + $0x450] ss:$8 sps:$4 sm:$0xff]   ;;  %v4369_v33 = vld [vmem:[%s5383_s15 + $0x464] ss:$8 sps:$4 sm:$0xff]  }
 0x125   : > { %3127 = vmatprep.subr.bf16.mxu1 %v4343_v16  ;;  %3411 = vmatprep.subr.bf16.mxu0 %v4345_v17  ;;  %v4371_v34 = vld [vmem:[%s5383_s15 + $0x60] ss:$8 sps:$4 sm:$0xff]   ;;  %v4373_v36 = vld [vmem:[%s5383_s15 + $0x74] ss:$8 sps:$4 sm:$0xff]   ;;  %v4377_v38 = vld [vmem:[%s5383_s15 + $0x70] ss:$8 sps:$4 sm:$0xff]  }
 0x126   : > { %v4372_v35 = vld [vmem:[%s5383_s15 + $0x460] ss:$8 sps:$4 sm:$0xff]   ;;  %v4375_v37 = vld [vmem:[%s5383_s15 + $0x474] ss:$8 sps:$4 sm:$0xff]   ;;  %v4378_v39 = vld [vmem:[%s5383_s15 + $0x470] ss:$8 sps:$4 sm:$0xff]  }
 0x127   : > { %v4379_v40 = vld [vmem:[%s5383_s15 + $0x84] ss:$8 sps:$4 sm:$0xff]   ;;  %v4383_v42 = vld [vmem:[%s5383_s15 + $0x80] ss:$8 sps:$4 sm:$0xff]   ;;  %v4385_v44 = vld [vmem:[%s5383_s15 + $0x94] ss:$8 sps:$4 sm:$0xff]  }
 0x128   : > { %3128 = vmatpush1.bf16.msra.mxu1 %v4347_v18  ;;  %3412 = vmatpush1.bf16.msra.mxu0 %v4348_v19  ;;  %v4381_v41 = vld [vmem:[%s5383_s15 + $0x484] ss:$8 sps:$4 sm:$0xff]   ;;  %v4384_v43 = vld [vmem:[%s5383_s15 + $0x480] ss:$8 sps:$4 sm:$0xff]   ;;  %v4387_v45 = vld [vmem:[%s5383_s15 + $0x494] ss:$8 sps:$4 sm:$0xff]  }
 0x129   : > { %3129 = vmatprep.subr.bf16.mxu1 %v4349_v20  ;;  %3413 = vmatprep.subr.bf16.mxu0 %v4351_v21  ;;  %v4389_v46 = vld [vmem:[%s5383_s15 + $0x90] ss:$8 sps:$4 sm:$0xff]   ;;  %v4391_v48 = vld [vmem:[%s5383_s15 + $0xa4] ss:$8 sps:$4 sm:$0xff]   ;;  %v4395_v50 = vld [vmem:[%s5383_s15 + $0xa0] ss:$8 sps:$4 sm:$0xff]  }
 0x12a   : > { %v4390_v47 = vld [vmem:[%s5383_s15 + $0x490] ss:$8 sps:$4 sm:$0xff]   ;;  %v4393_v49 = vld [vmem:[%s5383_s15 + $0x4a4] ss:$8 sps:$4 sm:$0xff]   ;;  %v4396_v51 = vld [vmem:[%s5383_s15 + $0x4a0] ss:$8 sps:$4 sm:$0xff]  }
 0x12b   : > { %v4397_v52 = vld [vmem:[%s5383_s15 + $0xb4] ss:$8 sps:$4 sm:$0xff]   ;;  %v4401_v54 = vld [vmem:[%s5383_s15 + $0xb0] ss:$8 sps:$4 sm:$0xff]   ;;  %v4403_v56 = vld [vmem:[%s5383_s15 + $0xc4] ss:$8 sps:$4 sm:$0xff]  }
 0x12c   : > { %3130 = vmatpush1.bf16.msra.mxu1 %v4353_v22  ;;  %3414 = vmatpush1.bf16.msra.mxu0 %v4354_v23  ;;  %v4399_v53 = vld [vmem:[%s5383_s15 + $0x4b4] ss:$8 sps:$4 sm:$0xff]   ;;  %v4402_v55 = vld [vmem:[%s5383_s15 + $0x4b0] ss:$8 sps:$4 sm:$0xff]   ;;  %v4405_v57 = vld [vmem:[%s5383_s15 + $0x4c4] ss:$8 sps:$4 sm:$0xff]  }
 0x12d   : > { %3131 = vmatprep.subr.bf16.mxu1 %v4355_v24  ;;  %3415 = vmatprep.subr.bf16.mxu0 %v4357_v25  ;;  %v4407_v58 = vld [vmem:[%s5383_s15 + $0xc0] ss:$8 sps:$4 sm:$0xff]   ;;  %v4409_v60 = vld [vmem:[%s5383_s15 + $0xd4] ss:$8 sps:$4 sm:$0xff]   ;;  %v4413_v62 = vld [vmem:[%s5383_s15 + $0xd0] ss:$8 sps:$4 sm:$0xff]  }
 0x12e   : > { %v4408_v59 = vld [vmem:[%s5383_s15 + $0x4c0] ss:$8 sps:$4 sm:$0xff]   ;;  %v4411_v61 = vld [vmem:[%s5383_s15 + $0x4d4] ss:$8 sps:$4 sm:$0xff]   ;;  %v4414_v63 = vld [vmem:[%s5383_s15 + $0x4d0] ss:$8 sps:$4 sm:$0xff]  }
 0x12f   : > { %v4415_v4 = vld [vmem:[%s5383_s15 + $0xe4] ss:$8 sps:$4 sm:$0xff]   ;;  %v4419_v8 = vld [vmem:[%s5383_s15 + $0xe0] ss:$8 sps:$4 sm:$0xff]   ;;  %v4421_v10 = vld [vmem:[%s5383_s15 + $0xf4] ss:$8 sps:$4 sm:$0xff]  }
 0x130   : > { %3132 = vmatpush1.bf16.msra.mxu1 %v4359_v26  ;;  %3416 = vmatpush1.bf16.msra.mxu0 %v4360_v27  ;;  %v4417_v7 = vld [vmem:[%s5383_s15 + $0x4e4] ss:$8 sps:$4 sm:$0xff]   ;;  %v4420_v9 = vld [vmem:[%s5383_s15 + $0x4e0] ss:$8 sps:$4 sm:$0xff]   ;;  %v4423_v11 = vld [vmem:[%s5383_s15 + $0x4f4] ss:$8 sps:$4 sm:$0xff]  }
 0x131   : > { %3133 = vmatprep.subr.bf16.mxu1 %v4361_v28  ;;  %3417 = vmatprep.subr.bf16.mxu0 %v4363_v29  ;;  %v4425_v12 = vld [vmem:[%s5383_s15 + $0xf0] ss:$8 sps:$4 sm:$0xff]   ;;  %v4429_v14 = vld [vmem:[%s5383_s15 + $0x104] ss:$8 sps:$4 sm:$0xff]   ;;  %v4427_v20 = vld [vmem:[%s5383_s15 + $0x100] ss:$8 sps:$4 sm:$0xff]  }
 0x132   : > { %v4426_v13 = vld [vmem:[%s5383_s15 + $0x4f0] ss:$8 sps:$4 sm:$0xff]   ;;  %v4432_v15 = vld [vmem:[%s5383_s15 + $0x504] ss:$8 sps:$4 sm:$0xff]   ;;  %v4430_v21 = vld [vmem:[%s5383_s15 + $0x500] ss:$8 sps:$4 sm:$0xff]  }
 0x133   : > { %v1251_v16 = vld [vmem:[%s5904_s0 + $0x80] sm:$0xff]  ;;  %v4435_v22 = vld [vmem:[%s5383_s15 + $0x114] ss:$8 sps:$4 sm:$0xff]   ;;  %v4433_v26 = vld [vmem:[%s5383_s15 + $0x110] ss:$8 sps:$4 sm:$0xff]   ;;  %s5853_s5 = scalar_lea.vmem [#allocation3], %s4290_s4 }
 0x134   : > { %3134 = vmatpush1.bf16.msra.mxu1 %v4365_v30  ;;  %3418 = vmatpush1.bf16.msra.mxu0 %v4366_v31  ;;  %v1259_v17 = vld [vmem:[%s5904_s0 + $0xc0] sm:$0xff]  ;;  %v4438_v23 = vld [vmem:[%s5383_s15 + $0x514] ss:$8 sps:$4 sm:$0xff]   ;;  %v4436_v27 = vld [vmem:[%s5383_s15 + $0x510] ss:$8 sps:$4 sm:$0xff]   ;;  %s4179_s9 = sshll.u32 (%p4821_p6), %s4761_s11, 4 }
 0x135   : > { %3135 = vmatprep.subr.bf16.mxu1 %v4367_v32  ;;  %3419 = vmatprep.subr.bf16.mxu0 %v4369_v33  ;;  %v1255_v18 = vld [vmem:[%s5904_s0 + $0xa0] sm:$0xff]  ;;  %v3871_v24 = vcombine.high %v1251_v16, %v1259_v17  ;;  %v4450_v30 = vld [vmem:[%s5383_s15 + $0x534] ss:$8 sps:$4 sm:$0xff]   ;;  %v4445_v31 = vld [vmem:[%s5383_s15 + $0x130] ss:$8 sps:$4 sm:$0xff]   ;;  %s3717_s7 = scalar_lea.vmem (%p4821_p6), %s5906_s2, %s4179_s9 }
 0x136   : > { %v1263_v19 = vld [vmem:[%s5904_s0 + $0xe0] sm:$0xff]  ;;  %v4448_v33 = vld [vmem:[%s5383_s15 + $0x530] ss:$8 sps:$4 sm:$0xff]  }
 0x137   : > { %v3879_v25 = vcombine.high %v1255_v18, %v1263_v19  ;;  %v4441_v28 = vld [vmem:[%s5383_s15 + $0x124] ss:$8 sps:$4 sm:$0xff]   ;;  %v4439_v1 = vld [vmem:[%s5383_s15 + $0x120] ss:$8 sps:$4 sm:$0xff]   ;;  %v3878_v5 = vcombine.low %v1255_v18, %v1263_v19 }
 0x138   : > { %3136 = vmatpush1.bf16.msra.mxu1 %v4371_v34  ;;  %3420 = vmatpush1.bf16.msra.mxu0 %v4372_v35  ;;  %v4444_v29 = vld [vmem:[%s5383_s15 + $0x524] ss:$8 sps:$4 sm:$0xff]   ;;  %v4442_v2 = vld [vmem:[%s5383_s15 + $0x520] ss:$8 sps:$4 sm:$0xff]  }
 0x139   : > { %3137 = vmatprep.subr.bf16.mxu1 %v4373_v36  ;;  %3421 = vmatprep.subr.bf16.mxu0 %v4375_v37  ;;  %v1267_v0 = vld [vmem:[%s5904_s0 + $0x100] sm:$0xff] }
 0x13a   : > { %v1275_v32 = vld [vmem:[%s5904_s0 + $0x140] sm:$0xff] }
 0x13b   : > { %v3887_v34 = vcombine.high %v1267_v0, %v1275_v32  ;;  %v4453_v35 = vld [vmem:[%s5383_s15 + $0x144] ss:$8 sps:$4 sm:$0xff]  }
 0x13c   : > { %3138 = vmatpush1.bf16.msra.mxu1 %v4377_v38  ;;  %3422 = vmatpush1.bf16.msra.mxu0 %v4378_v39  ;;  %v1271_v36 = vld [vmem:[%s5904_s0 + $0x120] sm:$0xff] }
 0x13d   : > { %3139 = vmatprep.subr.bf16.mxu1 %v4379_v40  ;;  %3423 = vmatprep.subr.bf16.mxu0 %v4381_v41  ;;  %v1279_v37 = vld [vmem:[%s5904_s0 + $0x160] sm:$0xff] }
 0x13e   : > { %v4456_v38 = vld [vmem:[%s5383_s15 + $0x544] ss:$8 sps:$4 sm:$0xff]   ;;  %v3895_v39 = vcombine.high %v1271_v36, %v1279_v37  ;;  %v4451_v40 = vld [vmem:[%s5383_s15 + $0x140] ss:$8 sps:$4 sm:$0xff]  }
 0x13f   : > { %v4454_v41 = vld [vmem:[%s5383_s15 + $0x540] ss:$8 sps:$4 sm:$0xff]   ;;  %v4489_v18 = vld [vmem:[%s5383_s15 + $0x1a4] ss:$8 sps:$4 sm:$0xff]  }
 0x140   : > { %3140 = vmatpush1.bf16.msra.mxu1 %v4383_v42  ;;  %3424 = vmatpush1.bf16.msra.mxu0 %v4384_v43  ;;  %v3886_v42 = vcombine.low %v1267_v0, %v1275_v32  ;;  %v3894_v43 = vcombine.low %v1271_v36, %v1279_v37  ;;  %v4492_v19 = vld [vmem:[%s5383_s15 + $0x5a4] ss:$8 sps:$4 sm:$0xff]   ;;  %v4507_v0 = vld [vmem:[%s5383_s15 + $0x1d4] ss:$8 sps:$4 sm:$0xff]  }
 0x141   : > { %3141 = vmatprep.subr.bf16.mxu1 %v4385_v44  ;;  %3425 = vmatprep.subr.bf16.mxu0 %v4387_v45  ;;  %v4459_v44 = vld [vmem:[%s5383_s15 + $0x154] ss:$8 sps:$4 sm:$0xff]   ;;  %v4529_v36 = vld [vmem:[%s5383_s15 + $0x204] ss:$8 sps:$4 sm:$0xff]  }
 0x142   : > { %v4462_v45 = vld [vmem:[%s5383_s15 + $0x554] ss:$8 sps:$4 sm:$0xff]   ;;  %v4532_v37 = vld [vmem:[%s5383_s15 + $0x604] ss:$8 sps:$4 sm:$0xff]  }
 0x143   : > { %v4523_v32 = vld [vmem:[%s5383_s15 + $0x1f4] ss:$8 sps:$4 sm:$0xff]  }
 0x144   : > { %3142 = vmatpush1.bf16.msra.mxu1 %v4389_v46  ;;  %3426 = vmatpush1.bf16.msra.mxu0 %v4390_v47  ;;  %v1283_v46 = vld [vmem:[%s5904_s0 + $0x180] sm:$0xff] }
 0x145   : > { %3143 = vmatprep.subr.bf16.mxu1 %v4391_v48  ;;  %3427 = vmatprep.subr.bf16.mxu0 %v4393_v49  ;;  %v3903_v47 = vcombine.high %v1283_v46, %v1283_v46  ;;  %v1287_v48 = vld [vmem:[%s5904_s0 + $0x1a0] sm:$0xff]  ;;  %v4457_v49 = vld [vmem:[%s5383_s15 + $0x150] ss:$8 sps:$4 sm:$0xff]  }
 0x148   : > { %3144 = vmatpush1.bf16.msra.mxu1 %v4395_v50  ;;  %3428 = vmatpush1.bf16.msra.mxu0 %v4396_v51  ;;  %v3911_v50 = vcombine.high %v1287_v48, %v1287_v48  ;;  %v4460_v51 = vld [vmem:[%s5383_s15 + $0x550] ss:$8 sps:$4 sm:$0xff]  }
 0x149   : > { %3145 = vmatprep.subr.bf16.mxu1 %v4397_v52  ;;  %3429 = vmatprep.subr.bf16.mxu0 %v4399_v53  ;;  %v4465_v52 = vld [vmem:[%s5383_s15 + $0x164] ss:$8 sps:$4 sm:$0xff]  }
 0x14a   : > { %v4468_v53 = vld [vmem:[%s5383_s15 + $0x564] ss:$8 sps:$4 sm:$0xff]  }
 0x14c   : > { %3146 = vmatpush1.bf16.msra.mxu1 %v4401_v54  ;;  %3430 = vmatpush1.bf16.msra.mxu0 %v4402_v55  ;;  %v4463_v54 = vld [vmem:[%s5383_s15 + $0x160] ss:$8 sps:$4 sm:$0xff]  }
 0x14d   : > { %3147 = vmatprep.subr.bf16.mxu1 %v4403_v56  ;;  %3431 = vmatprep.subr.bf16.mxu0 %v4405_v57  ;;  %v4466_v55 = vld [vmem:[%s5383_s15 + $0x560] ss:$8 sps:$4 sm:$0xff]   ;;  %v3902_v56 = vcombine.low %v1283_v46, %v1283_v46  ;;  %v3910_v57 = vcombine.low %v1287_v48, %v1287_v48  ;;  %v4535_v46 = vld [vmem:[%s5383_s15 + $0x214] ss:$8 sps:$4 sm:$0xff]  }
 0x150   : > { %3148 = vmatpush1.bf16.msra.mxu1 %v4407_v58  ;;  %3432 = vmatpush1.bf16.msra.mxu0 %v4408_v59  ;;  %v5516_v58 = vld [vmem:[%s5904_s0 + $0x8] sm:$0xff] }
 0x151   : > { %3149 = vmatprep.subr.bf16.mxu1 %v4409_v60  ;;  %3433 = vmatprep.subr.bf16.mxu0 %v4411_v61  ;;  %v5521_v59 = vld [vmem:[%s5904_s0 + $0x48] sm:$0xff]  ;;  %v4471_v60 = vld [vmem:[%s5383_s15 + $0x174] ss:$8 sps:$4 sm:$0xff]  }
 0x152   : > { %v4474_v61 = vld [vmem:[%s5383_s15 + $0x574] ss:$8 sps:$4 sm:$0xff]  }
 0x154   : > { %3150 = vmatpush1.bf16.msra.mxu1 %v4413_v62  ;;  %3434 = vmatpush1.bf16.msra.mxu0 %v4414_v63  ;;  %v5528_v62 = vld [vmem:[%s5904_s0 + $0x28] sm:$0xff] }
 0x155   : > { %3151 = vmatprep.subr.bf16.mxu1 %v4415_v4  ;;  %3435 = vmatprep.subr.bf16.mxu0 %v4417_v7  ;;  %v5533_v63 = vld [vmem:[%s5904_s0 + $0x68] sm:$0xff]  ;;  %v3857_v4 = vcombine.high %v5516_v58, %v5521_v59 }
 0x156   : > { %v3865_v7 = vcombine.high %v5528_v62, %v5533_v63 }
 0x158   : > { %3152 = vmatpush1.bf16.msra.mxu1 %v4419_v8  ;;  %3436 = vmatpush1.bf16.msra.mxu0 %v4420_v9  ;;  %v4469_v8 = vld [vmem:[%s5383_s15 + $0x170] ss:$8 sps:$4 sm:$0xff]  }
 0x159   : > { %3153 = vmatprep.subr.bf16.mxu1 %v4421_v10  ;;  %3437 = vmatprep.subr.bf16.mxu0 %v4423_v11  ;;  %v4472_v9 = vld [vmem:[%s5383_s15 + $0x570] ss:$8 sps:$4 sm:$0xff]   ;;  %v4477_v10 = vld [vmem:[%s5383_s15 + $0x184] ss:$8 sps:$4 sm:$0xff]  }
 0x15a   : > { %v4480_v11 = vld [vmem:[%s5383_s15 + $0x584] ss:$8 sps:$4 sm:$0xff]  }
 0x15c   : > { %3154 = vmatpush1.bf16.msra.mxu1 %v4425_v12  ;;  %3438 = vmatpush1.bf16.msra.mxu0 %v4426_v13  ;;  %v4475_v12 = vld [vmem:[%s5383_s15 + $0x180] ss:$8 sps:$4 sm:$0xff]  }
 0x15d   : > { %3194 = vmatprep.subr.bf16.mxu1 %v4429_v14  ;;  %3478 = vmatprep.subr.bf16.mxu0 %v4432_v15  ;;  %v4478_v13 = vld [vmem:[%s5383_s15 + $0x580] ss:$8 sps:$4 sm:$0xff]   ;;  %v4483_v14 = vld [vmem:[%s5383_s15 + $0x194] ss:$8 sps:$4 sm:$0xff]  }
 0x15e   : > { %v4486_v15 = vld [vmem:[%s5383_s15 + $0x594] ss:$8 sps:$4 sm:$0xff]  }
 0x15f   : > { %3156 = vmatmul.mubr.bf16.vlgmr.msra.gmra.mrb[0].mxu1 %v3854_v3  ;;  %3440 = vmatmul.mubr.bf16.vlgmr.msra.gmra.mrb[0].mxu0 %v3862_v6  ;;  %v3870_v3 = vcombine.low %v1251_v16, %v1259_v17  ;;  %v4447_v6 = vld [vmem:[%s5383_s15 + $0x134] ss:$8 sps:$4 sm:$0xff]   ;;  %v4481_v16 = vld [vmem:[%s5383_s15 + $0x190] ss:$8 sps:$4 sm:$0xff]  }
 0x160   : > { %3195 = vmatpush1.bf16.msra.mxu1 %v4427_v20  ;;  %3479 = vmatpush1.bf16.msra.mxu0 %v4430_v21  ;;  %v4484_v17 = vld [vmem:[%s5383_s15 + $0x590] ss:$8 sps:$4 sm:$0xff]   ;;  %v4487_v20 = vld [vmem:[%s5383_s15 + $0x1a0] ss:$8 sps:$4 sm:$0xff]  }
 0x161   : > { %3196 = vmatprep.subr.bf16.mxu1 %v4435_v22  ;;  %3480 = vmatprep.subr.bf16.mxu0 %v4438_v23  ;;  %v4490_v21 = vld [vmem:[%s5383_s15 + $0x5a0] ss:$8 sps:$4 sm:$0xff]   ;;  %v4495_v22 = vld [vmem:[%s5383_s15 + $0x1b4] ss:$8 sps:$4 sm:$0xff]  }
 0x162   : > { %3165 = vmatprep.mubr.bf16.mxu1 %v3871_v24  ;;  %3449 = vmatprep.mubr.bf16.mxu0 %v3879_v25  ;;  %v4498_v23 = vld [vmem:[%s5383_s15 + $0x5b4] ss:$8 sps:$4 sm:$0xff]   ;;  %v4493_v24 = vld [vmem:[%s5383_s15 + $0x1b0] ss:$8 sps:$4 sm:$0xff]  }
 0x163   : > { %v4496_v25 = vld [vmem:[%s5383_s15 + $0x5b0] ss:$8 sps:$4 sm:$0xff]  }
 0x164   : > { %3197 = vmatpush1.bf16.msra.mxu1 %v4433_v26  ;;  %3481 = vmatpush1.bf16.msra.mxu0 %v4436_v27  ;;  %v4501_v26 = vld [vmem:[%s5383_s15 + $0x1c4] ss:$8 sps:$4 sm:$0xff]  }
 0x165   : > { %3198 = vmatprep.subr.bf16.mxu1 %v4441_v28  ;;  %3482 = vmatprep.subr.bf16.mxu0 %v4444_v29  ;;  %v4504_v27 = vld [vmem:[%s5383_s15 + $0x5c4] ss:$8 sps:$4 sm:$0xff]   ;;  %v4499_v28 = vld [vmem:[%s5383_s15 + $0x1c0] ss:$8 sps:$4 sm:$0xff]  }
 0x166   : > { %v4502_v29 = vld [vmem:[%s5383_s15 + $0x5c0] ss:$8 sps:$4 sm:$0xff]  }
 0x167   : > { %3166 = vmatmul.mubr.bf16.gmra.mrb[4].mxu1 %v3870_v3  ;;  %3450 = vmatmul.mubr.bf16.gmra.mrb[4].mxu0 %v3878_v5  ;;  %v4508_v3 = vld [vmem:[%s5383_s15 + $0x5d0] ss:$8 sps:$4 sm:$0xff]   ;;  %v4514_v5 = vld [vmem:[%s5383_s15 + $0x1e4] ss:$8 sps:$4 sm:$0xff]  }
 0x168   : > { %3199 = vmatpush1.bf16.msra.mxu1 %v4439_v1  ;;  %3483 = vmatpush1.bf16.msra.mxu0 %v4442_v2  ;;  %v4510_v1 = vld [vmem:[%s5383_s15 + $0x5d4] ss:$8 sps:$4 sm:$0xff]   ;;  %v4505_v2 = vld [vmem:[%s5383_s15 + $0x1d0] ss:$8 sps:$4 sm:$0xff]  }
 0x169   : > { %3200 = vmatprep.subr.bf16.mxu1 %v4447_v6  ;;  %3484 = vmatprep.subr.bf16.mxu0 %v4450_v30  ;;  %v4518_v6 = vld [vmem:[%s5383_s15 + $0x5e4] ss:$8 sps:$4 sm:$0xff]   ;;  %v4512_v30 = vld [vmem:[%s5383_s15 + $0x1e0] ss:$8 sps:$4 sm:$0xff]  }
 0x16a   : > { %3175 = vmatprep.mubr.bf16.mxu1 %v3887_v34  ;;  %3459 = vmatprep.mubr.bf16.mxu0 %v3895_v39  ;;  %v4521_v34 = vld [vmem:[%s5383_s15 + $0x1f0] ss:$8 sps:$4 sm:$0xff]   ;;  %v1260_v39 = vld [vmem:[%s5904_s0 + $0xc8] sm:$0xff] }
 0x16c   : > { %3201 = vmatpush1.bf16.msra.mxu1 %v4445_v31  ;;  %3485 = vmatpush1.bf16.msra.mxu0 %v4448_v33  ;;  %v4516_v31 = vld [vmem:[%s5383_s15 + $0x5e0] ss:$8 sps:$4 sm:$0xff]   ;;  %v4526_v33 = vld [vmem:[%s5383_s15 + $0x5f4] ss:$8 sps:$4 sm:$0xff]  }
 0x16d   : > { %3202 = vmatprep.subr.bf16.mxu1 %v4453_v35  ;;  %3486 = vmatprep.subr.bf16.mxu0 %v4456_v38  ;;  %v4524_v35 = vld [vmem:[%s5383_s15 + $0x5f0] ss:$8 sps:$4 sm:$0xff]   ;;  %v1252_v38 = vld [vmem:[%s5904_s0 + $0x88] sm:$0xff] }
 0x16e   : > { %v3873_v48 = vcombine.high %v1252_v38, %v1260_v39 }
 0x16f   : > { %3176 = vmatmul.mubr.bf16.gmra.mrb[8].mxu1 %v3886_v42  ;;  %3460 = vmatmul.mubr.bf16.gmra.mrb[8].mxu0 %v3894_v43  ;;  %v3864_v42 = vcombine.low %v5528_v62, %v5533_v63  ;;  %v1264_v43 = vld [vmem:[%s5904_s0 + $0xe8] sm:$0xff]  ;;  %v4547_v62 = vld [vmem:[%s5383_s15 + $0x234] ss:$8 sps:$4 sm:$0xff]  }
 0x170   : > { %3203 = vmatpush1.bf16.msra.mxu1 %v4451_v40  ;;  %3487 = vmatpush1.bf16.msra.mxu0 %v4454_v41  ;;  %v1256_v40 = vld [vmem:[%s5904_s0 + $0xa8] sm:$0xff]  ;;  %v3856_v41 = vcombine.low %v5516_v58, %v5521_v59  ;;  %v4550_v63 = vld [vmem:[%s5383_s15 + $0x634] ss:$8 sps:$4 sm:$0xff]  }
 0x171   : > { %3204 = vmatprep.subr.bf16.mxu1 %v4459_v44  ;;  %3488 = vmatprep.subr.bf16.mxu0 %v4462_v45  ;;  %v4527_v44 = vld [vmem:[%s5383_s15 + $0x200] ss:$8 sps:$4 sm:$0xff]   ;;  %v3880_v58 = vcombine.low %v1256_v40, %v1264_v43 }
 0x172   : > { %3185 = vmatprep.mubr.bf16.mxu1 %v3903_v47  ;;  %3469 = vmatprep.mubr.bf16.mxu0 %v3911_v50  ;;  %v4530_v45 = vld [vmem:[%s5383_s15 + $0x600] ss:$8 sps:$4 sm:$0xff]   ;;  %v4538_v47 = vld [vmem:[%s5383_s15 + $0x614] ss:$8 sps:$4 sm:$0xff]   ;;  %v4533_v50 = vld [vmem:[%s5383_s15 + $0x210] ss:$8 sps:$4 sm:$0xff]  }
 0x173   : > { %v1280_v59 = vld [vmem:[%s5904_s0 + $0x168] sm:$0xff] }
 0x174   : > { %3205 = vmatpush1.bf16.msra.mxu1 %v4457_v49  ;;  %3489 = vmatpush1.bf16.msra.mxu0 %v4460_v51  ;;  %v3881_v49 = vcombine.high %v1256_v40, %v1264_v43  ;;  %v4536_v51 = vld [vmem:[%s5383_s15 + $0x610] ss:$8 sps:$4 sm:$0xff]   ;;  %v4592_v43 = vld [vmem:[%s5383_s15 + $0x6a4] ss:$8 sps:$4 sm:$0xff]  }
 0x175   : > { %3206 = vmatprep.subr.bf16.mxu1 %v4465_v52  ;;  %3490 = vmatprep.subr.bf16.mxu0 %v4468_v53  ;;  %v4541_v52 = vld [vmem:[%s5383_s15 + $0x224] ss:$8 sps:$4 sm:$0xff]   ;;  %v4581_v40 = vld [vmem:[%s5383_s15 + $0x290] ss:$8 sps:$4 sm:$0xff]  }
 0x176   : > { %v4544_v53 = vld [vmem:[%s5383_s15 + $0x624] ss:$8 sps:$4 sm:$0xff]  }
 0x177   : > { %3186 = vmatmul.mubr.bf16.gmra.mrb[12].mxu1 %v3902_v56  ;;  %3470 = vmatmul.mubr.bf16.gmra.mrb[12].mxu0 %v3910_v57  ;;  %v1272_v56 = vld [vmem:[%s5904_s0 + $0x128] sm:$0xff]  ;;  %v3872_v57 = vcombine.low %v1252_v38, %v1260_v39  ;;  %v4583_v38 = vld [vmem:[%s5383_s15 + $0x294] ss:$8 sps:$4 sm:$0xff]  }
 0x178   : > { %3207 = vmatpush1.bf16.msra.mxu1 %v4463_v54  ;;  %3491 = vmatpush1.bf16.msra.mxu0 %v4466_v55  ;;  %v1268_v54 = vld [vmem:[%s5904_s0 + $0x108] sm:$0xff]  ;;  %v4586_v39 = vld [vmem:[%s5383_s15 + $0x694] ss:$8 sps:$4 sm:$0xff]  }
 0x179   : > { %3208 = vmatprep.subr.bf16.mxu1 %v4471_v60  ;;  %3492 = vmatprep.subr.bf16.mxu0 %v4474_v61  ;;  %v1276_v55 = vld [vmem:[%s5904_s0 + $0x148] sm:$0xff] }
 0x17a   : > { %3226 = vmatprep.mubr.bf16.mxu1 %v3857_v4  ;;  %3510 = vmatprep.mubr.bf16.mxu0 %v3865_v7  ;;  %v4539_v60 = vld [vmem:[%s5383_s15 + $0x220] ss:$8 sps:$4 sm:$0xff]   ;;  %v3889_v4 = vcombine.high %v1268_v54, %v1276_v55  ;;  %v3897_v7 = vcombine.high %v1272_v56, %v1280_v59 }
 0x17b   : > { %v4542_v61 = vld [vmem:[%s5383_s15 + $0x620] ss:$8 sps:$4 sm:$0xff]  }
 0x17c   : > { %3209 = vmatpush1.bf16.msra.mxu1 %v4469_v8  ;;  %3493 = vmatpush1.bf16.msra.mxu0 %v4472_v9  ;;  %v4545_v8 = vld [vmem:[%s5383_s15 + $0x230] ss:$8 sps:$4 sm:$0xff]  }
 0x17d   : > { %3210 = vmatprep.subr.bf16.mxu1 %v4477_v10  ;;  %3494 = vmatprep.subr.bf16.mxu0 %v4480_v11  ;;  %v4548_v9 = vld [vmem:[%s5383_s15 + $0x630] ss:$8 sps:$4 sm:$0xff]   ;;  %v4553_v10 = vld [vmem:[%s5383_s15 + $0x244] ss:$8 sps:$4 sm:$0xff]  }
 0x17e   : > { %v4556_v11 = vld [vmem:[%s5383_s15 + $0x644] ss:$8 sps:$4 sm:$0xff]  }
 0x180   : > { %3211 = vmatpush1.bf16.msra.mxu1 %v4475_v12  ;;  %3495 = vmatpush1.bf16.msra.mxu0 %v4478_v13  ;;  %v4551_v12 = vld [vmem:[%s5383_s15 + $0x240] ss:$8 sps:$4 sm:$0xff]   ;;  %v3888_v13 = vcombine.low %v1268_v54, %v1276_v55  ;;  %v4607_v54 = vld [vmem:[%s5383_s15 + $0x2d4] ss:$8 sps:$4 sm:$0xff]  }
 0x181   : > { %3212 = vmatprep.subr.bf16.mxu1 %v4483_v14  ;;  %3496 = vmatprep.subr.bf16.mxu0 %v4486_v15  ;;  %v3896_v14 = vcombine.low %v1272_v56, %v1280_v59  ;;  %v1284_v15 = vld [vmem:[%s5904_s0 + $0x188] sm:$0xff]  ;;  %v4610_v55 = vld [vmem:[%s5383_s15 + $0x6d4] ss:$8 sps:$4 sm:$0xff]   ;;  %v4605_v56 = vld [vmem:[%s5383_s15 + $0x2d0] ss:$8 sps:$4 sm:$0xff]  }
 0x182   : > { %v4618_v59 = vld [vmem:[%s5383_s15 + $0x6e4] ss:$8 sps:$4 sm:$0xff]  }
 0x184   : > { %3213 = vmatpush1.bf16.msra.mxu1 %v4481_v16  ;;  %3497 = vmatpush1.bf16.msra.mxu0 %v4484_v17  ;;  %v1288_v16 = vld [vmem:[%s5904_s0 + $0x1a8] sm:$0xff] }
 0x185   : > { %3214 = vmatprep.subr.bf16.mxu1 %v4489_v18  ;;  %3498 = vmatprep.subr.bf16.mxu0 %v4492_v19  ;;  %v4554_v17 = vld [vmem:[%s5383_s15 + $0x640] ss:$8 sps:$4 sm:$0xff]   ;;  %v4559_v18 = vld [vmem:[%s5383_s15 + $0x254] ss:$8 sps:$4 sm:$0xff]  }
 0x186   : > { %v4562_v19 = vld [vmem:[%s5383_s15 + $0x654] ss:$8 sps:$4 sm:$0xff]  }
 0x188   : > { %3215 = vmatpush1.bf16.msra.mxu1 %v4487_v20  ;;  %3499 = vmatpush1.bf16.msra.mxu0 %v4490_v21  ;;  %v3905_v20 = vcombine.high %v1284_v15, %v1284_v15  ;;  %v3913_v21 = vcombine.high %v1288_v16, %v1288_v16 }
 0x189   : > { %3216 = vmatprep.subr.bf16.mxu1 %v4495_v22  ;;  %3500 = vmatprep.subr.bf16.mxu0 %v4498_v23  ;;  %v4557_v22 = vld [vmem:[%s5383_s15 + $0x250] ss:$8 sps:$4 sm:$0xff]  }
 0x18a   : > { %v4560_v23 = vld [vmem:[%s5383_s15 + $0x650] ss:$8 sps:$4 sm:$0xff]  }
 0x18c   : > { %3217 = vmatpush1.bf16.msra.mxu1 %v4493_v24  ;;  %3501 = vmatpush1.bf16.msra.mxu0 %v4496_v25  ;;  %v4565_v24 = vld [vmem:[%s5383_s15 + $0x264] ss:$8 sps:$4 sm:$0xff]  }
 0x18d   : > { %3218 = vmatprep.subr.bf16.mxu1 %v4501_v26  ;;  %3502 = vmatprep.subr.bf16.mxu0 %v4504_v27  ;;  %v4568_v25 = vld [vmem:[%s5383_s15 + $0x664] ss:$8 sps:$4 sm:$0xff]   ;;  %v5636_v26 = vld [vmem:[%s5904_s0 + $0x10] sm:$0xff]  ;;  %v4563_v27 = vld [vmem:[%s5383_s15 + $0x260] ss:$8 sps:$4 sm:$0xff]  }
 0x190   : > { %3219 = vmatpush1.bf16.msra.mxu1 %v4499_v28  ;;  %3503 = vmatpush1.bf16.msra.mxu0 %v4502_v29  ;;  %v5642_v28 = vld [vmem:[%s5904_s0 + $0x50] sm:$0xff]  ;;  %v3904_v29 = vcombine.low %v1284_v15, %v1284_v15 }
 0x191   : > { %3220 = vmatprep.subr.bf16.mxu1 %v4507_v0  ;;  %3504 = vmatprep.subr.bf16.mxu0 %v4510_v1  ;;  %v3912_v0 = vcombine.low %v1288_v16, %v1288_v16  ;;  %v5647_v1 = vld [vmem:[%s5904_s0 + $0x30] sm:$0xff]  ;;  %v4627_v16 = vld [vmem:[%s5383_s15 + $0x300] ss:$8 sps:$4 sm:$0xff]  }
 0x192   : > { %v1265_v15 = vld [vmem:[%s5904_s0 + $0xf0] sm:$0xff] }
 0x194   : > { %3221 = vmatpush1.bf16.msra.mxu1 %v4505_v2  ;;  %3505 = vmatpush1.bf16.msra.mxu0 %v4508_v3  ;;  %v5652_v2 = vld [vmem:[%s5904_s0 + $0x70] sm:$0xff]  ;;  %v4566_v3 = vld [vmem:[%s5383_s15 + $0x660] ss:$8 sps:$4 sm:$0xff]  }
 0x195   : > { %3222 = vmatprep.subr.bf16.mxu1 %v4514_v5  ;;  %3506 = vmatprep.subr.bf16.mxu0 %v4518_v6  ;;  %v4571_v5 = vld [vmem:[%s5383_s15 + $0x274] ss:$8 sps:$4 sm:$0xff]  }
 0x196   : > { %v4574_v6 = vld [vmem:[%s5383_s15 + $0x674] ss:$8 sps:$4 sm:$0xff]  }
 0x198   : > { %3223 = vmatpush1.bf16.msra.mxu1 %v4512_v30  ;;  %3507 = vmatpush1.bf16.msra.mxu0 %v4516_v31  ;;  %v3859_v30 = vcombine.high %v5636_v26, %v5642_v28  ;;  %v3867_v31 = vcombine.high %v5647_v1, %v5652_v2 }
 0x199   : > { %3224 = vmatprep.subr.bf16.mxu1 %v4523_v32  ;;  %3508 = vmatprep.subr.bf16.mxu0 %v4526_v33  ;;  %v4569_v32 = vld [vmem:[%s5383_s15 + $0x270] ss:$8 sps:$4 sm:$0xff]  }
 0x19a   : > { %v4572_v33 = vld [vmem:[%s5383_s15 + $0x670] ss:$8 sps:$4 sm:$0xff]  }
 0x19c   : > { %3225 = vmatpush1.bf16.msra.mxu1 %v4521_v34  ;;  %3509 = vmatpush1.bf16.msra.mxu0 %v4524_v35  ;;  %v4577_v34 = vld [vmem:[%s5383_s15 + $0x284] ss:$8 sps:$4 sm:$0xff]  }
 0x19d   : > { %3265 = vmatprep.subr.bf16.mxu1 %v4529_v36  ;;  %3549 = vmatprep.subr.bf16.mxu0 %v4532_v37  ;;  %v4580_v35 = vld [vmem:[%s5383_s15 + $0x684] ss:$8 sps:$4 sm:$0xff]   ;;  %v4575_v36 = vld [vmem:[%s5383_s15 + $0x280] ss:$8 sps:$4 sm:$0xff]  }
 0x19e   : > { %v4578_v37 = vld [vmem:[%s5383_s15 + $0x680] ss:$8 sps:$4 sm:$0xff]  }
 0x19f   : > { %3227 = vmatmul.mubr.bf16.vlgmr.msra.gmra.mrb[0].mxu1 %v3856_v41  ;;  %3511 = vmatmul.mubr.bf16.vlgmr.msra.gmra.mrb[0].mxu0 %v3864_v42  ;;  %v4584_v41 = vld [vmem:[%s5383_s15 + $0x690] ss:$8 sps:$4 sm:$0xff]   ;;  %v4589_v42 = vld [vmem:[%s5383_s15 + $0x2a4] ss:$8 sps:$4 sm:$0xff]  }
 0x1a0   : > { %3266 = vmatpush1.bf16.msra.mxu1 %v4527_v44  ;;  %3550 = vmatpush1.bf16.msra.mxu0 %v4530_v45  ;;  %v4587_v44 = vld [vmem:[%s5383_s15 + $0x2a0] ss:$8 sps:$4 sm:$0xff]  }
 0x1a1   : > { %3267 = vmatprep.subr.bf16.mxu1 %v4535_v46  ;;  %3551 = vmatprep.subr.bf16.mxu0 %v4538_v47  ;;  %v4590_v45 = vld [vmem:[%s5383_s15 + $0x6a0] ss:$8 sps:$4 sm:$0xff]   ;;  %v4595_v46 = vld [vmem:[%s5383_s15 + $0x2b4] ss:$8 sps:$4 sm:$0xff]  }
 0x1a2   : > { %3236 = vmatprep.mubr.bf16.mxu1 %v3873_v48  ;;  %3520 = vmatprep.mubr.bf16.mxu0 %v3881_v49  ;;  %v4598_v47 = vld [vmem:[%s5383_s15 + $0x6b4] ss:$8 sps:$4 sm:$0xff]   ;;  %v4593_v48 = vld [vmem:[%s5383_s15 + $0x2b0] ss:$8 sps:$4 sm:$0xff]  }
 0x1a3   : > { %v4596_v49 = vld [vmem:[%s5383_s15 + $0x6b0] ss:$8 sps:$4 sm:$0xff]  }
 0x1a4   : > { %3268 = vmatpush1.bf16.msra.mxu1 %v4533_v50  ;;  %3552 = vmatpush1.bf16.msra.mxu0 %v4536_v51  ;;  %v4601_v50 = vld [vmem:[%s5383_s15 + $0x2c4] ss:$8 sps:$4 sm:$0xff]  }
 0x1a5   : > { %3269 = vmatprep.subr.bf16.mxu1 %v4541_v52  ;;  %3553 = vmatprep.subr.bf16.mxu0 %v4544_v53  ;;  %v4604_v51 = vld [vmem:[%s5383_s15 + $0x6c4] ss:$8 sps:$4 sm:$0xff]   ;;  %v4599_v52 = vld [vmem:[%s5383_s15 + $0x2c0] ss:$8 sps:$4 sm:$0xff]  }
 0x1a6   : > { %v4602_v53 = vld [vmem:[%s5383_s15 + $0x6c0] ss:$8 sps:$4 sm:$0xff]  }
 0x1a7   : > { %3237 = vmatmul.mubr.bf16.gmra.mrb[4].mxu1 %v3872_v57  ;;  %3521 = vmatmul.mubr.bf16.gmra.mrb[4].mxu0 %v3880_v58  ;;  %v4608_v57 = vld [vmem:[%s5383_s15 + $0x6d0] ss:$8 sps:$4 sm:$0xff]   ;;  %v4614_v58 = vld [vmem:[%s5383_s15 + $0x2e4] ss:$8 sps:$4 sm:$0xff]  }
 0x1a8   : > { %3270 = vmatpush1.bf16.msra.mxu1 %v4539_v60  ;;  %3554 = vmatpush1.bf16.msra.mxu0 %v4542_v61  ;;  %v4612_v60 = vld [vmem:[%s5383_s15 + $0x2e0] ss:$8 sps:$4 sm:$0xff]  }
 0x1a9   : > { %3271 = vmatprep.subr.bf16.mxu1 %v4547_v62  ;;  %3555 = vmatprep.subr.bf16.mxu0 %v4550_v63  ;;  %v4616_v61 = vld [vmem:[%s5383_s15 + $0x6e0] ss:$8 sps:$4 sm:$0xff]   ;;  %v4623_v62 = vld [vmem:[%s5383_s15 + $0x2f4] ss:$8 sps:$4 sm:$0xff]  }
 0x1aa   : > { %3246 = vmatprep.mubr.bf16.mxu1 %v3889_v4  ;;  %3530 = vmatprep.mubr.bf16.mxu0 %v3897_v7  ;;  %v4626_v63 = vld [vmem:[%s5383_s15 + $0x6f4] ss:$8 sps:$4 sm:$0xff]   ;;  %v4621_v4 = vld [vmem:[%s5383_s15 + $0x2f0] ss:$8 sps:$4 sm:$0xff]  }
 0x1ab   : > { %v4624_v7 = vld [vmem:[%s5383_s15 + $0x6f0] ss:$8 sps:$4 sm:$0xff]  }
 0x1ac   : > { %3272 = vmatpush1.bf16.msra.mxu1 %v4545_v8  ;;  %3556 = vmatpush1.bf16.msra.mxu0 %v4548_v9  ;;  %v4629_v8 = vld [vmem:[%s5383_s15 + $0x304] ss:$8 sps:$4 sm:$0xff]  }
 0x1ad   : > { %3273 = vmatprep.subr.bf16.mxu1 %v4553_v10  ;;  %3557 = vmatprep.subr.bf16.mxu0 %v4556_v11  ;;  %v4632_v9 = vld [vmem:[%s5383_s15 + $0x704] ss:$8 sps:$4 sm:$0xff]   ;;  %v1253_v10 = vld [vmem:[%s5904_s0 + $0x90] sm:$0xff]  ;;  %v3858_v11 = vcombine.low %v5636_v26, %v5642_v28 }
 0x1ae   : > { %v1269_v26 = vld [vmem:[%s5904_s0 + $0x110] sm:$0xff] }
 0x1af   : > { %3247 = vmatmul.mubr.bf16.gmra.mrb[8].mxu1 %v3888_v13  ;;  %3531 = vmatmul.mubr.bf16.gmra.mrb[8].mxu0 %v3896_v14  ;;  %v1261_v13 = vld [vmem:[%s5904_s0 + $0xd0] sm:$0xff] }
 0x1b0   : > { %3274 = vmatpush1.bf16.msra.mxu1 %v4551_v12  ;;  %3558 = vmatpush1.bf16.msra.mxu0 %v4554_v17  ;;  %v3866_v12 = vcombine.low %v5647_v1, %v5652_v2  ;;  %v1257_v14 = vld [vmem:[%s5904_s0 + $0xb0] sm:$0xff]  ;;  %v4630_v17 = vld [vmem:[%s5383_s15 + $0x700] ss:$8 sps:$4 sm:$0xff]  }
 0x1b1   : > { %3275 = vmatprep.subr.bf16.mxu1 %v4559_v18  ;;  %3559 = vmatprep.subr.bf16.mxu0 %v4562_v19  ;;  %v4635_v18 = vld [vmem:[%s5383_s15 + $0x314] ss:$8 sps:$4 sm:$0xff]   ;;  %v3882_v28 = vcombine.low %v1257_v14, %v1265_v15  ;;  %v4639_v2 = vld [vmem:[%s5383_s15 + $0x320] ss:$8 sps:$4 sm:$0xff]  }
 0x1b2   : > { %3256 = vmatprep.mubr.bf16.mxu1 %v3905_v20  ;;  %3540 = vmatprep.mubr.bf16.mxu0 %v3913_v21  ;;  %v4638_v19 = vld [vmem:[%s5383_s15 + $0x714] ss:$8 sps:$4 sm:$0xff]   ;;  %v3875_v20 = vcombine.high %v1253_v10, %v1261_v13  ;;  %v3883_v21 = vcombine.high %v1257_v14, %v1265_v15  ;;  %v4689_v14 = vld [vmem:[%s5383_s15 + $0x3a4] ss:$8 sps:$4 sm:$0xff]  }
 0x1b3   : > { %v1281_v1 = vld [vmem:[%s5904_s0 + $0x170] sm:$0xff]  ;;  %v4692_v15 = vld [vmem:[%s5383_s15 + $0x7a4] ss:$8 sps:$4 sm:$0xff]  }
 0x1b4   : > { %3276 = vmatpush1.bf16.msra.mxu1 %v4557_v22  ;;  %3560 = vmatpush1.bf16.msra.mxu0 %v4560_v23  ;;  %v4633_v22 = vld [vmem:[%s5383_s15 + $0x310] ss:$8 sps:$4 sm:$0xff]  }
 0x1b5   : > { %3277 = vmatprep.subr.bf16.mxu1 %v4565_v24  ;;  %3561 = vmatprep.subr.bf16.mxu0 %v4568_v25  ;;  %v4636_v23 = vld [vmem:[%s5383_s15 + $0x710] ss:$8 sps:$4 sm:$0xff]   ;;  %v4641_v24 = vld [vmem:[%s5383_s15 + $0x324] ss:$8 sps:$4 sm:$0xff]  }
 0x1b6   : > { %v4644_v25 = vld [vmem:[%s5383_s15 + $0x724] ss:$8 sps:$4 sm:$0xff]  }
 0x1b7   : > { %3257 = vmatmul.mubr.bf16.gmra.mrb[12].mxu1 %v3904_v29  ;;  %3541 = vmatmul.mubr.bf16.gmra.mrb[12].mxu0 %v3912_v0  ;;  %v1277_v29 = vld [vmem:[%s5904_s0 + $0x150] sm:$0xff] }
 0x1b8   : > { %3278 = vmatpush1.bf16.msra.mxu1 %v4563_v27  ;;  %3562 = vmatpush1.bf16.msra.mxu0 %v4566_v3  ;;  %v3874_v27 = vcombine.low %v1253_v10, %v1261_v13  ;;  %v1273_v0 = vld [vmem:[%s5904_s0 + $0x130] sm:$0xff]  ;;  %v4642_v3 = vld [vmem:[%s5383_s15 + $0x720] ss:$8 sps:$4 sm:$0xff]  }
 0x1b9   : > { %3279 = vmatprep.subr.bf16.mxu1 %v4571_v5  ;;  %3563 = vmatprep.subr.bf16.mxu0 %v4574_v6  ;;  %v4647_v5 = vld [vmem:[%s5383_s15 + $0x334] ss:$8 sps:$4 sm:$0xff]   ;;  %v4684_v13 = vld [vmem:[%s5383_s15 + $0x790] ss:$8 sps:$4 sm:$0xff]  }
 0x1ba   : > { %3297 = vmatprep.mubr.bf16.mxu1 %v3859_v30  ;;  %3581 = vmatprep.mubr.bf16.mxu0 %v3867_v31  ;;  %v4650_v6 = vld [vmem:[%s5383_s15 + $0x734] ss:$8 sps:$4 sm:$0xff]   ;;  %v3891_v30 = vcombine.high %v1269_v26, %v1277_v29  ;;  %v3899_v31 = vcombine.high %v1273_v0, %v1281_v1 }
 0x1bb   : > { %v4683_v10 = vld [vmem:[%s5383_s15 + $0x394] ss:$8 sps:$4 sm:$0xff]  }
 0x1bc   : > { %3280 = vmatpush1.bf16.msra.mxu1 %v4569_v32  ;;  %3564 = vmatpush1.bf16.msra.mxu0 %v4572_v33  ;;  %v4645_v32 = vld [vmem:[%s5383_s15 + $0x330] ss:$8 sps:$4 sm:$0xff]  }
 0x1bd   : > { %3281 = vmatprep.subr.bf16.mxu1 %v4577_v34  ;;  %3565 = vmatprep.subr.bf16.mxu0 %v4580_v35  ;;  %v4648_v33 = vld [vmem:[%s5383_s15 + $0x730] ss:$8 sps:$4 sm:$0xff]   ;;  %v4653_v34 = vld [vmem:[%s5383_s15 + $0x344] ss:$8 sps:$4 sm:$0xff]  }
 0x1be   : > { %v4656_v35 = vld [vmem:[%s5383_s15 + $0x744] ss:$8 sps:$4 sm:$0xff]  }
 0x1c0   : > { %3282 = vmatpush1.bf16.msra.mxu1 %v4575_v36  ;;  %3566 = vmatpush1.bf16.msra.mxu0 %v4578_v37  ;;  %v3890_v36 = vcombine.low %v1269_v26, %v1277_v29  ;;  %v3898_v37 = vcombine.low %v1273_v0, %v1281_v1  ;;  %v4707_v26 = vld [vmem:[%s5383_s15 + $0x3d4] ss:$8 sps:$4 sm:$0xff]   ;;  %v4708_v29 = vld [vmem:[%s5383_s15 + $0x7d0] ss:$8 sps:$4 sm:$0xff]   ;;  %v4716_v0 = vld [vmem:[%s5383_s15 + $0x3e4] ss:$8 sps:$4 sm:$0xff]  }
 0x1c1   : > { %3283 = vmatprep.subr.bf16.mxu1 %v4583_v38  ;;  %3567 = vmatprep.subr.bf16.mxu0 %v4586_v39  ;;  %v1285_v38 = vld [vmem:[%s5904_s0 + $0x190] sm:$0xff]  ;;  %v4720_v1 = vld [vmem:[%s5383_s15 + $0x7e4] ss:$8 sps:$4 sm:$0xff]  }
 0x1c2   : > { %v1289_v39 = vld [vmem:[%s5904_s0 + $0x1b0] sm:$0xff] }
 0x1c4   : > { %3284 = vmatpush1.bf16.msra.mxu1 %v4581_v40  ;;  %3568 = vmatpush1.bf16.msra.mxu0 %v4584_v41  ;;  %v4651_v40 = vld [vmem:[%s5383_s15 + $0x340] ss:$8 sps:$4 sm:$0xff]  }
 0x1c5   : > { %3285 = vmatprep.subr.bf16.mxu1 %v4589_v42  ;;  %3569 = vmatprep.subr.bf16.mxu0 %v4592_v43  ;;  %v4654_v41 = vld [vmem:[%s5383_s15 + $0x740] ss:$8 sps:$4 sm:$0xff]   ;;  %v4659_v42 = vld [vmem:[%s5383_s15 + $0x354] ss:$8 sps:$4 sm:$0xff]  }
 0x1c6   : > { %v4662_v43 = vld [vmem:[%s5383_s15 + $0x754] ss:$8 sps:$4 sm:$0xff]  }
 0x1c8   : > { %3286 = vmatpush1.bf16.msra.mxu1 %v4587_v44  ;;  %3570 = vmatpush1.bf16.msra.mxu0 %v4590_v45  ;;  %v3907_v44 = vcombine.high %v1285_v38, %v1285_v38  ;;  %v3915_v45 = vcombine.high %v1289_v39, %v1289_v39 }
 0x1c9   : > { %3287 = vmatprep.subr.bf16.mxu1 %v4595_v46  ;;  %3571 = vmatprep.subr.bf16.mxu0 %v4598_v47  ;;  %v4657_v46 = vld [vmem:[%s5383_s15 + $0x350] ss:$8 sps:$4 sm:$0xff]  }
 0x1ca   : > { %v4660_v47 = vld [vmem:[%s5383_s15 + $0x750] ss:$8 sps:$4 sm:$0xff]  }
 0x1cc   : > { %3288 = vmatpush1.bf16.msra.mxu1 %v4593_v48  ;;  %3572 = vmatpush1.bf16.msra.mxu0 %v4596_v49  ;;  %v4665_v48 = vld [vmem:[%s5383_s15 + $0x364] ss:$8 sps:$4 sm:$0xff]  }
 0x1cd   : > { %3289 = vmatprep.subr.bf16.mxu1 %v4601_v50  ;;  %3573 = vmatprep.subr.bf16.mxu0 %v4604_v51  ;;  %v4668_v49 = vld [vmem:[%s5383_s15 + $0x764] ss:$8 sps:$4 sm:$0xff]   ;;  %v5758_v50 = vld [vmem:[%s5904_s0 + $0x18] sm:$0xff]  ;;  %v3906_v51 = vcombine.low %v1285_v38, %v1285_v38 }
 0x1d0   : > { %3290 = vmatpush1.bf16.msra.mxu1 %v4599_v52  ;;  %3574 = vmatpush1.bf16.msra.mxu0 %v4602_v53  ;;  %v3914_v52 = vcombine.low %v1289_v39, %v1289_v39  ;;  %v5763_v53 = vld [vmem:[%s5904_s0 + $0x58] sm:$0xff] }
 0x1d1   : > { %3291 = vmatprep.subr.bf16.mxu1 %v4607_v54  ;;  %3575 = vmatprep.subr.bf16.mxu0 %v4610_v55  ;;  %v5768_v54 = vld [vmem:[%s5904_s0 + $0x38] sm:$0xff] }
 0x1d2   : > { %v5773_v55 = vld [vmem:[%s5904_s0 + $0x78] sm:$0xff] }
 0x1d4   : > { %3292 = vmatpush1.bf16.msra.mxu1 %v4605_v56  ;;  %3576 = vmatpush1.bf16.msra.mxu0 %v4608_v57  ;;  %v4663_v56 = vld [vmem:[%s5383_s15 + $0x360] ss:$8 sps:$4 sm:$0xff]  }
 0x1d5   : > { %3293 = vmatprep.subr.bf16.mxu1 %v4614_v58  ;;  %3577 = vmatprep.subr.bf16.mxu0 %v4618_v59  ;;  %v4666_v57 = vld [vmem:[%s5383_s15 + $0x760] ss:$8 sps:$4 sm:$0xff]   ;;  %v4671_v58 = vld [vmem:[%s5383_s15 + $0x374] ss:$8 sps:$4 sm:$0xff]  }
 0x1d6   : > { %v4674_v59 = vld [vmem:[%s5383_s15 + $0x774] ss:$8 sps:$4 sm:$0xff]  }
 0x1d8   : > { %3294 = vmatpush1.bf16.msra.mxu1 %v4612_v60  ;;  %3578 = vmatpush1.bf16.msra.mxu0 %v4616_v61  ;;  %v3861_v60 = vcombine.high %v5758_v50, %v5763_v53  ;;  %v3869_v61 = vcombine.high %v5768_v54, %v5773_v55 }
 0x1d9   : > { %3295 = vmatprep.subr.bf16.mxu1 %v4623_v62  ;;  %3579 = vmatprep.subr.bf16.mxu0 %v4626_v63  ;;  %v4669_v62 = vld [vmem:[%s5383_s15 + $0x370] ss:$8 sps:$4 sm:$0xff]  }
 0x1da   : > { %v4672_v63 = vld [vmem:[%s5383_s15 + $0x770] ss:$8 sps:$4 sm:$0xff]  }
 0x1dc   : > { %3296 = vmatpush1.bf16.msra.mxu1 %v4621_v4  ;;  %3580 = vmatpush1.bf16.msra.mxu0 %v4624_v7  ;;  %v4677_v4 = vld [vmem:[%s5383_s15 + $0x384] ss:$8 sps:$4 sm:$0xff]  }
 0x1dd   : > { %3336 = vmatprep.subr.bf16.mxu1 %v4629_v8  ;;  %3620 = vmatprep.subr.bf16.mxu0 %v4632_v9  ;;  %v4680_v7 = vld [vmem:[%s5383_s15 + $0x784] ss:$8 sps:$4 sm:$0xff]   ;;  %v4675_v8 = vld [vmem:[%s5383_s15 + $0x380] ss:$8 sps:$4 sm:$0xff]  }
 0x1de   : > { %v4678_v9 = vld [vmem:[%s5383_s15 + $0x780] ss:$8 sps:$4 sm:$0xff]  }
 0x1df   : > { %3298 = vmatmul.mubr.bf16.vlgmr.msra.gmra.mrb[0].mxu1 %v3858_v11  ;;  %3582 = vmatmul.mubr.bf16.vlgmr.msra.gmra.mrb[0].mxu0 %v3866_v12  ;;  %v4686_v11 = vld [vmem:[%s5383_s15 + $0x794] ss:$8 sps:$4 sm:$0xff]   ;;  %v4681_v12 = vld [vmem:[%s5383_s15 + $0x390] ss:$8 sps:$4 sm:$0xff]  }
 0x1e0   : > { %3337 = vmatpush1.bf16.msra.mxu1 %v4627_v16  ;;  %3621 = vmatpush1.bf16.msra.mxu0 %v4630_v17  ;;  %v4687_v16 = vld [vmem:[%s5383_s15 + $0x3a0] ss:$8 sps:$4 sm:$0xff]  }
 0x1e1   : > { %3338 = vmatprep.subr.bf16.mxu1 %v4635_v18  ;;  %3622 = vmatprep.subr.bf16.mxu0 %v4638_v19  ;;  %v4690_v17 = vld [vmem:[%s5383_s15 + $0x7a0] ss:$8 sps:$4 sm:$0xff]   ;;  %v4695_v18 = vld [vmem:[%s5383_s15 + $0x3b4] ss:$8 sps:$4 sm:$0xff]  }
 0x1e2   : > { %3307 = vmatprep.mubr.bf16.mxu1 %v3875_v20  ;;  %3591 = vmatprep.mubr.bf16.mxu0 %v3883_v21  ;;  %v4698_v19 = vld [vmem:[%s5383_s15 + $0x7b4] ss:$8 sps:$4 sm:$0xff]   ;;  %v4693_v20 = vld [vmem:[%s5383_s15 + $0x3b0] ss:$8 sps:$4 sm:$0xff]  }
 0x1e3   : > { %v4696_v21 = vld [vmem:[%s5383_s15 + $0x7b0] ss:$8 sps:$4 sm:$0xff]  }
 0x1e4   : > { %3339 = vmatpush1.bf16.msra.mxu1 %v4633_v22  ;;  %3623 = vmatpush1.bf16.msra.mxu0 %v4636_v23  ;;  %v4701_v22 = vld [vmem:[%s5383_s15 + $0x3c4] ss:$8 sps:$4 sm:$0xff]  }
 0x1e5   : > { %3340 = vmatprep.subr.bf16.mxu1 %v4641_v24  ;;  %3624 = vmatprep.subr.bf16.mxu0 %v4644_v25  ;;  %v4704_v23 = vld [vmem:[%s5383_s15 + $0x7c4] ss:$8 sps:$4 sm:$0xff]   ;;  %v4699_v24 = vld [vmem:[%s5383_s15 + $0x3c0] ss:$8 sps:$4 sm:$0xff]  }
 0x1e6   : > { %v4702_v25 = vld [vmem:[%s5383_s15 + $0x7c0] ss:$8 sps:$4 sm:$0xff]  }
 0x1e7   : > { %3308 = vmatmul.mubr.bf16.gmra.mrb[4].mxu1 %v3874_v27  ;;  %3592 = vmatmul.mubr.bf16.gmra.mrb[4].mxu0 %v3882_v28  ;;  %v4710_v27 = vld [vmem:[%s5383_s15 + $0x7d4] ss:$8 sps:$4 sm:$0xff]   ;;  %v4705_v28 = vld [vmem:[%s5383_s15 + $0x3d0] ss:$8 sps:$4 sm:$0xff]  }
 0x1e8   : > { %3341 = vmatpush1.bf16.msra.mxu1 %v4639_v2  ;;  %3625 = vmatpush1.bf16.msra.mxu0 %v4642_v3  ;;  %v4714_v2 = vld [vmem:[%s5383_s15 + $0x3e0] ss:$8 sps:$4 sm:$0xff]  }
 0x1e9   : > { %3342 = vmatprep.subr.bf16.mxu1 %v4647_v5  ;;  %3626 = vmatprep.subr.bf16.mxu0 %v4650_v6  ;;  %v4718_v3 = vld [vmem:[%s5383_s15 + $0x7e0] ss:$8 sps:$4 sm:$0xff]   ;;  %v4723_v5 = vld [vmem:[%s5383_s15 + $0x3f4] ss:$8 sps:$4 sm:$0xff]  }
 0x1ea   : > { %3317 = vmatprep.mubr.bf16.mxu1 %v3891_v30  ;;  %3601 = vmatprep.mubr.bf16.mxu0 %v3899_v31  ;;  %v4726_v6 = vld [vmem:[%s5383_s15 + $0x7f4] ss:$8 sps:$4 sm:$0xff]   ;;  %v4721_v30 = vld [vmem:[%s5383_s15 + $0x3f0] ss:$8 sps:$4 sm:$0xff]  }
 0x1eb   : > { %v4724_v31 = vld [vmem:[%s5383_s15 + $0x7f0] ss:$8 sps:$4 sm:$0xff]  }
 0x1ec   : > { %3343 = vmatpush1.bf16.msra.mxu1 %v4645_v32  ;;  %3627 = vmatpush1.bf16.msra.mxu0 %v4648_v33  ;;  %v1254_v32 = vld [vmem:[%s5904_s0 + $0x98] sm:$0xff] }
 0x1ed   : > { %3344 = vmatprep.subr.bf16.mxu1 %v4653_v34  ;;  %3628 = vmatprep.subr.bf16.mxu0 %v4656_v35  ;;  %v1262_v33 = vld [vmem:[%s5904_s0 + $0xd8] sm:$0xff] }
 0x1ee   : > { %v1258_v34 = vld [vmem:[%s5904_s0 + $0xb8] sm:$0xff]  ;;  %v3877_v38 = vcombine.high %v1254_v32, %v1262_v33 }
 0x1ef   : > { %3318 = vmatmul.mubr.bf16.gmra.mrb[8].mxu1 %v3890_v36  ;;  %3602 = vmatmul.mubr.bf16.gmra.mrb[8].mxu0 %v3898_v37  ;;  %v1266_v35 = vld [vmem:[%s5904_s0 + $0xf8] sm:$0xff]  ;;  %v3860_v36 = vcombine.low %v5758_v50, %v5763_v53  ;;  %v3868_v37 = vcombine.low %v5768_v54, %v5773_v55 }
 0x1f0   : > { %3345 = vmatpush1.bf16.msra.mxu1 %v4651_v40  ;;  %3629 = vmatpush1.bf16.msra.mxu0 %v4654_v41  ;;  %v3885_v39 = vcombine.high %v1258_v34, %v1266_v35  ;;  %v1270_v40 = vld [vmem:[%s5904_s0 + $0x118] sm:$0xff] }
 0x1f1   : > { %3346 = vmatprep.subr.bf16.mxu1 %v4659_v42  ;;  %3630 = vmatprep.subr.bf16.mxu0 %v4662_v43  ;;  %v1278_v41 = vld [vmem:[%s5904_s0 + $0x158] sm:$0xff] }
 0x1f2   : > { %3327 = vmatprep.mubr.bf16.mxu1 %v3907_v44  ;;  %3611 = vmatprep.mubr.bf16.mxu0 %v3915_v45  ;;  %v1274_v42 = vld [vmem:[%s5904_s0 + $0x138] sm:$0xff]  ;;  %v3876_v44 = vcombine.low %v1254_v32, %v1262_v33  ;;  %v3884_v45 = vcombine.low %v1258_v34, %v1266_v35  ;;  %v3892_v50 = vcombine.low %v1270_v40, %v1278_v41 }
 0x1f3   : > { %v1282_v43 = vld [vmem:[%s5904_s0 + $0x178] sm:$0xff] }
 0x1f4   : > { %3347 = vmatpush1.bf16.msra.mxu1 %v4657_v46  ;;  %3631 = vmatpush1.bf16.msra.mxu0 %v4660_v47  ;;  %v3893_v46 = vcombine.high %v1270_v40, %v1278_v41  ;;  %v3901_v47 = vcombine.high %v1274_v42, %v1282_v43 }
 0x1f5   : > { %3348 = vmatprep.subr.bf16.mxu1 %v4665_v48  ;;  %3632 = vmatprep.subr.bf16.mxu0 %v4668_v49  ;;  %v1286_v48 = vld [vmem:[%s5904_s0 + $0x198] sm:$0xff] }
 0x1f6   : > { %v1290_v49 = vld [vmem:[%s5904_s0 + $0x1b8] sm:$0xff]  ;;  %v3908_v54 = vcombine.low %v1286_v48, %v1286_v48 }
 0x1f7   : > { %3328 = vmatmul.mubr.bf16.gmra.mrb[12].mxu1 %v3906_v51  ;;  %3612 = vmatmul.mubr.bf16.gmra.mrb[12].mxu0 %v3914_v52  ;;  %v3900_v51 = vcombine.low %v1274_v42, %v1282_v43  ;;  %v3909_v52 = vcombine.high %v1286_v48, %v1286_v48  ;;  %v3917_v53 = vcombine.high %v1290_v49, %v1290_v49 }
 0x1f8   : > { %3349 = vmatpush1.bf16.msra.mxu1 %v4663_v56  ;;  %3633 = vmatpush1.bf16.msra.mxu0 %v4666_v57  ;;  %v3916_v55 = vcombine.low %v1290_v49, %v1290_v49 }
 0x1f9   : > { %3350 = vmatprep.subr.bf16.mxu1 %v4671_v58  ;;  %3634 = vmatprep.subr.bf16.mxu0 %v4674_v59 }
 0x1fa   : > { %3368 = vmatprep.mubr.bf16.mxu1 %v3861_v60  ;;  %3652 = vmatprep.mubr.bf16.mxu0 %v3869_v61 }
 0x1fc   : > { %3351 = vmatpush1.bf16.msra.mxu1 %v4669_v62  ;;  %3635 = vmatpush1.bf16.msra.mxu0 %v4672_v63 }
 0x1fd   : > { %3352 = vmatprep.subr.bf16.mxu1 %v4677_v4  ;;  %3636 = vmatprep.subr.bf16.mxu0 %v4680_v7 }
 0x200   : > { %3353 = vmatpush1.bf16.msra.mxu1 %v4675_v8  ;;  %3637 = vmatpush1.bf16.msra.mxu0 %v4678_v9 }
 0x201   : > { %3354 = vmatprep.subr.bf16.mxu1 %v4683_v10  ;;  %3638 = vmatprep.subr.bf16.mxu0 %v4686_v11 }
 0x204   : > { %3355 = vmatpush1.bf16.msra.mxu1 %v4681_v12  ;;  %3639 = vmatpush1.bf16.msra.mxu0 %v4684_v13 }
 0x205   : > { %3356 = vmatprep.subr.bf16.mxu1 %v4689_v14  ;;  %3640 = vmatprep.subr.bf16.mxu0 %v4692_v15 }
 0x208   : > { %3357 = vmatpush1.bf16.msra.mxu1 %v4687_v16  ;;  %3641 = vmatpush1.bf16.msra.mxu0 %v4690_v17 }
 0x209   : > { %3358 = vmatprep.subr.bf16.mxu1 %v4695_v18  ;;  %3642 = vmatprep.subr.bf16.mxu0 %v4698_v19 }
 0x20c   : > { %3359 = vmatpush1.bf16.msra.mxu1 %v4693_v20  ;;  %3643 = vmatpush1.bf16.msra.mxu0 %v4696_v21 }
 0x20d   : > { %3360 = vmatprep.subr.bf16.mxu1 %v4701_v22  ;;  %3644 = vmatprep.subr.bf16.mxu0 %v4704_v23 }
 0x210   : > { %3361 = vmatpush1.bf16.msra.mxu1 %v4699_v24  ;;  %3645 = vmatpush1.bf16.msra.mxu0 %v4702_v25 }
 0x211   : > { %3362 = vmatprep.subr.bf16.mxu1 %v4707_v26  ;;  %3646 = vmatprep.subr.bf16.mxu0 %v4710_v27 }
 0x214   : > { %3363 = vmatpush1.bf16.msra.mxu1 %v4705_v28  ;;  %3647 = vmatpush1.bf16.msra.mxu0 %v4708_v29 }
 0x215   : > { %3364 = vmatprep.subr.bf16.mxu1 %v4716_v0  ;;  %3648 = vmatprep.subr.bf16.mxu0 %v4720_v1 }
 0x218   : > { %3365 = vmatpush1.bf16.msra.mxu1 %v4714_v2  ;;  %3649 = vmatpush1.bf16.msra.mxu0 %v4718_v3 }
 0x219   : > { %3366 = vmatprep.subr.bf16.mxu1 %v4723_v5  ;;  %3650 = vmatprep.subr.bf16.mxu0 %v4726_v6 }
 0x21c   : > { %3367 = vmatpush1.bf16.msra.mxu1 %v4721_v30  ;;  %3651 = vmatpush1.bf16.msra.mxu0 %v4724_v31 }
 0x21f   : > { %3369 = vmatmul.mubr.bf16.vlgmr.msra.gmra.mrb[0].mxu1 %v3860_v36  ;;  %3653 = vmatmul.mubr.bf16.vlgmr.msra.gmra.mrb[0].mxu0 %v3868_v37 }
 0x220   : > { %3378 = vmatprep.mubr.bf16.mxu1 %v3877_v38  ;;  %3662 = vmatprep.mubr.bf16.mxu0 %v3885_v39 }
 0x227   : > { %3379 = vmatmul.mubr.bf16.gmra.mrb[4].mxu1 %v3876_v44  ;;  %3663 = vmatmul.mubr.bf16.gmra.mrb[4].mxu0 %v3884_v45 }
 0x228   : > { %3388 = vmatprep.mubr.bf16.mxu1 %v3893_v46  ;;  %3672 = vmatprep.mubr.bf16.mxu0 %v3901_v47 }
 0x22f   : > { %3389 = vmatmul.mubr.bf16.gmra.mrb[8].mxu1 %v3892_v50  ;;  %3673 = vmatmul.mubr.bf16.gmra.mrb[8].mxu0 %v3900_v51 }
 0x230   : > { %3398 = vmatprep.mubr.bf16.mxu1 %v3909_v52  ;;  %3682 = vmatprep.mubr.bf16.mxu0 %v3917_v53 }
 0x237   : > { %3399 = vmatmul.mubr.bf16.gmra.mrb[12].mxu1 %v3908_v54  ;;  %3683 = vmatmul.mubr.bf16.gmra.mrb[12].mxu0 %v3916_v55 }
 0x2f2   : > { %v3370_v56 = vpop.f32.mrb[0].mxu1  ;;  %v3654_v57 = vpop.f32.mrb[0].mxu0 }
 0x2f3   : > { %v4180_v58 = vadd.f32 %v3654_v57, %v3370_v56  ;;  %v3372_v59 = vpop.f32.mrb[1].mxu1  ;;  %v3656_v60 = vpop.f32.mrb[1].mxu0 }
 0x2f4   : > { %v4181_v61 = vadd.f32 %v3656_v60, %v3372_v59  ;;  %v3374_v62 = vpop.f32.mrb[2].mxu1  ;;  %v3658_v63 = vpop.f32.mrb[2].mxu0 }
 0x2f5   : > { %3691 = vst [vmem:[%s5853_s5] sm:$0xff] %v4180_v58  ;;  %v4182_v4 = vadd.f32 %v3658_v63, %v3374_v62  ;;  %v3376_v7 = vpop.f32.mrb[3].mxu1  ;;  %v3660_v8 = vpop.f32.mrb[3].mxu0 }
 0x2f6   : > { %3692 = vst [vmem:[%s5853_s5 + $0x8] sm:$0xff] %v4181_v61  ;;  %v4183_v9 = vadd.f32 %v3660_v8, %v3376_v7 }
 0x2f7   : > { %3693 = vst [vmem:[%s5853_s5 + $0x10] sm:$0xff] %v4182_v4 }
 0x2f8   : > { %3694 = vst [vmem:[%s5853_s5 + $0x18] sm:$0xff] %v4183_v9 }
 0x2fa   : > { %v3380_v10 = vpop.f32.mrb[4].mxu1  ;;  %v3664_v11 = vpop.f32.mrb[4].mxu0 }
 0x2fb   : > { %v4184_v12 = vadd.f32 %v3664_v11, %v3380_v10  ;;  %v3382_v13 = vpop.f32.mrb[5].mxu1  ;;  %v3666_v14 = vpop.f32.mrb[5].mxu0 }
 0x2fc   : > { %v4185_v15 = vadd.f32 %v3666_v14, %v3382_v13  ;;  %v3384_v16 = vpop.f32.mrb[6].mxu1  ;;  %v3668_v17 = vpop.f32.mrb[6].mxu0  ;;  %v3730_v38 = vld [vmem:[%s5853_s5] sm:$0xff] (%p4821_p6) }
 0x2fd   : > { %3695 = vst [vmem:[%s5853_s5 + $0x20] sm:$0xff] %v4184_v12  ;;  %v4186_v18 = vadd.f32 %v3668_v17, %v3384_v16  ;;  %v3386_v19 = vpop.f32.mrb[7].mxu1  ;;  %v3670_v20 = vpop.f32.mrb[7].mxu0  ;;  %v3732_v39 = vld [vmem:[%s5853_s5 + $0x8] sm:$0xff] (%p4821_p6)  ;;  %3731 = vst [vmem:[%s3717_s7] sm:$0xff] (%p4821_p6), %v3730_v38 }
 0x2fe   : > { %3696 = vst [vmem:[%s5853_s5 + $0x28] sm:$0xff] %v4185_v15  ;;  %v4187_v21 = vadd.f32 %v3670_v20, %v3386_v19  ;;  %v3734_v40 = vld [vmem:[%s5853_s5 + $0x10] sm:$0xff] (%p4821_p6)  ;;  %3733 = vst [vmem:[%s3717_s7 + $0x8] sm:$0xff] (%p4821_p6), %v3732_v39 }
 0x2ff   : > { %3697 = vst [vmem:[%s5853_s5 + $0x30] sm:$0xff] %v4186_v18  ;;  %v3736_v41 = vld [vmem:[%s5853_s5 + $0x18] sm:$0xff] (%p4821_p6)  ;;  %3735 = vst [vmem:[%s3717_s7 + $0x40] sm:$0xff] (%p4821_p6), %v3734_v40 }
 0x300   : > { %3698 = vst [vmem:[%s5853_s5 + $0x38] sm:$0xff] %v4187_v21  ;;  %3737 = vst [vmem:[%s3717_s7 + $0x48] sm:$0xff] (%p4821_p6), %v3736_v41 }
 0x302   : > { %v3390_v22 = vpop.f32.mrb[8].mxu1  ;;  %v3674_v23 = vpop.f32.mrb[8].mxu0 }
 0x303   : > { %v4188_v24 = vadd.f32 %v3674_v23, %v3390_v22  ;;  %v3392_v25 = vpop.f32.mrb[9].mxu1  ;;  %v3676_v26 = vpop.f32.mrb[9].mxu0 }
 0x304   : > { %v4189_v27 = vadd.f32 %v3676_v26, %v3392_v25  ;;  %v3394_v28 = vpop.f32.mrb[10].mxu1  ;;  %v3678_v29 = vpop.f32.mrb[10].mxu0  ;;  %v3738_v42 = vld [vmem:[%s5853_s5 + $0x20] sm:$0xff] (%p4821_p6) }
 0x305   : > { %3699 = vst [vmem:[%s5853_s5 + $0x40] sm:$0xff] %v4188_v24  ;;  %v4190_v0 = vadd.f32 %v3678_v29, %v3394_v28  ;;  %v3396_v1 = vpop.f32.mrb[11].mxu1  ;;  %v3680_v2 = vpop.f32.mrb[11].mxu0  ;;  %v3740_v43 = vld [vmem:[%s5853_s5 + $0x28] sm:$0xff] (%p4821_p6)  ;;  %3739 = vst [vmem:[%s3717_s7 + $0x80] sm:$0xff] (%p4821_p6), %v3738_v42 }
 0x306   : > { %3700 = vst [vmem:[%s5853_s5 + $0x48] sm:$0xff] %v4189_v27  ;;  %v4191_v3 = vadd.f32 %v3680_v2, %v3396_v1  ;;  %3741 = vst [vmem:[%s3717_s7 + $0x88] sm:$0xff] (%p4821_p6), %v3740_v43  ;;  %v3742_v44 = vld [vmem:[%s5853_s5 + $0x30] sm:$0xff] (%p4821_p6) }
 0x307   : > { %3701 = vst [vmem:[%s5853_s5 + $0x50] sm:$0xff] %v4190_v0  ;;  %v3744_v45 = vld [vmem:[%s5853_s5 + $0x38] sm:$0xff] (%p4821_p6)  ;;  %3743 = vst [vmem:[%s3717_s7 + $0xc0] sm:$0xff] (%p4821_p6), %v3742_v44 }
 0x308   : > { %3702 = vst [vmem:[%s5853_s5 + $0x58] sm:$0xff] %v4191_v3  ;;  %3711 = sbr.rel (!%p4821_p6) target bundleno = 791 (0x317), region = 70  ;;  %3745 = vst [vmem:[%s3717_s7 + $0xc8] sm:$0xff] (%p4821_p6), %v3744_v45 }
 0x30a   : > { %v3400_v5 = vpop.f32.mrb[12].mxu1  ;;  %v3684_v6 = vpop.f32.mrb[12].mxu0 }
 0x30b   : > { %v4192_v30 = vadd.f32 %v3684_v6, %v3400_v5  ;;  %v3402_v31 = vpop.f32.mrb[13].mxu1  ;;  %v3686_v32 = vpop.f32.mrb[13].mxu0 }
 0x30c   : > { %v4193_v33 = vadd.f32 %v3686_v32, %v3402_v31  ;;  %v3404_v34 = vpop.f32.mrb[14].mxu1  ;;  %v3688_v35 = vpop.f32.mrb[14].mxu0  ;;  %v3746_v46 = vld [vmem:[%s5853_s5 + $0x40] sm:$0xff] (%p4821_p6) }
 0x30d   : > { %3703 = vst [vmem:[%s5853_s5 + $0x60] sm:$0xff] %v4192_v30  ;;  %v3405_v36 = vpop.f32.mrb[15].mxu1  ;;  %v3689_v37 = vpop.f32.mrb[15].mxu0  ;;  %3747 = vst [vmem:[%s3717_s7 + $0x100] sm:$0xff] (%p4821_p6), %v3746_v46  ;;  %v3748_v47 = vld [vmem:[%s5853_s5 + $0x48] sm:$0xff] (%p4821_p6) }
 0x30e   : > { %3704 = vst [vmem:[%s5853_s5 + $0x68] sm:$0xff] %v4193_v33  ;;  %v3750_v48 = vld [vmem:[%s5853_s5 + $0x50] sm:$0xff] (%p4821_p6)  ;;  %3749 = vst [vmem:[%s3717_s7 + $0x108] sm:$0xff] (%p4821_p6), %v3748_v47 }
 0x30f   : > { %v3752_v49 = vld [vmem:[%s5853_s5 + $0x58] sm:$0xff]  ;;  %3751 = vst [vmem:[%s3717_s7 + $0x140] sm:$0xff] %v3750_v48 }
 0x310   : > { %3753 = vst [vmem:[%s3717_s7 + $0x148] sm:$0xff] %v3752_v49 }
 0x314   : > { %v3754_v50 = vld [vmem:[%s5853_s5 + $0x60] sm:$0xff] }
 0x315   : > { %v3756_v51 = vld [vmem:[%s5853_s5 + $0x68] sm:$0xff]  ;;  %3755 = vst [vmem:[%s3717_s7 + $0x180] sm:$0xff] %v3754_v50 }
 0x316   : > { %3757 = vst [vmem:[%s3717_s7 + $0x188] sm:$0xff] %v3756_v51 }
 0x317 PF: > { %s12_s13 = sadd.s32 1, %s4769_s13   ;;  %s5908_s9 = smov %s4757_s10 }
 0x318   : > { %p9_p11 = scmp.ge.s32.totalorder %s12_s13, 6   ;;  %s5909_s10 = smov %s4826_s19 }
 0x319   : > { %s5910_s11 = smov %s4765_s12  ;;  %s5911_s12 = smov %s5913_s14 }
 0x31a   :  { %11 = sbr.rel (!%p9_p11) target bundleno = 3 (0x3), region = 127 }

// kernel: generator_forward.20
= control target key start
LH: loop header
LB: loop body
LE: loop exit
PB: predicated region body
PF: predicated region fallthrough
CT: control target
= control target key end

     0   :  { %v289_v0 = vmov 0.0   ;;  %vm280_vm0 = vcmask 1040384   ;;  %s501_s0 = inlined_call_operand.vmem [shape: f32[512,128], index: 0, kind: input, shape index: {}]   ;;  %s502_s1 = inlined_call_operand.vmem [shape: f32[2,128], index: 1, kind: output, shape index: {}]  }
   0x1   :  { %12 = vst [vmem:[%s502_s1] sm:$0x3] %v289_v0  ;;  %v13_v1 = vld [vmem:[%s501_s0] sm:$0xff]  ;;  %v14_v2 = vld [vmem:[%s501_s0 + $0x8] sm:$0xff]  ;;  %v15_v3 = vld [vmem:[%s501_s0 + $0x10] sm:$0xff] }
   0x2   :  { %v16_v4 = vld [vmem:[%s501_s0 + $0x18] sm:$0xff]  ;;  %v77_v5 = vadd.f32 %v14_v2, %v13_v1  ;;  %v146_v6 = vmul.f32 %v13_v1, %v13_v1  ;;  %v147_v7 = vmul.f32 %v14_v2, %v14_v2  ;;  %v148_v8 = vmul.f32 %v15_v3, %v15_v3  ;;  %v17_v9 = vld [vmem:[%s501_s0 + $0x20] sm:$0xff]  ;;  %v18_v13 = vld [vmem:[%s501_s0 + $0x28] sm:$0xff] }
   0x3   :  { %v149_v11 = vmul.f32 %v16_v4, %v16_v4  ;;  %v150_v15 = vmul.f32 %v17_v9, %v17_v9  ;;  %v19_v17 = vld [vmem:[%s501_s0 + $0x30] sm:$0xff]  ;;  %v151_v19 = vmul.f32 %v18_v13, %v18_v13  ;;  %v20_v21 = vld [vmem:[%s501_s0 + $0x38] sm:$0xff]  ;;  %v21_v25 = vld [vmem:[%s501_s0 + $0x40] sm:$0xff] }
   0x4   :  { %v78_v10 = vadd.f32 %v77_v5, %v15_v3  ;;  %v210_v12 = vadd.f32 %v147_v7, %v146_v6  ;;  %v152_v23 = vmul.f32 %v19_v17, %v19_v17  ;;  %v153_v27 = vmul.f32 %v20_v21, %v20_v21  ;;  %v22_v29 = vld [vmem:[%s501_s0 + $0x48] sm:$0xff]  ;;  %v23_v33 = vld [vmem:[%s501_s0 + $0x50] sm:$0xff]  ;;  %v24_v37 = vld [vmem:[%s501_s0 + $0x58] sm:$0xff] }
   0x5   :  { %v154_v31 = vmul.f32 %v21_v25, %v21_v25  ;;  %v155_v35 = vmul.f32 %v22_v29, %v22_v29  ;;  %v156_v39 = vmul.f32 %v23_v33, %v23_v33  ;;  %v25_v41 = vld [vmem:[%s501_s0 + $0x60] sm:$0xff]  ;;  %v157_v43 = vmul.f32 %v24_v37, %v24_v37  ;;  %v26_v45 = vld [vmem:[%s501_s0 + $0x68] sm:$0xff]  ;;  %v27_v49 = vld [vmem:[%s501_s0 + $0x70] sm:$0xff] }
   0x6   :  { %v79_v14 = vadd.f32 %v78_v10, %v16_v4  ;;  %v211_v16 = vadd.f32 %v210_v12, %v148_v8  ;;  %v158_v47 = vmul.f32 %v25_v41, %v25_v41  ;;  %v159_v51 = vmul.f32 %v26_v45, %v26_v45  ;;  %v28_v53 = vld [vmem:[%s501_s0 + $0x78] sm:$0xff]  ;;  %v29_v57 = vld [vmem:[%s501_s0 + $0x80] sm:$0xff]  ;;  %v30_v61 = vld [vmem:[%s501_s0 + $0x88] sm:$0xff] }
   0x7   :  { %v160_v55 = vmul.f32 %v27_v49, %v27_v49  ;;  %v161_v59 = vmul.f32 %v28_v53, %v28_v53  ;;  %v162_v63 = vmul.f32 %v29_v57, %v29_v57  ;;  %v31_v1 = vld [vmem:[%s501_s0 + $0x90] sm:$0xff]  ;;  %v163_v3 = vmul.f32 %v30_v61, %v30_v61  ;;  %v32_v5 = vld [vmem:[%s501_s0 + $0x98] sm:$0xff] }
   0x8   :  { %v80_v18 = vadd.f32 %v79_v14, %v17_v9  ;;  %v212_v20 = vadd.f32 %v211_v16, %v149_v11  ;;  %v164_v7 = vmul.f32 %v31_v1, %v31_v1  ;;  %v33_v9 = vld [vmem:[%s501_s0 + $0xa0] sm:$0xff]  ;;  %v165_v11 = vmul.f32 %v32_v5, %v32_v5 }
   0xa   :  { %v81_v22 = vadd.f32 %v80_v18, %v18_v13  ;;  %v213_v24 = vadd.f32 %v212_v20, %v150_v15  ;;  %v34_v13 = vld [vmem:[%s501_s0 + $0xa8] sm:$0xff]  ;;  %v166_v15 = vmul.f32 %v33_v9, %v33_v9 }
   0xc   :  { %v82_v26 = vadd.f32 %v81_v22, %v19_v17  ;;  %v214_v28 = vadd.f32 %v213_v24, %v151_v19  ;;  %v35_v17 = vld [vmem:[%s501_s0 + $0xb0] sm:$0xff]  ;;  %v167_v19 = vmul.f32 %v34_v13, %v34_v13 }
   0xe   :  { %v83_v30 = vadd.f32 %v82_v26, %v20_v21  ;;  %v215_v32 = vadd.f32 %v214_v28, %v152_v23  ;;  %v36_v21 = vld [vmem:[%s501_s0 + $0xb8] sm:$0xff]  ;;  %v168_v23 = vmul.f32 %v35_v17, %v35_v17 }
  0x10   :  { %v84_v34 = vadd.f32 %v83_v30, %v21_v25  ;;  %v216_v36 = vadd.f32 %v215_v32, %v153_v27  ;;  %v37_v25 = vld [vmem:[%s501_s0 + $0xc0] sm:$0xff]  ;;  %v169_v27 = vmul.f32 %v36_v21, %v36_v21 }
  0x12   :  { %v85_v38 = vadd.f32 %v84_v34, %v22_v29  ;;  %v217_v40 = vadd.f32 %v216_v36, %v154_v31  ;;  %v38_v29 = vld [vmem:[%s501_s0 + $0xc8] sm:$0xff]  ;;  %v170_v31 = vmul.f32 %v37_v25, %v37_v25 }
  0x14   :  { %v86_v42 = vadd.f32 %v85_v38, %v23_v33  ;;  %v218_v44 = vadd.f32 %v217_v40, %v155_v35  ;;  %v39_v33 = vld [vmem:[%s501_s0 + $0xd0] sm:$0xff]  ;;  %v171_v35 = vmul.f32 %v38_v29, %v38_v29 }
  0x16   :  { %v87_v46 = vadd.f32 %v86_v42, %v24_v37  ;;  %v219_v48 = vadd.f32 %v218_v44, %v156_v39  ;;  %v40_v37 = vld [vmem:[%s501_s0 + $0xd8] sm:$0xff]  ;;  %v172_v39 = vmul.f32 %v39_v33, %v39_v33 }
  0x18   :  { %v88_v50 = vadd.f32 %v87_v46, %v25_v41  ;;  %v220_v52 = vadd.f32 %v219_v48, %v157_v43  ;;  %v41_v41 = vld [vmem:[%s501_s0 + $0xe0] sm:$0xff]  ;;  %v173_v43 = vmul.f32 %v40_v37, %v40_v37 }
  0x1a   :  { %v89_v54 = vadd.f32 %v88_v50, %v26_v45  ;;  %v221_v56 = vadd.f32 %v220_v52, %v158_v47  ;;  %v42_v45 = vld [vmem:[%s501_s0 + $0xe8] sm:$0xff]  ;;  %v174_v47 = vmul.f32 %v41_v41, %v41_v41 }
  0x1c   :  { %v90_v58 = vadd.f32 %v89_v54, %v27_v49  ;;  %v222_v60 = vadd.f32 %v221_v56, %v159_v51  ;;  %v43_v49 = vld [vmem:[%s501_s0 + $0xf0] sm:$0xff]  ;;  %v175_v51 = vmul.f32 %v42_v45, %v42_v45 }
  0x1e   :  { %v91_v62 = vadd.f32 %v90_v58, %v28_v53  ;;  %v223_v0 = vadd.f32 %v222_v60, %v160_v55  ;;  %v44_v53 = vld [vmem:[%s501_s0 + $0xf8] sm:$0xff]  ;;  %v176_v55 = vmul.f32 %v43_v49, %v43_v49 }
  0x20   :  { %v92_v2 = vadd.f32 %v91_v62, %v29_v57  ;;  %v224_v4 = vadd.f32 %v223_v0, %v161_v59  ;;  %v45_v57 = vld [vmem:[%s501_s0 + $0x100] sm:$0xff]  ;;  %v177_v59 = vmul.f32 %v44_v53, %v44_v53 }
  0x22   :  { %v93_v6 = vadd.f32 %v92_v2, %v30_v61  ;;  %v225_v8 = vadd.f32 %v224_v4, %v162_v63  ;;  %v46_v61 = vld [vmem:[%s501_s0 + $0x108] sm:$0xff]  ;;  %v178_v63 = vmul.f32 %v45_v57, %v45_v57 }
  0x24   :  { %v94_v10 = vadd.f32 %v93_v6, %v31_v1  ;;  %v226_v12 = vadd.f32 %v225_v8, %v163_v3  ;;  %v47_v1 = vld [vmem:[%s501_s0 + $0x110] sm:$0xff]  ;;  %v179_v3 = vmul.f32 %v46_v61, %v46_v61 }
  0x26   :  { %v95_v14 = vadd.f32 %v94_v10, %v32_v5  ;;  %v227_v16 = vadd.f32 %v226_v12, %v164_v7  ;;  %v48_v5 = vld [vmem:[%s501_s0 + $0x118] sm:$0xff]  ;;  %v180_v7 = vmul.f32 %v47_v1, %v47_v1 }
  0x28   :  { %v96_v18 = vadd.f32 %v95_v14, %v33_v9  ;;  %v228_v20 = vadd.f32 %v227_v16, %v165_v11  ;;  %v49_v9 = vld [vmem:[%s501_s0 + $0x120] sm:$0xff]  ;;  %v181_v11 = vmul.f32 %v48_v5, %v48_v5 }
  0x2a   :  { %v97_v22 = vadd.f32 %v96_v18, %v34_v13  ;;  %v229_v24 = vadd.f32 %v228_v20, %v166_v15  ;;  %v50_v13 = vld [vmem:[%s501_s0 + $0x128] sm:$0xff]  ;;  %v182_v15 = vmul.f32 %v49_v9, %v49_v9 }
  0x2c   :  { %v98_v26 = vadd.f32 %v97_v22, %v35_v17  ;;  %v230_v28 = vadd.f32 %v229_v24, %v167_v19  ;;  %v51_v17 = vld [vmem:[%s501_s0 + $0x130] sm:$0xff]  ;;  %v183_v19 = vmul.f32 %v50_v13, %v50_v13 }
  0x2e   :  { %v99_v30 = vadd.f32 %v98_v26, %v36_v21  ;;  %v231_v32 = vadd.f32 %v230_v28, %v168_v23  ;;  %v52_v21 = vld [vmem:[%s501_s0 + $0x138] sm:$0xff]  ;;  %v184_v23 = vmul.f32 %v51_v17, %v51_v17 }
  0x30   :  { %v100_v34 = vadd.f32 %v99_v30, %v37_v25  ;;  %v232_v36 = vadd.f32 %v231_v32, %v169_v27  ;;  %v53_v25 = vld [vmem:[%s501_s0 + $0x140] sm:$0xff]  ;;  %v185_v27 = vmul.f32 %v52_v21, %v52_v21 }
  0x32   :  { %v101_v38 = vadd.f32 %v100_v34, %v38_v29  ;;  %v233_v40 = vadd.f32 %v232_v36, %v170_v31  ;;  %v54_v29 = vld [vmem:[%s501_s0 + $0x148] sm:$0xff]  ;;  %v186_v31 = vmul.f32 %v53_v25, %v53_v25 }
  0x34   :  { %v102_v42 = vadd.f32 %v101_v38, %v39_v33  ;;  %v234_v44 = vadd.f32 %v233_v40, %v171_v35  ;;  %v55_v33 = vld [vmem:[%s501_s0 + $0x150] sm:$0xff]  ;;  %v187_v35 = vmul.f32 %v54_v29, %v54_v29 }
  0x36   :  { %v103_v46 = vadd.f32 %v102_v42, %v40_v37  ;;  %v235_v48 = vadd.f32 %v234_v44, %v172_v39  ;;  %v56_v37 = vld [vmem:[%s501_s0 + $0x158] sm:$0xff]  ;;  %v188_v39 = vmul.f32 %v55_v33, %v55_v33 }
  0x38   :  { %v104_v50 = vadd.f32 %v103_v46, %v41_v41  ;;  %v236_v52 = vadd.f32 %v235_v48, %v173_v43  ;;  %v57_v41 = vld [vmem:[%s501_s0 + $0x160] sm:$0xff]  ;;  %v189_v43 = vmul.f32 %v56_v37, %v56_v37 }
  0x3a   :  { %v105_v54 = vadd.f32 %v104_v50, %v42_v45  ;;  %v237_v56 = vadd.f32 %v236_v52, %v174_v47  ;;  %v58_v45 = vld [vmem:[%s501_s0 + $0x168] sm:$0xff]  ;;  %v190_v47 = vmul.f32 %v57_v41, %v57_v41 }
  0x3c   :  { %v106_v58 = vadd.f32 %v105_v54, %v43_v49  ;;  %v238_v60 = vadd.f32 %v237_v56, %v175_v51  ;;  %v59_v49 = vld [vmem:[%s501_s0 + $0x170] sm:$0xff]  ;;  %v191_v51 = vmul.f32 %v58_v45, %v58_v45 }
  0x3e   :  { %v107_v62 = vadd.f32 %v106_v58, %v44_v53  ;;  %v239_v0 = vadd.f32 %v238_v60, %v176_v55  ;;  %v60_v53 = vld [vmem:[%s501_s0 + $0x178] sm:$0xff]  ;;  %v192_v55 = vmul.f32 %v59_v49, %v59_v49 }
  0x40   :  { %v108_v2 = vadd.f32 %v107_v62, %v45_v57  ;;  %v240_v4 = vadd.f32 %v239_v0, %v177_v59  ;;  %v61_v57 = vld [vmem:[%s501_s0 + $0x180] sm:$0xff]  ;;  %v193_v59 = vmul.f32 %v60_v53, %v60_v53 }
  0x42   :  { %v109_v6 = vadd.f32 %v108_v2, %v46_v61  ;;  %v241_v8 = vadd.f32 %v240_v4, %v178_v63  ;;  %v62_v61 = vld [vmem:[%s501_s0 + $0x188] sm:$0xff]  ;;  %v194_v63 = vmul.f32 %v61_v57, %v61_v57 }
  0x44   :  { %v110_v10 = vadd.f32 %v109_v6, %v47_v1  ;;  %v242_v12 = vadd.f32 %v241_v8, %v179_v3  ;;  %v63_v1 = vld [vmem:[%s501_s0 + $0x190] sm:$0xff]  ;;  %v195_v3 = vmul.f32 %v62_v61, %v62_v61 }
  0x46   :  { %v111_v14 = vadd.f32 %v110_v10, %v48_v5  ;;  %v243_v16 = vadd.f32 %v242_v12, %v180_v7  ;;  %v64_v5 = vld [vmem:[%s501_s0 + $0x198] sm:$0xff]  ;;  %v196_v7 = vmul.f32 %v63_v1, %v63_v1 }
  0x48   :  { %v112_v18 = vadd.f32 %v111_v14, %v49_v9  ;;  %v244_v20 = vadd.f32 %v243_v16, %v181_v11  ;;  %v65_v9 = vld [vmem:[%s501_s0 + $0x1a0] sm:$0xff]  ;;  %v197_v11 = vmul.f32 %v64_v5, %v64_v5 }
  0x4a   :  { %v113_v22 = vadd.f32 %v112_v18, %v50_v13  ;;  %v245_v24 = vadd.f32 %v244_v20, %v182_v15  ;;  %v66_v13 = vld [vmem:[%s501_s0 + $0x1a8] sm:$0xff]  ;;  %v198_v15 = vmul.f32 %v65_v9, %v65_v9 }
  0x4c   :  { %v114_v26 = vadd.f32 %v113_v22, %v51_v17  ;;  %v246_v28 = vadd.f32 %v245_v24, %v183_v19  ;;  %v67_v17 = vld [vmem:[%s501_s0 + $0x1b0] sm:$0xff]  ;;  %v199_v19 = vmul.f32 %v66_v13, %v66_v13 }
  0x4e   :  { %v115_v30 = vadd.f32 %v114_v26, %v52_v21  ;;  %v247_v32 = vadd.f32 %v246_v28, %v184_v23  ;;  %v68_v21 = vld [vmem:[%s501_s0 + $0x1b8] sm:$0xff]  ;;  %v200_v23 = vmul.f32 %v67_v17, %v67_v17 }
  0x50   :  { %v116_v34 = vadd.f32 %v115_v30, %v53_v25  ;;  %v248_v36 = vadd.f32 %v247_v32, %v185_v27  ;;  %v69_v25 = vld [vmem:[%s501_s0 + $0x1c0] sm:$0xff]  ;;  %v201_v27 = vmul.f32 %v68_v21, %v68_v21 }
  0x52   :  { %v117_v38 = vadd.f32 %v116_v34, %v54_v29  ;;  %v249_v40 = vadd.f32 %v248_v36, %v186_v31  ;;  %v70_v29 = vld [vmem:[%s501_s0 + $0x1c8] sm:$0xff]  ;;  %v202_v31 = vmul.f32 %v69_v25, %v69_v25 }
  0x54   :  { %v118_v42 = vadd.f32 %v117_v38, %v55_v33  ;;  %v250_v44 = vadd.f32 %v249_v40, %v187_v35  ;;  %v71_v33 = vld [vmem:[%s501_s0 + $0x1d0] sm:$0xff]  ;;  %v203_v35 = vmul.f32 %v70_v29, %v70_v29 }
  0x56   :  { %v119_v46 = vadd.f32 %v118_v42, %v56_v37  ;;  %v251_v48 = vadd.f32 %v250_v44, %v188_v39  ;;  %v72_v37 = vld [vmem:[%s501_s0 + $0x1d8] sm:$0xff]  ;;  %v204_v39 = vmul.f32 %v71_v33, %v71_v33 }
  0x58   :  { %v120_v50 = vadd.f32 %v119_v46, %v57_v41  ;;  %v252_v52 = vadd.f32 %v251_v48, %v189_v43  ;;  %v73_v41 = vld [vmem:[%s501_s0 + $0x1e0] sm:$0xff]  ;;  %v205_v43 = vmul.f32 %v72_v37, %v72_v37 }
  0x5a   :  { %v121_v54 = vadd.f32 %v120_v50, %v58_v45  ;;  %v253_v56 = vadd.f32 %v252_v52, %v190_v47  ;;  %v74_v45 = vld [vmem:[%s501_s0 + $0x1e8] sm:$0xff]  ;;  %v206_v47 = vmul.f32 %v73_v41, %v73_v41 }
  0x5c   :  { %v122_v58 = vadd.f32 %v121_v54, %v59_v49  ;;  %v254_v60 = vadd.f32 %v253_v56, %v191_v51  ;;  %v75_v49 = vld [vmem:[%s501_s0 + $0x1f0] sm:$0xff]  ;;  %v207_v51 = vmul.f32 %v74_v45, %v74_v45 }
  0x5e   :  { %v123_v62 = vadd.f32 %v122_v58, %v60_v53  ;;  %v255_v0 = vadd.f32 %v254_v60, %v192_v55  ;;  %v76_v53 = vld [vmem:[%s501_s0 + $0x1f8] sm:$0xff]  ;;  %v208_v55 = vmul.f32 %v75_v49, %v75_v49 }
  0x5f   :  { %v209_v58 = vmul.f32 %v76_v53, %v76_v53 }
  0x60   :  { %v124_v2 = vadd.f32 %v123_v62, %v61_v57  ;;  %v256_v4 = vadd.f32 %v255_v0, %v193_v59 }
  0x62   :  { %v125_v6 = vadd.f32 %v124_v2, %v62_v61  ;;  %v257_v8 = vadd.f32 %v256_v4, %v194_v63 }
  0x64   :  { %v126_v10 = vadd.f32 %v125_v6, %v63_v1  ;;  %v258_v12 = vadd.f32 %v257_v8, %v195_v3 }
  0x66   :  { %v127_v14 = vadd.f32 %v126_v10, %v64_v5  ;;  %v259_v16 = vadd.f32 %v258_v12, %v196_v7 }
  0x68   :  { %v128_v18 = vadd.f32 %v127_v14, %v65_v9  ;;  %v260_v20 = vadd.f32 %v259_v16, %v197_v11  ;;  %v279_v11 = vld [vmem:[%s502_s1] sm:$0x3] }
  0x6a   :  { %v129_v22 = vadd.f32 %v128_v18, %v66_v13  ;;  %v261_v24 = vadd.f32 %v260_v20, %v198_v15 }
  0x6c   :  { %v130_v26 = vadd.f32 %v129_v22, %v67_v17  ;;  %v262_v28 = vadd.f32 %v261_v24, %v199_v19 }
  0x6e   :  { %v131_v30 = vadd.f32 %v130_v26, %v68_v21  ;;  %v263_v32 = vadd.f32 %v262_v28, %v200_v23 }
  0x70   :  { %v132_v34 = vadd.f32 %v131_v30, %v69_v25  ;;  %v264_v36 = vadd.f32 %v263_v32, %v201_v27 }
  0x72   :  { %v133_v38 = vadd.f32 %v132_v34, %v70_v29  ;;  %v265_v40 = vadd.f32 %v264_v36, %v202_v31 }
  0x74   :  { %v134_v42 = vadd.f32 %v133_v38, %v71_v33  ;;  %v266_v44 = vadd.f32 %v265_v40, %v203_v35 }
  0x76   :  { %v135_v46 = vadd.f32 %v134_v42, %v72_v37  ;;  %v267_v48 = vadd.f32 %v266_v44, %v204_v39 }
  0x78   :  { %v136_v50 = vadd.f32 %v135_v46, %v73_v41  ;;  %v268_v52 = vadd.f32 %v267_v48, %v205_v43 }
  0x7a   :  { %v137_v54 = vadd.f32 %v136_v50, %v74_v45  ;;  %v269_v56 = vadd.f32 %v268_v52, %v206_v47 }
  0x7c   :  { %v138_v57 = vadd.f32 %v137_v54, %v75_v49  ;;  %v270_v59 = vadd.f32 %v269_v56, %v207_v51 }
  0x7e   :  { %v139_v60 = vadd.f32 %v138_v57, %v76_v53  ;;  %v271_v61 = vadd.f32 %v270_v59, %v208_v55 }
  0x80   :  { %v140_v62 = vrot.slane %v139_v60, 4  ;;  %v272_v63 = vadd.f32 %v271_v61, %v209_v58 }
  0x82   :  { %v141_v0 = vadd.f32 %v140_v62, %v139_v60  ;;  %v273_v1 = vrot.slane %v272_v63, 4 }
  0x84   :  { %v142_v2 = vrot.slane %v141_v0, 2  ;;  %v274_v3 = vadd.f32 %v273_v1, %v272_v63 }
  0x86   :  { %v143_v4 = vadd.f32 %v142_v2, %v141_v0  ;;  %v275_v5 = vrot.slane %v274_v3, 2 }
  0x88   :  { %v144_v6 = vrot.slane %v143_v4, 1  ;;  %v276_v7 = vadd.f32 %v275_v5, %v274_v3 }
  0x8a   :  { %v145_v8 = vadd.f32 %v144_v6, %v143_v4  ;;  %v277_v9 = vrot.slane %v276_v7, 1 }
  0x8c   :  { %v278_v10 = vadd.f32 %v277_v9, %v276_v7 }
  0x8e   :  { %v281_v12 = vsel %vm280_vm0, %v145_v8, %v278_v10 }
  0x8f   :  { %v282_v13 = vadd.f32 %v281_v12, %v279_v11 }
  0x91   :  { %283 = vst [vmem:[%s502_s1] sm:$0x3] %v282_v13 }

// kernel: generator_forward.19
= control target key start
LH: loop header
LB: loop body
LE: loop exit
PB: predicated region body
PF: predicated region fallthrough
CT: control target
= control target key end

     0   :  { %s3462_s9 = smov 0   ;;  %s3464_s10 = smov 0   ;;  %s4332_s0 = inlined_call_operand.vmem [shape: bf16[168,1024], index: 0, kind: input, shape index: {}]   ;;  %s4333_s1 = inlined_call_operand.vmem [shape: bf16[1024,512], index: 1, kind: input, shape index: {}]   ;;  %s4334_s2 = inlined_call_operand.vmem [shape: f32[168,512], index: 2, kind: output, shape index: {}]  }
   0x1   :  { %s3466_s11 = smov 0   ;;  %s3468_s12 = smov 0  }
   0x2   :  { %s3470_s13 = smov 0  }
   0x3 LB: > { %s21_s14 = sadd.s32 1, %s3441_s12  ;;  %s2804_s15 = sadd.s32 4294967295, %s3445_s13   ;;  %s3445_s13 = sphi %s3470_s13, %s12_s13   ;;  %s3441_s12 = sphi %s3468_s12, %s4339_s12   ;;  %s3437_s11 = sphi %s3466_s11, %s4338_s11   ;;  %s3433_s10 = sphi %s3464_s10, %s4337_s10   ;;  %s3429_s9 = sphi %s3462_s9, %s4336_s9  }
   0x4   : > { %p22_p0 = scmp.ge.s32.totalorder %s21_s14, 2  ;;  %p64_p1 = scmp.ne.s32.totalorder %s3433_s10, %s3429_s9 }
   0x5   : > { %p65_p2 = scmp.eq.s32.totalorder %s3445_s13, 0  ;;  %p96_p4 = scmp.eq.s32.totalorder %s2804_s15, 1 }
   0x6   : > { %s4341_s14 = smov (%p22_p0, %s21_s14), 0  ;;  %s57_s17 = sadd.s32 1, %s3433_s10 }
   0x7   : > { %p66_p3 = por %p65_p2, %p64_p1  ;;  %s54_s16 = ssub.s32 %s3441_s12, %s4341_s14 }
   0x8   : > { %p55_p5 = scmp.eq.s32.totalorder %s54_s16, 0  ;;  %p3497_p6 = por %p96_p4, %p64_p1 }
   0x9   : > { %p2808_p7 = scmp.ge.s32.totalorder %s3445_s13, 2 }
   0xa   : > { %s3502_s19 = scalar_select %p55_p5, %s3433_s10, %s57_s17  }
   0xb   : > { %128 = sbr.rel (%p2808_p7) target bundleno = 86 (0x56), region = 20 }
  0x12   : > { %131 = sbr.rel (!%p66_p3) target bundleno = 86 (0x56), region = 24  ;;  %s133_s20 = sand.u32 (%p66_p3), 1, %s3433_s10  }
  0x13   : > { %s3034_s21 = sshll.u32 (%p66_p3), %s3441_s12, 3  ;;  %s2809_s22 = sshll.u32 (%p66_p3), %s133_s20, 10 }
  0x14   : > { %s3510_s25 = scalar_lea.vmem (%p66_p3), %s4333_s1, %s3034_s21  ;;  %s3515_s26 = scalar_lea.vmem (%p66_p3), [#allocation2], %s2809_s22 }
  0x15   : > { %v420_v0 = vld [vmem:[%s3510_s25] sm:$0xff] (%p66_p3)  ;;  %v422_v1 = vld [vmem:[%s3510_s25 + $0x10] sm:$0xff] (%p66_p3) }
  0x16   : > { %v424_v2 = vld [vmem:[%s3510_s25 + $0x20] sm:$0xff] (%p66_p3)  ;;  %421 = vst [vmem:[%s3515_s26] sm:$0xff] (%p66_p3), %v420_v0  ;;  %423 = vst [vmem:[%s3515_s26 + $0x8] sm:$0xff] (%p66_p3), %v422_v1  ;;  %v426_v3 = vld [vmem:[%s3510_s25 + $0x30] sm:$0xff] (%p66_p3) }
  0x17   : > { %425 = vst [vmem:[%s3515_s26 + $0x10] sm:$0xff] (%p66_p3), %v424_v2  ;;  %v428_v4 = vld [vmem:[%s3510_s25 + $0x40] sm:$0xff] (%p66_p3)  ;;  %v430_v5 = vld [vmem:[%s3510_s25 + $0x50] sm:$0xff] (%p66_p3)  ;;  %427 = vst [vmem:[%s3515_s26 + $0x18] sm:$0xff] (%p66_p3), %v426_v3 }
  0x18   : > { %429 = vst [vmem:[%s3515_s26 + $0x20] sm:$0xff] (%p66_p3), %v428_v4  ;;  %431 = vst [vmem:[%s3515_s26 + $0x28] sm:$0xff] (%p66_p3), %v430_v5  ;;  %v432_v6 = vld [vmem:[%s3510_s25 + $0x60] sm:$0xff] (%p66_p3)  ;;  %v434_v7 = vld [vmem:[%s3510_s25 + $0x70] sm:$0xff] (%p66_p3) }
  0x19   : > { %v436_v8 = vld [vmem:[%s3510_s25 + $0x80] sm:$0xff]  ;;  %433 = vst [vmem:[%s3515_s26 + $0x30] sm:$0xff] %v432_v6  ;;  %435 = vst [vmem:[%s3515_s26 + $0x38] sm:$0xff] %v434_v7  ;;  %v438_v9 = vld [vmem:[%s3510_s25 + $0x90] sm:$0xff] }
  0x1a   : > { %437 = vst [vmem:[%s3515_s26 + $0x40] sm:$0xff] %v436_v8  ;;  %v440_v10 = vld [vmem:[%s3510_s25 + $0xa0] sm:$0xff]  ;;  %v442_v11 = vld [vmem:[%s3510_s25 + $0xb0] sm:$0xff]  ;;  %439 = vst [vmem:[%s3515_s26 + $0x48] sm:$0xff] %v438_v9 }
  0x1b   : > { %441 = vst [vmem:[%s3515_s26 + $0x50] sm:$0xff] %v440_v10  ;;  %443 = vst [vmem:[%s3515_s26 + $0x58] sm:$0xff] %v442_v11  ;;  %v444_v12 = vld [vmem:[%s3510_s25 + $0xc0] sm:$0xff]  ;;  %v446_v13 = vld [vmem:[%s3510_s25 + $0xd0] sm:$0xff] }
  0x1c   : > { %v448_v14 = vld [vmem:[%s3510_s25 + $0xe0] sm:$0xff]  ;;  %445 = vst [vmem:[%s3515_s26 + $0x60] sm:$0xff] %v444_v12  ;;  %447 = vst [vmem:[%s3515_s26 + $0x68] sm:$0xff] %v446_v13  ;;  %v450_v15 = vld [vmem:[%s3510_s25 + $0xf0] sm:$0xff] }
  0x1d   : > { %449 = vst [vmem:[%s3515_s26 + $0x70] sm:$0xff] %v448_v14  ;;  %v452_v16 = vld [vmem:[%s3510_s25 + $0x100] sm:$0xff]  ;;  %v454_v17 = vld [vmem:[%s3510_s25 + $0x110] sm:$0xff]  ;;  %451 = vst [vmem:[%s3515_s26 + $0x78] sm:$0xff] %v450_v15 }
  0x1e   : > { %453 = vst [vmem:[%s3515_s26 + $0x80] sm:$0xff] %v452_v16  ;;  %455 = vst [vmem:[%s3515_s26 + $0x88] sm:$0xff] %v454_v17  ;;  %v456_v18 = vld [vmem:[%s3510_s25 + $0x120] sm:$0xff]  ;;  %v458_v19 = vld [vmem:[%s3510_s25 + $0x130] sm:$0xff] }
  0x1f   : > { %v460_v20 = vld [vmem:[%s3510_s25 + $0x140] sm:$0xff]  ;;  %457 = vst [vmem:[%s3515_s26 + $0x90] sm:$0xff] %v456_v18  ;;  %459 = vst [vmem:[%s3515_s26 + $0x98] sm:$0xff] %v458_v19  ;;  %v462_v21 = vld [vmem:[%s3510_s25 + $0x150] sm:$0xff] }
  0x20   : > { %461 = vst [vmem:[%s3515_s26 + $0xa0] sm:$0xff] %v460_v20  ;;  %v464_v22 = vld [vmem:[%s3510_s25 + $0x160] sm:$0xff]  ;;  %v466_v23 = vld [vmem:[%s3510_s25 + $0x170] sm:$0xff]  ;;  %463 = vst [vmem:[%s3515_s26 + $0xa8] sm:$0xff] %v462_v21 }
  0x21   : > { %465 = vst [vmem:[%s3515_s26 + $0xb0] sm:$0xff] %v464_v22  ;;  %467 = vst [vmem:[%s3515_s26 + $0xb8] sm:$0xff] %v466_v23  ;;  %v468_v24 = vld [vmem:[%s3510_s25 + $0x180] sm:$0xff]  ;;  %v470_v25 = vld [vmem:[%s3510_s25 + $0x190] sm:$0xff] }
  0x22   : > { %v472_v26 = vld [vmem:[%s3510_s25 + $0x1a0] sm:$0xff]  ;;  %469 = vst [vmem:[%s3515_s26 + $0xc0] sm:$0xff] %v468_v24  ;;  %471 = vst [vmem:[%s3515_s26 + $0xc8] sm:$0xff] %v470_v25  ;;  %v474_v27 = vld [vmem:[%s3510_s25 + $0x1b0] sm:$0xff] }
  0x23   : > { %473 = vst [vmem:[%s3515_s26 + $0xd0] sm:$0xff] %v472_v26  ;;  %v476_v28 = vld [vmem:[%s3510_s25 + $0x1c0] sm:$0xff]  ;;  %v478_v29 = vld [vmem:[%s3510_s25 + $0x1d0] sm:$0xff]  ;;  %475 = vst [vmem:[%s3515_s26 + $0xd8] sm:$0xff] %v474_v27 }
  0x24   : > { %477 = vst [vmem:[%s3515_s26 + $0xe0] sm:$0xff] %v476_v28  ;;  %479 = vst [vmem:[%s3515_s26 + $0xe8] sm:$0xff] %v478_v29  ;;  %v480_v30 = vld [vmem:[%s3510_s25 + $0x1e0] sm:$0xff]  ;;  %v482_v31 = vld [vmem:[%s3510_s25 + $0x1f0] sm:$0xff] }
  0x25   : > { %v484_v32 = vld [vmem:[%s3510_s25 + $0x200] sm:$0xff]  ;;  %481 = vst [vmem:[%s3515_s26 + $0xf0] sm:$0xff] %v480_v30  ;;  %483 = vst [vmem:[%s3515_s26 + $0xf8] sm:$0xff] %v482_v31  ;;  %v486_v33 = vld [vmem:[%s3510_s25 + $0x210] sm:$0xff] }
  0x26   : > { %485 = vst [vmem:[%s3515_s26 + $0x100] sm:$0xff] %v484_v32  ;;  %v488_v34 = vld [vmem:[%s3510_s25 + $0x220] sm:$0xff]  ;;  %v490_v35 = vld [vmem:[%s3510_s25 + $0x230] sm:$0xff]  ;;  %487 = vst [vmem:[%s3515_s26 + $0x108] sm:$0xff] %v486_v33 }
  0x27   : > { %489 = vst [vmem:[%s3515_s26 + $0x110] sm:$0xff] %v488_v34  ;;  %491 = vst [vmem:[%s3515_s26 + $0x118] sm:$0xff] %v490_v35  ;;  %v492_v36 = vld [vmem:[%s3510_s25 + $0x240] sm:$0xff]  ;;  %v494_v37 = vld [vmem:[%s3510_s25 + $0x250] sm:$0xff] }
  0x28   : > { %v496_v38 = vld [vmem:[%s3510_s25 + $0x260] sm:$0xff]  ;;  %493 = vst [vmem:[%s3515_s26 + $0x120] sm:$0xff] %v492_v36  ;;  %495 = vst [vmem:[%s3515_s26 + $0x128] sm:$0xff] %v494_v37  ;;  %v498_v39 = vld [vmem:[%s3510_s25 + $0x270] sm:$0xff] }
  0x29   : > { %497 = vst [vmem:[%s3515_s26 + $0x130] sm:$0xff] %v496_v38  ;;  %v500_v40 = vld [vmem:[%s3510_s25 + $0x280] sm:$0xff]  ;;  %v502_v41 = vld [vmem:[%s3510_s25 + $0x290] sm:$0xff]  ;;  %499 = vst [vmem:[%s3515_s26 + $0x138] sm:$0xff] %v498_v39 }
  0x2a   : > { %501 = vst [vmem:[%s3515_s26 + $0x140] sm:$0xff] %v500_v40  ;;  %503 = vst [vmem:[%s3515_s26 + $0x148] sm:$0xff] %v502_v41  ;;  %v504_v42 = vld [vmem:[%s3510_s25 + $0x2a0] sm:$0xff]  ;;  %v506_v43 = vld [vmem:[%s3510_s25 + $0x2b0] sm:$0xff] }
  0x2b   : > { %v508_v44 = vld [vmem:[%s3510_s25 + $0x2c0] sm:$0xff]  ;;  %505 = vst [vmem:[%s3515_s26 + $0x150] sm:$0xff] %v504_v42  ;;  %507 = vst [vmem:[%s3515_s26 + $0x158] sm:$0xff] %v506_v43  ;;  %v510_v45 = vld [vmem:[%s3510_s25 + $0x2d0] sm:$0xff] }
  0x2c   : > { %509 = vst [vmem:[%s3515_s26 + $0x160] sm:$0xff] %v508_v44  ;;  %v512_v46 = vld [vmem:[%s3510_s25 + $0x2e0] sm:$0xff]  ;;  %v514_v47 = vld [vmem:[%s3510_s25 + $0x2f0] sm:$0xff]  ;;  %511 = vst [vmem:[%s3515_s26 + $0x168] sm:$0xff] %v510_v45 }
  0x2d   : > { %513 = vst [vmem:[%s3515_s26 + $0x170] sm:$0xff] %v512_v46  ;;  %515 = vst [vmem:[%s3515_s26 + $0x178] sm:$0xff] %v514_v47  ;;  %v516_v48 = vld [vmem:[%s3510_s25 + $0x300] sm:$0xff]  ;;  %v518_v49 = vld [vmem:[%s3510_s25 + $0x310] sm:$0xff] }
  0x2e   : > { %v520_v50 = vld [vmem:[%s3510_s25 + $0x320] sm:$0xff]  ;;  %517 = vst [vmem:[%s3515_s26 + $0x180] sm:$0xff] %v516_v48  ;;  %519 = vst [vmem:[%s3515_s26 + $0x188] sm:$0xff] %v518_v49  ;;  %v522_v51 = vld [vmem:[%s3510_s25 + $0x330] sm:$0xff] }
  0x2f   : > { %521 = vst [vmem:[%s3515_s26 + $0x190] sm:$0xff] %v520_v50  ;;  %v524_v52 = vld [vmem:[%s3510_s25 + $0x340] sm:$0xff]  ;;  %v526_v53 = vld [vmem:[%s3510_s25 + $0x350] sm:$0xff]  ;;  %523 = vst [vmem:[%s3515_s26 + $0x198] sm:$0xff] %v522_v51 }
  0x30   : > { %525 = vst [vmem:[%s3515_s26 + $0x1a0] sm:$0xff] %v524_v52  ;;  %527 = vst [vmem:[%s3515_s26 + $0x1a8] sm:$0xff] %v526_v53  ;;  %v528_v54 = vld [vmem:[%s3510_s25 + $0x360] sm:$0xff]  ;;  %v530_v55 = vld [vmem:[%s3510_s25 + $0x370] sm:$0xff] }
  0x31   : > { %v532_v56 = vld [vmem:[%s3510_s25 + $0x380] sm:$0xff]  ;;  %529 = vst [vmem:[%s3515_s26 + $0x1b0] sm:$0xff] %v528_v54  ;;  %531 = vst [vmem:[%s3515_s26 + $0x1b8] sm:$0xff] %v530_v55  ;;  %v534_v57 = vld [vmem:[%s3510_s25 + $0x390] sm:$0xff] }
  0x32   : > { %533 = vst [vmem:[%s3515_s26 + $0x1c0] sm:$0xff] %v532_v56  ;;  %v536_v58 = vld [vmem:[%s3510_s25 + $0x3a0] sm:$0xff]  ;;  %v538_v59 = vld [vmem:[%s3510_s25 + $0x3b0] sm:$0xff]  ;;  %535 = vst [vmem:[%s3515_s26 + $0x1c8] sm:$0xff] %v534_v57 }
  0x33   : > { %537 = vst [vmem:[%s3515_s26 + $0x1d0] sm:$0xff] %v536_v58  ;;  %539 = vst [vmem:[%s3515_s26 + $0x1d8] sm:$0xff] %v538_v59  ;;  %v540_v60 = vld [vmem:[%s3510_s25 + $0x3c0] sm:$0xff]  ;;  %v542_v61 = vld [vmem:[%s3510_s25 + $0x3d0] sm:$0xff] }
  0x34   : > { %v544_v62 = vld [vmem:[%s3510_s25 + $0x3e0] sm:$0xff]  ;;  %541 = vst [vmem:[%s3515_s26 + $0x1e0] sm:$0xff] %v540_v60  ;;  %543 = vst [vmem:[%s3515_s26 + $0x1e8] sm:$0xff] %v542_v61  ;;  %v546_v63 = vld [vmem:[%s3510_s25 + $0x3f0] sm:$0xff] }
  0x35   : > { %545 = vst [vmem:[%s3515_s26 + $0x1f0] sm:$0xff] %v544_v62  ;;  %v548_v0 = vld [vmem:[%s3510_s25 + $0x400] sm:$0xff]  ;;  %v550_v1 = vld [vmem:[%s3510_s25 + $0x410] sm:$0xff]  ;;  %547 = vst [vmem:[%s3515_s26 + $0x1f8] sm:$0xff] %v546_v63 }
  0x36   : > { %549 = vst [vmem:[%s3515_s26 + $0x200] sm:$0xff] %v548_v0  ;;  %551 = vst [vmem:[%s3515_s26 + $0x208] sm:$0xff] %v550_v1  ;;  %v552_v2 = vld [vmem:[%s3510_s25 + $0x420] sm:$0xff]  ;;  %v554_v3 = vld [vmem:[%s3510_s25 + $0x430] sm:$0xff] }
  0x37   : > { %v556_v4 = vld [vmem:[%s3510_s25 + $0x440] sm:$0xff]  ;;  %553 = vst [vmem:[%s3515_s26 + $0x210] sm:$0xff] %v552_v2  ;;  %555 = vst [vmem:[%s3515_s26 + $0x218] sm:$0xff] %v554_v3  ;;  %v558_v5 = vld [vmem:[%s3510_s25 + $0x450] sm:$0xff] }
  0x38   : > { %557 = vst [vmem:[%s3515_s26 + $0x220] sm:$0xff] %v556_v4  ;;  %v560_v6 = vld [vmem:[%s3510_s25 + $0x460] sm:$0xff]  ;;  %v562_v7 = vld [vmem:[%s3510_s25 + $0x470] sm:$0xff]  ;;  %559 = vst [vmem:[%s3515_s26 + $0x228] sm:$0xff] %v558_v5 }
  0x39   : > { %561 = vst [vmem:[%s3515_s26 + $0x230] sm:$0xff] %v560_v6  ;;  %563 = vst [vmem:[%s3515_s26 + $0x238] sm:$0xff] %v562_v7  ;;  %v564_v8 = vld [vmem:[%s3510_s25 + $0x480] sm:$0xff]  ;;  %v566_v9 = vld [vmem:[%s3510_s25 + $0x490] sm:$0xff] }
  0x3a   : > { %v568_v10 = vld [vmem:[%s3510_s25 + $0x4a0] sm:$0xff]  ;;  %565 = vst [vmem:[%s3515_s26 + $0x240] sm:$0xff] %v564_v8  ;;  %567 = vst [vmem:[%s3515_s26 + $0x248] sm:$0xff] %v566_v9  ;;  %v570_v11 = vld [vmem:[%s3510_s25 + $0x4b0] sm:$0xff] }
  0x3b   : > { %569 = vst [vmem:[%s3515_s26 + $0x250] sm:$0xff] %v568_v10  ;;  %v572_v12 = vld [vmem:[%s3510_s25 + $0x4c0] sm:$0xff]  ;;  %v574_v13 = vld [vmem:[%s3510_s25 + $0x4d0] sm:$0xff]  ;;  %571 = vst [vmem:[%s3515_s26 + $0x258] sm:$0xff] %v570_v11 }
  0x3c   : > { %573 = vst [vmem:[%s3515_s26 + $0x260] sm:$0xff] %v572_v12  ;;  %575 = vst [vmem:[%s3515_s26 + $0x268] sm:$0xff] %v574_v13  ;;  %v576_v14 = vld [vmem:[%s3510_s25 + $0x4e0] sm:$0xff]  ;;  %v578_v15 = vld [vmem:[%s3510_s25 + $0x4f0] sm:$0xff] }
  0x3d   : > { %v580_v16 = vld [vmem:[%s3510_s25 + $0x500] sm:$0xff]  ;;  %577 = vst [vmem:[%s3515_s26 + $0x270] sm:$0xff] %v576_v14  ;;  %579 = vst [vmem:[%s3515_s26 + $0x278] sm:$0xff] %v578_v15  ;;  %v582_v17 = vld [vmem:[%s3510_s25 + $0x510] sm:$0xff] }
  0x3e   : > { %581 = vst [vmem:[%s3515_s26 + $0x280] sm:$0xff] %v580_v16  ;;  %v584_v18 = vld [vmem:[%s3510_s25 + $0x520] sm:$0xff]  ;;  %v586_v19 = vld [vmem:[%s3510_s25 + $0x530] sm:$0xff]  ;;  %583 = vst [vmem:[%s3515_s26 + $0x288] sm:$0xff] %v582_v17 }
  0x3f   : > { %585 = vst [vmem:[%s3515_s26 + $0x290] sm:$0xff] %v584_v18  ;;  %587 = vst [vmem:[%s3515_s26 + $0x298] sm:$0xff] %v586_v19  ;;  %v588_v20 = vld [vmem:[%s3510_s25 + $0x540] sm:$0xff]  ;;  %v590_v21 = vld [vmem:[%s3510_s25 + $0x550] sm:$0xff] }
  0x40   : > { %v592_v22 = vld [vmem:[%s3510_s25 + $0x560] sm:$0xff]  ;;  %589 = vst [vmem:[%s3515_s26 + $0x2a0] sm:$0xff] %v588_v20  ;;  %591 = vst [vmem:[%s3515_s26 + $0x2a8] sm:$0xff] %v590_v21  ;;  %v594_v23 = vld [vmem:[%s3510_s25 + $0x570] sm:$0xff] }
  0x41   : > { %593 = vst [vmem:[%s3515_s26 + $0x2b0] sm:$0xff] %v592_v22  ;;  %v596_v24 = vld [vmem:[%s3510_s25 + $0x580] sm:$0xff]  ;;  %v598_v25 = vld [vmem:[%s3510_s25 + $0x590] sm:$0xff]  ;;  %595 = vst [vmem:[%s3515_s26 + $0x2b8] sm:$0xff] %v594_v23 }
  0x42   : > { %597 = vst [vmem:[%s3515_s26 + $0x2c0] sm:$0xff] %v596_v24  ;;  %599 = vst [vmem:[%s3515_s26 + $0x2c8] sm:$0xff] %v598_v25  ;;  %v600_v26 = vld [vmem:[%s3510_s25 + $0x5a0] sm:$0xff]  ;;  %v602_v27 = vld [vmem:[%s3510_s25 + $0x5b0] sm:$0xff] }
  0x43   : > { %v604_v28 = vld [vmem:[%s3510_s25 + $0x5c0] sm:$0xff]  ;;  %601 = vst [vmem:[%s3515_s26 + $0x2d0] sm:$0xff] %v600_v26  ;;  %603 = vst [vmem:[%s3515_s26 + $0x2d8] sm:$0xff] %v602_v27  ;;  %v606_v29 = vld [vmem:[%s3510_s25 + $0x5d0] sm:$0xff] }
  0x44   : > { %605 = vst [vmem:[%s3515_s26 + $0x2e0] sm:$0xff] %v604_v28  ;;  %v608_v30 = vld [vmem:[%s3510_s25 + $0x5e0] sm:$0xff]  ;;  %v610_v31 = vld [vmem:[%s3510_s25 + $0x5f0] sm:$0xff]  ;;  %607 = vst [vmem:[%s3515_s26 + $0x2e8] sm:$0xff] %v606_v29 }
  0x45   : > { %609 = vst [vmem:[%s3515_s26 + $0x2f0] sm:$0xff] %v608_v30  ;;  %611 = vst [vmem:[%s3515_s26 + $0x2f8] sm:$0xff] %v610_v31  ;;  %v612_v32 = vld [vmem:[%s3510_s25 + $0x600] sm:$0xff]  ;;  %v614_v33 = vld [vmem:[%s3510_s25 + $0x610] sm:$0xff] }
  0x46   : > { %v616_v34 = vld [vmem:[%s3510_s25 + $0x620] sm:$0xff]  ;;  %613 = vst [vmem:[%s3515_s26 + $0x300] sm:$0xff] %v612_v32  ;;  %615 = vst [vmem:[%s3515_s26 + $0x308] sm:$0xff] %v614_v33  ;;  %v618_v35 = vld [vmem:[%s3510_s25 + $0x630] sm:$0xff] }
  0x47   : > { %617 = vst [vmem:[%s3515_s26 + $0x310] sm:$0xff] %v616_v34  ;;  %v620_v36 = vld [vmem:[%s3510_s25 + $0x640] sm:$0xff]  ;;  %v622_v37 = vld [vmem:[%s3510_s25 + $0x650] sm:$0xff]  ;;  %619 = vst [vmem:[%s3515_s26 + $0x318] sm:$0xff] %v618_v35 }
  0x48   : > { %621 = vst [vmem:[%s3515_s26 + $0x320] sm:$0xff] %v620_v36  ;;  %623 = vst [vmem:[%s3515_s26 + $0x328] sm:$0xff] %v622_v37  ;;  %v624_v38 = vld [vmem:[%s3510_s25 + $0x660] sm:$0xff]  ;;  %v626_v39 = vld [vmem:[%s3510_s25 + $0x670] sm:$0xff] }
  0x49   : > { %v628_v40 = vld [vmem:[%s3510_s25 + $0x680] sm:$0xff]  ;;  %625 = vst [vmem:[%s3515_s26 + $0x330] sm:$0xff] %v624_v38  ;;  %627 = vst [vmem:[%s3515_s26 + $0x338] sm:$0xff] %v626_v39  ;;  %v630_v41 = vld [vmem:[%s3510_s25 + $0x690] sm:$0xff] }
  0x4a   : > { %629 = vst [vmem:[%s3515_s26 + $0x340] sm:$0xff] %v628_v40  ;;  %v632_v42 = vld [vmem:[%s3510_s25 + $0x6a0] sm:$0xff]  ;;  %v634_v43 = vld [vmem:[%s3510_s25 + $0x6b0] sm:$0xff]  ;;  %631 = vst [vmem:[%s3515_s26 + $0x348] sm:$0xff] %v630_v41 }
  0x4b   : > { %633 = vst [vmem:[%s3515_s26 + $0x350] sm:$0xff] %v632_v42  ;;  %635 = vst [vmem:[%s3515_s26 + $0x358] sm:$0xff] %v634_v43  ;;  %v636_v44 = vld [vmem:[%s3510_s25 + $0x6c0] sm:$0xff]  ;;  %v638_v45 = vld [vmem:[%s3510_s25 + $0x6d0] sm:$0xff] }
  0x4c   : > { %v640_v46 = vld [vmem:[%s3510_s25 + $0x6e0] sm:$0xff]  ;;  %637 = vst [vmem:[%s3515_s26 + $0x360] sm:$0xff] %v636_v44  ;;  %639 = vst [vmem:[%s3515_s26 + $0x368] sm:$0xff] %v638_v45  ;;  %v642_v47 = vld [vmem:[%s3510_s25 + $0x6f0] sm:$0xff] }
  0x4d   : > { %641 = vst [vmem:[%s3515_s26 + $0x370] sm:$0xff] %v640_v46  ;;  %v644_v48 = vld [vmem:[%s3510_s25 + $0x700] sm:$0xff]  ;;  %v646_v49 = vld [vmem:[%s3510_s25 + $0x710] sm:$0xff]  ;;  %643 = vst [vmem:[%s3515_s26 + $0x378] sm:$0xff] %v642_v47 }
  0x4e   : > { %645 = vst [vmem:[%s3515_s26 + $0x380] sm:$0xff] %v644_v48  ;;  %647 = vst [vmem:[%s3515_s26 + $0x388] sm:$0xff] %v646_v49  ;;  %v648_v50 = vld [vmem:[%s3510_s25 + $0x720] sm:$0xff]  ;;  %v650_v51 = vld [vmem:[%s3510_s25 + $0x730] sm:$0xff] }
  0x4f   : > { %v652_v52 = vld [vmem:[%s3510_s25 + $0x740] sm:$0xff]  ;;  %649 = vst [vmem:[%s3515_s26 + $0x390] sm:$0xff] %v648_v50  ;;  %651 = vst [vmem:[%s3515_s26 + $0x398] sm:$0xff] %v650_v51  ;;  %v654_v53 = vld [vmem:[%s3510_s25 + $0x750] sm:$0xff] }
  0x50   : > { %653 = vst [vmem:[%s3515_s26 + $0x3a0] sm:$0xff] %v652_v52  ;;  %v656_v54 = vld [vmem:[%s3510_s25 + $0x760] sm:$0xff]  ;;  %v658_v55 = vld [vmem:[%s3510_s25 + $0x770] sm:$0xff]  ;;  %655 = vst [vmem:[%s3515_s26 + $0x3a8] sm:$0xff] %v654_v53 }
  0x51   : > { %657 = vst [vmem:[%s3515_s26 + $0x3b0] sm:$0xff] %v656_v54  ;;  %659 = vst [vmem:[%s3515_s26 + $0x3b8] sm:$0xff] %v658_v55  ;;  %v660_v56 = vld [vmem:[%s3510_s25 + $0x780] sm:$0xff]  ;;  %v662_v57 = vld [vmem:[%s3510_s25 + $0x790] sm:$0xff] }
  0x52   : > { %v664_v58 = vld [vmem:[%s3510_s25 + $0x7a0] sm:$0xff]  ;;  %661 = vst [vmem:[%s3515_s26 + $0x3c0] sm:$0xff] %v660_v56  ;;  %663 = vst [vmem:[%s3515_s26 + $0x3c8] sm:$0xff] %v662_v57  ;;  %v666_v59 = vld [vmem:[%s3510_s25 + $0x7b0] sm:$0xff] }
  0x53   : > { %665 = vst [vmem:[%s3515_s26 + $0x3d0] sm:$0xff] %v664_v58  ;;  %v668_v60 = vld [vmem:[%s3510_s25 + $0x7c0] sm:$0xff]  ;;  %v670_v61 = vld [vmem:[%s3510_s25 + $0x7d0] sm:$0xff]  ;;  %667 = vst [vmem:[%s3515_s26 + $0x3d8] sm:$0xff] %v666_v59 }
  0x54   : > { %669 = vst [vmem:[%s3515_s26 + $0x3e0] sm:$0xff] %v668_v60  ;;  %671 = vst [vmem:[%s3515_s26 + $0x3e8] sm:$0xff] %v670_v61  ;;  %v672_v62 = vld [vmem:[%s3510_s25 + $0x7e0] sm:$0xff]  ;;  %v674_v63 = vld [vmem:[%s3510_s25 + $0x7f0] sm:$0xff] }
  0x55   : > { %673 = vst [vmem:[%s3515_s26 + $0x3f0] sm:$0xff] %v672_v62  ;;  %675 = vst [vmem:[%s3515_s26 + $0x3f8] sm:$0xff] %v674_v63 }
  0x56 PF: > { %p2812_p8 = scmp.ge.s32.totalorder %s3445_s13, 1  ;;  %p680_p9 = scmp.lt.s32.totalorder %s3445_s13, 3 }
  0x58   : > { %p681_p10 = pnand %p2812_p8, %p680_p9 }
  0x59   : > { %s687_s27 = sand.u32 (!%p681_p10), 1, %s3429_s9   ;;  %v3776_v0 = vld [vmem:[%s4332_s0] sm:$0xff] (!%p681_p10)  ;;  %v3786_v2 = vld [vmem:[%s4332_s0 + $0x10] sm:$0xff] (!%p681_p10) }
  0x5a   : > { %684 = sbr.rel (%p681_p10) target bundleno = 550 (0x226), region = 62  ;;  %v3781_v1 = vld [vmem:[%s4332_s0 + $0x20] sm:$0xff] (!%p681_p10)  ;;  %s2813_s6 = sshll.u32 (!%p681_p10), %s687_s27, 10  ;;  %v3797_v5 = vld [vmem:[%s4332_s0 + $0x30] sm:$0xff] (!%p681_p10) }
  0x5b   : > { %v2814_v3 = vcombine.low (!%p681_p10), %v3776_v0, %v3781_v1  ;;  %v2815_v4 = vcombine.high (!%p681_p10), %v3776_v0, %v3781_v1  ;;  %v2818_v6 = vcombine.low (!%p681_p10), %v3786_v2, %v3797_v5  ;;  %v2819_v7 = vcombine.high (!%p681_p10), %v3786_v2, %v3797_v5  ;;  %s3803_s15 = scalar_lea.vmem (!%p681_p10), [#allocation2], %s2813_s6  ;;  %v743_v0 = vld [vmem:[%s4332_s0 + $0xa0] sm:$0xff] (!%p681_p10)  ;;  %v741_v1 = vld [vmem:[%s4332_s0 + $0x90] sm:$0xff] (!%p681_p10)  ;;  %s3166_s30 = smul.u32 (!%p681_p10), 336, %s687_s27 }
  0x5c   : > { %v3207_v8 = vld [vmem:[%s3803_s15 + $0x4] ss:$8 sps:$4 sm:$0xff] (!%p681_p10)   ;;  %v3211_v10 = vld [vmem:[%s3803_s15] ss:$8 sps:$4 sm:$0xff] (!%p681_p10)   ;;  %v3213_v12 = vld [vmem:[%s3803_s15 + $0x14] ss:$8 sps:$4 sm:$0xff] (!%p681_p10)  }
  0x5d   : > { %2035 = vmatprep.mubr.bf16.mxu1 (!%p681_p10), %v2815_v4  ;;  %v3209_v9 = vld [vmem:[%s3803_s15 + $0x204] ss:$8 sps:$4 sm:$0xff] (!%p681_p10)   ;;  %2317 = vmatprep.mubr.bf16.mxu0 (!%p681_p10), %v2819_v7  ;;  %v3212_v11 = vld [vmem:[%s3803_s15 + $0x200] ss:$8 sps:$4 sm:$0xff] (!%p681_p10)   ;;  %v3215_v13 = vld [vmem:[%s3803_s15 + $0x214] ss:$8 sps:$4 sm:$0xff] (!%p681_p10)  }
  0x5e   : > { %2003 = vmatprep.subr.bf16.mxu1 (!%p681_p10), %v3207_v8  ;;  %2285 = vmatprep.subr.bf16.mxu0 (!%p681_p10), %v3209_v9  ;;  %v3217_v14 = vld [vmem:[%s3803_s15 + $0x10] ss:$8 sps:$4 sm:$0xff] (!%p681_p10)   ;;  %v3219_v16 = vld [vmem:[%s3803_s15 + $0x24] ss:$8 sps:$4 sm:$0xff] (!%p681_p10)   ;;  %v3223_v18 = vld [vmem:[%s3803_s15 + $0x20] ss:$8 sps:$4 sm:$0xff] (!%p681_p10)  }
  0x5f   : > { %2004 = vmatpush1.bf16.msra.mxu1 (!%p681_p10), %v3211_v10  ;;  %2286 = vmatpush1.bf16.msra.mxu0 (!%p681_p10), %v3212_v11  ;;  %v3218_v15 = vld [vmem:[%s3803_s15 + $0x210] ss:$8 sps:$4 sm:$0xff] (!%p681_p10)   ;;  %v3221_v17 = vld [vmem:[%s3803_s15 + $0x224] ss:$8 sps:$4 sm:$0xff] (!%p681_p10)   ;;  %v3224_v19 = vld [vmem:[%s3803_s15 + $0x220] ss:$8 sps:$4 sm:$0xff] (!%p681_p10)  }
  0x60   : > { %2005 = vmatprep.subr.bf16.mxu1 (!%p681_p10), %v3213_v12  ;;  %2287 = vmatprep.subr.bf16.mxu0 (!%p681_p10), %v3215_v13  ;;  %v3225_v20 = vld [vmem:[%s3803_s15 + $0x34] ss:$8 sps:$4 sm:$0xff] (!%p681_p10)   ;;  %v3229_v22 = vld [vmem:[%s3803_s15 + $0x30] ss:$8 sps:$4 sm:$0xff] (!%p681_p10)   ;;  %v3231_v24 = vld [vmem:[%s3803_s15 + $0x44] ss:$8 sps:$4 sm:$0xff] (!%p681_p10)  }
  0x61   : > { %v3227_v21 = vld [vmem:[%s3803_s15 + $0x234] ss:$8 sps:$4 sm:$0xff]   ;;  %v3230_v23 = vld [vmem:[%s3803_s15 + $0x230] ss:$8 sps:$4 sm:$0xff]   ;;  %v3233_v25 = vld [vmem:[%s3803_s15 + $0x244] ss:$8 sps:$4 sm:$0xff]  }
  0x62   : > { %v3235_v26 = vld [vmem:[%s3803_s15 + $0x40] ss:$8 sps:$4 sm:$0xff]   ;;  %v3237_v28 = vld [vmem:[%s3803_s15 + $0x54] ss:$8 sps:$4 sm:$0xff]   ;;  %v3241_v30 = vld [vmem:[%s3803_s15 + $0x50] ss:$8 sps:$4 sm:$0xff]  }
  0x63   : > { %2006 = vmatpush1.bf16.msra.mxu1 %v3217_v14  ;;  %2288 = vmatpush1.bf16.msra.mxu0 %v3218_v15  ;;  %v3236_v27 = vld [vmem:[%s3803_s15 + $0x240] ss:$8 sps:$4 sm:$0xff]   ;;  %v3239_v29 = vld [vmem:[%s3803_s15 + $0x254] ss:$8 sps:$4 sm:$0xff]   ;;  %v3242_v31 = vld [vmem:[%s3803_s15 + $0x250] ss:$8 sps:$4 sm:$0xff]  }
  0x64   : > { %2007 = vmatprep.subr.bf16.mxu1 %v3219_v16  ;;  %2289 = vmatprep.subr.bf16.mxu0 %v3221_v17  ;;  %v3243_v32 = vld [vmem:[%s3803_s15 + $0x64] ss:$8 sps:$4 sm:$0xff]   ;;  %v3247_v34 = vld [vmem:[%s3803_s15 + $0x60] ss:$8 sps:$4 sm:$0xff]   ;;  %v3249_v36 = vld [vmem:[%s3803_s15 + $0x74] ss:$8 sps:$4 sm:$0xff]  }
  0x65   : > { %v3245_v33 = vld [vmem:[%s3803_s15 + $0x264] ss:$8 sps:$4 sm:$0xff]   ;;  %v3248_v35 = vld [vmem:[%s3803_s15 + $0x260] ss:$8 sps:$4 sm:$0xff]   ;;  %v3251_v37 = vld [vmem:[%s3803_s15 + $0x274] ss:$8 sps:$4 sm:$0xff]  }
  0x66   : > { %v3253_v38 = vld [vmem:[%s3803_s15 + $0x70] ss:$8 sps:$4 sm:$0xff]   ;;  %v3255_v40 = vld [vmem:[%s3803_s15 + $0x84] ss:$8 sps:$4 sm:$0xff]   ;;  %v3259_v42 = vld [vmem:[%s3803_s15 + $0x80] ss:$8 sps:$4 sm:$0xff]  }
  0x67   : > { %2008 = vmatpush1.bf16.msra.mxu1 %v3223_v18  ;;  %2290 = vmatpush1.bf16.msra.mxu0 %v3224_v19  ;;  %v3254_v39 = vld [vmem:[%s3803_s15 + $0x270] ss:$8 sps:$4 sm:$0xff]   ;;  %v3257_v41 = vld [vmem:[%s3803_s15 + $0x284] ss:$8 sps:$4 sm:$0xff]   ;;  %v3260_v43 = vld [vmem:[%s3803_s15 + $0x280] ss:$8 sps:$4 sm:$0xff]  }
  0x68   : > { %2009 = vmatprep.subr.bf16.mxu1 %v3225_v20  ;;  %2291 = vmatprep.subr.bf16.mxu0 %v3227_v21  ;;  %v3261_v44 = vld [vmem:[%s3803_s15 + $0x94] ss:$8 sps:$4 sm:$0xff]   ;;  %v3265_v46 = vld [vmem:[%s3803_s15 + $0x90] ss:$8 sps:$4 sm:$0xff]   ;;  %v3267_v48 = vld [vmem:[%s3803_s15 + $0xa4] ss:$8 sps:$4 sm:$0xff]  }
  0x69   : > { %v3263_v45 = vld [vmem:[%s3803_s15 + $0x294] ss:$8 sps:$4 sm:$0xff]   ;;  %v3266_v47 = vld [vmem:[%s3803_s15 + $0x290] ss:$8 sps:$4 sm:$0xff]   ;;  %v3269_v49 = vld [vmem:[%s3803_s15 + $0x2a4] ss:$8 sps:$4 sm:$0xff]  }
  0x6a   : > { %v3271_v50 = vld [vmem:[%s3803_s15 + $0xa0] ss:$8 sps:$4 sm:$0xff]   ;;  %v3273_v52 = vld [vmem:[%s3803_s15 + $0xb4] ss:$8 sps:$4 sm:$0xff]   ;;  %v3277_v54 = vld [vmem:[%s3803_s15 + $0xb0] ss:$8 sps:$4 sm:$0xff]  }
  0x6b   : > { %2010 = vmatpush1.bf16.msra.mxu1 %v3229_v22  ;;  %2292 = vmatpush1.bf16.msra.mxu0 %v3230_v23  ;;  %v3272_v51 = vld [vmem:[%s3803_s15 + $0x2a0] ss:$8 sps:$4 sm:$0xff]   ;;  %v3275_v53 = vld [vmem:[%s3803_s15 + $0x2b4] ss:$8 sps:$4 sm:$0xff]   ;;  %v3278_v55 = vld [vmem:[%s3803_s15 + $0x2b0] ss:$8 sps:$4 sm:$0xff]  }
  0x6c   : > { %2011 = vmatprep.subr.bf16.mxu1 %v3231_v24  ;;  %2293 = vmatprep.subr.bf16.mxu0 %v3233_v25  ;;  %v3279_v56 = vld [vmem:[%s3803_s15 + $0xc4] ss:$8 sps:$4 sm:$0xff]   ;;  %v3283_v58 = vld [vmem:[%s3803_s15 + $0xc0] ss:$8 sps:$4 sm:$0xff]   ;;  %v3285_v60 = vld [vmem:[%s3803_s15 + $0xd4] ss:$8 sps:$4 sm:$0xff]  }
  0x6d   : > { %v3281_v57 = vld [vmem:[%s3803_s15 + $0x2c4] ss:$8 sps:$4 sm:$0xff]   ;;  %v3284_v59 = vld [vmem:[%s3803_s15 + $0x2c0] ss:$8 sps:$4 sm:$0xff]   ;;  %v3287_v61 = vld [vmem:[%s3803_s15 + $0x2d4] ss:$8 sps:$4 sm:$0xff]  }
  0x6e   : > { %v3289_v62 = vld [vmem:[%s3803_s15 + $0xd0] ss:$8 sps:$4 sm:$0xff]   ;;  %v3291_v4 = vld [vmem:[%s3803_s15 + $0xe4] ss:$8 sps:$4 sm:$0xff]   ;;  %v3295_v8 = vld [vmem:[%s3803_s15 + $0xe0] ss:$8 sps:$4 sm:$0xff]  }
  0x6f   : > { %2012 = vmatpush1.bf16.msra.mxu1 %v3235_v26  ;;  %2294 = vmatpush1.bf16.msra.mxu0 %v3236_v27  ;;  %v3290_v63 = vld [vmem:[%s3803_s15 + $0x2d0] ss:$8 sps:$4 sm:$0xff]   ;;  %v3293_v7 = vld [vmem:[%s3803_s15 + $0x2e4] ss:$8 sps:$4 sm:$0xff]   ;;  %v3296_v9 = vld [vmem:[%s3803_s15 + $0x2e0] ss:$8 sps:$4 sm:$0xff]  }
  0x70   : > { %2013 = vmatprep.subr.bf16.mxu1 %v3237_v28  ;;  %2295 = vmatprep.subr.bf16.mxu0 %v3239_v29  ;;  %v3297_v10 = vld [vmem:[%s3803_s15 + $0xf4] ss:$8 sps:$4 sm:$0xff]   ;;  %v3301_v12 = vld [vmem:[%s3803_s15 + $0xf0] ss:$8 sps:$4 sm:$0xff]   ;;  %v3305_v14 = vld [vmem:[%s3803_s15 + $0x104] ss:$8 sps:$4 sm:$0xff]  }
  0x71   : > { %v3299_v11 = vld [vmem:[%s3803_s15 + $0x2f4] ss:$8 sps:$4 sm:$0xff]   ;;  %v3302_v13 = vld [vmem:[%s3803_s15 + $0x2f0] ss:$8 sps:$4 sm:$0xff]   ;;  %v3308_v15 = vld [vmem:[%s3803_s15 + $0x304] ss:$8 sps:$4 sm:$0xff]  }
  0x72   : > { %v731_v16 = vld [vmem:[%s4332_s0 + $0x40] sm:$0xff]  ;;  %v733_v18 = vld [vmem:[%s4332_s0 + $0x50] sm:$0xff]  ;;  %s4181_s3 = scalar_lea.vmem [#allocation3], %s3166_s30  ;;  %s3035_s9 = sshll.u32 (%p3497_p6), %s3437_s11, 4 }
  0x73   : > { %2014 = vmatpush1.bf16.msra.mxu1 %v3241_v30  ;;  %2296 = vmatpush1.bf16.msra.mxu0 %v3242_v31  ;;  %v735_v17 = vld [vmem:[%s4332_s0 + $0x60] sm:$0xff]  ;;  %v737_v19 = vld [vmem:[%s4332_s0 + $0x70] sm:$0xff]  ;;  %s4234_s5 = scalar_lea.vmem (%p3497_p6), %s4334_s2, %s3035_s9 }
  0x74   : > { %2015 = vmatprep.subr.bf16.mxu1 %v3243_v32  ;;  %2297 = vmatprep.subr.bf16.mxu0 %v3245_v33  ;;  %v3303_v20 = vld [vmem:[%s3803_s15 + $0x100] ss:$8 sps:$4 sm:$0xff]   ;;  %v3311_v22 = vld [vmem:[%s3803_s15 + $0x114] ss:$8 sps:$4 sm:$0xff]   ;;  %v3309_v24 = vld [vmem:[%s3803_s15 + $0x110] ss:$8 sps:$4 sm:$0xff]   ;;  %v2823_v25 = vcombine.high %v731_v16, %v735_v17  ;;  %v2827_v26 = vcombine.high %v733_v18, %v737_v19  ;;  %v2826_v5 = vcombine.low %v733_v18, %v737_v19 }
  0x75   : > { %v3306_v21 = vld [vmem:[%s3803_s15 + $0x300] ss:$8 sps:$4 sm:$0xff]   ;;  %v3314_v23 = vld [vmem:[%s3803_s15 + $0x314] ss:$8 sps:$4 sm:$0xff]   ;;  %v3312_v27 = vld [vmem:[%s3803_s15 + $0x310] ss:$8 sps:$4 sm:$0xff]  }
  0x76   : > { %v3317_v28 = vld [vmem:[%s3803_s15 + $0x124] ss:$8 sps:$4 sm:$0xff]   ;;  %v745_v2 = vld [vmem:[%s4332_s0 + $0xb0] sm:$0xff]  ;;  %v3318_v31 = vld [vmem:[%s3803_s15 + $0x320] ss:$8 sps:$4 sm:$0xff]  }
  0x77   : > { %2016 = vmatpush1.bf16.msra.mxu1 %v3247_v34  ;;  %2298 = vmatpush1.bf16.msra.mxu0 %v3248_v35  ;;  %v3320_v29 = vld [vmem:[%s3803_s15 + $0x324] ss:$8 sps:$4 sm:$0xff]   ;;  %v2835_v33 = vcombine.high %v741_v1, %v745_v2  ;;  %v3323_v34 = vld [vmem:[%s3803_s15 + $0x134] ss:$8 sps:$4 sm:$0xff]  }
  0x78   : > { %2017 = vmatprep.subr.bf16.mxu1 %v3249_v36  ;;  %2299 = vmatprep.subr.bf16.mxu0 %v3251_v37  ;;  %v739_v30 = vld [vmem:[%s4332_s0 + $0x80] sm:$0xff]  ;;  %v3326_v35 = vld [vmem:[%s3803_s15 + $0x334] ss:$8 sps:$4 sm:$0xff]   ;;  %v3321_v36 = vld [vmem:[%s3803_s15 + $0x130] ss:$8 sps:$4 sm:$0xff]  }
  0x79   : > { %v2831_v32 = vcombine.high %v739_v30, %v743_v0  ;;  %v3324_v37 = vld [vmem:[%s3803_s15 + $0x330] ss:$8 sps:$4 sm:$0xff]  }
  0x7b   : > { %2018 = vmatpush1.bf16.msra.mxu1 %v3253_v38  ;;  %2300 = vmatpush1.bf16.msra.mxu0 %v3254_v39  ;;  %v3329_v38 = vld [vmem:[%s3803_s15 + $0x144] ss:$8 sps:$4 sm:$0xff]  }
  0x7c   : > { %2019 = vmatprep.subr.bf16.mxu1 %v3255_v40  ;;  %2301 = vmatprep.subr.bf16.mxu0 %v3257_v41  ;;  %v3332_v39 = vld [vmem:[%s3803_s15 + $0x344] ss:$8 sps:$4 sm:$0xff]  }
  0x7d   : > { %v747_v40 = vld [vmem:[%s4332_s0 + $0xc0] sm:$0xff] }
  0x7e   : > { %v751_v41 = vld [vmem:[%s4332_s0 + $0xe0] sm:$0xff] }
  0x7f   : > { %2020 = vmatpush1.bf16.msra.mxu1 %v3259_v42  ;;  %2302 = vmatpush1.bf16.msra.mxu0 %v3260_v43  ;;  %v749_v42 = vld [vmem:[%s4332_s0 + $0xd0] sm:$0xff] }
  0x80   : > { %2021 = vmatprep.subr.bf16.mxu1 %v3261_v44  ;;  %2303 = vmatprep.subr.bf16.mxu0 %v3263_v45  ;;  %v753_v43 = vld [vmem:[%s4332_s0 + $0xf0] sm:$0xff]  ;;  %v2830_v44 = vcombine.low %v739_v30, %v743_v0  ;;  %v2834_v45 = vcombine.low %v741_v1, %v745_v2  ;;  %v3365_v1 = vld [vmem:[%s3803_s15 + $0x1a4] ss:$8 sps:$4 sm:$0xff]  }
  0x81   : > { %v3357_v30 = vld [vmem:[%s3803_s15 + $0x190] ss:$8 sps:$4 sm:$0xff]   ;;  %v3368_v2 = vld [vmem:[%s3803_s15 + $0x3a4] ss:$8 sps:$4 sm:$0xff]  }
  0x82   : > { %v3360_v0 = vld [vmem:[%s3803_s15 + $0x390] ss:$8 sps:$4 sm:$0xff]  }
  0x83   : > { %2022 = vmatpush1.bf16.msra.mxu1 %v3265_v46  ;;  %2304 = vmatpush1.bf16.msra.mxu0 %v3266_v47  ;;  %v3327_v46 = vld [vmem:[%s3803_s15 + $0x140] ss:$8 sps:$4 sm:$0xff]   ;;  %v2839_v47 = vcombine.high %v747_v40, %v751_v41 }
  0x84   : > { %2023 = vmatprep.subr.bf16.mxu1 %v3267_v48  ;;  %2305 = vmatprep.subr.bf16.mxu0 %v3269_v49  ;;  %v3330_v48 = vld [vmem:[%s3803_s15 + $0x340] ss:$8 sps:$4 sm:$0xff]   ;;  %v2843_v49 = vcombine.high %v749_v42, %v753_v43 }
  0x87   : > { %2024 = vmatpush1.bf16.msra.mxu1 %v3271_v50  ;;  %2306 = vmatpush1.bf16.msra.mxu0 %v3272_v51  ;;  %v3333_v50 = vld [vmem:[%s3803_s15 + $0x150] ss:$8 sps:$4 sm:$0xff]   ;;  %v3335_v51 = vld [vmem:[%s3803_s15 + $0x154] ss:$8 sps:$4 sm:$0xff]  }
  0x88   : > { %2025 = vmatprep.subr.bf16.mxu1 %v3273_v52  ;;  %2307 = vmatprep.subr.bf16.mxu0 %v3275_v53  ;;  %v3338_v52 = vld [vmem:[%s3803_s15 + $0x354] ss:$8 sps:$4 sm:$0xff]   ;;  %v3336_v53 = vld [vmem:[%s3803_s15 + $0x350] ss:$8 sps:$4 sm:$0xff]  }
  0x8b   : > { %2026 = vmatpush1.bf16.msra.mxu1 %v3277_v54  ;;  %2308 = vmatpush1.bf16.msra.mxu0 %v3278_v55  ;;  %v755_v54 = vld [vmem:[%s4332_s0 + $0x100] sm:$0xff] }
  0x8c   : > { %2027 = vmatprep.subr.bf16.mxu1 %v3279_v56  ;;  %2309 = vmatprep.subr.bf16.mxu0 %v3281_v57  ;;  %v759_v55 = vld [vmem:[%s4332_s0 + $0x120] sm:$0xff]  ;;  %v757_v56 = vld [vmem:[%s4332_s0 + $0x110] sm:$0xff] }
  0x8d   : > { %v761_v57 = vld [vmem:[%s4332_s0 + $0x130] sm:$0xff]  ;;  %v2846_v18 = vcombine.low %v755_v54, %v759_v55 }
  0x8e   : > { %v2850_v19 = vcombine.low %v757_v56, %v761_v57 }
  0x8f   : > { %2028 = vmatpush1.bf16.msra.mxu1 %v3283_v58  ;;  %2310 = vmatpush1.bf16.msra.mxu0 %v3284_v59  ;;  %v3341_v58 = vld [vmem:[%s3803_s15 + $0x164] ss:$8 sps:$4 sm:$0xff]  }
  0x90   : > { %2029 = vmatprep.subr.bf16.mxu1 %v3285_v60  ;;  %2311 = vmatprep.subr.bf16.mxu0 %v3287_v61  ;;  %v3344_v59 = vld [vmem:[%s3803_s15 + $0x364] ss:$8 sps:$4 sm:$0xff]   ;;  %v2838_v60 = vcombine.low %v747_v40, %v751_v41  ;;  %v2842_v61 = vcombine.low %v749_v42, %v753_v43  ;;  %v3369_v40 = vld [vmem:[%s3803_s15 + $0x1b0] ss:$8 sps:$4 sm:$0xff]  }
  0x91   : > { %v3372_v41 = vld [vmem:[%s3803_s15 + $0x3b0] ss:$8 sps:$4 sm:$0xff]   ;;  %v3377_v42 = vld [vmem:[%s3803_s15 + $0x1c4] ss:$8 sps:$4 sm:$0xff]  }
  0x92   : > { %v3380_v43 = vld [vmem:[%s3803_s15 + $0x3c4] ss:$8 sps:$4 sm:$0xff]  }
  0x93   : > { %2030 = vmatpush1.bf16.msra.mxu1 %v3289_v62  ;;  %2312 = vmatpush1.bf16.msra.mxu0 %v3290_v63  ;;  %v2847_v62 = vcombine.high %v755_v54, %v759_v55  ;;  %v2851_v63 = vcombine.high %v757_v56, %v761_v57  ;;  %v789_v54 = vld [vmem:[%s4332_s0 + $0x210] sm:$0xff] }
  0x94   : > { %2031 = vmatprep.subr.bf16.mxu1 %v3291_v4  ;;  %2313 = vmatprep.subr.bf16.mxu0 %v3293_v7  ;;  %v3339_v4 = vld [vmem:[%s3803_s15 + $0x160] ss:$8 sps:$4 sm:$0xff]   ;;  %v793_v55 = vld [vmem:[%s4332_s0 + $0x230] sm:$0xff] }
  0x95   : > { %v3342_v7 = vld [vmem:[%s3803_s15 + $0x360] ss:$8 sps:$4 sm:$0xff]   ;;  %v3381_v56 = vld [vmem:[%s3803_s15 + $0x1d0] ss:$8 sps:$4 sm:$0xff]  }
  0x96   : > { %v3384_v57 = vld [vmem:[%s3803_s15 + $0x3d0] ss:$8 sps:$4 sm:$0xff]  }
  0x97   : > { %2032 = vmatpush1.bf16.msra.mxu1 %v3295_v8  ;;  %2314 = vmatpush1.bf16.msra.mxu0 %v3296_v9  ;;  %v3347_v8 = vld [vmem:[%s3803_s15 + $0x174] ss:$8 sps:$4 sm:$0xff]  }
  0x98   : > { %2033 = vmatprep.subr.bf16.mxu1 %v3297_v10  ;;  %2315 = vmatprep.subr.bf16.mxu0 %v3299_v11  ;;  %v3350_v9 = vld [vmem:[%s3803_s15 + $0x374] ss:$8 sps:$4 sm:$0xff]   ;;  %v763_v10 = vld [vmem:[%s4332_s0 + $0x140] sm:$0xff] }
  0x99   : > { %v767_v11 = vld [vmem:[%s4332_s0 + $0x160] sm:$0xff] }
  0x9b   : > { %2034 = vmatpush1.bf16.msra.mxu1 %v3301_v12  ;;  %2316 = vmatpush1.bf16.msra.mxu0 %v3302_v13  ;;  %v3345_v12 = vld [vmem:[%s3803_s15 + $0x170] ss:$8 sps:$4 sm:$0xff]  }
  0x9c   : > { %2144 = vmatprep.subr.bf16.mxu1 %v3305_v14  ;;  %2426 = vmatprep.subr.bf16.mxu0 %v3308_v15  ;;  %v765_v13 = vld [vmem:[%s4332_s0 + $0x150] sm:$0xff] }
  0x9d   : > { %v769_v14 = vld [vmem:[%s4332_s0 + $0x170] sm:$0xff] }
  0x9e   : > { %2036 = vmatmul.mubr.bf16.vlgmr.msra.gmra.mrb[0].mxu1 %v2814_v3  ;;  %2318 = vmatmul.mubr.bf16.vlgmr.msra.gmra.mrb[0].mxu0 %v2818_v6  ;;  %v2822_v3 = vcombine.low %v731_v16, %v735_v17  ;;  %v3315_v6 = vld [vmem:[%s3803_s15 + $0x120] ss:$8 sps:$4 sm:$0xff]   ;;  %v3348_v15 = vld [vmem:[%s3803_s15 + $0x370] ss:$8 sps:$4 sm:$0xff]   ;;  %v3353_v16 = vld [vmem:[%s3803_s15 + $0x184] ss:$8 sps:$4 sm:$0xff]  }
  0x9f   : > { %2145 = vmatpush1.bf16.msra.mxu1 %v3303_v20  ;;  %2427 = vmatpush1.bf16.msra.mxu0 %v3306_v21  ;;  %v3356_v17 = vld [vmem:[%s3803_s15 + $0x384] ss:$8 sps:$4 sm:$0xff]   ;;  %v2855_v20 = vcombine.high %v763_v10, %v767_v11  ;;  %v2859_v21 = vcombine.high %v765_v13, %v769_v14 }
  0xa0   : > { %2146 = vmatprep.subr.bf16.mxu1 %v3311_v22  ;;  %2428 = vmatprep.subr.bf16.mxu0 %v3314_v23  ;;  %v3351_v22 = vld [vmem:[%s3803_s15 + $0x180] ss:$8 sps:$4 sm:$0xff]  }
  0xa1   : > { %2045 = vmatprep.mubr.bf16.mxu1 %v2823_v25  ;;  %2327 = vmatprep.mubr.bf16.mxu0 %v2827_v26  ;;  %v3354_v23 = vld [vmem:[%s3803_s15 + $0x380] ss:$8 sps:$4 sm:$0xff]   ;;  %v3362_v25 = vld [vmem:[%s3803_s15 + $0x394] ss:$8 sps:$4 sm:$0xff]  }
  0xa2   : > { %v771_v26 = vld [vmem:[%s4332_s0 + $0x180] sm:$0xff] }
  0xa3   : > { %2147 = vmatpush1.bf16.msra.mxu1 %v3309_v24  ;;  %2429 = vmatpush1.bf16.msra.mxu0 %v3312_v27  ;;  %v3359_v24 = vld [vmem:[%s3803_s15 + $0x194] ss:$8 sps:$4 sm:$0xff]   ;;  %v775_v27 = vld [vmem:[%s4332_s0 + $0x1a0] sm:$0xff] }
  0xa4   : > { %2148 = vmatprep.subr.bf16.mxu1 %v3317_v28  ;;  %2430 = vmatprep.subr.bf16.mxu0 %v3320_v29  ;;  %v773_v28 = vld [vmem:[%s4332_s0 + $0x190] sm:$0xff] }
  0xa5   : > { %v777_v29 = vld [vmem:[%s4332_s0 + $0x1b0] sm:$0xff] }
  0xa6   : > { %2046 = vmatmul.mubr.bf16.gmra.mrb[4].mxu1 %v2822_v3  ;;  %2328 = vmatmul.mubr.bf16.gmra.mrb[4].mxu0 %v2826_v5  ;;  %v2854_v3 = vcombine.low %v763_v10, %v767_v11  ;;  %v2858_v5 = vcombine.low %v765_v13, %v769_v14  ;;  %v795_v10 = vld [vmem:[%s4332_s0 + $0x240] sm:$0xff]  ;;  %v801_v13 = vld [vmem:[%s4332_s0 + $0x270] sm:$0xff] }
  0xa7   : > { %2149 = vmatpush1.bf16.msra.mxu1 %v3315_v6  ;;  %2431 = vmatpush1.bf16.msra.mxu0 %v3318_v31  ;;  %v2863_v6 = vcombine.high %v771_v26, %v775_v27  ;;  %v2867_v31 = vcombine.high %v773_v28, %v777_v29  ;;  %v799_v11 = vld [vmem:[%s4332_s0 + $0x260] sm:$0xff]  ;;  %v3397_v14 = vld [vmem:[%s3803_s15 + $0x1f0] ss:$8 sps:$4 sm:$0xff]  }
  0xa8   : > { %2055 = vmatprep.mubr.bf16.mxu1 %v2831_v32  ;;  %2337 = vmatprep.mubr.bf16.mxu0 %v2835_v33  ;;  %v3363_v32 = vld [vmem:[%s3803_s15 + $0x1a0] ss:$8 sps:$4 sm:$0xff]  }
  0xa9   : > { %2150 = vmatprep.subr.bf16.mxu1 %v3323_v34  ;;  %2432 = vmatprep.subr.bf16.mxu0 %v3326_v35  ;;  %v3366_v33 = vld [vmem:[%s3803_s15 + $0x3a0] ss:$8 sps:$4 sm:$0xff]   ;;  %v3371_v34 = vld [vmem:[%s3803_s15 + $0x1b4] ss:$8 sps:$4 sm:$0xff]  }
  0xaa   : > { %v3374_v35 = vld [vmem:[%s3803_s15 + $0x3b4] ss:$8 sps:$4 sm:$0xff]  }
  0xab   : > { %2151 = vmatpush1.bf16.msra.mxu1 %v3321_v36  ;;  %2433 = vmatpush1.bf16.msra.mxu0 %v3324_v37  ;;  %v779_v36 = vld [vmem:[%s4332_s0 + $0x1c0] sm:$0xff] }
  0xac   : > { %2152 = vmatprep.subr.bf16.mxu1 %v3329_v38  ;;  %2434 = vmatprep.subr.bf16.mxu0 %v3332_v39  ;;  %v783_v37 = vld [vmem:[%s4332_s0 + $0x1e0] sm:$0xff]  ;;  %v781_v38 = vld [vmem:[%s4332_s0 + $0x1d0] sm:$0xff] }
  0xad   : > { %v785_v39 = vld [vmem:[%s4332_s0 + $0x1f0] sm:$0xff] }
  0xae   : > { %2056 = vmatmul.mubr.bf16.gmra.mrb[8].mxu1 %v2830_v44  ;;  %2338 = vmatmul.mubr.bf16.gmra.mrb[8].mxu0 %v2834_v45  ;;  %v2862_v44 = vcombine.low %v771_v26, %v775_v27  ;;  %v2866_v45 = vcombine.low %v773_v28, %v777_v29  ;;  %v724_v26 = vld [vmem:[%s4332_s0 + $0x8] sm:$0xff]  ;;  %v726_v28 = vld [vmem:[%s4332_s0 + $0x18] sm:$0xff] }
  0xaf   : > { %2065 = vmatprep.mubr.bf16.mxu1 %v2839_v47  ;;  %2153 = vmatpush1.bf16.msra.mxu1 %v3327_v46  ;;  %v2871_v46 = vcombine.high %v779_v36, %v783_v37  ;;  %v2875_v47 = vcombine.high %v781_v38, %v785_v39  ;;  %v728_v27 = vld [vmem:[%s4332_s0 + $0x28] sm:$0xff]  ;;  %v730_v29 = vld [vmem:[%s4332_s0 + $0x38] sm:$0xff] }
  0xb0   : > { %2347 = vmatprep.mubr.bf16.mxu0 %v2843_v49  ;;  %2435 = vmatpush1.bf16.msra.mxu0 %v3330_v48  ;;  %v3375_v48 = vld [vmem:[%s3803_s15 + $0x1c0] ss:$8 sps:$4 sm:$0xff]  }
  0xb1   : > { %2154 = vmatprep.subr.bf16.mxu1 %v3335_v51  ;;  %2436 = vmatprep.subr.bf16.mxu0 %v3338_v52  ;;  %v3378_v49 = vld [vmem:[%s3803_s15 + $0x3c0] ss:$8 sps:$4 sm:$0xff]   ;;  %v3386_v51 = vld [vmem:[%s3803_s15 + $0x3d4] ss:$8 sps:$4 sm:$0xff]  }
  0xb2   : > { %v787_v52 = vld [vmem:[%s4332_s0 + $0x200] sm:$0xff] }
  0xb3   : > { %2155 = vmatpush1.bf16.msra.mxu1 %v3333_v50  ;;  %v3383_v50 = vld [vmem:[%s3803_s15 + $0x1d4] ss:$8 sps:$4 sm:$0xff]  }
  0xb4   : > { %2437 = vmatpush1.bf16.msra.mxu0 %v3336_v53  ;;  %2156 = vmatprep.subr.bf16.mxu1 %v3341_v58  ;;  %v791_v53 = vld [vmem:[%s4332_s0 + $0x220] sm:$0xff] }
  0xb5   : > { %2438 = vmatprep.subr.bf16.mxu0 %v3344_v59  ;;  %v3389_v58 = vld [vmem:[%s3803_s15 + $0x1e4] ss:$8 sps:$4 sm:$0xff]  }
  0xb6   : > { %2066 = vmatmul.mubr.bf16.gmra.mrb[12].mxu1 %v2838_v60  ;;  %2348 = vmatmul.mubr.bf16.gmra.mrb[12].mxu0 %v2842_v61  ;;  %v3392_v59 = vld [vmem:[%s3803_s15 + $0x3e4] ss:$8 sps:$4 sm:$0xff]   ;;  %v2870_v60 = vcombine.low %v779_v36, %v783_v37  ;;  %v2874_v61 = vcombine.low %v781_v38, %v785_v39  ;;  %v742_v38 = vld [vmem:[%s4332_s0 + $0x98] sm:$0xff] }
  0xb7   : > { %2075 = vmatprep.mubr.bf16.mxu1 %v2847_v62  ;;  %2357 = vmatprep.mubr.bf16.mxu0 %v2851_v63  ;;  %v2879_v62 = vcombine.high %v787_v52, %v791_v53  ;;  %v2883_v63 = vcombine.high %v789_v54, %v793_v55  ;;  %v740_v36 = vld [vmem:[%s4332_s0 + $0x88] sm:$0xff]  ;;  %v746_v39 = vld [vmem:[%s4332_s0 + $0xb8] sm:$0xff] }
  0xb8   : > { %2157 = vmatpush1.bf16.msra.mxu1 %v3339_v4  ;;  %2439 = vmatpush1.bf16.msra.mxu0 %v3342_v7  ;;  %v3387_v4 = vld [vmem:[%s3803_s15 + $0x1e0] ss:$8 sps:$4 sm:$0xff]  }
  0xb9   : > { %2158 = vmatprep.subr.bf16.mxu1 %v3347_v8  ;;  %2440 = vmatprep.subr.bf16.mxu0 %v3350_v9  ;;  %v3390_v7 = vld [vmem:[%s3803_s15 + $0x3e0] ss:$8 sps:$4 sm:$0xff]   ;;  %v3399_v8 = vld [vmem:[%s3803_s15 + $0x1f4] ss:$8 sps:$4 sm:$0xff]  }
  0xba   : > { %v3402_v9 = vld [vmem:[%s3803_s15 + $0x3f4] ss:$8 sps:$4 sm:$0xff]   ;;  %v744_v37 = vld [vmem:[%s4332_s0 + $0xa8] sm:$0xff] }
  0xbc   : > { %2159 = vmatpush1.bf16.msra.mxu1 %v3345_v12  ;;  %2441 = vmatpush1.bf16.msra.mxu0 %v3348_v15  ;;  %v797_v12 = vld [vmem:[%s4332_s0 + $0x250] sm:$0xff] }
  0xbd   : > { %2160 = vmatprep.subr.bf16.mxu1 %v3353_v16  ;;  %2442 = vmatprep.subr.bf16.mxu0 %v3356_v17  ;;  %v3400_v15 = vld [vmem:[%s3803_s15 + $0x3f0] ss:$8 sps:$4 sm:$0xff]   ;;  %v2878_v16 = vcombine.low %v787_v52, %v791_v53  ;;  %v2882_v17 = vcombine.low %v789_v54, %v793_v55  ;;  %v756_v52 = vld [vmem:[%s4332_s0 + $0x108] sm:$0xff] }
  0xbe   : > { %2076 = vmatmul.mubr.bf16.gmra.mrb[16].mxu1 %v2846_v18  ;;  %2358 = vmatmul.mubr.bf16.gmra.mrb[16].mxu0 %v2850_v19  ;;  %v2887_v18 = vcombine.high %v795_v10, %v799_v11  ;;  %v2891_v19 = vcombine.high %v797_v12, %v801_v13  ;;  %v760_v53 = vld [vmem:[%s4332_s0 + $0x128] sm:$0xff]  ;;  %v758_v54 = vld [vmem:[%s4332_s0 + $0x118] sm:$0xff] }
  0xbf   : > { %2085 = vmatprep.mubr.bf16.mxu1 %v2855_v20  ;;  %2367 = vmatprep.mubr.bf16.mxu0 %v2859_v21  ;;  %v803_v20 = vld [vmem:[%s4332_s0 + $0x280] sm:$0xff]  ;;  %v805_v21 = vld [vmem:[%s4332_s0 + $0x290] sm:$0xff]  ;;  %v762_v55 = vld [vmem:[%s4332_s0 + $0x138] sm:$0xff] }
  0xc0   : > { %2161 = vmatpush1.bf16.msra.mxu1 %v3351_v22  ;;  %2443 = vmatpush1.bf16.msra.mxu0 %v3354_v23  ;;  %v2886_v22 = vcombine.low %v795_v10, %v799_v11  ;;  %v2890_v23 = vcombine.low %v797_v12, %v801_v13  ;;  %v772_v10 = vld [vmem:[%s4332_s0 + $0x188] sm:$0xff]  ;;  %v774_v12 = vld [vmem:[%s4332_s0 + $0x198] sm:$0xff] }
  0xc1   : > { %2162 = vmatprep.subr.bf16.mxu1 %v3359_v24  ;;  %2444 = vmatprep.subr.bf16.mxu0 %v3362_v25  ;;  %v2895_v24 = vcombine.high %v803_v20, %v803_v20  ;;  %v2899_v25 = vcombine.high %v805_v21, %v805_v21  ;;  %v776_v11 = vld [vmem:[%s4332_s0 + $0x1a8] sm:$0xff]  ;;  %v778_v13 = vld [vmem:[%s4332_s0 + $0x1b8] sm:$0xff] }
  0xc4   : > { %2163 = vmatpush1.bf16.msra.mxu1 %v3357_v30  ;;  %2445 = vmatpush1.bf16.msra.mxu0 %v3360_v0  ;;  %v2894_v30 = vcombine.low %v803_v20, %v803_v20  ;;  %v2898_v0 = vcombine.low %v805_v21, %v805_v21  ;;  %v782_v20 = vld [vmem:[%s4332_s0 + $0x1d8] sm:$0xff] }
  0xc5   : > { %2164 = vmatprep.subr.bf16.mxu1 %v3365_v1  ;;  %2446 = vmatprep.subr.bf16.mxu0 %v3368_v2  ;;  %v2817_v1 = vcombine.high %v724_v26, %v728_v27  ;;  %v2821_v2 = vcombine.high %v726_v28, %v730_v29  ;;  %v786_v21 = vld [vmem:[%s4332_s0 + $0x1f8] sm:$0xff] }
  0xc6   : > { %2086 = vmatmul.mubr.bf16.gmra.mrb[20].mxu1 %v2854_v3  ;;  %2368 = vmatmul.mubr.bf16.gmra.mrb[20].mxu0 %v2858_v5  ;;  %v732_v3 = vld [vmem:[%s4332_s0 + $0x48] sm:$0xff] }
  0xc7   : > { %2095 = vmatprep.mubr.bf16.mxu1 %v2863_v6  ;;  %2377 = vmatprep.mubr.bf16.mxu0 %v2867_v31  ;;  %v736_v5 = vld [vmem:[%s4332_s0 + $0x68] sm:$0xff]  ;;  %v734_v6 = vld [vmem:[%s4332_s0 + $0x58] sm:$0xff] }
  0xc8   : > { %2165 = vmatpush1.bf16.msra.mxu1 %v3363_v32  ;;  %2447 = vmatpush1.bf16.msra.mxu0 %v3366_v33  ;;  %v738_v31 = vld [vmem:[%s4332_s0 + $0x78] sm:$0xff]  ;;  %v2816_v32 = vcombine.low %v724_v26, %v728_v27  ;;  %v2820_v33 = vcombine.low %v726_v28, %v730_v29  ;;  %v788_v26 = vld [vmem:[%s4332_s0 + $0x208] sm:$0xff] }
  0xc9   : > { %2166 = vmatprep.subr.bf16.mxu1 %v3371_v34  ;;  %2448 = vmatprep.subr.bf16.mxu0 %v3374_v35  ;;  %v2825_v34 = vcombine.high %v732_v3, %v736_v5  ;;  %v2829_v35 = vcombine.high %v734_v6, %v738_v31  ;;  %v792_v27 = vld [vmem:[%s4332_s0 + $0x228] sm:$0xff]  ;;  %v790_v28 = vld [vmem:[%s4332_s0 + $0x218] sm:$0xff] }
  0xca   : > { %v794_v29 = vld [vmem:[%s4332_s0 + $0x238] sm:$0xff] }
  0xcc   : > { %2167 = vmatpush1.bf16.msra.mxu1 %v3369_v40  ;;  %2449 = vmatpush1.bf16.msra.mxu0 %v3372_v41  ;;  %v2824_v40 = vcombine.low %v732_v3, %v736_v5  ;;  %v2828_v41 = vcombine.low %v734_v6, %v738_v31  ;;  %v796_v3 = vld [vmem:[%s4332_s0 + $0x248] sm:$0xff]  ;;  %v798_v6 = vld [vmem:[%s4332_s0 + $0x258] sm:$0xff] }
  0xcd   : > { %2168 = vmatprep.subr.bf16.mxu1 %v3377_v42  ;;  %2450 = vmatprep.subr.bf16.mxu0 %v3380_v43  ;;  %v2833_v42 = vcombine.high %v740_v36, %v744_v37  ;;  %v2837_v43 = vcombine.high %v742_v38, %v746_v39  ;;  %v800_v5 = vld [vmem:[%s4332_s0 + $0x268] sm:$0xff]  ;;  %v802_v31 = vld [vmem:[%s4332_s0 + $0x278] sm:$0xff] }
  0xce   : > { %2096 = vmatmul.mubr.bf16.gmra.mrb[24].mxu1 %v2862_v44  ;;  %2378 = vmatmul.mubr.bf16.gmra.mrb[24].mxu0 %v2866_v45  ;;  %v748_v44 = vld [vmem:[%s4332_s0 + $0xc8] sm:$0xff] }
  0xcf   : > { %2105 = vmatprep.mubr.bf16.mxu1 %v2871_v46  ;;  %2387 = vmatprep.mubr.bf16.mxu0 %v2875_v47  ;;  %v752_v45 = vld [vmem:[%s4332_s0 + $0xe8] sm:$0xff]  ;;  %v750_v46 = vld [vmem:[%s4332_s0 + $0xd8] sm:$0xff] }
  0xd0   : > { %2169 = vmatpush1.bf16.msra.mxu1 %v3375_v48  ;;  %2451 = vmatpush1.bf16.msra.mxu0 %v3378_v49  ;;  %v754_v47 = vld [vmem:[%s4332_s0 + $0xf8] sm:$0xff]  ;;  %v2832_v48 = vcombine.low %v740_v36, %v744_v37  ;;  %v2836_v49 = vcombine.low %v742_v38, %v746_v39  ;;  %v804_v36 = vld [vmem:[%s4332_s0 + $0x288] sm:$0xff]  ;;  %v2888_v38 = vcombine.low %v796_v3, %v800_v5 }
  0xd1   : > { %2170 = vmatprep.subr.bf16.mxu1 %v3383_v50  ;;  %2452 = vmatprep.subr.bf16.mxu0 %v3386_v51  ;;  %v2841_v50 = vcombine.high %v748_v44, %v752_v45  ;;  %v2845_v51 = vcombine.high %v750_v46, %v754_v47  ;;  %v806_v37 = vld [vmem:[%s4332_s0 + $0x298] sm:$0xff]  ;;  %v2892_v39 = vcombine.low %v798_v6, %v802_v31 }
  0xd4   : > { %2171 = vmatpush1.bf16.msra.mxu1 %v3381_v56  ;;  %2453 = vmatpush1.bf16.msra.mxu0 %v3384_v57  ;;  %v2840_v56 = vcombine.low %v748_v44, %v752_v45  ;;  %v2844_v57 = vcombine.low %v750_v46, %v754_v47 }
  0xd5   : > { %2172 = vmatprep.subr.bf16.mxu1 %v3389_v58  ;;  %2454 = vmatprep.subr.bf16.mxu0 %v3392_v59  ;;  %v2849_v58 = vcombine.high %v756_v52, %v760_v53  ;;  %v2853_v59 = vcombine.high %v758_v54, %v762_v55 }
  0xd6   : > { %2106 = vmatmul.mubr.bf16.gmra.mrb[28].mxu1 %v2870_v60  ;;  %2388 = vmatmul.mubr.bf16.gmra.mrb[28].mxu0 %v2874_v61  ;;  %v764_v60 = vld [vmem:[%s4332_s0 + $0x148] sm:$0xff] }
  0xd7   : > { %2115 = vmatprep.mubr.bf16.mxu1 %v2879_v62  ;;  %2397 = vmatprep.mubr.bf16.mxu0 %v2883_v63  ;;  %v768_v61 = vld [vmem:[%s4332_s0 + $0x168] sm:$0xff]  ;;  %v766_v62 = vld [vmem:[%s4332_s0 + $0x158] sm:$0xff] }
  0xd8   : > { %2173 = vmatpush1.bf16.msra.mxu1 %v3387_v4  ;;  %2455 = vmatpush1.bf16.msra.mxu0 %v3390_v7  ;;  %v770_v63 = vld [vmem:[%s4332_s0 + $0x178] sm:$0xff]  ;;  %v2848_v4 = vcombine.low %v756_v52, %v760_v53  ;;  %v2852_v7 = vcombine.low %v758_v54, %v762_v55 }
  0xd9   : > { %2174 = vmatprep.subr.bf16.mxu1 %v3399_v8  ;;  %2456 = vmatprep.subr.bf16.mxu0 %v3402_v9  ;;  %v2857_v8 = vcombine.high %v764_v60, %v768_v61  ;;  %v2861_v9 = vcombine.high %v766_v62, %v770_v63 }
  0xdc   : > { %2175 = vmatpush1.bf16.msra.mxu1 %v3397_v14  ;;  %2457 = vmatpush1.bf16.msra.mxu0 %v3400_v15  ;;  %v2856_v14 = vcombine.low %v764_v60, %v768_v61  ;;  %v2860_v15 = vcombine.low %v766_v62, %v770_v63 }
  0xde   : > { %2116 = vmatmul.mubr.bf16.gmra.mrb[32].mxu1 %v2878_v16  ;;  %2398 = vmatmul.mubr.bf16.gmra.mrb[32].mxu0 %v2882_v17  ;;  %v2865_v16 = vcombine.high %v772_v10, %v776_v11  ;;  %v2869_v17 = vcombine.high %v774_v12, %v778_v13 }
  0xdf   : > { %2125 = vmatprep.mubr.bf16.mxu1 %v2887_v18  ;;  %2407 = vmatprep.mubr.bf16.mxu0 %v2891_v19  ;;  %v780_v18 = vld [vmem:[%s4332_s0 + $0x1c8] sm:$0xff] }
  0xe0   : > { %v784_v19 = vld [vmem:[%s4332_s0 + $0x1e8] sm:$0xff] }
  0xe6   : > { %2126 = vmatmul.mubr.bf16.gmra.mrb[36].mxu1 %v2886_v22  ;;  %2408 = vmatmul.mubr.bf16.gmra.mrb[36].mxu0 %v2890_v23  ;;  %v2864_v22 = vcombine.low %v772_v10, %v776_v11  ;;  %v2868_v23 = vcombine.low %v774_v12, %v778_v13 }
  0xe7   : > { %2135 = vmatprep.mubr.bf16.mxu1 %v2895_v24  ;;  %2417 = vmatprep.mubr.bf16.mxu0 %v2899_v25  ;;  %v2873_v24 = vcombine.high %v780_v18, %v784_v19  ;;  %v2877_v25 = vcombine.high %v782_v20, %v786_v21 }
  0xee   : > { %2136 = vmatmul.mubr.bf16.gmra.mrb[40].mxu1 %v2894_v30  ;;  %2418 = vmatmul.mubr.bf16.gmra.mrb[40].mxu0 %v2898_v0  ;;  %v2872_v30 = vcombine.low %v780_v18, %v784_v19  ;;  %v2876_v0 = vcombine.low %v782_v20, %v786_v21 }
  0xef   : > { %2176 = vmatprep.mubr.bf16.mxu1 %v2817_v1  ;;  %2458 = vmatprep.mubr.bf16.mxu0 %v2821_v2  ;;  %v2881_v1 = vcombine.high %v788_v26, %v792_v27  ;;  %v2885_v2 = vcombine.high %v790_v28, %v794_v29 }
  0xf6   : > { %2177 = vmatmul.mubr.bf16.vlgmr.msra.gmra.mrb[0].mxu1 %v2816_v32  ;;  %2459 = vmatmul.mubr.bf16.vlgmr.msra.gmra.mrb[0].mxu0 %v2820_v33  ;;  %v2880_v32 = vcombine.low %v788_v26, %v792_v27  ;;  %v2884_v33 = vcombine.low %v790_v28, %v794_v29 }
  0xf7   : > { %2186 = vmatprep.mubr.bf16.mxu1 %v2825_v34  ;;  %2468 = vmatprep.mubr.bf16.mxu0 %v2829_v35  ;;  %v2889_v34 = vcombine.high %v796_v3, %v800_v5  ;;  %v2893_v35 = vcombine.high %v798_v6, %v802_v31 }
  0xfe   : > { %2187 = vmatmul.mubr.bf16.gmra.mrb[4].mxu1 %v2824_v40  ;;  %2469 = vmatmul.mubr.bf16.gmra.mrb[4].mxu0 %v2828_v41  ;;  %v2897_v40 = vcombine.high %v804_v36, %v804_v36  ;;  %v2901_v41 = vcombine.high %v806_v37, %v806_v37 }
  0xff   : > { %2196 = vmatprep.mubr.bf16.mxu1 %v2833_v42  ;;  %2478 = vmatprep.mubr.bf16.mxu0 %v2837_v43  ;;  %v2896_v42 = vcombine.low %v804_v36, %v804_v36  ;;  %v2900_v43 = vcombine.low %v806_v37, %v806_v37 }
 0x106   : > { %2197 = vmatmul.mubr.bf16.gmra.mrb[8].mxu1 %v2832_v48  ;;  %2479 = vmatmul.mubr.bf16.gmra.mrb[8].mxu0 %v2836_v49 }
 0x107   : > { %2206 = vmatprep.mubr.bf16.mxu1 %v2841_v50  ;;  %2488 = vmatprep.mubr.bf16.mxu0 %v2845_v51 }
 0x10e   : > { %2207 = vmatmul.mubr.bf16.gmra.mrb[12].mxu1 %v2840_v56  ;;  %2489 = vmatmul.mubr.bf16.gmra.mrb[12].mxu0 %v2844_v57 }
 0x10f   : > { %2216 = vmatprep.mubr.bf16.mxu1 %v2849_v58  ;;  %2498 = vmatprep.mubr.bf16.mxu0 %v2853_v59 }
 0x116   : > { %2217 = vmatmul.mubr.bf16.gmra.mrb[16].mxu1 %v2848_v4  ;;  %2499 = vmatmul.mubr.bf16.gmra.mrb[16].mxu0 %v2852_v7 }
 0x117   : > { %2226 = vmatprep.mubr.bf16.mxu1 %v2857_v8  ;;  %2508 = vmatprep.mubr.bf16.mxu0 %v2861_v9 }
 0x11e   : > { %2227 = vmatmul.mubr.bf16.gmra.mrb[20].mxu1 %v2856_v14  ;;  %2509 = vmatmul.mubr.bf16.gmra.mrb[20].mxu0 %v2860_v15 }
 0x11f   : > { %2236 = vmatprep.mubr.bf16.mxu1 %v2865_v16  ;;  %2518 = vmatprep.mubr.bf16.mxu0 %v2869_v17 }
 0x126   : > { %2237 = vmatmul.mubr.bf16.gmra.mrb[24].mxu1 %v2864_v22  ;;  %2519 = vmatmul.mubr.bf16.gmra.mrb[24].mxu0 %v2868_v23 }
 0x127   : > { %2246 = vmatprep.mubr.bf16.mxu1 %v2873_v24  ;;  %2528 = vmatprep.mubr.bf16.mxu0 %v2877_v25 }
 0x12e   : > { %2247 = vmatmul.mubr.bf16.gmra.mrb[28].mxu1 %v2872_v30  ;;  %2529 = vmatmul.mubr.bf16.gmra.mrb[28].mxu0 %v2876_v0 }
 0x12f   : > { %2256 = vmatprep.mubr.bf16.mxu1 %v2881_v1  ;;  %2538 = vmatprep.mubr.bf16.mxu0 %v2885_v2 }
 0x136   : > { %2257 = vmatmul.mubr.bf16.gmra.mrb[32].mxu1 %v2880_v32  ;;  %2539 = vmatmul.mubr.bf16.gmra.mrb[32].mxu0 %v2884_v33 }
 0x137   : > { %2266 = vmatprep.mubr.bf16.mxu1 %v2889_v34  ;;  %2548 = vmatprep.mubr.bf16.mxu0 %v2893_v35 }
 0x13e   : > { %2267 = vmatmul.mubr.bf16.gmra.mrb[36].mxu1 %v2888_v38  ;;  %2549 = vmatmul.mubr.bf16.gmra.mrb[36].mxu0 %v2892_v39 }
 0x13f   : > { %2276 = vmatprep.mubr.bf16.mxu1 %v2897_v40  ;;  %2558 = vmatprep.mubr.bf16.mxu0 %v2901_v41 }
 0x146   : > { %2277 = vmatmul.mubr.bf16.gmra.mrb[40].mxu1 %v2896_v42  ;;  %2559 = vmatmul.mubr.bf16.gmra.mrb[40].mxu0 %v2900_v43 }
 0x1c9   : > { %v2178_v44 = vpop.f32.mrb[0].mxu1  ;;  %v2460_v45 = vpop.f32.mrb[0].mxu0 }
 0x1ca   : > { %v3036_v46 = vadd.f32 %v2460_v45, %v2178_v44  ;;  %v2180_v47 = vpop.f32.mrb[1].mxu1  ;;  %v2462_v48 = vpop.f32.mrb[1].mxu0 }
 0x1cb   : > { %v3037_v49 = vadd.f32 %v2462_v48, %v2180_v47  ;;  %v2182_v50 = vpop.f32.mrb[2].mxu1  ;;  %v2464_v51 = vpop.f32.mrb[2].mxu0 }
 0x1cc   : > { %2567 = vst [vmem:[%s4181_s3] sm:$0xff] %v3036_v46  ;;  %v3038_v52 = vadd.f32 %v2464_v51, %v2182_v50  ;;  %v2184_v53 = vpop.f32.mrb[3].mxu1  ;;  %v2466_v54 = vpop.f32.mrb[3].mxu0 }
 0x1cd   : > { %2568 = vst [vmem:[%s4181_s3 + $0x8] sm:$0xff] %v3037_v49  ;;  %v3039_v55 = vadd.f32 %v2466_v54, %v2184_v53 }
 0x1ce   : > { %2569 = vst [vmem:[%s4181_s3 + $0x10] sm:$0xff] %v3038_v52 }
 0x1cf   : > { %2570 = vst [vmem:[%s4181_s3 + $0x18] sm:$0xff] %v3039_v55 }
 0x1d1   : > { %v2188_v56 = vpop.f32.mrb[4].mxu1  ;;  %v2470_v57 = vpop.f32.mrb[4].mxu0 }
 0x1d2   : > { %v3040_v58 = vadd.f32 %v2470_v57, %v2188_v56  ;;  %v2190_v59 = vpop.f32.mrb[5].mxu1  ;;  %v2472_v60 = vpop.f32.mrb[5].mxu0 }
 0x1d3   : > { %v3041_v61 = vadd.f32 %v2472_v60, %v2190_v59  ;;  %v2192_v62 = vpop.f32.mrb[6].mxu1  ;;  %v2474_v63 = vpop.f32.mrb[6].mxu0 }
 0x1d4   : > { %2571 = vst [vmem:[%s4181_s3 + $0x20] sm:$0xff] %v3040_v58  ;;  %v3042_v4 = vadd.f32 %v2474_v63, %v2192_v62  ;;  %v2194_v7 = vpop.f32.mrb[7].mxu1  ;;  %v2476_v8 = vpop.f32.mrb[7].mxu0 }
 0x1d5   : > { %2572 = vst [vmem:[%s4181_s3 + $0x28] sm:$0xff] %v3041_v61  ;;  %v3043_v9 = vadd.f32 %v2476_v8, %v2194_v7 }
 0x1d6   : > { %2573 = vst [vmem:[%s4181_s3 + $0x30] sm:$0xff] %v3042_v4 }
 0x1d7   : > { %2574 = vst [vmem:[%s4181_s3 + $0x38] sm:$0xff] %v3043_v9 }
 0x1d9   : > { %v2198_v10 = vpop.f32.mrb[8].mxu1  ;;  %v2480_v11 = vpop.f32.mrb[8].mxu0 }
 0x1da   : > { %v3044_v12 = vadd.f32 %v2480_v11, %v2198_v10  ;;  %v2200_v13 = vpop.f32.mrb[9].mxu1  ;;  %v2482_v14 = vpop.f32.mrb[9].mxu0 }
 0x1db   : > { %v3045_v15 = vadd.f32 %v2482_v14, %v2200_v13  ;;  %v2202_v16 = vpop.f32.mrb[10].mxu1  ;;  %v2484_v17 = vpop.f32.mrb[10].mxu0 }
 0x1dc   : > { %2575 = vst [vmem:[%s4181_s3 + $0x40] sm:$0xff] %v3044_v12  ;;  %v3046_v18 = vadd.f32 %v2484_v17, %v2202_v16  ;;  %v2204_v19 = vpop.f32.mrb[11].mxu1  ;;  %v2486_v20 = vpop.f32.mrb[11].mxu0 }
 0x1dd   : > { %2576 = vst [vmem:[%s4181_s3 + $0x48] sm:$0xff] %v3045_v15  ;;  %v3047_v21 = vadd.f32 %v2486_v20, %v2204_v19 }
 0x1de   : > { %2577 = vst [vmem:[%s4181_s3 + $0x50] sm:$0xff] %v3046_v18 }
 0x1df   : > { %2578 = vst [vmem:[%s4181_s3 + $0x58] sm:$0xff] %v3047_v21 }
 0x1e1   : > { %v2208_v22 = vpop.f32.mrb[12].mxu1  ;;  %v2490_v23 = vpop.f32.mrb[12].mxu0 }
 0x1e2   : > { %v3048_v24 = vadd.f32 %v2490_v23, %v2208_v22  ;;  %v2210_v25 = vpop.f32.mrb[13].mxu1  ;;  %v2492_v26 = vpop.f32.mrb[13].mxu0 }
 0x1e3   : > { %v3049_v27 = vadd.f32 %v2492_v26, %v2210_v25  ;;  %v2212_v28 = vpop.f32.mrb[14].mxu1  ;;  %v2494_v29 = vpop.f32.mrb[14].mxu0 }
 0x1e4   : > { %2579 = vst [vmem:[%s4181_s3 + $0x60] sm:$0xff] %v3048_v24  ;;  %v3050_v30 = vadd.f32 %v2494_v29, %v2212_v28  ;;  %v2214_v0 = vpop.f32.mrb[15].mxu1  ;;  %v2496_v1 = vpop.f32.mrb[15].mxu0 }
 0x1e5   : > { %2580 = vst [vmem:[%s4181_s3 + $0x68] sm:$0xff] %v3049_v27  ;;  %v3051_v2 = vadd.f32 %v2496_v1, %v2214_v0 }
 0x1e6   : > { %2581 = vst [vmem:[%s4181_s3 + $0x70] sm:$0xff] %v3050_v30 }
 0x1e7   : > { %2582 = vst [vmem:[%s4181_s3 + $0x78] sm:$0xff] %v3051_v2 }
 0x1e9   : > { %v2218_v3 = vpop.f32.mrb[16].mxu1  ;;  %v2500_v5 = vpop.f32.mrb[16].mxu0 }
 0x1ea   : > { %v3052_v6 = vadd.f32 %v2500_v5, %v2218_v3  ;;  %v2220_v31 = vpop.f32.mrb[17].mxu1  ;;  %v2502_v32 = vpop.f32.mrb[17].mxu0 }
 0x1eb   : > { %v3053_v33 = vadd.f32 %v2502_v32, %v2220_v31  ;;  %v2222_v34 = vpop.f32.mrb[18].mxu1  ;;  %v2504_v35 = vpop.f32.mrb[18].mxu0 }
 0x1ec   : > { %2583 = vst [vmem:[%s4181_s3 + $0x80] sm:$0xff] %v3052_v6  ;;  %v3054_v36 = vadd.f32 %v2504_v35, %v2222_v34  ;;  %v2224_v37 = vpop.f32.mrb[19].mxu1  ;;  %v2506_v38 = vpop.f32.mrb[19].mxu0 }
 0x1ed   : > { %2584 = vst [vmem:[%s4181_s3 + $0x88] sm:$0xff] %v3053_v33  ;;  %v3055_v39 = vadd.f32 %v2506_v38, %v2224_v37 }
 0x1ee   : > { %2585 = vst [vmem:[%s4181_s3 + $0x90] sm:$0xff] %v3054_v36 }
 0x1ef   : > { %2586 = vst [vmem:[%s4181_s3 + $0x98] sm:$0xff] %v3055_v39 }
 0x1f1   : > { %v2228_v40 = vpop.f32.mrb[20].mxu1  ;;  %v2510_v41 = vpop.f32.mrb[20].mxu0 }
 0x1f2   : > { %v3056_v42 = vadd.f32 %v2510_v41, %v2228_v40  ;;  %v2230_v43 = vpop.f32.mrb[21].mxu1  ;;  %v2512_v44 = vpop.f32.mrb[21].mxu0 }
 0x1f3   : > { %v3057_v45 = vadd.f32 %v2512_v44, %v2230_v43  ;;  %v2232_v46 = vpop.f32.mrb[22].mxu1  ;;  %v2514_v47 = vpop.f32.mrb[22].mxu0 }
 0x1f4   : > { %2587 = vst [vmem:[%s4181_s3 + $0xa0] sm:$0xff] %v3056_v42  ;;  %v3058_v48 = vadd.f32 %v2514_v47, %v2232_v46  ;;  %v2234_v49 = vpop.f32.mrb[23].mxu1  ;;  %v2516_v50 = vpop.f32.mrb[23].mxu0  ;;  %v2634_v46 = vld [vmem:[%s4181_s3] sm:$0xff] (%p3497_p6)  ;;  %v2636_v47 = vld [vmem:[%s4181_s3 + $0x8] sm:$0xff] (%p3497_p6) }
 0x1f5   : > { %2588 = vst [vmem:[%s4181_s3 + $0xa8] sm:$0xff] %v3057_v45  ;;  %v3059_v51 = vadd.f32 %v2516_v50, %v2234_v49  ;;  %v2640_v49 = vld [vmem:[%s4181_s3 + $0x18] sm:$0xff] (%p3497_p6)  ;;  %v2642_v50 = vld [vmem:[%s4181_s3 + $0x20] sm:$0xff] (%p3497_p6)  ;;  %2635 = vst [vmem:[%s4234_s5] sm:$0xff] (%p3497_p6), %v2634_v46 }
 0x1f6   : > { %2589 = vst [vmem:[%s4181_s3 + $0xb0] sm:$0xff] %v3058_v48  ;;  %v2638_v48 = vld [vmem:[%s4181_s3 + $0x10] sm:$0xff] (%p3497_p6)  ;;  %2637 = vst [vmem:[%s4234_s5 + $0x8] sm:$0xff] (%p3497_p6), %v2636_v47 }
 0x1f7   : > { %2590 = vst [vmem:[%s4181_s3 + $0xb8] sm:$0xff] %v3059_v51  ;;  %v2644_v51 = vld [vmem:[%s4181_s3 + $0x28] sm:$0xff] (%p3497_p6)  ;;  %2639 = vst [vmem:[%s4234_s5 + $0x20] sm:$0xff] (%p3497_p6), %v2638_v48 }
 0x1f8   : > { %2641 = vst [vmem:[%s4234_s5 + $0x28] sm:$0xff] (%p3497_p6), %v2640_v49  ;;  %2643 = vst [vmem:[%s4234_s5 + $0x40] sm:$0xff] (%p3497_p6), %v2642_v50 }
 0x1f9   : > { %v2238_v52 = vpop.f32.mrb[24].mxu1  ;;  %v2520_v53 = vpop.f32.mrb[24].mxu0  ;;  %2645 = vst [vmem:[%s4234_s5 + $0x48] sm:$0xff] (%p3497_p6), %v2644_v51 }
 0x1fa   : > { %v3060_v54 = vadd.f32 %v2520_v53, %v2238_v52  ;;  %v2240_v55 = vpop.f32.mrb[25].mxu1  ;;  %v2522_v56 = vpop.f32.mrb[25].mxu0  ;;  %v2646_v52 = vld [vmem:[%s4181_s3 + $0x30] sm:$0xff] (%p3497_p6)  ;;  %v2648_v53 = vld [vmem:[%s4181_s3 + $0x38] sm:$0xff] (%p3497_p6) }
 0x1fb   : > { %v3061_v57 = vadd.f32 %v2522_v56, %v2240_v55  ;;  %v2242_v58 = vpop.f32.mrb[26].mxu1  ;;  %v2524_v59 = vpop.f32.mrb[26].mxu0  ;;  %2647 = vst [vmem:[%s4234_s5 + $0x60] sm:$0xff] (%p3497_p6), %v2646_v52  ;;  %2649 = vst [vmem:[%s4234_s5 + $0x68] sm:$0xff] (%p3497_p6), %v2648_v53  ;;  %v2652_v55 = vld [vmem:[%s4181_s3 + $0x48] sm:$0xff] (%p3497_p6)  ;;  %v2654_v56 = vld [vmem:[%s4181_s3 + $0x50] sm:$0xff] (%p3497_p6) }
 0x1fc   : > { %2591 = vst [vmem:[%s4181_s3 + $0xc0] sm:$0xff] %v3060_v54  ;;  %v3062_v60 = vadd.f32 %v2524_v59, %v2242_v58  ;;  %v2244_v61 = vpop.f32.mrb[27].mxu1  ;;  %v2526_v62 = vpop.f32.mrb[27].mxu0  ;;  %v2650_v54 = vld [vmem:[%s4181_s3 + $0x40] sm:$0xff] (%p3497_p6)  ;;  %2653 = vst [vmem:[%s4234_s5 + $0x88] sm:$0xff] (%p3497_p6), %v2652_v55  ;;  %v2660_v59 = vld [vmem:[%s4181_s3 + $0x68] sm:$0xff] (%p3497_p6) }
 0x1fd   : > { %2592 = vst [vmem:[%s4181_s3 + $0xc8] sm:$0xff] %v3061_v57  ;;  %v3063_v63 = vadd.f32 %v2526_v62, %v2244_v61  ;;  %2651 = vst [vmem:[%s4234_s5 + $0x80] sm:$0xff] (%p3497_p6), %v2650_v54  ;;  %v2656_v57 = vld [vmem:[%s4181_s3 + $0x58] sm:$0xff] (%p3497_p6)  ;;  %v2658_v58 = vld [vmem:[%s4181_s3 + $0x60] sm:$0xff] (%p3497_p6) }
 0x1fe   : > { %2593 = vst [vmem:[%s4181_s3 + $0xd0] sm:$0xff] %v3062_v60  ;;  %2655 = vst [vmem:[%s4234_s5 + $0xa0] sm:$0xff] (%p3497_p6), %v2654_v56  ;;  %v2662_v60 = vld [vmem:[%s4181_s3 + $0x70] sm:$0xff] (%p3497_p6)  ;;  %v2664_v61 = vld [vmem:[%s4181_s3 + $0x78] sm:$0xff] (%p3497_p6) }
 0x1ff   : > { %2594 = vst [vmem:[%s4181_s3 + $0xd8] sm:$0xff] %v3063_v63  ;;  %2657 = vst [vmem:[%s4234_s5 + $0xa8] sm:$0xff] (%p3497_p6), %v2656_v57  ;;  %v2666_v62 = vld [vmem:[%s4181_s3 + $0x80] sm:$0xff] (%p3497_p6)  ;;  %v2668_v63 = vld [vmem:[%s4181_s3 + $0x88] sm:$0xff] (%p3497_p6) }
 0x200   : > { %2659 = vst [vmem:[%s4234_s5 + $0xc0] sm:$0xff] (%p3497_p6), %v2658_v58  ;;  %2661 = vst [vmem:[%s4234_s5 + $0xc8] sm:$0xff] (%p3497_p6), %v2660_v59 }
 0x201   : > { %v2248_v4 = vpop.f32.mrb[28].mxu1  ;;  %v2530_v7 = vpop.f32.mrb[28].mxu0  ;;  %2663 = vst [vmem:[%s4234_s5 + $0xe0] sm:$0xff] (%p3497_p6), %v2662_v60  ;;  %2665 = vst [vmem:[%s4234_s5 + $0xe8] sm:$0xff] (%p3497_p6), %v2664_v61 }
 0x202   : > { %v3064_v8 = vadd.f32 %v2530_v7, %v2248_v4  ;;  %v2250_v9 = vpop.f32.mrb[29].mxu1  ;;  %v2532_v10 = vpop.f32.mrb[29].mxu0  ;;  %2667 = vst [vmem:[%s4234_s5 + $0x100] sm:$0xff] (%p3497_p6), %v2666_v62  ;;  %2669 = vst [vmem:[%s4234_s5 + $0x108] sm:$0xff] (%p3497_p6), %v2668_v63  ;;  %v2670_v4 = vld [vmem:[%s4181_s3 + $0x90] sm:$0xff] (%p3497_p6)  ;;  %v2672_v7 = vld [vmem:[%s4181_s3 + $0x98] sm:$0xff] (%p3497_p6) }
 0x203   : > { %v3065_v11 = vadd.f32 %v2532_v10, %v2250_v9  ;;  %v2252_v12 = vpop.f32.mrb[30].mxu1  ;;  %v2534_v13 = vpop.f32.mrb[30].mxu0  ;;  %2671 = vst [vmem:[%s4234_s5 + $0x120] sm:$0xff] (%p3497_p6), %v2670_v4  ;;  %2673 = vst [vmem:[%s4234_s5 + $0x128] sm:$0xff] (%p3497_p6), %v2672_v7  ;;  %v2676_v9 = vld [vmem:[%s4181_s3 + $0xa8] sm:$0xff] (%p3497_p6)  ;;  %v2678_v10 = vld [vmem:[%s4181_s3 + $0xb0] sm:$0xff] (%p3497_p6) }
 0x204   : > { %2595 = vst [vmem:[%s4181_s3 + $0xe0] sm:$0xff] %v3064_v8  ;;  %v3066_v14 = vadd.f32 %v2534_v13, %v2252_v12  ;;  %v2254_v15 = vpop.f32.mrb[31].mxu1  ;;  %v2536_v16 = vpop.f32.mrb[31].mxu0  ;;  %v2674_v8 = vld [vmem:[%s4181_s3 + $0xa0] sm:$0xff] (%p3497_p6)  ;;  %2677 = vst [vmem:[%s4234_s5 + $0x148] sm:$0xff] (%p3497_p6), %v2676_v9  ;;  %v2684_v13 = vld [vmem:[%s4181_s3 + $0xc8] sm:$0xff] (%p3497_p6) }
 0x205   : > { %2596 = vst [vmem:[%s4181_s3 + $0xe8] sm:$0xff] %v3065_v11  ;;  %v3067_v17 = vadd.f32 %v2536_v16, %v2254_v15  ;;  %2675 = vst [vmem:[%s4234_s5 + $0x140] sm:$0xff] (%p3497_p6), %v2674_v8  ;;  %v2680_v11 = vld [vmem:[%s4181_s3 + $0xb8] sm:$0xff] (%p3497_p6)  ;;  %v2682_v12 = vld [vmem:[%s4181_s3 + $0xc0] sm:$0xff] (%p3497_p6) }
 0x206   : > { %2597 = vst [vmem:[%s4181_s3 + $0xf0] sm:$0xff] %v3066_v14  ;;  %2679 = vst [vmem:[%s4234_s5 + $0x160] sm:$0xff] (%p3497_p6), %v2678_v10  ;;  %v2686_v14 = vld [vmem:[%s4181_s3 + $0xd0] sm:$0xff] (%p3497_p6)  ;;  %v2688_v15 = vld [vmem:[%s4181_s3 + $0xd8] sm:$0xff] (%p3497_p6) }
 0x207   : > { %2598 = vst [vmem:[%s4181_s3 + $0xf8] sm:$0xff] %v3067_v17  ;;  %2681 = vst [vmem:[%s4234_s5 + $0x168] sm:$0xff] (%p3497_p6), %v2680_v11 }
 0x208   : > { %2683 = vst [vmem:[%s4234_s5 + $0x180] sm:$0xff] (%p3497_p6), %v2682_v12  ;;  %2685 = vst [vmem:[%s4234_s5 + $0x188] sm:$0xff] (%p3497_p6), %v2684_v13 }
 0x209   : > { %v2258_v18 = vpop.f32.mrb[32].mxu1  ;;  %v2540_v19 = vpop.f32.mrb[32].mxu0  ;;  %2687 = vst [vmem:[%s4234_s5 + $0x1a0] sm:$0xff] (%p3497_p6), %v2686_v14  ;;  %2689 = vst [vmem:[%s4234_s5 + $0x1a8] sm:$0xff] (%p3497_p6), %v2688_v15 }
 0x20a   : > { %v3068_v20 = vadd.f32 %v2540_v19, %v2258_v18  ;;  %v2260_v21 = vpop.f32.mrb[33].mxu1  ;;  %v2542_v22 = vpop.f32.mrb[33].mxu0 }
 0x20b   : > { %v3069_v23 = vadd.f32 %v2542_v22, %v2260_v21  ;;  %v2262_v24 = vpop.f32.mrb[34].mxu1  ;;  %v2544_v25 = vpop.f32.mrb[34].mxu0  ;;  %v2690_v16 = vld [vmem:[%s4181_s3 + $0xe0] sm:$0xff] (%p3497_p6) }
 0x20c   : > { %2599 = vst [vmem:[%s4181_s3 + $0x100] sm:$0xff] %v3068_v20  ;;  %v3070_v26 = vadd.f32 %v2544_v25, %v2262_v24  ;;  %v2264_v27 = vpop.f32.mrb[35].mxu1  ;;  %v2546_v28 = vpop.f32.mrb[35].mxu0  ;;  %v2692_v17 = vld [vmem:[%s4181_s3 + $0xe8] sm:$0xff] (%p3497_p6)  ;;  %2691 = vst [vmem:[%s4234_s5 + $0x1c0] sm:$0xff] (%p3497_p6), %v2690_v16 }
 0x20d   : > { %2600 = vst [vmem:[%s4181_s3 + $0x108] sm:$0xff] %v3069_v23  ;;  %v3071_v29 = vadd.f32 %v2546_v28, %v2264_v27  ;;  %2693 = vst [vmem:[%s4234_s5 + $0x1c8] sm:$0xff] (%p3497_p6), %v2692_v17  ;;  %v2694_v18 = vld [vmem:[%s4181_s3 + $0xf0] sm:$0xff] (%p3497_p6) }
 0x20e   : > { %2601 = vst [vmem:[%s4181_s3 + $0x110] sm:$0xff] %v3070_v26  ;;  %v2696_v19 = vld [vmem:[%s4181_s3 + $0xf8] sm:$0xff] (%p3497_p6)  ;;  %2695 = vst [vmem:[%s4234_s5 + $0x1e0] sm:$0xff] (%p3497_p6), %v2694_v18 }
 0x20f   : > { %2602 = vst [vmem:[%s4181_s3 + $0x118] sm:$0xff] %v3071_v29  ;;  %2697 = vst [vmem:[%s4234_s5 + $0x1e8] sm:$0xff] (%p3497_p6), %v2696_v19 }
 0x211   : > { %v2268_v30 = vpop.f32.mrb[36].mxu1  ;;  %v2550_v0 = vpop.f32.mrb[36].mxu0 }
 0x212   : > { %v3072_v1 = vadd.f32 %v2550_v0, %v2268_v30  ;;  %v2270_v2 = vpop.f32.mrb[37].mxu1  ;;  %v2552_v3 = vpop.f32.mrb[37].mxu0 }
 0x213   : > { %v3073_v5 = vadd.f32 %v2552_v3, %v2270_v2  ;;  %v2272_v6 = vpop.f32.mrb[38].mxu1  ;;  %v2554_v31 = vpop.f32.mrb[38].mxu0  ;;  %v2698_v20 = vld [vmem:[%s4181_s3 + $0x100] sm:$0xff] (%p3497_p6) }
 0x214   : > { %2603 = vst [vmem:[%s4181_s3 + $0x120] sm:$0xff] %v3072_v1  ;;  %v3074_v32 = vadd.f32 %v2554_v31, %v2272_v6  ;;  %v2274_v33 = vpop.f32.mrb[39].mxu1  ;;  %v2556_v34 = vpop.f32.mrb[39].mxu0  ;;  %2699 = vst [vmem:[%s4234_s5 + $0x200] sm:$0xff] (%p3497_p6), %v2698_v20  ;;  %v2700_v21 = vld [vmem:[%s4181_s3 + $0x108] sm:$0xff] (%p3497_p6) }
 0x215   : > { %2604 = vst [vmem:[%s4181_s3 + $0x128] sm:$0xff] %v3073_v5  ;;  %v3075_v35 = vadd.f32 %v2556_v34, %v2274_v33  ;;  %v2702_v22 = vld [vmem:[%s4181_s3 + $0x110] sm:$0xff] (%p3497_p6)  ;;  %2701 = vst [vmem:[%s4234_s5 + $0x208] sm:$0xff] (%p3497_p6), %v2700_v21 }
 0x216   : > { %2605 = vst [vmem:[%s4181_s3 + $0x130] sm:$0xff] %v3074_v32  ;;  %v2704_v23 = vld [vmem:[%s4181_s3 + $0x118] sm:$0xff] (%p3497_p6)  ;;  %2703 = vst [vmem:[%s4234_s5 + $0x220] sm:$0xff] (%p3497_p6), %v2702_v22 }
 0x217   : > { %2606 = vst [vmem:[%s4181_s3 + $0x138] sm:$0xff] %v3075_v35  ;;  %2615 = sbr.rel (!%p3497_p6) target bundleno = 550 (0x226), region = 70  ;;  %2705 = vst [vmem:[%s4234_s5 + $0x228] sm:$0xff] (%p3497_p6), %v2704_v23 }
 0x219   : > { %v2278_v36 = vpop.f32.mrb[40].mxu1  ;;  %v2560_v37 = vpop.f32.mrb[40].mxu0 }
 0x21a   : > { %v3076_v38 = vadd.f32 %v2560_v37, %v2278_v36  ;;  %v2280_v39 = vpop.f32.mrb[41].mxu1  ;;  %v2562_v40 = vpop.f32.mrb[41].mxu0 }
 0x21b   : > { %v3077_v41 = vadd.f32 %v2562_v40, %v2280_v39  ;;  %v2282_v42 = vpop.f32.mrb[42].mxu1  ;;  %v2564_v43 = vpop.f32.mrb[42].mxu0  ;;  %v2706_v24 = vld [vmem:[%s4181_s3 + $0x120] sm:$0xff] (%p3497_p6) }
 0x21c   : > { %2607 = vst [vmem:[%s4181_s3 + $0x140] sm:$0xff] %v3076_v38  ;;  %v2283_v44 = vpop.f32.mrb[43].mxu1  ;;  %v2565_v45 = vpop.f32.mrb[43].mxu0  ;;  %v2708_v25 = vld [vmem:[%s4181_s3 + $0x128] sm:$0xff] (%p3497_p6)  ;;  %2707 = vst [vmem:[%s4234_s5 + $0x240] sm:$0xff] (%p3497_p6), %v2706_v24 }
 0x21d   : > { %2608 = vst [vmem:[%s4181_s3 + $0x148] sm:$0xff] %v3077_v41  ;;  %v2710_v26 = vld [vmem:[%s4181_s3 + $0x130] sm:$0xff] (%p3497_p6)  ;;  %2709 = vst [vmem:[%s4234_s5 + $0x248] sm:$0xff] (%p3497_p6), %v2708_v25 }
 0x21e   : > { %2711 = vst [vmem:[%s4234_s5 + $0x260] sm:$0xff] %v2710_v26  ;;  %v2712_v27 = vld [vmem:[%s4181_s3 + $0x138] sm:$0xff] }
 0x21f   : > { %2713 = vst [vmem:[%s4234_s5 + $0x268] sm:$0xff] %v2712_v27 }
 0x223   : > { %v2714_v28 = vld [vmem:[%s4181_s3 + $0x140] sm:$0xff] }
 0x224   : > { %v2716_v29 = vld [vmem:[%s4181_s3 + $0x148] sm:$0xff]  ;;  %2715 = vst [vmem:[%s4234_s5 + $0x280] sm:$0xff] %v2714_v28 }
 0x225   : > { %2717 = vst [vmem:[%s4234_s5 + $0x288] sm:$0xff] %v2716_v29 }
 0x226 PF: > { %s12_s13 = sadd.s32 1, %s3445_s13   ;;  %s4336_s9 = smov %s3433_s10 }
 0x227   : > { %p9_p11 = scmp.ge.s32.totalorder %s12_s13, 4   ;;  %s4337_s10 = smov %s3502_s19 }
 0x228   : > { %s4338_s11 = smov %s3441_s12  ;;  %s4339_s12 = smov %s4341_s14 }
 0x229   :  { %11 = sbr.rel (!%p9_p11) target bundleno = 3 (0x3), region = 127 }

// kernel: generator_forward.21
= control target key start
LH: loop header
LB: loop body
LE: loop exit
PB: predicated region body
PF: predicated region fallthrough
CT: control target
= control target key end

     0   :  { %v89_v0 = vlaneseq  ;;  %s1443_s0 = inlined_call_operand.vmem [shape: f32[512,128], index: 0, kind: input, shape index: {}]   ;;  %s1444_s1 = inlined_call_operand.vmem [shape: f32[2,128], index: 1, kind: input, shape index: {}]   ;;  %s1445_s2 = inlined_call_operand.vmem [shape: f32[1,128], index: 2, kind: input, shape index: {}]   ;;  %s1446_s3 = inlined_call_operand.vmem [shape: f32[1,128], index: 3, kind: input, shape index: {}]   ;;  %s1447_s4 = inlined_call_operand.vmem [shape: f32[512,128], index: 4, kind: output, shape index: {}]  }
   0x1   :  { %v17_v1 = vld [vmem:[%s1444_s1] sm:$0x1]  ;;  %v19_v2 = vld [vmem:[%s1444_s1 + $0x1] sm:$0x1]  ;;  %v474_v7 = vld [vmem:[%s1443_s0 + $0x8] sm:$0xff] }
   0x2   :  { %v18_v3 = vmul.f32 0.001953125, %v17_v1  ;;  %v20_v4 = vmul.f32 0.001953125, %v19_v2  ;;  %v464_v5 = vshrl.u32 %v89_v0, 7  ;;  %v469_v6 = vld [vmem:[%s1443_s0] sm:$0xff]  ;;  %v479_v8 = vld [vmem:[%s1443_s0 + $0x10] sm:$0xff]  ;;  %v485_v11 = vld [vmem:[%s1443_s0 + $0x18] sm:$0xff] }
   0x3   :  { %v490_v12 = vld [vmem:[%s1443_s0 + $0x20] sm:$0xff]  ;;  %v495_v13 = vld [vmem:[%s1443_s0 + $0x28] sm:$0xff]  ;;  %v500_v14 = vld [vmem:[%s1443_s0 + $0x30] sm:$0xff] }
   0x4   :  { %v21_v9 = vmul.f32 %v18_v3, %v18_v3  ;;  %v1448_v10 = vsub.s32 0, %v464_v5  ;;  %v505_v15 = vld [vmem:[%s1443_s0 + $0x38] sm:$0xff]  ;;  %v510_v16 = vld [vmem:[%s1443_s0 + $0x40] sm:$0xff]  ;;  %v515_v17 = vld [vmem:[%s1443_s0 + $0x48] sm:$0xff]  ;;  %v1480_v33 = vsub.s32 0, %v464_v5 }
   0x5   :  { %v524_v20 = vld [vmem:[%s1443_s0 + $0x50] sm:$0xff]  ;;  %v529_v21 = vld [vmem:[%s1443_s0 + $0x58] sm:$0xff]  ;;  %v534_v22 = vld [vmem:[%s1443_s0 + $0x60] sm:$0xff] }
   0x6   :  { %v22_v18 = vsub.f32 %v20_v4, %v21_v9  ;;  %v519_v19 = vrot.slane %v18_v3, %v1448_v10  ;;  %v539_v23 = vld [vmem:[%s1443_s0 + $0x68] sm:$0xff]  ;;  %v544_v24 = vld [vmem:[%s1443_s0 + $0x70] sm:$0xff]  ;;  %v549_v25 = vld [vmem:[%s1443_s0 + $0x78] sm:$0xff] }
   0x7   :  { %v560_v30 = vld [vmem:[%s1443_s0 + $0x80] sm:$0xff]  ;;  %v565_v31 = vld [vmem:[%s1443_s0 + $0x88] sm:$0xff]  ;;  %v570_v32 = vld [vmem:[%s1443_s0 + $0x90] sm:$0xff] }
   0x8   :  { %v23_v26 = vadd.f32 1e-05, %v22_v18  ;;  %v583_v37 = vld [vmem:[%s1443_s0 + $0x98] sm:$0xff]  ;;  %v588_v38 = vld [vmem:[%s1443_s0 + $0xa0] sm:$0xff]  ;;  %v593_v39 = vld [vmem:[%s1443_s0 + $0xa8] sm:$0xff]  ;;  %v1487_v34 = vsub.f32 %v485_v11, %v519_v19  ;;  %v1491_v11 = vsub.f32 %v505_v15, %v519_v19 }
   0x9   :  { %v604_v43 = vld [vmem:[%s1443_s0 + $0xb0] sm:$0xff]  ;;  %v609_v44 = vld [vmem:[%s1443_s0 + $0xb8] sm:$0xff]  ;;  %v614_v45 = vld [vmem:[%s1443_s0 + $0xc0] sm:$0xff] }
   0xa   :  { %431 = vrsqrt.f32 %v23_v26  ;;  %v627_v50 = vld [vmem:[%s1443_s0 + $0xc8] sm:$0xff]  ;;  %v632_v51 = vld [vmem:[%s1443_s0 + $0xd0] sm:$0xff]  ;;  %v637_v52 = vld [vmem:[%s1443_s0 + $0xd8] sm:$0xff] }
   0xb   :  { %v650_v57 = vld [vmem:[%s1443_s0 + $0xe0] sm:$0xff]  ;;  %v655_v58 = vld [vmem:[%s1443_s0 + $0xe8] sm:$0xff]  ;;  %v660_v59 = vld [vmem:[%s1443_s0 + $0xf0] sm:$0xff] }
   0xc   :  { %v673_v0 = vld [vmem:[%s1443_s0 + $0xf8] sm:$0xff]  ;;  %v678_v1 = vld [vmem:[%s1443_s0 + $0x100] sm:$0xff]  ;;  %v683_v2 = vld [vmem:[%s1443_s0 + $0x108] sm:$0xff] }
   0xd   :  { %v696_v26 = vld [vmem:[%s1443_s0 + $0x110] sm:$0xff]  ;;  %v701_v63 = vld [vmem:[%s1443_s0 + $0x118] sm:$0xff]  ;;  %v706_v4 = vld [vmem:[%s1443_s0 + $0x120] sm:$0xff] }
   0xe   :  { %v719_v61 = vld [vmem:[%s1443_s0 + $0x128] sm:$0xff]  ;;  %v724_v60 = vld [vmem:[%s1443_s0 + $0x130] sm:$0xff]  ;;  %v729_v18 = vld [vmem:[%s1443_s0 + $0x138] sm:$0xff] }
   0xf   :  { %v157_v3 = vld [vmem:[%s1445_s2] sm:$0x1]  ;;  %v750_v53 = vld [vmem:[%s1443_s0 + $0x148] sm:$0xff]  ;;  %v755_v9 = vld [vmem:[%s1443_s0 + $0x150] sm:$0xff] }
  0x10   :  { %v745_v54 = vld [vmem:[%s1443_s0 + $0x140] sm:$0xff]  ;;  %v768_v48 = vld [vmem:[%s1443_s0 + $0x158] sm:$0xff]  ;;  %v778_v55 = vld [vmem:[%s1443_s0 + $0x168] sm:$0xff] }
  0x11   :  { %v773_v47 = vld [vmem:[%s1443_s0 + $0x160] sm:$0xff]  ;;  %v791_v42 = vld [vmem:[%s1443_s0 + $0x170] sm:$0xff]  ;;  %v796_v41 = vld [vmem:[%s1443_s0 + $0x178] sm:$0xff] }
  0x12   :  { %1466 = vst [vmem:[#allocation2_spill] sm:$0xff] %v796_v41  ;;  %v801_v49 = vld [vmem:[%s1443_s0 + $0x180] sm:$0xff]  ;;  %v814_v36 = vld [vmem:[%s1443_s0 + $0x188] sm:$0xff]  ;;  %v819_v35 = vld [vmem:[%s1443_s0 + $0x190] sm:$0xff] }
  0x13   :  { %1467 = vst [vmem:[#allocation3_spill] sm:$0xff] %v801_v49  ;;  %1468 = vst [vmem:[#allocation4_spill] sm:$0xff] %v814_v36  ;;  %v824_v46 = vld [vmem:[%s1443_s0 + $0x198] sm:$0xff]  ;;  %v837_v29 = vld [vmem:[%s1443_s0 + $0x1a0] sm:$0xff] }
  0x14   :  { %1469 = vst [vmem:[#allocation5_spill] sm:$0xff] %v819_v35  ;;  %1470 = vst [vmem:[#allocation6_spill] sm:$0xff] %v824_v46  ;;  %v432_v56 = vpop.eup %431  ;;  %v842_v28 = vld [vmem:[%s1443_s0 + $0x1a8] sm:$0xff]  ;;  %v847_v40 = vld [vmem:[%s1443_s0 + $0x1b0] sm:$0xff] }
  0x15   :  { %1471 = vst [vmem:[#allocation7_spill] sm:$0xff] %v837_v29  ;;  %1472 = vst [vmem:[#allocation8_spill] sm:$0xff] %v842_v28  ;;  %v158_v62 = vmul.f32 %v432_v56, %v157_v3  ;;  %v858_v10 = vld [vmem:[%s1443_s0 + $0x1b8] sm:$0xff]  ;;  %v863_v36 = vld [vmem:[%s1443_s0 + $0x1c0] sm:$0xff]  ;;  %v1485_v28 = vsub.f32 %v474_v7, %v519_v19  ;;  %v1489_v7 = vsub.f32 %v495_v13, %v519_v19 }
  0x16   :  { %1473 = vst [vmem:[#allocation9_spill] sm:$0xff] %v847_v40  ;;  %1474 = vst [vmem:[#allocation10_spill] sm:$0xff] %v858_v10  ;;  %v868_v56 = vld [vmem:[%s1443_s0 + $0x1c8] sm:$0xff]  ;;  %v881_v29 = vld [vmem:[%s1443_s0 + $0x1d0] sm:$0xff]  ;;  %v1486_v10 = vsub.f32 %v479_v8, %v519_v19  ;;  %v1490_v8 = vsub.f32 %v500_v14, %v519_v19 }
  0x17   :  { %1475 = vst [vmem:[#allocation11_spill] sm:$0xff] %v863_v36  ;;  %1476 = vst [vmem:[#allocation12_spill] sm:$0xff] %v868_v56  ;;  %v886_v46 = vld [vmem:[%s1443_s0 + $0x1d8] sm:$0xff]  ;;  %v891_v27 = vld [vmem:[%s1443_s0 + $0x1e0] sm:$0xff]  ;;  %v895_v3 = vrot.slane %v158_v62, %v1480_v33 }
  0x18   :  { %1477 = vst [vmem:[#allocation13_spill] sm:$0xff] %v881_v29  ;;  %1478 = vst [vmem:[#allocation14_spill] sm:$0xff] %v886_v46  ;;  %v906_v40 = vld [vmem:[%s1443_s0 + $0x1e8] sm:$0xff]  ;;  %v911_v5 = vld [vmem:[%s1443_s0 + $0x1f0] sm:$0xff]  ;;  %v1484_v29 = vsub.f32 %v469_v6, %v519_v19  ;;  %v1488_v6 = vsub.f32 %v490_v12, %v519_v19 }
  0x19   :  { %1479 = vst [vmem:[#allocation15_spill] sm:$0xff] %v891_v27  ;;  %1481 = vst [vmem:[#allocation16_spill] sm:$0xff] %v906_v40  ;;  %v916_v33 = vld [vmem:[%s1443_s0 + $0x1f8] sm:$0xff]  ;;  %v921_v62 = vld [vmem:[%s1446_s3] ss:$0 sm:$0xff]  ;;  %v164_v35 = vmul.f32 %v895_v3, %v1485_v28  ;;  %v165_v36 = vmul.f32 %v895_v3, %v1486_v10  ;;  %v166_v46 = vmul.f32 %v895_v3, %v1487_v34 }
  0x1a   :  { %1482 = vst [vmem:[#allocation17_spill] sm:$0xff] %v911_v5  ;;  %1483 = vst [vmem:[#allocation18_spill] sm:$0xff] %v916_v33  ;;  %v163_v56 = vmul.f32 %v895_v3, %v1484_v29  ;;  %v167_v29 = vmul.f32 %v895_v3, %v1488_v6  ;;  %v168_v28 = vmul.f32 %v895_v3, %v1489_v7 }
  0x1b   :  { %v169_v10 = vmul.f32 %v895_v3, %v1490_v8  ;;  %v170_v34 = vmul.f32 %v895_v3, %v1491_v11  ;;  %v235_v12 = vadd.f32 %v921_v62, %v164_v35  ;;  %v236_v6 = vadd.f32 %v921_v62, %v165_v36 }
  0x1c   :  { %v234_v33 = vadd.f32 %v921_v62, %v163_v56  ;;  %v237_v13 = vadd.f32 %v921_v62, %v166_v46  ;;  %v238_v7 = vadd.f32 %v921_v62, %v167_v29  ;;  %v239_v5 = vadd.f32 %v921_v62, %v168_v28 }
  0x1d   :  { %v240_v14 = vadd.f32 %v921_v62, %v169_v10  ;;  %v241_v8 = vadd.f32 %v921_v62, %v170_v34  ;;  %v299_v15 = vmax.f32 %v235_v12, 0.0  ;;  %v300_v27 = vmax.f32 %v236_v6, 0.0 }
  0x1e   :  { %v298_v40 = vmax.f32 %v234_v33, 0.0  ;;  %v301_v11 = vmax.f32 %v237_v13, 0.0  ;;  %v302_v49 = vmax.f32 %v238_v7, 0.0  ;;  %v303_v56 = vmax.f32 %v239_v5, 0.0 }
  0x1f   :  { %v304_v41 = vmax.f32 %v240_v14, 0.0  ;;  %v305_v35 = vmax.f32 %v241_v8, 0.0  ;;  %363 = vst [vmem:[%s1447_s4 + $0x8] sm:$0xff] %v299_v15  ;;  %364 = vst [vmem:[%s1447_s4 + $0x10] sm:$0xff] %v300_v27  ;;  %v1492_v36 = vsub.f32 %v510_v16, %v519_v19  ;;  %v1494_v33 = vsub.f32 %v524_v20, %v519_v19 }
  0x20   :  { %362 = vst [vmem:[%s1447_s4] sm:$0xff] %v298_v40  ;;  %365 = vst [vmem:[%s1447_s4 + $0x18] sm:$0xff] %v301_v11  ;;  %v1493_v40 = vsub.f32 %v515_v17, %v519_v19  ;;  %v1495_v27 = vsub.f32 %v529_v21, %v519_v19  ;;  %v1496_v16 = vsub.f32 %v534_v22, %v519_v19 }
  0x21   :  { %v171_v46 = vmul.f32 %v895_v3, %v1492_v36  ;;  %v173_v29 = vmul.f32 %v895_v3, %v1494_v33  ;;  %366 = vst [vmem:[%s1447_s4 + $0x20] sm:$0xff] %v302_v49  ;;  %367 = vst [vmem:[%s1447_s4 + $0x28] sm:$0xff] %v303_v56  ;;  %v1497_v20 = vsub.f32 %v539_v23, %v519_v19 }
  0x22   :  { %v172_v5 = vmul.f32 %v895_v3, %v1493_v40  ;;  %v174_v28 = vmul.f32 %v895_v3, %v1495_v27  ;;  %368 = vst [vmem:[%s1447_s4 + $0x30] sm:$0xff] %v304_v41  ;;  %369 = vst [vmem:[%s1447_s4 + $0x38] sm:$0xff] %v305_v35  ;;  %v175_v17 = vmul.f32 %v895_v3, %v1496_v16 }
  0x23   :  { %v176_v21 = vmul.f32 %v895_v3, %v1497_v20  ;;  %v1498_v49 = vsub.f32 %v544_v24, %v519_v19  ;;  %v1499_v41 = vsub.f32 %v549_v25, %v519_v19  ;;  %v242_v12 = vadd.f32 %v921_v62, %v171_v46 }
  0x24   :  { %v243_v22 = vadd.f32 %v921_v62, %v172_v5  ;;  %v244_v6 = vadd.f32 %v921_v62, %v173_v29  ;;  %v245_v23 = vadd.f32 %v921_v62, %v174_v28  ;;  %v246_v13 = vadd.f32 %v921_v62, %v175_v17 }
  0x25   :  { %v177_v10 = vmul.f32 %v895_v3, %v1498_v49  ;;  %v178_v34 = vmul.f32 %v895_v3, %v1499_v41  ;;  %v247_v7 = vadd.f32 %v921_v62, %v176_v21  ;;  %v306_v8 = vmax.f32 %v242_v12, 0.0 }
  0x26   :  { %v307_v25 = vmax.f32 %v243_v22, 0.0  ;;  %v308_v15 = vmax.f32 %v244_v6, 0.0  ;;  %v309_v11 = vmax.f32 %v245_v23, 0.0  ;;  %v310_v56 = vmax.f32 %v246_v13, 0.0 }
  0x27   :  { %v248_v24 = vadd.f32 %v921_v62, %v177_v10  ;;  %v249_v14 = vadd.f32 %v921_v62, %v178_v34  ;;  %v311_v35 = vmax.f32 %v247_v7, 0.0  ;;  %370 = vst [vmem:[%s1447_s4 + $0x40] sm:$0xff] %v306_v8  ;;  %v1500_v40 = vsub.f32 %v560_v30, %v519_v19 }
  0x28   :  { %371 = vst [vmem:[%s1447_s4 + $0x48] sm:$0xff] %v307_v25  ;;  %372 = vst [vmem:[%s1447_s4 + $0x50] sm:$0xff] %v308_v15  ;;  %v1501_v33 = vsub.f32 %v565_v31, %v519_v19  ;;  %v1502_v27 = vsub.f32 %v570_v32, %v519_v19  ;;  %v1503_v16 = vsub.f32 %v583_v37, %v519_v19 }
  0x29   :  { %v312_v36 = vmax.f32 %v248_v24, 0.0  ;;  %v313_v46 = vmax.f32 %v249_v14, 0.0  ;;  %373 = vst [vmem:[%s1447_s4 + $0x58] sm:$0xff] %v309_v11  ;;  %v179_v5 = vmul.f32 %v895_v3, %v1500_v40  ;;  %374 = vst [vmem:[%s1447_s4 + $0x60] sm:$0xff] %v310_v56  ;;  %v1504_v30 = vsub.f32 %v588_v38, %v519_v19 }
  0x2a   :  { %v180_v29 = vmul.f32 %v895_v3, %v1501_v33  ;;  %v181_v28 = vmul.f32 %v895_v3, %v1502_v27  ;;  %v182_v17 = vmul.f32 %v895_v3, %v1503_v16  ;;  %375 = vst [vmem:[%s1447_s4 + $0x68] sm:$0xff] %v311_v35  ;;  %v1505_v32 = vsub.f32 %v593_v39, %v519_v19 }
  0x2b   :  { %376 = vst [vmem:[%s1447_s4 + $0x70] sm:$0xff] %v312_v36  ;;  %377 = vst [vmem:[%s1447_s4 + $0x78] sm:$0xff] %v313_v46  ;;  %v183_v31 = vmul.f32 %v895_v3, %v1504_v30  ;;  %v1506_v20 = vsub.f32 %v604_v43, %v519_v19  ;;  %v1507_v49 = vsub.f32 %v609_v44, %v519_v19 }
  0x2c   :  { %v184_v37 = vmul.f32 %v895_v3, %v1505_v32  ;;  %v250_v41 = vadd.f32 %v921_v62, %v179_v5  ;;  %v251_v38 = vadd.f32 %v921_v62, %v180_v29  ;;  %v252_v34 = vadd.f32 %v921_v62, %v181_v28 }
  0x2d   :  { %v185_v21 = vmul.f32 %v895_v3, %v1506_v20  ;;  %v186_v10 = vmul.f32 %v895_v3, %v1507_v49  ;;  %v253_v39 = vadd.f32 %v921_v62, %v182_v17  ;;  %v254_v12 = vadd.f32 %v921_v62, %v183_v31 }
  0x2e   :  { %v255_v22 = vadd.f32 %v921_v62, %v184_v37  ;;  %v314_v23 = vmax.f32 %v250_v41, 0.0  ;;  %v315_v44 = vmax.f32 %v251_v38, 0.0  ;;  %v316_v13 = vmax.f32 %v252_v34, 0.0 }
  0x2f   :  { %v256_v43 = vadd.f32 %v921_v62, %v185_v21  ;;  %v257_v6 = vadd.f32 %v921_v62, %v186_v10  ;;  %v317_v7 = vmax.f32 %v253_v39, 0.0  ;;  %v318_v24 = vmax.f32 %v254_v12, 0.0 }
  0x30   :  { %v319_v14 = vmax.f32 %v255_v22, 0.0  ;;  %378 = vst [vmem:[%s1447_s4 + $0x80] sm:$0xff] %v314_v23  ;;  %379 = vst [vmem:[%s1447_s4 + $0x88] sm:$0xff] %v315_v44  ;;  %v1508_v15 = vsub.f32 %v614_v45, %v519_v19  ;;  %v1509_v56 = vsub.f32 %v627_v50, %v519_v19  ;;  %v1510_v36 = vsub.f32 %v632_v51, %v519_v19 }
  0x31   :  { %v320_v8 = vmax.f32 %v256_v43, 0.0  ;;  %v321_v25 = vmax.f32 %v257_v6, 0.0  ;;  %380 = vst [vmem:[%s1447_s4 + $0x90] sm:$0xff] %v316_v13  ;;  %381 = vst [vmem:[%s1447_s4 + $0x98] sm:$0xff] %v317_v7  ;;  %v1511_v40 = vsub.f32 %v637_v52, %v519_v19  ;;  %v1512_v45 = vsub.f32 %v650_v57, %v519_v19 }
  0x32   :  { %v187_v11 = vmul.f32 %v895_v3, %v1508_v15  ;;  %v188_v35 = vmul.f32 %v895_v3, %v1509_v56  ;;  %v189_v46 = vmul.f32 %v895_v3, %v1510_v36  ;;  %382 = vst [vmem:[%s1447_s4 + $0xa0] sm:$0xff] %v318_v24  ;;  %383 = vst [vmem:[%s1447_s4 + $0xa8] sm:$0xff] %v319_v14 }
  0x33   :  { %v190_v5 = vmul.f32 %v895_v3, %v1511_v40  ;;  %384 = vst [vmem:[%s1447_s4 + $0xb0] sm:$0xff] %v320_v8  ;;  %385 = vst [vmem:[%s1447_s4 + $0xb8] sm:$0xff] %v321_v25  ;;  %v191_v50 = vmul.f32 %v895_v3, %v1512_v45  ;;  %v1513_v51 = vsub.f32 %v655_v58, %v519_v19 }
  0x34   :  { %v1514_v33 = vsub.f32 %v660_v59, %v519_v19  ;;  %v1515_v27 = vsub.f32 %v673_v0, %v519_v19  ;;  %v258_v16 = vadd.f32 %v921_v62, %v187_v11  ;;  %v259_v57 = vadd.f32 %v921_v62, %v188_v35 }
  0x35   :  { %v192_v52 = vmul.f32 %v895_v3, %v1513_v51  ;;  %v260_v17 = vadd.f32 %v921_v62, %v189_v46  ;;  %v261_v58 = vadd.f32 %v921_v62, %v190_v5  ;;  %v262_v30 = vadd.f32 %v921_v62, %v191_v50 }
  0x36   :  { %v193_v29 = vmul.f32 %v895_v3, %v1514_v33  ;;  %v194_v28 = vmul.f32 %v895_v3, %v1515_v27  ;;  %v322_v37 = vmax.f32 %v258_v16, 0.0  ;;  %v323_v0 = vmax.f32 %v259_v57, 0.0 }
  0x37   :  { %v263_v31 = vadd.f32 %v921_v62, %v192_v52  ;;  %v324_v20 = vmax.f32 %v260_v17, 0.0  ;;  %v325_v21 = vmax.f32 %v261_v58, 0.0  ;;  %v326_v49 = vmax.f32 %v262_v30, 0.0  ;;  %v1531_v30 = vld [vmem:[#allocation2_spill] sm:$0xff] }
  0x38   :  { %v264_v59 = vadd.f32 %v921_v62, %v193_v29  ;;  %v265_v32 = vadd.f32 %v921_v62, %v194_v28  ;;  %386 = vst [vmem:[%s1447_s4 + $0xc0] sm:$0xff] %v322_v37  ;;  %387 = vst [vmem:[%s1447_s4 + $0xc8] sm:$0xff] %v323_v0  ;;  %v1516_v34 = vsub.f32 %v678_v1, %v519_v19 }
  0x39   :  { %v327_v10 = vmax.f32 %v263_v31, 0.0  ;;  %388 = vst [vmem:[%s1447_s4 + $0xd0] sm:$0xff] %v324_v20  ;;  %389 = vst [vmem:[%s1447_s4 + $0xd8] sm:$0xff] %v325_v21  ;;  %v1517_v12 = vsub.f32 %v683_v2, %v519_v19  ;;  %v1518_v43 = vsub.f32 %v696_v26, %v519_v19  ;;  %v1519_v23 = vsub.f32 %v701_v63, %v519_v19 }
  0x3a   :  { %v328_v41 = vmax.f32 %v264_v59, 0.0  ;;  %v329_v38 = vmax.f32 %v265_v32, 0.0  ;;  %v195_v39 = vmul.f32 %v895_v3, %v1516_v34  ;;  %390 = vst [vmem:[%s1447_s4 + $0xe0] sm:$0xff] %v326_v49  ;;  %v1520_v63 = vsub.f32 %v706_v4, %v519_v19 }
  0x3b   :  { %v196_v22 = vmul.f32 %v895_v3, %v1517_v12  ;;  %v197_v6 = vmul.f32 %v895_v3, %v1518_v43  ;;  %v198_v44 = vmul.f32 %v895_v3, %v1519_v23  ;;  %391 = vst [vmem:[%s1447_s4 + $0xe8] sm:$0xff] %v327_v10  ;;  %v1521_v2 = vsub.f32 %v719_v61, %v519_v19  ;;  %v1533_v43 = vld [vmem:[#allocation3_spill] sm:$0xff] }
  0x3c   :  { %392 = vst [vmem:[%s1447_s4 + $0xf0] sm:$0xff] %v328_v41  ;;  %393 = vst [vmem:[%s1447_s4 + $0xf8] sm:$0xff] %v329_v38  ;;  %v199_v1 = vmul.f32 %v895_v3, %v1520_v63  ;;  %v1522_v13 = vsub.f32 %v724_v60, %v519_v19  ;;  %v1523_v24 = vsub.f32 %v729_v18, %v519_v19 }
  0x3d   :  { %v200_v26 = vmul.f32 %v895_v3, %v1521_v2  ;;  %v266_v8 = vadd.f32 %v921_v62, %v195_v39  ;;  %v267_v4 = vadd.f32 %v921_v62, %v196_v22  ;;  %v268_v25 = vadd.f32 %v921_v62, %v197_v6  ;;  %v1537_v2 = vld [vmem:[#allocation5_spill] sm:$0xff] }
  0x3e   :  { %v201_v7 = vmul.f32 %v895_v3, %v1522_v13  ;;  %v202_v14 = vmul.f32 %v895_v3, %v1523_v24  ;;  %v269_v61 = vadd.f32 %v921_v62, %v198_v44  ;;  %v270_v15 = vadd.f32 %v921_v62, %v199_v1  ;;  %v1535_v44 = vld [vmem:[#allocation4_spill] sm:$0xff] }
  0x3f   :  { %v271_v11 = vadd.f32 %v921_v62, %v200_v26  ;;  %v330_v35 = vmax.f32 %v266_v8, 0.0  ;;  %v331_v18 = vmax.f32 %v267_v4, 0.0  ;;  %v332_v36 = vmax.f32 %v268_v25, 0.0  ;;  %v1541_v8 = vld [vmem:[#allocation7_spill] sm:$0xff] }
  0x40   :  { %v272_v60 = vadd.f32 %v921_v62, %v201_v7  ;;  %v273_v56 = vadd.f32 %v921_v62, %v202_v14  ;;  %v333_v46 = vmax.f32 %v269_v61, 0.0  ;;  %v334_v40 = vmax.f32 %v270_v15, 0.0  ;;  %v1539_v7 = vld [vmem:[#allocation6_spill] sm:$0xff]  ;;  %v1543_v61 = vld [vmem:[#allocation8_spill] sm:$0xff] }
  0x41   :  { %v335_v5 = vmax.f32 %v271_v11, 0.0  ;;  %394 = vst [vmem:[%s1447_s4 + $0x100] sm:$0xff] %v330_v35  ;;  %395 = vst [vmem:[%s1447_s4 + $0x108] sm:$0xff] %v331_v18  ;;  %v1524_v51 = vsub.f32 %v745_v54, %v519_v19  ;;  %v1525_v33 = vsub.f32 %v750_v53, %v519_v19  ;;  %v1526_v27 = vsub.f32 %v755_v9, %v519_v19  ;;  %v1547_v18 = vld [vmem:[#allocation10_spill] sm:$0xff] }
  0x42   :  { %v336_v45 = vmax.f32 %v272_v60, 0.0  ;;  %v337_v50 = vmax.f32 %v273_v56, 0.0  ;;  %396 = vst [vmem:[%s1447_s4 + $0x110] sm:$0xff] %v332_v36  ;;  %397 = vst [vmem:[%s1447_s4 + $0x118] sm:$0xff] %v333_v46  ;;  %v1527_v16 = vsub.f32 %v768_v48, %v519_v19  ;;  %v1528_v48 = vsub.f32 %v773_v47, %v519_v19  ;;  %v1545_v60 = vld [vmem:[#allocation9_spill] sm:$0xff] }
  0x43   :  { %v203_v52 = vmul.f32 %v895_v3, %v1524_v51  ;;  %v204_v29 = vmul.f32 %v895_v3, %v1525_v33  ;;  %v205_v28 = vmul.f32 %v895_v3, %v1526_v27  ;;  %398 = vst [vmem:[%s1447_s4 + $0x120] sm:$0xff] %v334_v40  ;;  %399 = vst [vmem:[%s1447_s4 + $0x128] sm:$0xff] %v335_v5 }
  0x44   :  { %v206_v57 = vmul.f32 %v895_v3, %v1527_v16  ;;  %400 = vst [vmem:[%s1447_s4 + $0x130] sm:$0xff] %v336_v45  ;;  %401 = vst [vmem:[%s1447_s4 + $0x138] sm:$0xff] %v337_v50  ;;  %v207_v53 = vmul.f32 %v895_v3, %v1528_v48  ;;  %v1529_v54 = vsub.f32 %v778_v55, %v519_v19 }
  0x45   :  { %v1530_v17 = vsub.f32 %v791_v42, %v519_v19  ;;  %v1532_v31 = vsub.f32 %v1531_v30, %v519_v19  ;;  %v274_v32 = vadd.f32 %v921_v62, %v203_v52  ;;  %v275_v47 = vadd.f32 %v921_v62, %v204_v29 }
  0x46   :  { %v208_v9 = vmul.f32 %v895_v3, %v1529_v54  ;;  %v276_v37 = vadd.f32 %v921_v62, %v205_v28  ;;  %v277_v55 = vadd.f32 %v921_v62, %v206_v57  ;;  %v278_v0 = vadd.f32 %v921_v62, %v207_v53 }
  0x47   :  { %v209_v58 = vmul.f32 %v895_v3, %v1530_v17  ;;  %v210_v59 = vmul.f32 %v895_v3, %v1532_v31  ;;  %v338_v49 = vmax.f32 %v274_v32, 0.0  ;;  %v339_v10 = vmax.f32 %v275_v47, 0.0  ;;  %v1549_v17 = vld [vmem:[#allocation11_spill] sm:$0xff]  ;;  %v1551_v31 = vld [vmem:[#allocation12_spill] sm:$0xff]  ;;  %v1553_v47 = vld [vmem:[#allocation13_spill] sm:$0xff] }
  0x48   :  { %v279_v20 = vadd.f32 %v921_v62, %v208_v9  ;;  %v340_v41 = vmax.f32 %v276_v37, 0.0  ;;  %v341_v38 = vmax.f32 %v277_v55, 0.0  ;;  %v342_v34 = vmax.f32 %v278_v0, 0.0  ;;  %v1555_v0 = vld [vmem:[#allocation14_spill] sm:$0xff] }
  0x49   :  { %v280_v42 = vadd.f32 %v921_v62, %v209_v58  ;;  %v281_v21 = vadd.f32 %v921_v62, %v210_v59  ;;  %402 = vst [vmem:[%s1447_s4 + $0x140] sm:$0xff] %v338_v49  ;;  %403 = vst [vmem:[%s1447_s4 + $0x148] sm:$0xff] %v339_v10  ;;  %v1534_v6 = vsub.f32 %v1533_v43, %v519_v19  ;;  %v1563_v43 = vld [vmem:[#allocation18_spill] sm:$0xff] }
  0x4a   :  { %v343_v39 = vmax.f32 %v279_v20, 0.0  ;;  %404 = vst [vmem:[%s1447_s4 + $0x150] sm:$0xff] %v340_v41  ;;  %405 = vst [vmem:[%s1447_s4 + $0x158] sm:$0xff] %v341_v38  ;;  %v1536_v63 = vsub.f32 %v1535_v44, %v519_v19  ;;  %v1538_v26 = vsub.f32 %v1537_v2, %v519_v19  ;;  %v1540_v24 = vsub.f32 %v1539_v7, %v519_v19  ;;  %v1559_v41 = vld [vmem:[#allocation16_spill] sm:$0xff] }
  0x4b   :  { %v344_v12 = vmax.f32 %v280_v42, 0.0  ;;  %v345_v22 = vmax.f32 %v281_v21, 0.0  ;;  %v211_v23 = vmul.f32 %v895_v3, %v1534_v6  ;;  %406 = vst [vmem:[%s1447_s4 + $0x160] sm:$0xff] %v342_v34  ;;  %v1542_v4 = vsub.f32 %v1541_v8, %v519_v19  ;;  %v1557_v21 = vld [vmem:[#allocation15_spill] sm:$0xff] }
  0x4c   :  { %v212_v1 = vmul.f32 %v895_v3, %v1536_v63  ;;  %v213_v13 = vmul.f32 %v895_v3, %v1538_v26  ;;  %v214_v14 = vmul.f32 %v895_v3, %v1540_v24  ;;  %407 = vst [vmem:[%s1447_s4 + $0x168] sm:$0xff] %v343_v39  ;;  %v1544_v15 = vsub.f32 %v1543_v61, %v519_v19  ;;  %v1561_v39 = vld [vmem:[#allocation17_spill] sm:$0xff] }
  0x4d   :  { %408 = vst [vmem:[%s1447_s4 + $0x170] sm:$0xff] %v344_v12  ;;  %409 = vst [vmem:[%s1447_s4 + $0x178] sm:$0xff] %v345_v22  ;;  %v215_v25 = vmul.f32 %v895_v3, %v1542_v4  ;;  %v1546_v56 = vsub.f32 %v1545_v60, %v519_v19  ;;  %v1548_v36 = vsub.f32 %v1547_v18, %v519_v19 }
  0x4e   :  { %v216_v11 = vmul.f32 %v895_v3, %v1544_v15  ;;  %v282_v40 = vadd.f32 %v921_v62, %v211_v23  ;;  %v283_v5 = vadd.f32 %v921_v62, %v212_v1  ;;  %v284_v45 = vadd.f32 %v921_v62, %v213_v13 }
  0x4f   :  { %v217_v35 = vmul.f32 %v895_v3, %v1546_v56  ;;  %v218_v46 = vmul.f32 %v895_v3, %v1548_v36  ;;  %v285_v50 = vadd.f32 %v921_v62, %v214_v14  ;;  %v286_v51 = vadd.f32 %v921_v62, %v215_v25 }
  0x50   :  { %v287_v52 = vadd.f32 %v921_v62, %v216_v11  ;;  %v346_v27 = vmax.f32 %v282_v40, 0.0  ;;  %v347_v28 = vmax.f32 %v283_v5, 0.0  ;;  %v348_v16 = vmax.f32 %v284_v45, 0.0 }
  0x51   :  { %v288_v33 = vadd.f32 %v921_v62, %v217_v35  ;;  %v289_v29 = vadd.f32 %v921_v62, %v218_v46  ;;  %v349_v57 = vmax.f32 %v285_v50, 0.0  ;;  %v350_v48 = vmax.f32 %v286_v51, 0.0 }
  0x52   :  { %v351_v53 = vmax.f32 %v287_v52, 0.0  ;;  %410 = vst [vmem:[%s1447_s4 + $0x180] sm:$0xff] %v346_v27  ;;  %411 = vst [vmem:[%s1447_s4 + $0x188] sm:$0xff] %v347_v28  ;;  %v1550_v58 = vsub.f32 %v1549_v17, %v519_v19  ;;  %v1552_v59 = vsub.f32 %v1551_v31, %v519_v19  ;;  %v1554_v37 = vsub.f32 %v1553_v47, %v519_v19 }
  0x53   :  { %v352_v54 = vmax.f32 %v288_v33, 0.0  ;;  %v353_v9 = vmax.f32 %v289_v29, 0.0  ;;  %412 = vst [vmem:[%s1447_s4 + $0x190] sm:$0xff] %v348_v16  ;;  %413 = vst [vmem:[%s1447_s4 + $0x198] sm:$0xff] %v349_v57  ;;  %v1556_v20 = vsub.f32 %v1555_v0, %v519_v19  ;;  %v1558_v49 = vsub.f32 %v1557_v21, %v519_v19 }
  0x54   :  { %v219_v30 = vmul.f32 %v895_v3, %v1550_v58  ;;  %v220_v32 = vmul.f32 %v895_v3, %v1552_v59  ;;  %v221_v55 = vmul.f32 %v895_v3, %v1554_v37  ;;  %414 = vst [vmem:[%s1447_s4 + $0x1a0] sm:$0xff] %v350_v48  ;;  %415 = vst [vmem:[%s1447_s4 + $0x1a8] sm:$0xff] %v351_v53 }
  0x55   :  { %v222_v42 = vmul.f32 %v895_v3, %v1556_v20  ;;  %416 = vst [vmem:[%s1447_s4 + $0x1b0] sm:$0xff] %v352_v54  ;;  %417 = vst [vmem:[%s1447_s4 + $0x1b8] sm:$0xff] %v353_v9  ;;  %v223_v10 = vmul.f32 %v895_v3, %v1558_v49  ;;  %v1560_v38 = vsub.f32 %v1559_v41, %v519_v19 }
  0x56   :  { %v1562_v12 = vsub.f32 %v1561_v39, %v519_v19  ;;  %v1564_v6 = vsub.f32 %v1563_v43, %v519_v19  ;;  %v290_v44 = vadd.f32 %v921_v62, %v219_v30  ;;  %v291_v63 = vadd.f32 %v921_v62, %v220_v32 }
  0x57   :  { %v224_v34 = vmul.f32 %v895_v3, %v1560_v38  ;;  %v292_v1 = vadd.f32 %v921_v62, %v221_v55  ;;  %v293_v2 = vadd.f32 %v921_v62, %v222_v42  ;;  %v294_v26 = vadd.f32 %v921_v62, %v223_v10 }
  0x58   :  { %v225_v22 = vmul.f32 %v895_v3, %v1562_v12  ;;  %v226_v23 = vmul.f32 %v895_v3, %v1564_v6  ;;  %v354_v14 = vmax.f32 %v290_v44, 0.0  ;;  %v355_v19 = vmax.f32 %v291_v63, 0.0 }
  0x59   :  { %v295_v13 = vadd.f32 %v921_v62, %v224_v34  ;;  %v356_v8 = vmax.f32 %v292_v1, 0.0  ;;  %v357_v3 = vmax.f32 %v293_v2, 0.0  ;;  %v358_v4 = vmax.f32 %v294_v26, 0.0 }
  0x5a   :  { %v296_v7 = vadd.f32 %v921_v62, %v225_v22  ;;  %v297_v24 = vadd.f32 %v921_v62, %v226_v23  ;;  %418 = vst [vmem:[%s1447_s4 + $0x1c0] sm:$0xff] %v354_v14  ;;  %419 = vst [vmem:[%s1447_s4 + $0x1c8] sm:$0xff] %v355_v19 }
  0x5b   :  { %v359_v25 = vmax.f32 %v295_v13, 0.0  ;;  %420 = vst [vmem:[%s1447_s4 + $0x1d0] sm:$0xff] %v356_v8  ;;  %421 = vst [vmem:[%s1447_s4 + $0x1d8] sm:$0xff] %v357_v3 }
  0x5c   :  { %v360_v61 = vmax.f32 %v296_v7, 0.0  ;;  %v361_v15 = vmax.f32 %v297_v24, 0.0  ;;  %422 = vst [vmem:[%s1447_s4 + $0x1e0] sm:$0xff] %v358_v4 }
  0x5d   :  { %423 = vst [vmem:[%s1447_s4 + $0x1e8] sm:$0xff] %v359_v25 }
  0x5e   :  { %424 = vst [vmem:[%s1447_s4 + $0x1f0] sm:$0xff] %v360_v61  ;;  %425 = vst [vmem:[%s1447_s4 + $0x1f8] sm:$0xff] %v361_v15 }

// kernel: generator_forward.22
= control target key start
LH: loop header
LB: loop body
LE: loop exit
PB: predicated region body
PF: predicated region fallthrough
CT: control target
= control target key end

     0   :  { %s1977_s9 = smov 0   ;;  %s1979_s10 = smov 0   ;;  %s2344_s0 = inlined_call_operand.vmem [shape: bf16[768,512], index: 0, kind: input, shape index: {}]   ;;  %s2345_s1 = inlined_call_operand.vmem [shape: bf16[512,256], index: 1, kind: input, shape index: {}]   ;;  %s2346_s2 = inlined_call_operand.vmem [shape: f32[768,256], index: 2, kind: output, shape index: {}]  }
   0x1   :  { %s1981_s11 = smov 0  }
   0x2 LB: > { %s24_s12 = sadd.s32 1, %s1956_s10  ;;  %p1519_p0 = scmp.ge.s32.totalorder %s1960_s11, 1  ;;  %s1960_s11 = sphi %s1981_s11, %s12_s11   ;;  %s1956_s10 = sphi %s1979_s10, %s2348_s10   ;;  %s1952_s9 = sphi %s1977_s9, %s2347_s9  }
   0x3   : > { %p26_p1 = scmp.ge.s32.totalorder %s24_s12, 3  ;;  %p139_p2 = scmp.lt.s32.totalorder %s1960_s11, 4 }
   0x5   : > { %s2350_s12 = smov (%p26_p1, %s24_s12), 0  ;;  %p140_p3 = pnand %p1519_p0, %p139_p2 }
   0x6   : > { %v1746_v0 = vld [vmem:[%s2345_s1 + $0x4] ss:$8 sps:$4 sm:$0xff] (!%p140_p3)   ;;  %v1750_v2 = vld [vmem:[%s2345_s1] ss:$8 sps:$4 sm:$0xff] (!%p140_p3)   ;;  %v1752_v4 = vld [vmem:[%s2345_s1 + $0x14] ss:$8 sps:$4 sm:$0xff] (!%p140_p3)  }
   0x7   : > { %143 = sbr.rel (%p140_p3) target bundleno = 410 (0x19a), region = 28  ;;  %v1748_v1 = vld [vmem:[%s2345_s1 + $0x104] ss:$8 sps:$4 sm:$0xff] (!%p140_p3)   ;;  %965 = vmatprep.subr.bf16.mxu1 (!%p140_p3), %v1746_v0  ;;  %v1751_v3 = vld [vmem:[%s2345_s1 + $0x100] ss:$8 sps:$4 sm:$0xff] (!%p140_p3)   ;;  %s1520_s25 = sshll.u32 (!%p140_p3), %s1952_s9, 5 }
   0x8   : > { %1158 = vmatprep.subr.bf16.mxu0 (!%p140_p3), %v1748_v1  ;;  %966 = vmatpush1.bf16.msra.mxu1 (!%p140_p3), %v1750_v2  ;;  %v1754_v5 = vld [vmem:[%s2345_s1 + $0x114] ss:$8 sps:$4 sm:$0xff] (!%p140_p3)   ;;  %v1756_v6 = vld [vmem:[%s2345_s1 + $0x10] ss:$8 sps:$4 sm:$0xff] (!%p140_p3)   ;;  %v1758_v8 = vld [vmem:[%s2345_s1 + $0x24] ss:$8 sps:$4 sm:$0xff] (!%p140_p3)  }
   0x9   : > { %1159 = vmatpush1.bf16.msra.mxu0 (!%p140_p3), %v1751_v3  ;;  %967 = vmatprep.subr.bf16.mxu1 (!%p140_p3), %v1752_v4  ;;  %v1757_v7 = vld [vmem:[%s2345_s1 + $0x110] ss:$8 sps:$4 sm:$0xff] (!%p140_p3)   ;;  %v1760_v9 = vld [vmem:[%s2345_s1 + $0x124] ss:$8 sps:$4 sm:$0xff] (!%p140_p3)   ;;  %v1762_v10 = vld [vmem:[%s2345_s1 + $0x20] ss:$8 sps:$4 sm:$0xff] (!%p140_p3)  }
   0xa   : > { %1160 = vmatprep.subr.bf16.mxu0 (!%p140_p3), %v1754_v5  ;;  %v1763_v11 = vld [vmem:[%s2345_s1 + $0x120] ss:$8 sps:$4 sm:$0xff] (!%p140_p3)   ;;  %v1764_v12 = vld [vmem:[%s2345_s1 + $0x34] ss:$8 sps:$4 sm:$0xff] (!%p140_p3)   ;;  %v1768_v14 = vld [vmem:[%s2345_s1 + $0x30] ss:$8 sps:$4 sm:$0xff] (!%p140_p3)  }
   0xb   : > { %v1766_v13 = vld [vmem:[%s2345_s1 + $0x134] ss:$8 sps:$4 sm:$0xff] (!%p140_p3)   ;;  %v1769_v15 = vld [vmem:[%s2345_s1 + $0x130] ss:$8 sps:$4 sm:$0xff] (!%p140_p3)   ;;  %v1770_v16 = vld [vmem:[%s2345_s1 + $0x44] ss:$8 sps:$4 sm:$0xff] (!%p140_p3)  }
   0xc   : > { %968 = vmatpush1.bf16.msra.mxu1 (!%p140_p3), %v1756_v6  ;;  %v1772_v17 = vld [vmem:[%s2345_s1 + $0x144] ss:$8 sps:$4 sm:$0xff] (!%p140_p3)   ;;  %v1774_v18 = vld [vmem:[%s2345_s1 + $0x40] ss:$8 sps:$4 sm:$0xff] (!%p140_p3)   ;;  %v1776_v20 = vld [vmem:[%s2345_s1 + $0x54] ss:$8 sps:$4 sm:$0xff] (!%p140_p3)  }
   0xd   : > { %1161 = vmatpush1.bf16.msra.mxu0 (!%p140_p3), %v1757_v7  ;;  %969 = vmatprep.subr.bf16.mxu1 (!%p140_p3), %v1758_v8  ;;  %v1775_v19 = vld [vmem:[%s2345_s1 + $0x140] ss:$8 sps:$4 sm:$0xff] (!%p140_p3)   ;;  %v1778_v21 = vld [vmem:[%s2345_s1 + $0x154] ss:$8 sps:$4 sm:$0xff] (!%p140_p3)   ;;  %v1780_v22 = vld [vmem:[%s2345_s1 + $0x50] ss:$8 sps:$4 sm:$0xff] (!%p140_p3)  }
   0xe   : > { %1162 = vmatprep.subr.bf16.mxu0 %v1760_v9  ;;  %v1781_v23 = vld [vmem:[%s2345_s1 + $0x150] ss:$8 sps:$4 sm:$0xff]   ;;  %v1782_v24 = vld [vmem:[%s2345_s1 + $0x64] ss:$8 sps:$4 sm:$0xff]   ;;  %v1786_v26 = vld [vmem:[%s2345_s1 + $0x60] ss:$8 sps:$4 sm:$0xff]  }
   0xf   : > { %v1784_v25 = vld [vmem:[%s2345_s1 + $0x164] ss:$8 sps:$4 sm:$0xff]   ;;  %v1787_v27 = vld [vmem:[%s2345_s1 + $0x160] ss:$8 sps:$4 sm:$0xff]   ;;  %v1788_v28 = vld [vmem:[%s2345_s1 + $0x74] ss:$8 sps:$4 sm:$0xff]  }
  0x10   : > { %970 = vmatpush1.bf16.msra.mxu1 %v1762_v10  ;;  %v1790_v29 = vld [vmem:[%s2345_s1 + $0x174] ss:$8 sps:$4 sm:$0xff]   ;;  %v1792_v30 = vld [vmem:[%s2345_s1 + $0x70] ss:$8 sps:$4 sm:$0xff]   ;;  %v1794_v32 = vld [vmem:[%s2345_s1 + $0x84] ss:$8 sps:$4 sm:$0xff]  }
  0x11   : > { %1163 = vmatpush1.bf16.msra.mxu0 %v1763_v11  ;;  %971 = vmatprep.subr.bf16.mxu1 %v1764_v12  ;;  %v1793_v31 = vld [vmem:[%s2345_s1 + $0x170] ss:$8 sps:$4 sm:$0xff]   ;;  %v1796_v33 = vld [vmem:[%s2345_s1 + $0x184] ss:$8 sps:$4 sm:$0xff]   ;;  %p173_p4 = scmp.lt.s32.totalorder %s1520_s25, 95 }
  0x12   : > { %1164 = vmatprep.subr.bf16.mxu0 %v1766_v13  ;;  %v1798_v34 = vld [vmem:[%s2345_s1 + $0x80] ss:$8 sps:$4 sm:$0xff]   ;;  %v1800_v36 = vld [vmem:[%s2345_s1 + $0x94] ss:$8 sps:$4 sm:$0xff]   ;;  %v1804_v38 = vld [vmem:[%s2345_s1 + $0x90] ss:$8 sps:$4 sm:$0xff]  }
  0x13   : > { %v1799_v35 = vld [vmem:[%s2345_s1 + $0x180] ss:$8 sps:$4 sm:$0xff]   ;;  %v1802_v37 = vld [vmem:[%s2345_s1 + $0x194] ss:$8 sps:$4 sm:$0xff]   ;;  %s2352_s25 = smov (!%p173_p4, %s1520_s25), 95 }
  0x14   : > { %972 = vmatpush1.bf16.msra.mxu1 %v1768_v14  ;;  %v1805_v39 = vld [vmem:[%s2345_s1 + $0x190] ss:$8 sps:$4 sm:$0xff]   ;;  %v1806_v40 = vld [vmem:[%s2345_s1 + $0xa4] ss:$8 sps:$4 sm:$0xff]   ;;  %s1656_s26 = sshll.u32 %s2352_s25, 4 }
  0x15   : > { %1165 = vmatpush1.bf16.msra.mxu0 %v1769_v15  ;;  %973 = vmatprep.subr.bf16.mxu1 %v1770_v16  ;;  %v1808_v41 = vld [vmem:[%s2345_s1 + $0x1a4] ss:$8 sps:$4 sm:$0xff]   ;;  %v1810_v42 = vld [vmem:[%s2345_s1 + $0xa0] ss:$8 sps:$4 sm:$0xff]   ;;  %v1812_v44 = vld [vmem:[%s2345_s1 + $0xb4] ss:$8 sps:$4 sm:$0xff]   ;;  %s2141_s6 = scalar_lea.vmem %s2344_s0, %s1656_s26  ;;  %s2269_s3 = scalar_lea.vmem %s2346_s2, %s1656_s26 }
  0x16   : > { %1166 = vmatprep.subr.bf16.mxu0 %v1772_v17  ;;  %v1811_v43 = vld [vmem:[%s2345_s1 + $0x1a0] ss:$8 sps:$4 sm:$0xff]   ;;  %v1814_v45 = vld [vmem:[%s2345_s1 + $0x1b4] ss:$8 sps:$4 sm:$0xff]   ;;  %v1816_v46 = vld [vmem:[%s2345_s1 + $0xb0] ss:$8 sps:$4 sm:$0xff]  }
  0x17   : > { %v1817_v47 = vld [vmem:[%s2345_s1 + $0x1b0] ss:$8 sps:$4 sm:$0xff]   ;;  %v1818_v48 = vld [vmem:[%s2345_s1 + $0xc4] ss:$8 sps:$4 sm:$0xff]   ;;  %v1822_v52 = vld [vmem:[%s2345_s1 + $0xc0] ss:$8 sps:$4 sm:$0xff]  }
  0x18   : > { %974 = vmatpush1.bf16.msra.mxu1 %v1774_v18  ;;  %v1844_v49 = vld [vmem:[%s2141_s6 + $0x4] ss:$16 sps:$4 sm:$0xff]   ;;  %v1847_v51 = vld [vmem:[%s2141_s6 + $0xc] ss:$16 sps:$4 sm:$0xff]   ;;  %v1823_v53 = vld [vmem:[%s2345_s1 + $0x1c0] ss:$8 sps:$4 sm:$0xff]  }
  0x19   : > { %1167 = vmatpush1.bf16.msra.mxu0 %v1775_v19  ;;  %975 = vmatprep.subr.bf16.mxu1 %v1776_v20  ;;  %v1820_v50 = vld [vmem:[%s2345_s1 + $0x1c4] ss:$8 sps:$4 sm:$0xff]   ;;  %v1824_v54 = vld [vmem:[%s2345_s1 + $0xd4] ss:$8 sps:$4 sm:$0xff]   ;;  %v1828_v56 = vld [vmem:[%s2345_s1 + $0xd0] ss:$8 sps:$4 sm:$0xff]  }
  0x1a   : > { %1168 = vmatprep.subr.bf16.mxu0 %v1778_v21  ;;  %997 = vmatprep.mubr.bf16.mxu1 %v1844_v49  ;;  %v1826_v55 = vld [vmem:[%s2345_s1 + $0x1d4] ss:$8 sps:$4 sm:$0xff]   ;;  %v1829_v57 = vld [vmem:[%s2345_s1 + $0x1d0] ss:$8 sps:$4 sm:$0xff]   ;;  %v1830_v58 = vld [vmem:[%s2345_s1 + $0xe4] ss:$8 sps:$4 sm:$0xff]  }
  0x1b   : > { %1190 = vmatprep.mubr.bf16.mxu0 %v1847_v51  ;;  %v1832_v59 = vld [vmem:[%s2345_s1 + $0x1e4] ss:$8 sps:$4 sm:$0xff]   ;;  %v1834_v60 = vld [vmem:[%s2345_s1 + $0xe0] ss:$8 sps:$4 sm:$0xff]   ;;  %v1836_v62 = vld [vmem:[%s2345_s1 + $0xf4] ss:$8 sps:$4 sm:$0xff]  }
  0x1c   : > { %976 = vmatpush1.bf16.msra.mxu1 %v1780_v22  ;;  %v1835_v61 = vld [vmem:[%s2345_s1 + $0x1e0] ss:$8 sps:$4 sm:$0xff]   ;;  %v1838_v63 = vld [vmem:[%s2345_s1 + $0x1f4] ss:$8 sps:$4 sm:$0xff]   ;;  %v1840_v0 = vld [vmem:[%s2345_s1 + $0xf0] ss:$8 sps:$4 sm:$0xff]  }
  0x1d   : > { %1169 = vmatpush1.bf16.msra.mxu0 %v1781_v23  ;;  %977 = vmatprep.subr.bf16.mxu1 %v1782_v24  ;;  %v1841_v1 = vld [vmem:[%s2345_s1 + $0x1f0] ss:$8 sps:$4 sm:$0xff]   ;;  %v1848_v4 = vld [vmem:[%s2141_s6 + $0x24] ss:$16 sps:$4 sm:$0xff]   ;;  %v1850_v5 = vld [vmem:[%s2141_s6 + $0x2c] ss:$16 sps:$4 sm:$0xff]  }
  0x1e   : > { %1170 = vmatprep.subr.bf16.mxu0 %v1784_v25  ;;  %v1842_v2 = vld [vmem:[%s2141_s6] ss:$16 sps:$4 sm:$0xff]   ;;  %v1845_v3 = vld [vmem:[%s2141_s6 + $0x8] ss:$16 sps:$4 sm:$0xff]   ;;  %v1854_v8 = vld [vmem:[%s2141_s6 + $0x44] ss:$16 sps:$4 sm:$0xff]  }
  0x1f   : > { %v1852_v6 = vld [vmem:[%s2141_s6 + $0x20] ss:$16 sps:$4 sm:$0xff]   ;;  %v1853_v7 = vld [vmem:[%s2141_s6 + $0x28] ss:$16 sps:$4 sm:$0xff]   ;;  %v1856_v9 = vld [vmem:[%s2141_s6 + $0x4c] ss:$16 sps:$4 sm:$0xff]  }
  0x20   : > { %978 = vmatpush1.bf16.msra.mxu1 %v1786_v26  ;;  %v1858_v10 = vld [vmem:[%s2141_s6 + $0x40] ss:$16 sps:$4 sm:$0xff]   ;;  %v1859_v11 = vld [vmem:[%s2141_s6 + $0x48] ss:$16 sps:$4 sm:$0xff]   ;;  %v1860_v12 = vld [vmem:[%s2141_s6 + $0x64] ss:$16 sps:$4 sm:$0xff]  }
  0x21   : > { %1171 = vmatpush1.bf16.msra.mxu0 %v1787_v27  ;;  %979 = vmatprep.subr.bf16.mxu1 %v1788_v28  ;;  %v1862_v13 = vld [vmem:[%s2141_s6 + $0x6c] ss:$16 sps:$4 sm:$0xff]   ;;  %v1864_v14 = vld [vmem:[%s2141_s6 + $0x60] ss:$16 sps:$4 sm:$0xff]   ;;  %v1865_v15 = vld [vmem:[%s2141_s6 + $0x68] ss:$16 sps:$4 sm:$0xff]  }
  0x22   : > { %1172 = vmatprep.subr.bf16.mxu0 %v1790_v29  ;;  %v1866_v16 = vld [vmem:[%s2141_s6 + $0x84] ss:$16 sps:$4 sm:$0xff]   ;;  %v1868_v17 = vld [vmem:[%s2141_s6 + $0x8c] ss:$16 sps:$4 sm:$0xff]   ;;  %v1870_v18 = vld [vmem:[%s2141_s6 + $0x80] ss:$16 sps:$4 sm:$0xff]  }
  0x23   : > { %v1871_v19 = vld [vmem:[%s2141_s6 + $0x88] ss:$16 sps:$4 sm:$0xff]   ;;  %v1872_v20 = vld [vmem:[%s2141_s6 + $0xa4] ss:$16 sps:$4 sm:$0xff]   ;;  %v1874_v21 = vld [vmem:[%s2141_s6 + $0xac] ss:$16 sps:$4 sm:$0xff]  }
  0x24   : > { %980 = vmatpush1.bf16.msra.mxu1 %v1792_v30  ;;  %v1876_v22 = vld [vmem:[%s2141_s6 + $0xa0] ss:$16 sps:$4 sm:$0xff]   ;;  %v1877_v23 = vld [vmem:[%s2141_s6 + $0xa8] ss:$16 sps:$4 sm:$0xff]   ;;  %v1878_v24 = vld [vmem:[%s2141_s6 + $0xc4] ss:$16 sps:$4 sm:$0xff]  }
  0x25   : > { %1173 = vmatpush1.bf16.msra.mxu0 %v1793_v31  ;;  %981 = vmatprep.subr.bf16.mxu1 %v1794_v32  ;;  %v1880_v25 = vld [vmem:[%s2141_s6 + $0xcc] ss:$16 sps:$4 sm:$0xff]   ;;  %v1882_v26 = vld [vmem:[%s2141_s6 + $0xc0] ss:$16 sps:$4 sm:$0xff]   ;;  %v1883_v27 = vld [vmem:[%s2141_s6 + $0xc8] ss:$16 sps:$4 sm:$0xff]  }
  0x26   : > { %1174 = vmatprep.subr.bf16.mxu0 %v1796_v33  ;;  %v1884_v28 = vld [vmem:[%s2141_s6 + $0xe4] ss:$16 sps:$4 sm:$0xff]   ;;  %v1886_v29 = vld [vmem:[%s2141_s6 + $0xec] ss:$16 sps:$4 sm:$0xff]   ;;  %v1888_v30 = vld [vmem:[%s2141_s6 + $0xe0] ss:$16 sps:$4 sm:$0xff]  }
  0x27   : > { %v1889_v31 = vld [vmem:[%s2141_s6 + $0xe8] ss:$16 sps:$4 sm:$0xff]   ;;  %v1890_v32 = vld [vmem:[%s2141_s6 + $0x104] ss:$16 sps:$4 sm:$0xff]   ;;  %v1892_v33 = vld [vmem:[%s2141_s6 + $0x10c] ss:$16 sps:$4 sm:$0xff]  }
  0x28   : > { %982 = vmatpush1.bf16.msra.mxu1 %v1798_v34  ;;  %v1894_v34 = vld [vmem:[%s2141_s6 + $0x100] ss:$16 sps:$4 sm:$0xff]   ;;  %v1916_v49 = vld [vmem:[%s2141_s6 + $0x18c] ss:$16 sps:$4 sm:$0xff]   ;;  %v1919_v51 = vld [vmem:[%s2141_s6 + $0x188] ss:$16 sps:$4 sm:$0xff]  }
  0x29   : > { %1175 = vmatpush1.bf16.msra.mxu0 %v1799_v35  ;;  %983 = vmatprep.subr.bf16.mxu1 %v1800_v36  ;;  %v1895_v35 = vld [vmem:[%s2141_s6 + $0x108] ss:$16 sps:$4 sm:$0xff]   ;;  %v1896_v36 = vld [vmem:[%s2141_s6 + $0x124] ss:$16 sps:$4 sm:$0xff]  }
  0x2a   : > { %1176 = vmatprep.subr.bf16.mxu0 %v1802_v37  ;;  %v1898_v37 = vld [vmem:[%s2141_s6 + $0x12c] ss:$16 sps:$4 sm:$0xff]  }
  0x2c   : > { %984 = vmatpush1.bf16.msra.mxu1 %v1804_v38  ;;  %v1900_v38 = vld [vmem:[%s2141_s6 + $0x120] ss:$16 sps:$4 sm:$0xff]  }
  0x2d   : > { %1177 = vmatpush1.bf16.msra.mxu0 %v1805_v39  ;;  %985 = vmatprep.subr.bf16.mxu1 %v1806_v40  ;;  %v1901_v39 = vld [vmem:[%s2141_s6 + $0x128] ss:$16 sps:$4 sm:$0xff]   ;;  %v1902_v40 = vld [vmem:[%s2141_s6 + $0x144] ss:$16 sps:$4 sm:$0xff]  }
  0x2e   : > { %1178 = vmatprep.subr.bf16.mxu0 %v1808_v41  ;;  %v1904_v41 = vld [vmem:[%s2141_s6 + $0x14c] ss:$16 sps:$4 sm:$0xff]  }
  0x30   : > { %986 = vmatpush1.bf16.msra.mxu1 %v1810_v42  ;;  %v1906_v42 = vld [vmem:[%s2141_s6 + $0x140] ss:$16 sps:$4 sm:$0xff]  }
  0x31   : > { %1179 = vmatpush1.bf16.msra.mxu0 %v1811_v43  ;;  %987 = vmatprep.subr.bf16.mxu1 %v1812_v44  ;;  %v1907_v43 = vld [vmem:[%s2141_s6 + $0x148] ss:$16 sps:$4 sm:$0xff]   ;;  %v1908_v44 = vld [vmem:[%s2141_s6 + $0x164] ss:$16 sps:$4 sm:$0xff]  }
  0x32   : > { %1180 = vmatprep.subr.bf16.mxu0 %v1814_v45  ;;  %v1910_v45 = vld [vmem:[%s2141_s6 + $0x16c] ss:$16 sps:$4 sm:$0xff]  }
  0x34   : > { %988 = vmatpush1.bf16.msra.mxu1 %v1816_v46  ;;  %v1912_v46 = vld [vmem:[%s2141_s6 + $0x160] ss:$16 sps:$4 sm:$0xff]  }
  0x35   : > { %1181 = vmatpush1.bf16.msra.mxu0 %v1817_v47  ;;  %989 = vmatprep.subr.bf16.mxu1 %v1818_v48  ;;  %v1913_v47 = vld [vmem:[%s2141_s6 + $0x168] ss:$16 sps:$4 sm:$0xff]   ;;  %v1914_v48 = vld [vmem:[%s2141_s6 + $0x184] ss:$16 sps:$4 sm:$0xff]  }
  0x36   : > { %1182 = vmatprep.subr.bf16.mxu0 %v1820_v50  ;;  %v1918_v50 = vld [vmem:[%s2141_s6 + $0x180] ss:$16 sps:$4 sm:$0xff]  }
  0x38   : > { %990 = vmatpush1.bf16.msra.mxu1 %v1822_v52  ;;  %v1920_v52 = vld [vmem:[%s2141_s6 + $0x1a4] ss:$16 sps:$4 sm:$0xff]  }
  0x39   : > { %1183 = vmatpush1.bf16.msra.mxu0 %v1823_v53  ;;  %991 = vmatprep.subr.bf16.mxu1 %v1824_v54  ;;  %v1922_v53 = vld [vmem:[%s2141_s6 + $0x1ac] ss:$16 sps:$4 sm:$0xff]   ;;  %v1924_v54 = vld [vmem:[%s2141_s6 + $0x1a0] ss:$16 sps:$4 sm:$0xff]  }
  0x3a   : > { %1184 = vmatprep.subr.bf16.mxu0 %v1826_v55  ;;  %v1925_v55 = vld [vmem:[%s2141_s6 + $0x1a8] ss:$16 sps:$4 sm:$0xff]  }
  0x3c   : > { %992 = vmatpush1.bf16.msra.mxu1 %v1828_v56  ;;  %v1926_v56 = vld [vmem:[%s2141_s6 + $0x1c4] ss:$16 sps:$4 sm:$0xff]  }
  0x3d   : > { %1185 = vmatpush1.bf16.msra.mxu0 %v1829_v57  ;;  %993 = vmatprep.subr.bf16.mxu1 %v1830_v58  ;;  %v1928_v57 = vld [vmem:[%s2141_s6 + $0x1cc] ss:$16 sps:$4 sm:$0xff]   ;;  %v1930_v58 = vld [vmem:[%s2141_s6 + $0x1c0] ss:$16 sps:$4 sm:$0xff]  }
  0x3e   : > { %1186 = vmatprep.subr.bf16.mxu0 %v1832_v59  ;;  %v1931_v59 = vld [vmem:[%s2141_s6 + $0x1c8] ss:$16 sps:$4 sm:$0xff]  }
  0x40   : > { %994 = vmatpush1.bf16.msra.mxu1 %v1834_v60  ;;  %v1932_v60 = vld [vmem:[%s2141_s6 + $0x1e4] ss:$16 sps:$4 sm:$0xff]  }
  0x41   : > { %1187 = vmatpush1.bf16.msra.mxu0 %v1835_v61  ;;  %995 = vmatprep.subr.bf16.mxu1 %v1836_v62  ;;  %v1934_v61 = vld [vmem:[%s2141_s6 + $0x1ec] ss:$16 sps:$4 sm:$0xff]   ;;  %v1936_v62 = vld [vmem:[%s2141_s6 + $0x1e0] ss:$16 sps:$4 sm:$0xff]  }
  0x42   : > { %1188 = vmatprep.subr.bf16.mxu0 %v1838_v63  ;;  %v1937_v63 = vld [vmem:[%s2141_s6 + $0x1e8] ss:$16 sps:$4 sm:$0xff]  }
  0x44   : > { %996 = vmatpush1.bf16.msra.mxu1 %v1840_v0 }
  0x45   : > { %1189 = vmatpush1.bf16.msra.mxu0 %v1841_v1 }
  0x47   : > { %998 = vmatmul.mubr.bf16.vlgmr.msra.gmra.mrb[0].mxu1 %v1842_v2 }
  0x48   : > { %1191 = vmatmul.mubr.bf16.vlgmr.msra.gmra.mrb[0].mxu0 %v1845_v3  ;;  %1007 = vmatprep.mubr.bf16.mxu1 %v1848_v4 }
  0x49   : > { %1200 = vmatprep.mubr.bf16.mxu0 %v1850_v5 }
  0x4f   : > { %1008 = vmatmul.mubr.bf16.gmra.mrb[4].mxu1 %v1852_v6 }
  0x50   : > { %1201 = vmatmul.mubr.bf16.gmra.mrb[4].mxu0 %v1853_v7  ;;  %1017 = vmatprep.mubr.bf16.mxu1 %v1854_v8 }
  0x51   : > { %1210 = vmatprep.mubr.bf16.mxu0 %v1856_v9 }
  0x57   : > { %1018 = vmatmul.mubr.bf16.gmra.mrb[8].mxu1 %v1858_v10 }
  0x58   : > { %1211 = vmatmul.mubr.bf16.gmra.mrb[8].mxu0 %v1859_v11  ;;  %1027 = vmatprep.mubr.bf16.mxu1 %v1860_v12 }
  0x59   : > { %1220 = vmatprep.mubr.bf16.mxu0 %v1862_v13 }
  0x5f   : > { %1028 = vmatmul.mubr.bf16.gmra.mrb[12].mxu1 %v1864_v14 }
  0x60   : > { %1221 = vmatmul.mubr.bf16.gmra.mrb[12].mxu0 %v1865_v15  ;;  %1037 = vmatprep.mubr.bf16.mxu1 %v1866_v16 }
  0x61   : > { %1230 = vmatprep.mubr.bf16.mxu0 %v1868_v17 }
  0x67   : > { %1038 = vmatmul.mubr.bf16.gmra.mrb[16].mxu1 %v1870_v18 }
  0x68   : > { %1231 = vmatmul.mubr.bf16.gmra.mrb[16].mxu0 %v1871_v19  ;;  %1047 = vmatprep.mubr.bf16.mxu1 %v1872_v20 }
  0x69   : > { %1240 = vmatprep.mubr.bf16.mxu0 %v1874_v21 }
  0x6f   : > { %1048 = vmatmul.mubr.bf16.gmra.mrb[20].mxu1 %v1876_v22 }
  0x70   : > { %1241 = vmatmul.mubr.bf16.gmra.mrb[20].mxu0 %v1877_v23  ;;  %1057 = vmatprep.mubr.bf16.mxu1 %v1878_v24 }
  0x71   : > { %1250 = vmatprep.mubr.bf16.mxu0 %v1880_v25 }
  0x77   : > { %1058 = vmatmul.mubr.bf16.gmra.mrb[24].mxu1 %v1882_v26 }
  0x78   : > { %1251 = vmatmul.mubr.bf16.gmra.mrb[24].mxu0 %v1883_v27  ;;  %1067 = vmatprep.mubr.bf16.mxu1 %v1884_v28 }
  0x79   : > { %1260 = vmatprep.mubr.bf16.mxu0 %v1886_v29 }
  0x7f   : > { %1068 = vmatmul.mubr.bf16.gmra.mrb[28].mxu1 %v1888_v30 }
  0x80   : > { %1261 = vmatmul.mubr.bf16.gmra.mrb[28].mxu0 %v1889_v31  ;;  %1077 = vmatprep.mubr.bf16.mxu1 %v1890_v32 }
  0x81   : > { %1270 = vmatprep.mubr.bf16.mxu0 %v1892_v33 }
  0x87   : > { %1078 = vmatmul.mubr.bf16.gmra.mrb[32].mxu1 %v1894_v34 }
  0x88   : > { %1271 = vmatmul.mubr.bf16.gmra.mrb[32].mxu0 %v1895_v35  ;;  %1087 = vmatprep.mubr.bf16.mxu1 %v1896_v36 }
  0x89   : > { %1280 = vmatprep.mubr.bf16.mxu0 %v1898_v37 }
  0x8f   : > { %1088 = vmatmul.mubr.bf16.gmra.mrb[36].mxu1 %v1900_v38 }
  0x90   : > { %1281 = vmatmul.mubr.bf16.gmra.mrb[36].mxu0 %v1901_v39  ;;  %1097 = vmatprep.mubr.bf16.mxu1 %v1902_v40 }
  0x91   : > { %1290 = vmatprep.mubr.bf16.mxu0 %v1904_v41 }
  0x97   : > { %1098 = vmatmul.mubr.bf16.gmra.mrb[40].mxu1 %v1906_v42 }
  0x98   : > { %1291 = vmatmul.mubr.bf16.gmra.mrb[40].mxu0 %v1907_v43  ;;  %1107 = vmatprep.mubr.bf16.mxu1 %v1908_v44 }
  0x99   : > { %1300 = vmatprep.mubr.bf16.mxu0 %v1910_v45 }
  0x9f   : > { %1108 = vmatmul.mubr.bf16.gmra.mrb[44].mxu1 %v1912_v46 }
  0xa0   : > { %1301 = vmatmul.mubr.bf16.gmra.mrb[44].mxu0 %v1913_v47  ;;  %1117 = vmatprep.mubr.bf16.mxu1 %v1914_v48 }
  0xa1   : > { %1310 = vmatprep.mubr.bf16.mxu0 %v1916_v49 }
  0xa7   : > { %1118 = vmatmul.mubr.bf16.gmra.mrb[48].mxu1 %v1918_v50 }
  0xa8   : > { %1311 = vmatmul.mubr.bf16.gmra.mrb[48].mxu0 %v1919_v51  ;;  %1127 = vmatprep.mubr.bf16.mxu1 %v1920_v52 }
  0xa9   : > { %1320 = vmatprep.mubr.bf16.mxu0 %v1922_v53 }
  0xaf   : > { %1128 = vmatmul.mubr.bf16.gmra.mrb[52].mxu1 %v1924_v54 }
  0xb0   : > { %1321 = vmatmul.mubr.bf16.gmra.mrb[52].mxu0 %v1925_v55  ;;  %1137 = vmatprep.mubr.bf16.mxu1 %v1926_v56 }
  0xb1   : > { %1330 = vmatprep.mubr.bf16.mxu0 %v1928_v57 }
  0xb7   : > { %1138 = vmatmul.mubr.bf16.gmra.mrb[56].mxu1 %v1930_v58 }
  0xb8   : > { %1331 = vmatmul.mubr.bf16.gmra.mrb[56].mxu0 %v1931_v59  ;;  %1147 = vmatprep.mubr.bf16.mxu1 %v1932_v60 }
  0xb9   : > { %1340 = vmatprep.mubr.bf16.mxu0 %v1934_v61 }
  0xbf   : > { %1148 = vmatmul.mubr.bf16.gmra.mrb[60].mxu1 %v1936_v62 }
  0xc0   : > { %1341 = vmatmul.mubr.bf16.gmra.mrb[60].mxu0 %v1937_v63 }
 0x11a   : > { %v999_v0 = vpop.f32.mrb[0].mxu1 }
 0x11b   : > { %v1192_v1 = vpop.f32.mrb[0].mxu0  ;;  %v1001_v3 = vpop.f32.mrb[1].mxu1 }
 0x11c   : > { %v1193_v2 = vadd.f32 %v1192_v1, %v999_v0  ;;  %v1194_v4 = vpop.f32.mrb[1].mxu0  ;;  %v1003_v6 = vpop.f32.mrb[2].mxu1 }
 0x11d   : > { %v1195_v5 = vadd.f32 %v1194_v4, %v1001_v3  ;;  %v1196_v7 = vpop.f32.mrb[2].mxu0  ;;  %v1005_v9 = vpop.f32.mrb[3].mxu1 }
 0x11e   : > { %1351 = vst [vmem:[%s2269_s3] sm:$0xff] %v1193_v2  ;;  %v1197_v8 = vadd.f32 %v1196_v7, %v1003_v6  ;;  %v1198_v10 = vpop.f32.mrb[3].mxu0 }
 0x11f   : > { %1352 = vst [vmem:[%s2269_s3 + $0x8] sm:$0xff] %v1195_v5  ;;  %v1199_v11 = vadd.f32 %v1198_v10, %v1005_v9 }
 0x120   : > { %1353 = vst [vmem:[%s2269_s3 + $0x10] sm:$0xff] %v1197_v8 }
 0x121   : > { %1354 = vst [vmem:[%s2269_s3 + $0x18] sm:$0xff] %v1199_v11 }
 0x122   : > { %v1009_v12 = vpop.f32.mrb[4].mxu1 }
 0x123   : > { %v1202_v13 = vpop.f32.mrb[4].mxu0  ;;  %v1011_v15 = vpop.f32.mrb[5].mxu1 }
 0x124   : > { %v1203_v14 = vadd.f32 %v1202_v13, %v1009_v12  ;;  %v1204_v16 = vpop.f32.mrb[5].mxu0  ;;  %v1013_v18 = vpop.f32.mrb[6].mxu1 }
 0x125   : > { %v1205_v17 = vadd.f32 %v1204_v16, %v1011_v15  ;;  %v1206_v19 = vpop.f32.mrb[6].mxu0  ;;  %v1015_v21 = vpop.f32.mrb[7].mxu1 }
 0x126   : > { %1355 = vst [vmem:[%s2269_s3 + $0x20] sm:$0xff] %v1203_v14  ;;  %v1207_v20 = vadd.f32 %v1206_v19, %v1013_v18  ;;  %v1208_v22 = vpop.f32.mrb[7].mxu0 }
 0x127   : > { %1356 = vst [vmem:[%s2269_s3 + $0x28] sm:$0xff] %v1205_v17  ;;  %v1209_v23 = vadd.f32 %v1208_v22, %v1015_v21 }
 0x128   : > { %1357 = vst [vmem:[%s2269_s3 + $0x30] sm:$0xff] %v1207_v20 }
 0x129   : > { %1358 = vst [vmem:[%s2269_s3 + $0x38] sm:$0xff] %v1209_v23 }
 0x12a   : > { %v1019_v24 = vpop.f32.mrb[8].mxu1 }
 0x12b   : > { %v1212_v25 = vpop.f32.mrb[8].mxu0  ;;  %v1021_v27 = vpop.f32.mrb[9].mxu1 }
 0x12c   : > { %v1213_v26 = vadd.f32 %v1212_v25, %v1019_v24  ;;  %v1214_v28 = vpop.f32.mrb[9].mxu0  ;;  %v1023_v30 = vpop.f32.mrb[10].mxu1 }
 0x12d   : > { %v1215_v29 = vadd.f32 %v1214_v28, %v1021_v27  ;;  %v1216_v31 = vpop.f32.mrb[10].mxu0  ;;  %v1025_v33 = vpop.f32.mrb[11].mxu1 }
 0x12e   : > { %1359 = vst [vmem:[%s2269_s3 + $0x40] sm:$0xff] %v1213_v26  ;;  %v1217_v32 = vadd.f32 %v1216_v31, %v1023_v30  ;;  %v1218_v34 = vpop.f32.mrb[11].mxu0 }
 0x12f   : > { %1360 = vst [vmem:[%s2269_s3 + $0x48] sm:$0xff] %v1215_v29  ;;  %v1219_v35 = vadd.f32 %v1218_v34, %v1025_v33 }
 0x130   : > { %1361 = vst [vmem:[%s2269_s3 + $0x50] sm:$0xff] %v1217_v32 }
 0x131   : > { %1362 = vst [vmem:[%s2269_s3 + $0x58] sm:$0xff] %v1219_v35 }
 0x132   : > { %v1029_v36 = vpop.f32.mrb[12].mxu1 }
 0x133   : > { %v1222_v37 = vpop.f32.mrb[12].mxu0  ;;  %v1031_v39 = vpop.f32.mrb[13].mxu1 }
 0x134   : > { %v1223_v38 = vadd.f32 %v1222_v37, %v1029_v36  ;;  %v1224_v40 = vpop.f32.mrb[13].mxu0  ;;  %v1033_v42 = vpop.f32.mrb[14].mxu1 }
 0x135   : > { %v1225_v41 = vadd.f32 %v1224_v40, %v1031_v39  ;;  %v1226_v43 = vpop.f32.mrb[14].mxu0  ;;  %v1035_v45 = vpop.f32.mrb[15].mxu1 }
 0x136   : > { %1363 = vst [vmem:[%s2269_s3 + $0x60] sm:$0xff] %v1223_v38  ;;  %v1227_v44 = vadd.f32 %v1226_v43, %v1033_v42  ;;  %v1228_v46 = vpop.f32.mrb[15].mxu0 }
 0x137   : > { %1364 = vst [vmem:[%s2269_s3 + $0x68] sm:$0xff] %v1225_v41  ;;  %v1229_v47 = vadd.f32 %v1228_v46, %v1035_v45 }
 0x138   : > { %1365 = vst [vmem:[%s2269_s3 + $0x70] sm:$0xff] %v1227_v44 }
 0x139   : > { %1366 = vst [vmem:[%s2269_s3 + $0x78] sm:$0xff] %v1229_v47 }
 0x13a   : > { %v1039_v48 = vpop.f32.mrb[16].mxu1 }
 0x13b   : > { %v1232_v49 = vpop.f32.mrb[16].mxu0  ;;  %v1041_v51 = vpop.f32.mrb[17].mxu1 }
 0x13c   : > { %v1233_v50 = vadd.f32 %v1232_v49, %v1039_v48  ;;  %v1234_v52 = vpop.f32.mrb[17].mxu0  ;;  %v1043_v54 = vpop.f32.mrb[18].mxu1 }
 0x13d   : > { %v1235_v53 = vadd.f32 %v1234_v52, %v1041_v51  ;;  %v1236_v55 = vpop.f32.mrb[18].mxu0  ;;  %v1045_v57 = vpop.f32.mrb[19].mxu1 }
 0x13e   : > { %1367 = vst [vmem:[%s2269_s3 + $0x80] sm:$0xff] %v1233_v50  ;;  %v1237_v56 = vadd.f32 %v1236_v55, %v1043_v54  ;;  %v1238_v58 = vpop.f32.mrb[19].mxu0 }
 0x13f   : > { %1368 = vst [vmem:[%s2269_s3 + $0x88] sm:$0xff] %v1235_v53  ;;  %v1239_v59 = vadd.f32 %v1238_v58, %v1045_v57 }
 0x140   : > { %1369 = vst [vmem:[%s2269_s3 + $0x90] sm:$0xff] %v1237_v56 }
 0x141   : > { %1370 = vst [vmem:[%s2269_s3 + $0x98] sm:$0xff] %v1239_v59 }
 0x142   : > { %v1049_v60 = vpop.f32.mrb[20].mxu1 }
 0x143   : > { %v1242_v61 = vpop.f32.mrb[20].mxu0  ;;  %v1051_v63 = vpop.f32.mrb[21].mxu1 }
 0x144   : > { %v1243_v62 = vadd.f32 %v1242_v61, %v1049_v60  ;;  %v1244_v0 = vpop.f32.mrb[21].mxu0  ;;  %v1053_v2 = vpop.f32.mrb[22].mxu1 }
 0x145   : > { %v1245_v1 = vadd.f32 %v1244_v0, %v1051_v63  ;;  %v1246_v3 = vpop.f32.mrb[22].mxu0  ;;  %v1055_v5 = vpop.f32.mrb[23].mxu1 }
 0x146   : > { %1371 = vst [vmem:[%s2269_s3 + $0xa0] sm:$0xff] %v1243_v62  ;;  %v1247_v4 = vadd.f32 %v1246_v3, %v1053_v2  ;;  %v1248_v6 = vpop.f32.mrb[23].mxu0 }
 0x147   : > { %1372 = vst [vmem:[%s2269_s3 + $0xa8] sm:$0xff] %v1245_v1  ;;  %v1249_v7 = vadd.f32 %v1248_v6, %v1055_v5 }
 0x148   : > { %1373 = vst [vmem:[%s2269_s3 + $0xb0] sm:$0xff] %v1247_v4 }
 0x149   : > { %1374 = vst [vmem:[%s2269_s3 + $0xb8] sm:$0xff] %v1249_v7 }
 0x14a   : > { %v1059_v8 = vpop.f32.mrb[24].mxu1 }
 0x14b   : > { %v1252_v9 = vpop.f32.mrb[24].mxu0  ;;  %v1061_v11 = vpop.f32.mrb[25].mxu1 }
 0x14c   : > { %v1253_v10 = vadd.f32 %v1252_v9, %v1059_v8  ;;  %v1254_v12 = vpop.f32.mrb[25].mxu0  ;;  %v1063_v14 = vpop.f32.mrb[26].mxu1 }
 0x14d   : > { %v1255_v13 = vadd.f32 %v1254_v12, %v1061_v11  ;;  %v1256_v15 = vpop.f32.mrb[26].mxu0  ;;  %v1065_v17 = vpop.f32.mrb[27].mxu1 }
 0x14e   : > { %1375 = vst [vmem:[%s2269_s3 + $0xc0] sm:$0xff] %v1253_v10  ;;  %v1257_v16 = vadd.f32 %v1256_v15, %v1063_v14  ;;  %v1258_v18 = vpop.f32.mrb[27].mxu0 }
 0x14f   : > { %1376 = vst [vmem:[%s2269_s3 + $0xc8] sm:$0xff] %v1255_v13  ;;  %v1259_v19 = vadd.f32 %v1258_v18, %v1065_v17 }
 0x150   : > { %1377 = vst [vmem:[%s2269_s3 + $0xd0] sm:$0xff] %v1257_v16 }
 0x151   : > { %1378 = vst [vmem:[%s2269_s3 + $0xd8] sm:$0xff] %v1259_v19 }
 0x152   : > { %v1069_v20 = vpop.f32.mrb[28].mxu1 }
 0x153   : > { %v1262_v21 = vpop.f32.mrb[28].mxu0  ;;  %v1071_v23 = vpop.f32.mrb[29].mxu1 }
 0x154   : > { %v1263_v22 = vadd.f32 %v1262_v21, %v1069_v20  ;;  %v1264_v24 = vpop.f32.mrb[29].mxu0  ;;  %v1073_v26 = vpop.f32.mrb[30].mxu1 }
 0x155   : > { %v1265_v25 = vadd.f32 %v1264_v24, %v1071_v23  ;;  %v1266_v27 = vpop.f32.mrb[30].mxu0  ;;  %v1075_v29 = vpop.f32.mrb[31].mxu1 }
 0x156   : > { %1379 = vst [vmem:[%s2269_s3 + $0xe0] sm:$0xff] %v1263_v22  ;;  %v1267_v28 = vadd.f32 %v1266_v27, %v1073_v26  ;;  %v1268_v30 = vpop.f32.mrb[31].mxu0 }
 0x157   : > { %1380 = vst [vmem:[%s2269_s3 + $0xe8] sm:$0xff] %v1265_v25  ;;  %v1269_v31 = vadd.f32 %v1268_v30, %v1075_v29 }
 0x158   : > { %1381 = vst [vmem:[%s2269_s3 + $0xf0] sm:$0xff] %v1267_v28 }
 0x159   : > { %1382 = vst [vmem:[%s2269_s3 + $0xf8] sm:$0xff] %v1269_v31 }
 0x15a   : > { %v1079_v32 = vpop.f32.mrb[32].mxu1 }
 0x15b   : > { %v1272_v33 = vpop.f32.mrb[32].mxu0  ;;  %v1081_v35 = vpop.f32.mrb[33].mxu1 }
 0x15c   : > { %v1273_v34 = vadd.f32 %v1272_v33, %v1079_v32  ;;  %v1274_v36 = vpop.f32.mrb[33].mxu0  ;;  %v1083_v38 = vpop.f32.mrb[34].mxu1 }
 0x15d   : > { %v1275_v37 = vadd.f32 %v1274_v36, %v1081_v35  ;;  %v1276_v39 = vpop.f32.mrb[34].mxu0  ;;  %v1085_v41 = vpop.f32.mrb[35].mxu1 }
 0x15e   : > { %1383 = vst [vmem:[%s2269_s3 + $0x100] sm:$0xff] %v1273_v34  ;;  %v1277_v40 = vadd.f32 %v1276_v39, %v1083_v38  ;;  %v1278_v42 = vpop.f32.mrb[35].mxu0 }
 0x15f   : > { %1384 = vst [vmem:[%s2269_s3 + $0x108] sm:$0xff] %v1275_v37  ;;  %v1279_v43 = vadd.f32 %v1278_v42, %v1085_v41 }
 0x160   : > { %1385 = vst [vmem:[%s2269_s3 + $0x110] sm:$0xff] %v1277_v40 }
 0x161   : > { %1386 = vst [vmem:[%s2269_s3 + $0x118] sm:$0xff] %v1279_v43 }
 0x162   : > { %v1089_v44 = vpop.f32.mrb[36].mxu1 }
 0x163   : > { %v1282_v45 = vpop.f32.mrb[36].mxu0  ;;  %v1091_v47 = vpop.f32.mrb[37].mxu1 }
 0x164   : > { %v1283_v46 = vadd.f32 %v1282_v45, %v1089_v44  ;;  %v1284_v48 = vpop.f32.mrb[37].mxu0  ;;  %v1093_v50 = vpop.f32.mrb[38].mxu1 }
 0x165   : > { %v1285_v49 = vadd.f32 %v1284_v48, %v1091_v47  ;;  %v1286_v51 = vpop.f32.mrb[38].mxu0  ;;  %v1095_v53 = vpop.f32.mrb[39].mxu1 }
 0x166   : > { %1387 = vst [vmem:[%s2269_s3 + $0x120] sm:$0xff] %v1283_v46  ;;  %v1287_v52 = vadd.f32 %v1286_v51, %v1093_v50  ;;  %v1288_v54 = vpop.f32.mrb[39].mxu0 }
 0x167   : > { %1388 = vst [vmem:[%s2269_s3 + $0x128] sm:$0xff] %v1285_v49  ;;  %v1289_v55 = vadd.f32 %v1288_v54, %v1095_v53 }
 0x168   : > { %1389 = vst [vmem:[%s2269_s3 + $0x130] sm:$0xff] %v1287_v52 }
 0x169   : > { %1390 = vst [vmem:[%s2269_s3 + $0x138] sm:$0xff] %v1289_v55 }
 0x16a   : > { %v1099_v56 = vpop.f32.mrb[40].mxu1 }
 0x16b   : > { %v1292_v57 = vpop.f32.mrb[40].mxu0  ;;  %v1101_v59 = vpop.f32.mrb[41].mxu1 }
 0x16c   : > { %v1293_v58 = vadd.f32 %v1292_v57, %v1099_v56  ;;  %v1294_v60 = vpop.f32.mrb[41].mxu0  ;;  %v1103_v62 = vpop.f32.mrb[42].mxu1 }
 0x16d   : > { %v1295_v61 = vadd.f32 %v1294_v60, %v1101_v59  ;;  %v1296_v63 = vpop.f32.mrb[42].mxu0  ;;  %v1105_v1 = vpop.f32.mrb[43].mxu1 }
 0x16e   : > { %1391 = vst [vmem:[%s2269_s3 + $0x140] sm:$0xff] %v1293_v58  ;;  %v1297_v0 = vadd.f32 %v1296_v63, %v1103_v62  ;;  %v1298_v2 = vpop.f32.mrb[43].mxu0 }
 0x16f   : > { %1392 = vst [vmem:[%s2269_s3 + $0x148] sm:$0xff] %v1295_v61  ;;  %v1299_v3 = vadd.f32 %v1298_v2, %v1105_v1 }
 0x170   : > { %1393 = vst [vmem:[%s2269_s3 + $0x150] sm:$0xff] %v1297_v0 }
 0x171   : > { %1394 = vst [vmem:[%s2269_s3 + $0x158] sm:$0xff] %v1299_v3 }
 0x172   : > { %v1109_v4 = vpop.f32.mrb[44].mxu1 }
 0x173   : > { %v1302_v5 = vpop.f32.mrb[44].mxu0  ;;  %v1111_v7 = vpop.f32.mrb[45].mxu1 }
 0x174   : > { %v1303_v6 = vadd.f32 %v1302_v5, %v1109_v4  ;;  %v1304_v8 = vpop.f32.mrb[45].mxu0  ;;  %v1113_v10 = vpop.f32.mrb[46].mxu1 }
 0x175   : > { %v1305_v9 = vadd.f32 %v1304_v8, %v1111_v7  ;;  %v1306_v11 = vpop.f32.mrb[46].mxu0  ;;  %v1115_v13 = vpop.f32.mrb[47].mxu1 }
 0x176   : > { %1395 = vst [vmem:[%s2269_s3 + $0x160] sm:$0xff] %v1303_v6  ;;  %v1307_v12 = vadd.f32 %v1306_v11, %v1113_v10  ;;  %v1308_v14 = vpop.f32.mrb[47].mxu0 }
 0x177   : > { %1396 = vst [vmem:[%s2269_s3 + $0x168] sm:$0xff] %v1305_v9  ;;  %v1309_v15 = vadd.f32 %v1308_v14, %v1115_v13 }
 0x178   : > { %1397 = vst [vmem:[%s2269_s3 + $0x170] sm:$0xff] %v1307_v12 }
 0x179   : > { %1398 = vst [vmem:[%s2269_s3 + $0x178] sm:$0xff] %v1309_v15 }
 0x17a   : > { %v1119_v16 = vpop.f32.mrb[48].mxu1 }
 0x17b   : > { %v1312_v17 = vpop.f32.mrb[48].mxu0  ;;  %v1121_v19 = vpop.f32.mrb[49].mxu1 }
 0x17c   : > { %v1313_v18 = vadd.f32 %v1312_v17, %v1119_v16  ;;  %v1314_v20 = vpop.f32.mrb[49].mxu0  ;;  %v1123_v22 = vpop.f32.mrb[50].mxu1 }
 0x17d   : > { %v1315_v21 = vadd.f32 %v1314_v20, %v1121_v19  ;;  %v1316_v23 = vpop.f32.mrb[50].mxu0  ;;  %v1125_v25 = vpop.f32.mrb[51].mxu1 }
 0x17e   : > { %1399 = vst [vmem:[%s2269_s3 + $0x180] sm:$0xff] %v1313_v18  ;;  %v1317_v24 = vadd.f32 %v1316_v23, %v1123_v22  ;;  %v1318_v26 = vpop.f32.mrb[51].mxu0 }
 0x17f   : > { %1400 = vst [vmem:[%s2269_s3 + $0x188] sm:$0xff] %v1315_v21  ;;  %v1319_v27 = vadd.f32 %v1318_v26, %v1125_v25 }
 0x180   : > { %1401 = vst [vmem:[%s2269_s3 + $0x190] sm:$0xff] %v1317_v24 }
 0x181   : > { %1402 = vst [vmem:[%s2269_s3 + $0x198] sm:$0xff] %v1319_v27 }
 0x182   : > { %v1129_v28 = vpop.f32.mrb[52].mxu1 }
 0x183   : > { %v1322_v29 = vpop.f32.mrb[52].mxu0  ;;  %v1131_v31 = vpop.f32.mrb[53].mxu1 }
 0x184   : > { %v1323_v30 = vadd.f32 %v1322_v29, %v1129_v28  ;;  %v1324_v32 = vpop.f32.mrb[53].mxu0  ;;  %v1133_v34 = vpop.f32.mrb[54].mxu1 }
 0x185   : > { %v1325_v33 = vadd.f32 %v1324_v32, %v1131_v31  ;;  %v1326_v35 = vpop.f32.mrb[54].mxu0  ;;  %v1135_v37 = vpop.f32.mrb[55].mxu1 }
 0x186   : > { %1403 = vst [vmem:[%s2269_s3 + $0x1a0] sm:$0xff] %v1323_v30  ;;  %v1327_v36 = vadd.f32 %v1326_v35, %v1133_v34  ;;  %v1328_v38 = vpop.f32.mrb[55].mxu0 }
 0x187   : > { %1404 = vst [vmem:[%s2269_s3 + $0x1a8] sm:$0xff] %v1325_v33  ;;  %v1329_v39 = vadd.f32 %v1328_v38, %v1135_v37 }
 0x188   : > { %1405 = vst [vmem:[%s2269_s3 + $0x1b0] sm:$0xff] %v1327_v36 }
 0x189   : > { %1406 = vst [vmem:[%s2269_s3 + $0x1b8] sm:$0xff] %v1329_v39 }
 0x18a   : > { %v1139_v40 = vpop.f32.mrb[56].mxu1 }
 0x18b   : > { %v1332_v41 = vpop.f32.mrb[56].mxu0  ;;  %v1141_v43 = vpop.f32.mrb[57].mxu1 }
 0x18c   : > { %v1333_v42 = vadd.f32 %v1332_v41, %v1139_v40  ;;  %v1334_v44 = vpop.f32.mrb[57].mxu0  ;;  %v1143_v46 = vpop.f32.mrb[58].mxu1 }
 0x18d   : > { %v1335_v45 = vadd.f32 %v1334_v44, %v1141_v43  ;;  %v1336_v47 = vpop.f32.mrb[58].mxu0  ;;  %v1145_v49 = vpop.f32.mrb[59].mxu1 }
 0x18e   : > { %1407 = vst [vmem:[%s2269_s3 + $0x1c0] sm:$0xff] %v1333_v42  ;;  %v1337_v48 = vadd.f32 %v1336_v47, %v1143_v46  ;;  %v1338_v50 = vpop.f32.mrb[59].mxu0 }
 0x18f   : > { %1408 = vst [vmem:[%s2269_s3 + $0x1c8] sm:$0xff] %v1335_v45  ;;  %v1339_v51 = vadd.f32 %v1338_v50, %v1145_v49 }
 0x190   : > { %1409 = vst [vmem:[%s2269_s3 + $0x1d0] sm:$0xff] %v1337_v48 }
 0x191   : > { %1410 = vst [vmem:[%s2269_s3 + $0x1d8] sm:$0xff] %v1339_v51 }
 0x192   : > { %v1149_v52 = vpop.f32.mrb[60].mxu1 }
 0x193   : > { %v1342_v53 = vpop.f32.mrb[60].mxu0  ;;  %v1151_v55 = vpop.f32.mrb[61].mxu1 }
 0x194   : > { %v1343_v54 = vadd.f32 %v1342_v53, %v1149_v52  ;;  %v1344_v56 = vpop.f32.mrb[61].mxu0  ;;  %v1153_v58 = vpop.f32.mrb[62].mxu1 }
 0x195   : > { %v1345_v57 = vadd.f32 %v1344_v56, %v1151_v55  ;;  %v1346_v59 = vpop.f32.mrb[62].mxu0  ;;  %v1155_v61 = vpop.f32.mrb[63].mxu1 }
 0x196   : > { %1411 = vst [vmem:[%s2269_s3 + $0x1e0] sm:$0xff] %v1343_v54  ;;  %v1347_v60 = vadd.f32 %v1346_v59, %v1153_v58  ;;  %v1348_v62 = vpop.f32.mrb[63].mxu0 }
 0x197   : > { %1412 = vst [vmem:[%s2269_s3 + $0x1e8] sm:$0xff] %v1345_v57  ;;  %v1349_v63 = vadd.f32 %v1348_v62, %v1155_v61 }
 0x198   : > { %1413 = vst [vmem:[%s2269_s3 + $0x1f0] sm:$0xff] %v1347_v60 }
 0x199   : > { %1414 = vst [vmem:[%s2269_s3 + $0x1f8] sm:$0xff] %v1349_v63 }
 0x19a PF: > { %s12_s11 = sadd.s32 1, %s1960_s11   ;;  %s2347_s9 = smov %s1956_s10 }
 0x19b   : > { %p9_p5 = scmp.ge.s32.totalorder %s12_s11, 5   ;;  %s2348_s10 = smov %s2350_s12 }
 0x19d   :  { %11 = sbr.rel (!%p9_p5) target bundleno = 2 (0x2), region = 61 }

// kernel: generator_forward.23
= control target key start
LH: loop header
LB: loop body
LE: loop exit
PB: predicated region body
PF: predicated region fallthrough
CT: control target
= control target key end

     0   :  { %s960_s6 = smov 0   ;;  %s1964_s0 = inlined_call_operand.vmem [shape: f32[2048,64], index: 0, kind: input, shape index: {}]   ;;  %s1965_s1 = inlined_call_operand.vmem [shape: f32[2,64], index: 1, kind: output, shape index: {}]  }
   0x1 LB: > { %s923_s7 = sadd.s32 4294967295, %s947_s6   ;;  %p926_p0 = scmp.ge.s32.totalorder %s947_s6, 1  ;;  %s947_s6 = sphi %s960_s6, %s11_s6  }
   0x2   : > { %p83_p1 = scmp.lt.s32.totalorder %s947_s6, 3 }
   0x4   : > { %p84_p2 = pnand %p926_p0, %p83_p1 }
   0x5   : > { %s927_s8 = sshll.u32 (!%p84_p2), %s923_s7, 7  ;;  %p929_p4 = scmp.ne.s32.totalorder (!%p84_p2), %s923_s7, 0 }
   0x6   : > { %87 = sbr.rel (%p84_p2) target bundleno = 332 (0x14c), region = 24  ;;  %p99_p3 = scmp.lt.s32.totalorder (!%p84_p2), %s927_s8, 255 }
   0xd   : > { %s1967_s8 = smov (!%p99_p3, %s927_s8), 255  ;;  %107 = sbr.rel (%p929_p4) target bundleno = 20 (0x14), region = 28 }
   0xe   : > { %s928_s9 = sshll.u32 %s1967_s8, 3  ;;  %vm108_vm0 = vcmask (!%p929_p4), 517120   ;;  %v949_v0 = vmov (!%p929_p4), 0.0  }
   0xf   : > { %s971_s12 = scalar_lea.vmem %s1964_s0, %s928_s9  ;;  %109 = vst.msk [vmem:[%s1965_s1] sm:$0x3] (!%p929_p4), %vm108_vm0, %v949_v0 }
  0x14 PF: > { %v977_v1 = vld [vmem:[%s971_s12] sm:$0xff]  ;;  %v980_v2 = vld [vmem:[%s971_s12 + $0x8] sm:$0xff]  ;;  %v983_v3 = vld [vmem:[%s971_s12 + $0x10] sm:$0xff]  ;;  %vm238_vm1 = vcmask 523264   ;;  %vm890_vm2 = vcmask 1040384   ;;  %vm893_vm3 = vcmask 517120  }
  0x15   : > { %v239_v4 = vsel %vm238_vm1, %v977_v1, 0.0  ;;  %v240_v5 = vsel %vm238_vm1, %v980_v2, 0.0  ;;  %v242_v6 = vsel %vm238_vm1, %v983_v3, 0.0  ;;  %v992_v7 = vld [vmem:[%s971_s12 + $0x18] sm:$0xff]  ;;  %v997_v10 = vld [vmem:[%s971_s12 + $0x20] sm:$0xff]  ;;  %v1002_v13 = vld [vmem:[%s971_s12 + $0x28] sm:$0xff] }
  0x16   : > { %v241_v8 = vadd.f32 %v240_v5, %v239_v4  ;;  %v244_v9 = vsel %vm238_vm1, %v992_v7, 0.0  ;;  %v246_v12 = vsel %vm238_vm1, %v997_v10, 0.0  ;;  %v248_v15 = vsel %vm238_vm1, %v1002_v13, 0.0  ;;  %v1007_v16 = vld [vmem:[%s971_s12 + $0x30] sm:$0xff]  ;;  %v1012_v19 = vld [vmem:[%s971_s12 + $0x38] sm:$0xff]  ;;  %v1017_v22 = vld [vmem:[%s971_s12 + $0x40] sm:$0xff] }
  0x17   : > { %v250_v18 = vsel %vm238_vm1, %v1007_v16, 0.0  ;;  %v252_v21 = vsel %vm238_vm1, %v1012_v19, 0.0  ;;  %v254_v24 = vsel %vm238_vm1, %v1017_v22, 0.0  ;;  %v1022_v25 = vld [vmem:[%s971_s12 + $0x48] sm:$0xff]  ;;  %v1027_v28 = vld [vmem:[%s971_s12 + $0x50] sm:$0xff]  ;;  %v1032_v31 = vld [vmem:[%s971_s12 + $0x58] sm:$0xff] }
  0x18   : > { %v243_v11 = vadd.f32 %v242_v6, %v241_v8  ;;  %v256_v27 = vsel %vm238_vm1, %v1022_v25, 0.0  ;;  %v258_v30 = vsel %vm238_vm1, %v1027_v28, 0.0  ;;  %v260_v33 = vsel %vm238_vm1, %v1032_v31, 0.0  ;;  %v1037_v34 = vld [vmem:[%s971_s12 + $0x60] sm:$0xff]  ;;  %v1042_v37 = vld [vmem:[%s971_s12 + $0x68] sm:$0xff]  ;;  %v1047_v40 = vld [vmem:[%s971_s12 + $0x70] sm:$0xff] }
  0x19   : > { %v262_v36 = vsel %vm238_vm1, %v1037_v34, 0.0  ;;  %v264_v39 = vsel %vm238_vm1, %v1042_v37, 0.0  ;;  %v266_v42 = vsel %vm238_vm1, %v1047_v40, 0.0  ;;  %v1052_v43 = vld [vmem:[%s971_s12 + $0x78] sm:$0xff]  ;;  %v1057_v46 = vld [vmem:[%s971_s12 + $0x80] sm:$0xff]  ;;  %v1062_v49 = vld [vmem:[%s971_s12 + $0x88] sm:$0xff] }
  0x1a   : > { %v245_v14 = vadd.f32 %v244_v9, %v243_v11  ;;  %v268_v45 = vsel %vm238_vm1, %v1052_v43, 0.0  ;;  %v270_v48 = vsel %vm238_vm1, %v1057_v46, 0.0  ;;  %v272_v51 = vsel %vm238_vm1, %v1062_v49, 0.0  ;;  %v1067_v52 = vld [vmem:[%s971_s12 + $0x90] sm:$0xff]  ;;  %v1072_v55 = vld [vmem:[%s971_s12 + $0x98] sm:$0xff]  ;;  %v1077_v58 = vld [vmem:[%s971_s12 + $0xa0] sm:$0xff] }
  0x1b   : > { %v274_v54 = vsel %vm238_vm1, %v1067_v52, 0.0  ;;  %v276_v57 = vsel %vm238_vm1, %v1072_v55, 0.0  ;;  %v278_v60 = vsel %vm238_vm1, %v1077_v58, 0.0  ;;  %v1082_v61 = vld [vmem:[%s971_s12 + $0xa8] sm:$0xff]  ;;  %v1087_v0 = vld [vmem:[%s971_s12 + $0xb0] sm:$0xff]  ;;  %v1092_v6 = vld [vmem:[%s971_s12 + $0xb8] sm:$0xff] }
  0x1c   : > { %v247_v17 = vadd.f32 %v246_v12, %v245_v14  ;;  %v280_v63 = vsel %vm238_vm1, %v1082_v61, 0.0  ;;  %v282_v5 = vsel %vm238_vm1, %v1087_v0, 0.0  ;;  %v284_v9 = vsel %vm238_vm1, %v1092_v6, 0.0  ;;  %v1097_v11 = vld [vmem:[%s971_s12 + $0xc0] sm:$0xff] }
  0x1d   : > { %v286_v14 = vsel %vm238_vm1, %v1097_v11, 0.0 }
  0x1e   : > { %v249_v20 = vadd.f32 %v248_v15, %v247_v17  ;;  %v1102_v15 = vld [vmem:[%s971_s12 + $0xc8] sm:$0xff] }
  0x20   : > { %v251_v23 = vadd.f32 %v250_v18, %v249_v20  ;;  %v288_v18 = vsel %vm238_vm1, %v1102_v15, 0.0  ;;  %v1107_v20 = vld [vmem:[%s971_s12 + $0xd0] sm:$0xff] }
  0x22   : > { %v253_v26 = vadd.f32 %v252_v21, %v251_v23  ;;  %v290_v23 = vsel %vm238_vm1, %v1107_v20, 0.0 }
  0x24   : > { %v255_v29 = vadd.f32 %v254_v24, %v253_v26  ;;  %v500_v24 = vmul.f32 %v977_v1, %v977_v1  ;;  %v501_v26 = vmul.f32 %v980_v2, %v980_v2  ;;  %v504_v1 = vmul.f32 %v997_v10, %v997_v10 }
  0x25   : > { %v505_v10 = vmul.f32 %v1002_v13, %v1002_v13 }
  0x26   : > { %v257_v32 = vadd.f32 %v256_v27, %v255_v29  ;;  %v502_v27 = vmul.f32 %v983_v3, %v983_v3  ;;  %v1118_v29 = vld [vmem:[%s971_s12 + $0xd8] sm:$0xff]  ;;  %v628_v3 = vsel %vm238_vm1, %v500_v24, 0.0 }
  0x28   : > { %v259_v35 = vadd.f32 %v258_v30, %v257_v32  ;;  %v292_v32 = vsel %vm238_vm1, %v1118_v29, 0.0 }
  0x2a   : > { %v261_v38 = vadd.f32 %v260_v33, %v259_v35  ;;  %v503_v33 = vmul.f32 %v992_v7, %v992_v7  ;;  %v1125_v35 = vld [vmem:[%s971_s12 + $0xe0] sm:$0xff] }
  0x2b   : > { %v294_v2 = vsel %vm238_vm1, %v1125_v35, 0.0 }
  0x2c   : > { %v263_v41 = vadd.f32 %v262_v36, %v261_v38  ;;  %v629_v38 = vsel %vm238_vm1, %v501_v26, 0.0 }
  0x2d   : > { %v630_v7 = vadd.f32 %v629_v38, %v628_v3  ;;  %v1191_v3 = vld [vmem:[%s971_s12 + $0x120] sm:$0xff] }
  0x2e   : > { %v265_v44 = vadd.f32 %v264_v39, %v263_v41  ;;  %v631_v39 = vsel %vm238_vm1, %v502_v27, 0.0  ;;  %v1135_v41 = vld [vmem:[%s971_s12 + $0xe8] sm:$0xff]  ;;  %v510_v27 = vmul.f32 %v1027_v28, %v1027_v28  ;;  %v310_v28 = vsel %vm238_vm1, %v1191_v3, 0.0 }
  0x30   : > { %v267_v47 = vadd.f32 %v266_v42, %v265_v44  ;;  %v296_v44 = vsel %vm238_vm1, %v1135_v41, 0.0 }
  0x32   : > { %v269_v50 = vadd.f32 %v268_v45, %v267_v47  ;;  %v633_v45 = vsel %vm238_vm1, %v503_v33, 0.0  ;;  %v1143_v47 = vld [vmem:[%s971_s12 + $0xf0] sm:$0xff] }
  0x34   : > { %v271_v53 = vadd.f32 %v270_v48, %v269_v50  ;;  %v632_v50 = vadd.f32 %v631_v39, %v630_v7  ;;  %v647_v7 = vsel %vm238_vm1, %v510_v27, 0.0 }
  0x36   : > { %v273_v56 = vadd.f32 %v272_v51, %v271_v53  ;;  %v298_v51 = vsel %vm238_vm1, %v1143_v47, 0.0  ;;  %v506_v53 = vmul.f32 %v1007_v16, %v1007_v16 }
  0x38   : > { %v275_v59 = vadd.f32 %v274_v54, %v273_v56  ;;  %v635_v54 = vsel %vm238_vm1, %v504_v1, 0.0  ;;  %v1151_v56 = vld [vmem:[%s971_s12 + $0xf8] sm:$0xff]  ;;  %v511_v1 = vmul.f32 %v1032_v31, %v1032_v31 }
  0x39   : > { %v300_v13 = vsel %vm238_vm1, %v1151_v56, 0.0 }
  0x3a   : > { %v277_v62 = vadd.f32 %v276_v57, %v275_v59  ;;  %v634_v59 = vadd.f32 %v633_v45, %v632_v50  ;;  %v649_v50 = vsel %vm238_vm1, %v511_v1, 0.0 }
  0x3c   : > { %v279_v4 = vadd.f32 %v278_v60, %v277_v62  ;;  %v507_v60 = vmul.f32 %v1012_v19, %v1012_v19  ;;  %v637_v62 = vsel %vm238_vm1, %v505_v10, 0.0 }
  0x3e   : > { %v281_v8 = vadd.f32 %v280_v63, %v279_v4  ;;  %v1159_v63 = vld [vmem:[%s971_s12 + $0x100] sm:$0xff] }
  0x3f   : > { %v302_v16 = vsel %vm238_vm1, %v1159_v63, 0.0 }
  0x40   : > { %v283_v12 = vadd.f32 %v282_v5, %v281_v8  ;;  %v636_v5 = vadd.f32 %v635_v54, %v634_v59  ;;  %v508_v8 = vmul.f32 %v1017_v22, %v1017_v22 }
  0x42   : > { %v285_v17 = vadd.f32 %v284_v9, %v283_v12  ;;  %v639_v9 = vsel %vm238_vm1, %v506_v53, 0.0  ;;  %v1167_v12 = vld [vmem:[%s971_s12 + $0x108] sm:$0xff] }
  0x43   : > { %v304_v19 = vsel %vm238_vm1, %v1167_v12, 0.0 }
  0x44   : > { %v287_v21 = vadd.f32 %v286_v14, %v285_v17  ;;  %v638_v17 = vadd.f32 %v637_v62, %v636_v5 }
  0x46   : > { %v289_v30 = vadd.f32 %v288_v18, %v287_v21  ;;  %v509_v18 = vmul.f32 %v1022_v25, %v1022_v25  ;;  %v641_v21 = vsel %vm238_vm1, %v507_v60, 0.0  ;;  %v640_v26 = vadd.f32 %v639_v9, %v638_v17 }
  0x48   : > { %v291_v36 = vadd.f32 %v290_v23, %v289_v30  ;;  %v1175_v23 = vld [vmem:[%s971_s12 + $0x110] sm:$0xff]  ;;  %v643_v30 = vsel %vm238_vm1, %v508_v8, 0.0 }
  0x49   : > { %v306_v22 = vsel %vm238_vm1, %v1175_v23, 0.0 }
  0x4a   : > { %v293_v42 = vadd.f32 %v292_v32, %v291_v36  ;;  %v1183_v32 = vld [vmem:[%s971_s12 + $0x118] sm:$0xff]  ;;  %v642_v36 = vadd.f32 %v641_v21, %v640_v26 }
  0x4b   : > { %v308_v25 = vsel %vm238_vm1, %v1183_v32, 0.0 }
  0x4c   : > { %v295_v48 = vadd.f32 %v294_v2, %v293_v42  ;;  %v645_v2 = vsel %vm238_vm1, %v509_v18, 0.0  ;;  %v644_v39 = vadd.f32 %v643_v30, %v642_v36  ;;  %v512_v42 = vmul.f32 %v1037_v34, %v1037_v34 }
  0x4e   : > { %v297_v57 = vadd.f32 %v296_v44, %v295_v48  ;;  %v1199_v44 = vld [vmem:[%s971_s12 + $0x128] sm:$0xff]  ;;  %v646_v45 = vadd.f32 %v645_v2, %v644_v39  ;;  %v513_v48 = vmul.f32 %v1042_v37, %v1042_v37  ;;  %v651_v59 = vsel %vm238_vm1, %v512_v42, 0.0 }
  0x4f   : > { %v312_v31 = vsel %vm238_vm1, %v1199_v44, 0.0 }
  0x50   : > { %v299_v4 = vadd.f32 %v298_v51, %v297_v57  ;;  %v1207_v51 = vld [vmem:[%s971_s12 + $0x130] sm:$0xff]  ;;  %v648_v54 = vadd.f32 %v647_v7, %v646_v45  ;;  %v514_v57 = vmul.f32 %v1047_v40, %v1047_v40  ;;  %v653_v5 = vsel %vm238_vm1, %v513_v48, 0.0 }
  0x51   : > { %v314_v34 = vsel %vm238_vm1, %v1207_v51, 0.0 }
  0x52   : > { %v301_v14 = vadd.f32 %v300_v13, %v299_v4  ;;  %v1215_v13 = vld [vmem:[%s971_s12 + $0x138] sm:$0xff]  ;;  %v650_v62 = vadd.f32 %v649_v50, %v648_v54  ;;  %v515_v4 = vmul.f32 %v1052_v43, %v1052_v43  ;;  %v655_v17 = vsel %vm238_vm1, %v514_v57, 0.0 }
  0x53   : > { %v316_v37 = vsel %vm238_vm1, %v1215_v13, 0.0 }
  0x54   : > { %v303_v24 = vadd.f32 %v302_v16, %v301_v14  ;;  %v1223_v16 = vld [vmem:[%s971_s12 + $0x140] sm:$0xff]  ;;  %v652_v9 = vadd.f32 %v651_v59, %v650_v62  ;;  %v516_v14 = vmul.f32 %v1057_v46, %v1057_v46  ;;  %v657_v26 = vsel %vm238_vm1, %v515_v4, 0.0 }
  0x55   : > { %v318_v40 = vsel %vm238_vm1, %v1223_v16, 0.0 }
  0x56   : > { %v305_v33 = vadd.f32 %v304_v19, %v303_v24  ;;  %v1231_v19 = vld [vmem:[%s971_s12 + $0x148] sm:$0xff]  ;;  %v654_v21 = vadd.f32 %v653_v5, %v652_v9  ;;  %v517_v24 = vmul.f32 %v1062_v49, %v1062_v49  ;;  %v659_v36 = vsel %vm238_vm1, %v516_v14, 0.0 }
  0x57   : > { %v320_v43 = vsel %vm238_vm1, %v1231_v19, 0.0 }
  0x58   : > { %v307_v38 = vadd.f32 %v306_v22, %v305_v33  ;;  %v1239_v22 = vld [vmem:[%s971_s12 + $0x150] sm:$0xff]  ;;  %v656_v30 = vadd.f32 %v655_v17, %v654_v21  ;;  %v518_v33 = vmul.f32 %v1067_v52, %v1067_v52  ;;  %v661_v39 = vsel %vm238_vm1, %v517_v24, 0.0 }
  0x59   : > { %v322_v46 = vsel %vm238_vm1, %v1239_v22, 0.0 }
  0x5a   : > { %v309_v10 = vadd.f32 %v308_v25, %v307_v38  ;;  %v1247_v25 = vld [vmem:[%s971_s12 + $0x158] sm:$0xff]  ;;  %v658_v2 = vadd.f32 %v657_v26, %v656_v30  ;;  %v519_v38 = vmul.f32 %v1072_v55, %v1072_v55  ;;  %v663_v45 = vsel %vm238_vm1, %v518_v33, 0.0 }
  0x5b   : > { %v324_v49 = vsel %vm238_vm1, %v1247_v25, 0.0 }
  0x5c   : > { %v311_v53 = vadd.f32 %v310_v28, %v309_v10  ;;  %v1255_v28 = vld [vmem:[%s971_s12 + $0x160] sm:$0xff]  ;;  %v660_v7 = vadd.f32 %v659_v36, %v658_v2  ;;  %v520_v10 = vmul.f32 %v1077_v58, %v1077_v58  ;;  %v665_v54 = vsel %vm238_vm1, %v519_v38, 0.0 }
  0x5d   : > { %v326_v52 = vsel %vm238_vm1, %v1255_v28, 0.0 }
  0x5e   : > { %v313_v60 = vadd.f32 %v312_v31, %v311_v53  ;;  %v1263_v31 = vld [vmem:[%s971_s12 + $0x168] sm:$0xff]  ;;  %v662_v50 = vadd.f32 %v661_v39, %v660_v7  ;;  %v521_v53 = vmul.f32 %v1082_v61, %v1082_v61  ;;  %v667_v62 = vsel %vm238_vm1, %v520_v10, 0.0 }
  0x5f   : > { %v328_v55 = vsel %vm238_vm1, %v1263_v31, 0.0 }
  0x60   : > { %v315_v8 = vadd.f32 %v314_v34, %v313_v60  ;;  %v1271_v34 = vld [vmem:[%s971_s12 + $0x170] sm:$0xff]  ;;  %v664_v59 = vadd.f32 %v663_v45, %v662_v50  ;;  %v522_v60 = vmul.f32 %v1087_v0, %v1087_v0  ;;  %v669_v9 = vsel %vm238_vm1, %v521_v53, 0.0 }
  0x61   : > { %v330_v58 = vsel %vm238_vm1, %v1271_v34, 0.0 }
  0x62   : > { %v317_v18 = vadd.f32 %v316_v37, %v315_v8  ;;  %v1279_v37 = vld [vmem:[%s971_s12 + $0x178] sm:$0xff]  ;;  %v666_v5 = vadd.f32 %v665_v54, %v664_v59  ;;  %v523_v8 = vmul.f32 %v1092_v6, %v1092_v6  ;;  %v671_v21 = vsel %vm238_vm1, %v522_v60, 0.0 }
  0x63   : > { %v332_v61 = vsel %vm238_vm1, %v1279_v37, 0.0 }
  0x64   : > { %v319_v27 = vadd.f32 %v318_v40, %v317_v18  ;;  %v1287_v40 = vld [vmem:[%s971_s12 + $0x180] sm:$0xff]  ;;  %v668_v17 = vadd.f32 %v667_v62, %v666_v5  ;;  %v524_v18 = vmul.f32 %v1097_v11, %v1097_v11  ;;  %v673_v30 = vsel %vm238_vm1, %v523_v8, 0.0 }
  0x65   : > { %v334_v0 = vsel %vm238_vm1, %v1287_v40, 0.0 }
  0x66   : > { %v321_v1 = vadd.f32 %v320_v43, %v319_v27  ;;  %v1295_v43 = vld [vmem:[%s971_s12 + $0x188] sm:$0xff]  ;;  %v670_v26 = vadd.f32 %v669_v9, %v668_v17  ;;  %v525_v27 = vmul.f32 %v1102_v15, %v1102_v15  ;;  %v675_v2 = vsel %vm238_vm1, %v524_v18, 0.0 }
  0x67   : > { %v336_v6 = vsel %vm238_vm1, %v1295_v43, 0.0 }
  0x68   : > { %v323_v42 = vadd.f32 %v322_v46, %v321_v1  ;;  %v1303_v46 = vld [vmem:[%s971_s12 + $0x190] sm:$0xff]  ;;  %v672_v36 = vadd.f32 %v671_v21, %v670_v26  ;;  %v526_v1 = vmul.f32 %v1107_v20, %v1107_v20  ;;  %v677_v7 = vsel %vm238_vm1, %v525_v27, 0.0 }
  0x69   : > { %v338_v11 = vsel %vm238_vm1, %v1303_v46, 0.0 }
  0x6a   : > { %v325_v48 = vadd.f32 %v324_v49, %v323_v42  ;;  %v1311_v49 = vld [vmem:[%s971_s12 + $0x198] sm:$0xff]  ;;  %v674_v39 = vadd.f32 %v673_v30, %v672_v36  ;;  %v527_v42 = vmul.f32 %v1118_v29, %v1118_v29  ;;  %v679_v50 = vsel %vm238_vm1, %v526_v1, 0.0 }
  0x6b   : > { %v340_v15 = vsel %vm238_vm1, %v1311_v49, 0.0 }
  0x6c   : > { %v327_v57 = vadd.f32 %v326_v52, %v325_v48  ;;  %v1319_v52 = vld [vmem:[%s971_s12 + $0x1a0] sm:$0xff]  ;;  %v676_v45 = vadd.f32 %v675_v2, %v674_v39  ;;  %v528_v48 = vmul.f32 %v1125_v35, %v1125_v35  ;;  %v681_v59 = vsel %vm238_vm1, %v527_v42, 0.0 }
  0x6d   : > { %v342_v20 = vsel %vm238_vm1, %v1319_v52, 0.0 }
  0x6e   : > { %v329_v4 = vadd.f32 %v328_v55, %v327_v57  ;;  %v1327_v55 = vld [vmem:[%s971_s12 + $0x1a8] sm:$0xff]  ;;  %v678_v54 = vadd.f32 %v677_v7, %v676_v45  ;;  %v529_v57 = vmul.f32 %v1135_v41, %v1135_v41  ;;  %v683_v5 = vsel %vm238_vm1, %v528_v48, 0.0 }
  0x6f   : > { %v344_v29 = vsel %vm238_vm1, %v1327_v55, 0.0 }
  0x70   : > { %v331_v14 = vadd.f32 %v330_v58, %v329_v4  ;;  %v1335_v58 = vld [vmem:[%s971_s12 + $0x1b0] sm:$0xff]  ;;  %v680_v62 = vadd.f32 %v679_v50, %v678_v54  ;;  %v530_v4 = vmul.f32 %v1143_v47, %v1143_v47  ;;  %v685_v17 = vsel %vm238_vm1, %v529_v57, 0.0 }
  0x71   : > { %v346_v35 = vsel %vm238_vm1, %v1335_v58, 0.0 }
  0x72   : > { %v333_v24 = vadd.f32 %v332_v61, %v331_v14  ;;  %v1343_v61 = vld [vmem:[%s971_s12 + $0x1b8] sm:$0xff]  ;;  %v682_v9 = vadd.f32 %v681_v59, %v680_v62  ;;  %v531_v14 = vmul.f32 %v1151_v56, %v1151_v56  ;;  %v687_v26 = vsel %vm238_vm1, %v530_v4, 0.0 }
  0x73   : > { %v348_v41 = vsel %vm238_vm1, %v1343_v61, 0.0 }
  0x74   : > { %v335_v33 = vadd.f32 %v334_v0, %v333_v24  ;;  %v1351_v0 = vld [vmem:[%s971_s12 + $0x1c0] sm:$0xff]  ;;  %v684_v21 = vadd.f32 %v683_v5, %v682_v9  ;;  %v532_v24 = vmul.f32 %v1159_v63, %v1159_v63  ;;  %v689_v36 = vsel %vm238_vm1, %v531_v14, 0.0 }
  0x75   : > { %v350_v47 = vsel %vm238_vm1, %v1351_v0, 0.0 }
  0x76   : > { %v337_v38 = vadd.f32 %v336_v6, %v335_v33  ;;  %v1359_v6 = vld [vmem:[%s971_s12 + $0x1c8] sm:$0xff]  ;;  %v686_v30 = vadd.f32 %v685_v17, %v684_v21  ;;  %v533_v33 = vmul.f32 %v1167_v12, %v1167_v12  ;;  %v691_v39 = vsel %vm238_vm1, %v532_v24, 0.0 }
  0x77   : > { %v352_v56 = vsel %vm238_vm1, %v1359_v6, 0.0 }
  0x78   : > { %v339_v10 = vadd.f32 %v338_v11, %v337_v38  ;;  %v1367_v11 = vld [vmem:[%s971_s12 + $0x1d0] sm:$0xff]  ;;  %v688_v2 = vadd.f32 %v687_v26, %v686_v30  ;;  %v534_v38 = vmul.f32 %v1175_v23, %v1175_v23  ;;  %v693_v45 = vsel %vm238_vm1, %v533_v33, 0.0 }
  0x79   : > { %v354_v63 = vsel %vm238_vm1, %v1367_v11, 0.0 }
  0x7a   : > { %v341_v53 = vadd.f32 %v340_v15, %v339_v10  ;;  %v1375_v15 = vld [vmem:[%s971_s12 + $0x1d8] sm:$0xff]  ;;  %v690_v7 = vadd.f32 %v689_v36, %v688_v2  ;;  %v535_v10 = vmul.f32 %v1183_v32, %v1183_v32  ;;  %v695_v54 = vsel %vm238_vm1, %v534_v38, 0.0 }
  0x7b   : > { %v356_v12 = vsel %vm238_vm1, %v1375_v15, 0.0 }
  0x7c   : > { %v343_v60 = vadd.f32 %v342_v20, %v341_v53  ;;  %v1383_v20 = vld [vmem:[%s971_s12 + $0x1e0] sm:$0xff]  ;;  %v692_v50 = vadd.f32 %v691_v39, %v690_v7  ;;  %v536_v53 = vmul.f32 %v1191_v3, %v1191_v3  ;;  %v697_v62 = vsel %vm238_vm1, %v535_v10, 0.0 }
  0x7d   : > { %v358_v23 = vsel %vm238_vm1, %v1383_v20, 0.0 }
  0x7e   : > { %v345_v8 = vadd.f32 %v344_v29, %v343_v60  ;;  %v1391_v29 = vld [vmem:[%s971_s12 + $0x1e8] sm:$0xff]  ;;  %v694_v59 = vadd.f32 %v693_v45, %v692_v50  ;;  %v537_v60 = vmul.f32 %v1199_v44, %v1199_v44  ;;  %v699_v9 = vsel %vm238_vm1, %v536_v53, 0.0 }
  0x7f   : > { %v360_v32 = vsel %vm238_vm1, %v1391_v29, 0.0 }
  0x80   : > { %v347_v18 = vadd.f32 %v346_v35, %v345_v8  ;;  %v1399_v35 = vld [vmem:[%s971_s12 + $0x1f0] sm:$0xff]  ;;  %v696_v5 = vadd.f32 %v695_v54, %v694_v59  ;;  %v538_v8 = vmul.f32 %v1207_v51, %v1207_v51  ;;  %v701_v21 = vsel %vm238_vm1, %v537_v60, 0.0 }
  0x81   : > { %v362_v3 = vsel %vm238_vm1, %v1399_v35, 0.0 }
  0x82   : > { %v349_v27 = vadd.f32 %v348_v41, %v347_v18  ;;  %v1407_v41 = vld [vmem:[%s971_s12 + $0x1f8] sm:$0xff]  ;;  %v698_v17 = vadd.f32 %v697_v62, %v696_v5  ;;  %v539_v18 = vmul.f32 %v1215_v13, %v1215_v13  ;;  %v703_v30 = vsel %vm238_vm1, %v538_v8, 0.0 }
  0x83   : > { %v364_v44 = vsel %vm238_vm1, %v1407_v41, 0.0 }
  0x84   : > { %v351_v1 = vadd.f32 %v350_v47, %v349_v27  ;;  %v1415_v47 = vld [vmem:[%s971_s12 + $0x200] sm:$0xff]  ;;  %v700_v26 = vadd.f32 %v699_v9, %v698_v17  ;;  %v540_v27 = vmul.f32 %v1223_v16, %v1223_v16  ;;  %v705_v2 = vsel %vm238_vm1, %v539_v18, 0.0 }
  0x85   : > { %v366_v51 = vsel %vm238_vm1, %v1415_v47, 0.0 }
  0x86   : > { %v353_v42 = vadd.f32 %v352_v56, %v351_v1  ;;  %v1423_v56 = vld [vmem:[%s971_s12 + $0x208] sm:$0xff]  ;;  %v702_v36 = vadd.f32 %v701_v21, %v700_v26  ;;  %v541_v1 = vmul.f32 %v1231_v19, %v1231_v19  ;;  %v707_v7 = vsel %vm238_vm1, %v540_v27, 0.0 }
  0x87   : > { %v368_v13 = vsel %vm238_vm1, %v1423_v56, 0.0 }
  0x88   : > { %v355_v48 = vadd.f32 %v354_v63, %v353_v42  ;;  %v1431_v63 = vld [vmem:[%s971_s12 + $0x210] sm:$0xff]  ;;  %v704_v39 = vadd.f32 %v703_v30, %v702_v36  ;;  %v542_v42 = vmul.f32 %v1239_v22, %v1239_v22  ;;  %v709_v50 = vsel %vm238_vm1, %v541_v1, 0.0 }
  0x89   : > { %v370_v16 = vsel %vm238_vm1, %v1431_v63, 0.0 }
  0x8a   : > { %v357_v57 = vadd.f32 %v356_v12, %v355_v48  ;;  %v1439_v12 = vld [vmem:[%s971_s12 + $0x218] sm:$0xff]  ;;  %v706_v45 = vadd.f32 %v705_v2, %v704_v39  ;;  %v543_v48 = vmul.f32 %v1247_v25, %v1247_v25  ;;  %v711_v59 = vsel %vm238_vm1, %v542_v42, 0.0 }
  0x8b   : > { %v372_v19 = vsel %vm238_vm1, %v1439_v12, 0.0 }
  0x8c   : > { %v359_v4 = vadd.f32 %v358_v23, %v357_v57  ;;  %v1447_v23 = vld [vmem:[%s971_s12 + $0x220] sm:$0xff]  ;;  %v708_v54 = vadd.f32 %v707_v7, %v706_v45  ;;  %v544_v57 = vmul.f32 %v1255_v28, %v1255_v28  ;;  %v713_v5 = vsel %vm238_vm1, %v543_v48, 0.0 }
  0x8d   : > { %v374_v22 = vsel %vm238_vm1, %v1447_v23, 0.0 }
  0x8e   : > { %v361_v14 = vadd.f32 %v360_v32, %v359_v4  ;;  %v1455_v32 = vld [vmem:[%s971_s12 + $0x228] sm:$0xff]  ;;  %v710_v62 = vadd.f32 %v709_v50, %v708_v54  ;;  %v545_v4 = vmul.f32 %v1263_v31, %v1263_v31  ;;  %v715_v17 = vsel %vm238_vm1, %v544_v57, 0.0 }
  0x8f   : > { %v376_v25 = vsel %vm238_vm1, %v1455_v32, 0.0 }
  0x90   : > { %v363_v24 = vadd.f32 %v362_v3, %v361_v14  ;;  %v1463_v3 = vld [vmem:[%s971_s12 + $0x230] sm:$0xff]  ;;  %v712_v9 = vadd.f32 %v711_v59, %v710_v62  ;;  %v546_v14 = vmul.f32 %v1271_v34, %v1271_v34  ;;  %v717_v26 = vsel %vm238_vm1, %v545_v4, 0.0 }
  0x91   : > { %v378_v28 = vsel %vm238_vm1, %v1463_v3, 0.0 }
  0x92   : > { %v365_v33 = vadd.f32 %v364_v44, %v363_v24  ;;  %v1471_v44 = vld [vmem:[%s971_s12 + $0x238] sm:$0xff]  ;;  %v714_v21 = vadd.f32 %v713_v5, %v712_v9  ;;  %v547_v24 = vmul.f32 %v1279_v37, %v1279_v37  ;;  %v719_v36 = vsel %vm238_vm1, %v546_v14, 0.0 }
  0x93   : > { %v380_v31 = vsel %vm238_vm1, %v1471_v44, 0.0 }
  0x94   : > { %v367_v38 = vadd.f32 %v366_v51, %v365_v33  ;;  %v1479_v51 = vld [vmem:[%s971_s12 + $0x240] sm:$0xff]  ;;  %v716_v30 = vadd.f32 %v715_v17, %v714_v21  ;;  %v548_v33 = vmul.f32 %v1287_v40, %v1287_v40  ;;  %v721_v39 = vsel %vm238_vm1, %v547_v24, 0.0 }
  0x95   : > { %v382_v34 = vsel %vm238_vm1, %v1479_v51, 0.0 }
  0x96   : > { %v369_v10 = vadd.f32 %v368_v13, %v367_v38  ;;  %v1487_v13 = vld [vmem:[%s971_s12 + $0x248] sm:$0xff]  ;;  %v718_v2 = vadd.f32 %v717_v26, %v716_v30  ;;  %v549_v38 = vmul.f32 %v1295_v43, %v1295_v43  ;;  %v723_v45 = vsel %vm238_vm1, %v548_v33, 0.0 }
  0x97   : > { %v384_v37 = vsel %vm238_vm1, %v1487_v13, 0.0 }
  0x98   : > { %v371_v53 = vadd.f32 %v370_v16, %v369_v10  ;;  %v1495_v16 = vld [vmem:[%s971_s12 + $0x250] sm:$0xff]  ;;  %v720_v7 = vadd.f32 %v719_v36, %v718_v2  ;;  %v550_v10 = vmul.f32 %v1303_v46, %v1303_v46  ;;  %v725_v54 = vsel %vm238_vm1, %v549_v38, 0.0 }
  0x99   : > { %v386_v40 = vsel %vm238_vm1, %v1495_v16, 0.0 }
  0x9a   : > { %v373_v60 = vadd.f32 %v372_v19, %v371_v53  ;;  %v1503_v19 = vld [vmem:[%s971_s12 + $0x258] sm:$0xff]  ;;  %v722_v50 = vadd.f32 %v721_v39, %v720_v7  ;;  %v551_v53 = vmul.f32 %v1311_v49, %v1311_v49  ;;  %v727_v62 = vsel %vm238_vm1, %v550_v10, 0.0 }
  0x9b   : > { %v388_v43 = vsel %vm238_vm1, %v1503_v19, 0.0 }
  0x9c   : > { %v375_v8 = vadd.f32 %v374_v22, %v373_v60  ;;  %v1511_v22 = vld [vmem:[%s971_s12 + $0x260] sm:$0xff]  ;;  %v724_v59 = vadd.f32 %v723_v45, %v722_v50  ;;  %v552_v60 = vmul.f32 %v1319_v52, %v1319_v52  ;;  %v729_v9 = vsel %vm238_vm1, %v551_v53, 0.0 }
  0x9d   : > { %v390_v46 = vsel %vm238_vm1, %v1511_v22, 0.0 }
  0x9e   : > { %v377_v18 = vadd.f32 %v376_v25, %v375_v8  ;;  %v1519_v25 = vld [vmem:[%s971_s12 + $0x268] sm:$0xff]  ;;  %v726_v5 = vadd.f32 %v725_v54, %v724_v59  ;;  %v553_v8 = vmul.f32 %v1327_v55, %v1327_v55  ;;  %v731_v21 = vsel %vm238_vm1, %v552_v60, 0.0 }
  0x9f   : > { %v392_v49 = vsel %vm238_vm1, %v1519_v25, 0.0 }
  0xa0   : > { %v379_v27 = vadd.f32 %v378_v28, %v377_v18  ;;  %v1527_v28 = vld [vmem:[%s971_s12 + $0x270] sm:$0xff]  ;;  %v728_v17 = vadd.f32 %v727_v62, %v726_v5  ;;  %v554_v18 = vmul.f32 %v1335_v58, %v1335_v58  ;;  %v733_v30 = vsel %vm238_vm1, %v553_v8, 0.0 }
  0xa1   : > { %v394_v52 = vsel %vm238_vm1, %v1527_v28, 0.0 }
  0xa2   : > { %v381_v1 = vadd.f32 %v380_v31, %v379_v27  ;;  %v1535_v31 = vld [vmem:[%s971_s12 + $0x278] sm:$0xff]  ;;  %v730_v26 = vadd.f32 %v729_v9, %v728_v17  ;;  %v555_v27 = vmul.f32 %v1343_v61, %v1343_v61  ;;  %v735_v2 = vsel %vm238_vm1, %v554_v18, 0.0 }
  0xa3   : > { %v396_v55 = vsel %vm238_vm1, %v1535_v31, 0.0 }
  0xa4   : > { %v383_v42 = vadd.f32 %v382_v34, %v381_v1  ;;  %v1543_v34 = vld [vmem:[%s971_s12 + $0x280] sm:$0xff]  ;;  %v732_v36 = vadd.f32 %v731_v21, %v730_v26  ;;  %v556_v1 = vmul.f32 %v1351_v0, %v1351_v0  ;;  %v737_v7 = vsel %vm238_vm1, %v555_v27, 0.0 }
  0xa5   : > { %v398_v58 = vsel %vm238_vm1, %v1543_v34, 0.0 }
  0xa6   : > { %v385_v48 = vadd.f32 %v384_v37, %v383_v42  ;;  %v1551_v37 = vld [vmem:[%s971_s12 + $0x288] sm:$0xff]  ;;  %v734_v39 = vadd.f32 %v733_v30, %v732_v36  ;;  %v557_v42 = vmul.f32 %v1359_v6, %v1359_v6  ;;  %v739_v50 = vsel %vm238_vm1, %v556_v1, 0.0 }
  0xa7   : > { %v400_v61 = vsel %vm238_vm1, %v1551_v37, 0.0 }
  0xa8   : > { %v387_v57 = vadd.f32 %v386_v40, %v385_v48  ;;  %v1559_v40 = vld [vmem:[%s971_s12 + $0x290] sm:$0xff]  ;;  %v736_v45 = vadd.f32 %v735_v2, %v734_v39  ;;  %v558_v48 = vmul.f32 %v1367_v11, %v1367_v11  ;;  %v741_v59 = vsel %vm238_vm1, %v557_v42, 0.0 }
  0xa9   : > { %v402_v0 = vsel %vm238_vm1, %v1559_v40, 0.0 }
  0xaa   : > { %v389_v4 = vadd.f32 %v388_v43, %v387_v57  ;;  %v1567_v43 = vld [vmem:[%s971_s12 + $0x298] sm:$0xff]  ;;  %v738_v54 = vadd.f32 %v737_v7, %v736_v45  ;;  %v559_v57 = vmul.f32 %v1375_v15, %v1375_v15  ;;  %v743_v5 = vsel %vm238_vm1, %v558_v48, 0.0 }
  0xab   : > { %v404_v6 = vsel %vm238_vm1, %v1567_v43, 0.0 }
  0xac   : > { %v391_v14 = vadd.f32 %v390_v46, %v389_v4  ;;  %v1575_v46 = vld [vmem:[%s971_s12 + $0x2a0] sm:$0xff]  ;;  %v740_v62 = vadd.f32 %v739_v50, %v738_v54  ;;  %v560_v4 = vmul.f32 %v1383_v20, %v1383_v20  ;;  %v745_v17 = vsel %vm238_vm1, %v559_v57, 0.0 }
  0xad   : > { %v406_v11 = vsel %vm238_vm1, %v1575_v46, 0.0 }
  0xae   : > { %v393_v24 = vadd.f32 %v392_v49, %v391_v14  ;;  %v1583_v49 = vld [vmem:[%s971_s12 + $0x2a8] sm:$0xff]  ;;  %v742_v9 = vadd.f32 %v741_v59, %v740_v62  ;;  %v561_v14 = vmul.f32 %v1391_v29, %v1391_v29  ;;  %v747_v26 = vsel %vm238_vm1, %v560_v4, 0.0 }
  0xaf   : > { %v408_v15 = vsel %vm238_vm1, %v1583_v49, 0.0 }
  0xb0   : > { %v395_v33 = vadd.f32 %v394_v52, %v393_v24  ;;  %v1591_v52 = vld [vmem:[%s971_s12 + $0x2b0] sm:$0xff]  ;;  %v744_v21 = vadd.f32 %v743_v5, %v742_v9  ;;  %v562_v24 = vmul.f32 %v1399_v35, %v1399_v35  ;;  %v749_v36 = vsel %vm238_vm1, %v561_v14, 0.0 }
  0xb1   : > { %v410_v20 = vsel %vm238_vm1, %v1591_v52, 0.0 }
  0xb2   : > { %v397_v38 = vadd.f32 %v396_v55, %v395_v33  ;;  %v1599_v55 = vld [vmem:[%s971_s12 + $0x2b8] sm:$0xff]  ;;  %v746_v30 = vadd.f32 %v745_v17, %v744_v21  ;;  %v563_v33 = vmul.f32 %v1407_v41, %v1407_v41  ;;  %v751_v39 = vsel %vm238_vm1, %v562_v24, 0.0 }
  0xb3   : > { %v412_v29 = vsel %vm238_vm1, %v1599_v55, 0.0 }
  0xb4   : > { %v399_v10 = vadd.f32 %v398_v58, %v397_v38  ;;  %v1607_v58 = vld [vmem:[%s971_s12 + $0x2c0] sm:$0xff]  ;;  %v748_v2 = vadd.f32 %v747_v26, %v746_v30  ;;  %v564_v38 = vmul.f32 %v1415_v47, %v1415_v47  ;;  %v753_v45 = vsel %vm238_vm1, %v563_v33, 0.0 }
  0xb5   : > { %v414_v35 = vsel %vm238_vm1, %v1607_v58, 0.0 }
  0xb6   : > { %v401_v53 = vadd.f32 %v400_v61, %v399_v10  ;;  %v1615_v61 = vld [vmem:[%s971_s12 + $0x2c8] sm:$0xff]  ;;  %v750_v7 = vadd.f32 %v749_v36, %v748_v2  ;;  %v565_v10 = vmul.f32 %v1423_v56, %v1423_v56  ;;  %v755_v54 = vsel %vm238_vm1, %v564_v38, 0.0 }
  0xb7   : > { %v416_v41 = vsel %vm238_vm1, %v1615_v61, 0.0 }
  0xb8   : > { %v403_v60 = vadd.f32 %v402_v0, %v401_v53  ;;  %v1623_v0 = vld [vmem:[%s971_s12 + $0x2d0] sm:$0xff]  ;;  %v752_v50 = vadd.f32 %v751_v39, %v750_v7  ;;  %v566_v53 = vmul.f32 %v1431_v63, %v1431_v63  ;;  %v757_v62 = vsel %vm238_vm1, %v565_v10, 0.0 }
  0xb9   : > { %v418_v47 = vsel %vm238_vm1, %v1623_v0, 0.0 }
  0xba   : > { %v405_v8 = vadd.f32 %v404_v6, %v403_v60  ;;  %v1631_v6 = vld [vmem:[%s971_s12 + $0x2d8] sm:$0xff]  ;;  %v754_v59 = vadd.f32 %v753_v45, %v752_v50  ;;  %v567_v60 = vmul.f32 %v1439_v12, %v1439_v12  ;;  %v759_v9 = vsel %vm238_vm1, %v566_v53, 0.0 }
  0xbb   : > { %v420_v56 = vsel %vm238_vm1, %v1631_v6, 0.0 }
  0xbc   : > { %v407_v18 = vadd.f32 %v406_v11, %v405_v8  ;;  %v1639_v11 = vld [vmem:[%s971_s12 + $0x2e0] sm:$0xff]  ;;  %v756_v5 = vadd.f32 %v755_v54, %v754_v59  ;;  %v568_v8 = vmul.f32 %v1447_v23, %v1447_v23  ;;  %v761_v21 = vsel %vm238_vm1, %v567_v60, 0.0 }
  0xbd   : > { %v422_v63 = vsel %vm238_vm1, %v1639_v11, 0.0 }
  0xbe   : > { %v409_v27 = vadd.f32 %v408_v15, %v407_v18  ;;  %v1647_v15 = vld [vmem:[%s971_s12 + $0x2e8] sm:$0xff]  ;;  %v758_v17 = vadd.f32 %v757_v62, %v756_v5  ;;  %v569_v18 = vmul.f32 %v1455_v32, %v1455_v32  ;;  %v763_v30 = vsel %vm238_vm1, %v568_v8, 0.0 }
  0xbf   : > { %v424_v12 = vsel %vm238_vm1, %v1647_v15, 0.0 }
  0xc0   : > { %v411_v1 = vadd.f32 %v410_v20, %v409_v27  ;;  %v1655_v20 = vld [vmem:[%s971_s12 + $0x2f0] sm:$0xff]  ;;  %v760_v26 = vadd.f32 %v759_v9, %v758_v17  ;;  %v570_v27 = vmul.f32 %v1463_v3, %v1463_v3  ;;  %v765_v2 = vsel %vm238_vm1, %v569_v18, 0.0 }
  0xc1   : > { %v426_v23 = vsel %vm238_vm1, %v1655_v20, 0.0 }
  0xc2   : > { %v413_v42 = vadd.f32 %v412_v29, %v411_v1  ;;  %v1663_v29 = vld [vmem:[%s971_s12 + $0x2f8] sm:$0xff]  ;;  %v762_v36 = vadd.f32 %v761_v21, %v760_v26  ;;  %v571_v1 = vmul.f32 %v1471_v44, %v1471_v44  ;;  %v767_v7 = vsel %vm238_vm1, %v570_v27, 0.0 }
  0xc3   : > { %v428_v32 = vsel %vm238_vm1, %v1663_v29, 0.0 }
  0xc4   : > { %v415_v48 = vadd.f32 %v414_v35, %v413_v42  ;;  %v1671_v35 = vld [vmem:[%s971_s12 + $0x300] sm:$0xff]  ;;  %v764_v39 = vadd.f32 %v763_v30, %v762_v36  ;;  %v572_v42 = vmul.f32 %v1479_v51, %v1479_v51  ;;  %v769_v50 = vsel %vm238_vm1, %v571_v1, 0.0 }
  0xc5   : > { %v430_v3 = vsel %vm238_vm1, %v1671_v35, 0.0 }
  0xc6   : > { %v417_v57 = vadd.f32 %v416_v41, %v415_v48  ;;  %v1679_v41 = vld [vmem:[%s971_s12 + $0x308] sm:$0xff]  ;;  %v766_v45 = vadd.f32 %v765_v2, %v764_v39  ;;  %v573_v48 = vmul.f32 %v1487_v13, %v1487_v13  ;;  %v771_v59 = vsel %vm238_vm1, %v572_v42, 0.0 }
  0xc7   : > { %v432_v44 = vsel %vm238_vm1, %v1679_v41, 0.0 }
  0xc8   : > { %v419_v4 = vadd.f32 %v418_v47, %v417_v57  ;;  %v1687_v47 = vld [vmem:[%s971_s12 + $0x310] sm:$0xff]  ;;  %v768_v54 = vadd.f32 %v767_v7, %v766_v45  ;;  %v574_v57 = vmul.f32 %v1495_v16, %v1495_v16  ;;  %v773_v5 = vsel %vm238_vm1, %v573_v48, 0.0 }
  0xc9   : > { %v434_v51 = vsel %vm238_vm1, %v1687_v47, 0.0 }
  0xca   : > { %v421_v14 = vadd.f32 %v420_v56, %v419_v4  ;;  %v1695_v56 = vld [vmem:[%s971_s12 + $0x318] sm:$0xff]  ;;  %v770_v62 = vadd.f32 %v769_v50, %v768_v54  ;;  %v575_v4 = vmul.f32 %v1503_v19, %v1503_v19  ;;  %v775_v17 = vsel %vm238_vm1, %v574_v57, 0.0 }
  0xcb   : > { %v436_v13 = vsel %vm238_vm1, %v1695_v56, 0.0 }
  0xcc   : > { %v423_v24 = vadd.f32 %v422_v63, %v421_v14  ;;  %v1703_v63 = vld [vmem:[%s971_s12 + $0x320] sm:$0xff]  ;;  %v772_v9 = vadd.f32 %v771_v59, %v770_v62  ;;  %v576_v14 = vmul.f32 %v1511_v22, %v1511_v22  ;;  %v777_v26 = vsel %vm238_vm1, %v575_v4, 0.0 }
  0xcd   : > { %v438_v16 = vsel %vm238_vm1, %v1703_v63, 0.0 }
  0xce   : > { %v425_v33 = vadd.f32 %v424_v12, %v423_v24  ;;  %v1711_v12 = vld [vmem:[%s971_s12 + $0x328] sm:$0xff]  ;;  %v774_v21 = vadd.f32 %v773_v5, %v772_v9  ;;  %v577_v24 = vmul.f32 %v1519_v25, %v1519_v25  ;;  %v779_v36 = vsel %vm238_vm1, %v576_v14, 0.0 }
  0xcf   : > { %v440_v19 = vsel %vm238_vm1, %v1711_v12, 0.0 }
  0xd0   : > { %v427_v38 = vadd.f32 %v426_v23, %v425_v33  ;;  %v1719_v23 = vld [vmem:[%s971_s12 + $0x330] sm:$0xff]  ;;  %v776_v30 = vadd.f32 %v775_v17, %v774_v21  ;;  %v578_v33 = vmul.f32 %v1527_v28, %v1527_v28  ;;  %v781_v39 = vsel %vm238_vm1, %v577_v24, 0.0 }
  0xd1   : > { %v442_v22 = vsel %vm238_vm1, %v1719_v23, 0.0 }
  0xd2   : > { %v429_v10 = vadd.f32 %v428_v32, %v427_v38  ;;  %v1727_v32 = vld [vmem:[%s971_s12 + $0x338] sm:$0xff]  ;;  %v778_v2 = vadd.f32 %v777_v26, %v776_v30  ;;  %v579_v38 = vmul.f32 %v1535_v31, %v1535_v31  ;;  %v783_v45 = vsel %vm238_vm1, %v578_v33, 0.0 }
  0xd3   : > { %v444_v25 = vsel %vm238_vm1, %v1727_v32, 0.0 }
  0xd4   : > { %v431_v53 = vadd.f32 %v430_v3, %v429_v10  ;;  %v1735_v3 = vld [vmem:[%s971_s12 + $0x340] sm:$0xff]  ;;  %v780_v7 = vadd.f32 %v779_v36, %v778_v2  ;;  %v580_v10 = vmul.f32 %v1543_v34, %v1543_v34  ;;  %v785_v54 = vsel %vm238_vm1, %v579_v38, 0.0 }
  0xd5   : > { %v446_v28 = vsel %vm238_vm1, %v1735_v3, 0.0  ;;  %v587_v2 = vmul.f32 %v1599_v55, %v1599_v55 }
  0xd6   : > { %v433_v60 = vadd.f32 %v432_v44, %v431_v53  ;;  %v1743_v44 = vld [vmem:[%s971_s12 + $0x348] sm:$0xff]  ;;  %v782_v50 = vadd.f32 %v781_v39, %v780_v7  ;;  %v581_v53 = vmul.f32 %v1551_v37, %v1551_v37  ;;  %v787_v62 = vsel %vm238_vm1, %v580_v10, 0.0 }
  0xd7   : > { %v448_v31 = vsel %vm238_vm1, %v1743_v44, 0.0  ;;  %v588_v7 = vmul.f32 %v1607_v58, %v1607_v58  ;;  %v589_v10 = vmul.f32 %v1615_v61, %v1615_v61  ;;  %v801_v55 = vsel %vm238_vm1, %v587_v2, 0.0 }
  0xd8   : > { %v435_v8 = vadd.f32 %v434_v51, %v433_v60  ;;  %v1751_v51 = vld [vmem:[%s971_s12 + $0x350] sm:$0xff]  ;;  %v784_v59 = vadd.f32 %v783_v45, %v782_v50  ;;  %v582_v60 = vmul.f32 %v1559_v40, %v1559_v40  ;;  %v789_v9 = vsel %vm238_vm1, %v581_v53, 0.0  ;;  %v1800_v45 = vld [vmem:[%s971_s12 + $0x378] sm:$0xff] }
  0xd9   : > { %v450_v34 = vsel %vm238_vm1, %v1751_v51, 0.0  ;;  %v590_v53 = vmul.f32 %v1623_v0, %v1623_v0  ;;  %v803_v58 = vsel %vm238_vm1, %v588_v7, 0.0  ;;  %v805_v61 = vsel %vm238_vm1, %v589_v10, 0.0 }
  0xda   : > { %v437_v18 = vadd.f32 %v436_v13, %v435_v8  ;;  %v1759_v13 = vld [vmem:[%s971_s12 + $0x358] sm:$0xff]  ;;  %v786_v5 = vadd.f32 %v785_v54, %v784_v59  ;;  %v583_v8 = vmul.f32 %v1567_v43, %v1567_v43  ;;  %v791_v21 = vsel %vm238_vm1, %v582_v60, 0.0  ;;  %v1811_v59 = vld [vmem:[%s971_s12 + $0x380] sm:$0xff] }
  0xdb   : > { %v452_v37 = vsel %vm238_vm1, %v1759_v13, 0.0  ;;  %v585_v43 = vmul.f32 %v1583_v49, %v1583_v49  ;;  %v807_v0 = vsel %vm238_vm1, %v590_v53, 0.0  ;;  %v600_v10 = vmul.f32 %v1703_v63, %v1703_v63 }
  0xdc   : > { %v439_v27 = vadd.f32 %v438_v16, %v437_v18  ;;  %v1767_v16 = vld [vmem:[%s971_s12 + $0x360] sm:$0xff]  ;;  %v788_v17 = vadd.f32 %v787_v62, %v786_v5  ;;  %v584_v18 = vmul.f32 %v1575_v46, %v1575_v46  ;;  %v793_v26 = vsel %vm238_vm1, %v583_v8, 0.0  ;;  %v1822_v8 = vld [vmem:[%s971_s12 + $0x388] sm:$0xff] }
  0xdd   : > { %v454_v40 = vsel %vm238_vm1, %v1767_v16, 0.0  ;;  %v586_v46 = vmul.f32 %v1591_v52, %v1591_v52  ;;  %v797_v49 = vsel %vm238_vm1, %v585_v43, 0.0  ;;  %v462_v62 = vsel %vm238_vm1, %v1811_v59, 0.0 }
  0xde   : > { %v441_v1 = vadd.f32 %v440_v19, %v439_v27  ;;  %v790_v24 = vadd.f32 %v789_v9, %v788_v17  ;;  %v1778_v27 = vld [vmem:[%s971_s12 + $0x368] sm:$0xff]  ;;  %v795_v36 = vsel %vm238_vm1, %v584_v18, 0.0  ;;  %v464_v17 = vsel %vm238_vm1, %v1822_v8, 0.0 }
  0xdf   : > { %v456_v33 = vsel %vm238_vm1, %v1778_v27, 0.0  ;;  %v799_v52 = vsel %vm238_vm1, %v586_v46, 0.0  ;;  %v1844_v46 = vld [vmem:[%s971_s12 + $0x398] sm:$0xff]  ;;  %v827_v63 = vsel %vm238_vm1, %v600_v10, 0.0 }
  0xe0   : > { %v443_v42 = vadd.f32 %v442_v22, %v441_v1  ;;  %v792_v22 = vadd.f32 %v791_v21, %v790_v24  ;;  %v595_v21 = vmul.f32 %v1663_v29, %v1663_v29  ;;  %v468_v2 = vsel %vm238_vm1, %v1844_v46, 0.0 }
  0xe2   : > { %v445_v48 = vadd.f32 %v444_v25, %v443_v42  ;;  %v794_v1 = vadd.f32 %v793_v26, %v792_v22  ;;  %v1789_v25 = vld [vmem:[%s971_s12 + $0x370] sm:$0xff]  ;;  %v817_v29 = vsel %vm238_vm1, %v595_v21, 0.0 }
  0xe3   : > { %v458_v42 = vsel %vm238_vm1, %v1789_v25, 0.0 }
  0xe4   : > { %v447_v57 = vadd.f32 %v446_v28, %v445_v48  ;;  %v796_v39 = vadd.f32 %v795_v36, %v794_v1 }
  0xe6   : > { %v449_v4 = vadd.f32 %v448_v31, %v447_v57  ;;  %v798_v28 = vadd.f32 %v797_v49, %v796_v39  ;;  %v460_v31 = vsel %vm238_vm1, %v1800_v45, 0.0  ;;  %v591_v57 = vmul.f32 %v1631_v6, %v1631_v6 }
  0xe7   : > { %v598_v49 = vmul.f32 %v1687_v47, %v1687_v47  ;;  %v599_v39 = vmul.f32 %v1695_v56, %v1695_v56 }
  0xe8   : > { %v451_v14 = vadd.f32 %v450_v34, %v449_v4  ;;  %v800_v50 = vadd.f32 %v799_v52, %v798_v28  ;;  %v592_v4 = vmul.f32 %v1639_v11, %v1639_v11  ;;  %v809_v6 = vsel %vm238_vm1, %v591_v57, 0.0 }
  0xe9   : > { %v823_v47 = vsel %vm238_vm1, %v598_v49, 0.0  ;;  %v825_v56 = vsel %vm238_vm1, %v599_v39, 0.0  ;;  %v611_v49 = vmul.f32 %v1800_v45, %v1800_v45  ;;  %v233_v45 = vld [vmem:[%s971_s12 + $0x3d8] sm:$0xff] }
  0xea   : > { %v453_v19 = vadd.f32 %v452_v37, %v451_v14  ;;  %v802_v54 = vadd.f32 %v801_v55, %v800_v50  ;;  %v593_v37 = vmul.f32 %v1647_v15, %v1647_v15  ;;  %v811_v11 = vsel %vm238_vm1, %v592_v4, 0.0  ;;  %v1866_v50 = vld [vmem:[%s971_s12 + $0x3a8] sm:$0xff] }
  0xeb   : > { %v849_v10 = vsel %vm238_vm1, %v611_v49, 0.0 }
  0xec   : > { %v455_v30 = vadd.f32 %v454_v40, %v453_v19  ;;  %v804_v60 = vadd.f32 %v803_v58, %v802_v54  ;;  %v594_v40 = vmul.f32 %v1655_v20, %v1655_v20  ;;  %v813_v15 = vsel %vm238_vm1, %v593_v37, 0.0  ;;  %v1833_v19 = vld [vmem:[%s971_s12 + $0x390] sm:$0xff] }
  0xed   : > { %v466_v26 = vsel %vm238_vm1, %v1833_v19, 0.0  ;;  %v472_v58 = vsel %vm238_vm1, %v1866_v50, 0.0  ;;  %v602_v54 = vmul.f32 %v1719_v23, %v1719_v23  ;;  %v605_v37 = vmul.f32 %v1743_v44, %v1743_v44  ;;  %v230_v44 = vld [vmem:[%s971_s12 + $0x3c0] sm:$0xff] }
  0xee   : > { %v457_v38 = vadd.f32 %v456_v33, %v455_v30  ;;  %v806_v5 = vadd.f32 %v805_v61, %v804_v60  ;;  %v596_v30 = vmul.f32 %v1671_v35, %v1671_v35  ;;  %v815_v20 = vsel %vm238_vm1, %v594_v40, 0.0 }
  0xef   : > { %v597_v33 = vmul.f32 %v1679_v41, %v1679_v41  ;;  %v603_v61 = vmul.f32 %v1727_v32, %v1727_v32  ;;  %v831_v23 = vsel %vm238_vm1, %v602_v54, 0.0  ;;  %v606_v40 = vmul.f32 %v1751_v51, %v1751_v51 }
  0xf0   : > { %v459_v48 = vadd.f32 %v458_v42, %v457_v38  ;;  %v808_v14 = vadd.f32 %v807_v0, %v806_v5  ;;  %v819_v35 = vsel %vm238_vm1, %v596_v30, 0.0  ;;  %v1855_v42 = vld [vmem:[%s971_s12 + $0x3a0] sm:$0xff]  ;;  %v604_v0 = vmul.f32 %v1735_v3, %v1735_v3 }
  0xf1   : > { %v821_v41 = vsel %vm238_vm1, %v597_v33, 0.0  ;;  %v470_v28 = vsel %vm238_vm1, %v1855_v42, 0.0  ;;  %v833_v32 = vsel %vm238_vm1, %v603_v61, 0.0  ;;  %v837_v21 = vsel %vm238_vm1, %v605_v37, 0.0 }
  0xf2   : > { %v461_v34 = vadd.f32 %v460_v31, %v459_v48  ;;  %v810_v18 = vadd.f32 %v809_v6, %v808_v14  ;;  %v601_v48 = vmul.f32 %v1711_v12, %v1711_v12  ;;  %v229_v6 = vld [vmem:[%s971_s12 + $0x3b8] sm:$0xff]  ;;  %v839_v30 = vsel %vm238_vm1, %v606_v40, 0.0 }
  0xf3   : > { %v616_v61 = vmul.f32 %v1855_v42, %v1855_v42 }
  0xf4   : > { %v463_v9 = vadd.f32 %v462_v62, %v461_v34  ;;  %v812_v43 = vadd.f32 %v811_v11, %v810_v18  ;;  %v829_v12 = vsel %vm238_vm1, %v601_v48, 0.0  ;;  %v1877_v34 = vld [vmem:[%s971_s12 + $0x3b0] sm:$0xff]  ;;  %v835_v11 = vsel %vm238_vm1, %v604_v0, 0.0 }
  0xf5   : > { %v474_v4 = vsel %vm238_vm1, %v1877_v34, 0.0  ;;  %v607_v18 = vmul.f32 %v1759_v13, %v1759_v13  ;;  %v231_v13 = vld [vmem:[%s971_s12 + $0x3c8] sm:$0xff]  ;;  %v484_v48 = vsel %vm238_vm1, %v233_v45, 0.0  ;;  %v859_v37 = vsel %vm238_vm1, %v616_v61, 0.0 }
  0xf6   : > { %v465_v24 = vadd.f32 %v464_v17, %v463_v9  ;;  %v814_v22 = vadd.f32 %v813_v15, %v812_v43  ;;  %v476_v17 = vsel %vm238_vm1, %v229_v6, 0.0  ;;  %v478_v43 = vsel %vm238_vm1, %v230_v44, 0.0 }
  0xf8   : > { %v467_v36 = vadd.f32 %v466_v26, %v465_v24  ;;  %v816_v1 = vadd.f32 %v815_v20, %v814_v22  ;;  %v608_v26 = vmul.f32 %v1767_v16, %v1767_v16  ;;  %v609_v20 = vmul.f32 %v1778_v27, %v1778_v27  ;;  %v232_v27 = vld [vmem:[%s971_s12 + $0x3d0] sm:$0xff] }
  0xf9   : > { %v841_v22 = vsel %vm238_vm1, %v607_v18, 0.0 }
  0xfa   : > { %v818_v38 = vadd.f32 %v817_v29, %v816_v1  ;;  %v469_v7 = vadd.f32 %v468_v2, %v467_v36  ;;  %v480_v36 = vsel %vm238_vm1, %v231_v13, 0.0  ;;  %v610_v1 = vmul.f32 %v1789_v25, %v1789_v25 }
  0xfb   : > { %v843_v2 = vsel %vm238_vm1, %v608_v26, 0.0 }
  0xfc   : > { %v820_v52 = vadd.f32 %v819_v35, %v818_v38  ;;  %v471_v31 = vadd.f32 %v470_v28, %v469_v7  ;;  %v845_v35 = vsel %vm238_vm1, %v609_v20, 0.0  ;;  %v612_v7 = vmul.f32 %v1811_v59, %v1811_v59 }
  0xfd   : > { %v613_v28 = vmul.f32 %v1822_v8, %v1822_v8  ;;  %v234_v8 = vld [vmem:[%s971_s12 + $0x3e0] sm:$0xff]  ;;  %v623_v20 = vmul.f32 %v233_v45, %v233_v45 }
  0xfe   : > { %v822_v55 = vadd.f32 %v821_v41, %v820_v52  ;;  %v473_v60 = vadd.f32 %v472_v58, %v471_v31  ;;  %v482_v41 = vsel %vm238_vm1, %v232_v27, 0.0  ;;  %v847_v52 = vsel %vm238_vm1, %v610_v1, 0.0 }
  0xff   : > { %v851_v31 = vsel %vm238_vm1, %v612_v7, 0.0  ;;  %v853_v58 = vsel %vm238_vm1, %v613_v28, 0.0 }
 0x100   : > { %v824_v53 = vadd.f32 %v823_v47, %v822_v55  ;;  %v475_v9 = vadd.f32 %v474_v4, %v473_v60  ;;  %v617_v60 = vmul.f32 %v1866_v50, %v1866_v50 }
 0x102   : > { %v826_v57 = vadd.f32 %v825_v56, %v824_v53  ;;  %v477_v15 = vadd.f32 %v476_v17, %v475_v9  ;;  %v614_v56 = vmul.f32 %v1833_v19, %v1833_v19  ;;  %v615_v53 = vmul.f32 %v1844_v46, %v1844_v46  ;;  %v235_v46 = vld [vmem:[%s971_s12 + $0x3e8] sm:$0xff] }
 0x103   : > { %v861_v9 = vsel %vm238_vm1, %v617_v60, 0.0  ;;  %v625_v1 = vmul.f32 %v235_v46, %v235_v46 }
 0x104   : > { %v828_v62 = vadd.f32 %v827_v63, %v826_v57  ;;  %v479_v33 = vadd.f32 %v478_v43, %v477_v15  ;;  %v486_v57 = vsel %vm238_vm1, %v234_v8, 0.0 }
 0x106   : > { %v830_v5 = vadd.f32 %v829_v12, %v828_v62  ;;  %v481_v38 = vadd.f32 %v480_v36, %v479_v33  ;;  %v855_v12 = vsel %vm238_vm1, %v614_v56, 0.0  ;;  %v857_v62 = vsel %vm238_vm1, %v615_v53, 0.0 }
 0x108   : > { %v832_v14 = vadd.f32 %v831_v23, %v830_v5  ;;  %v483_v47 = vadd.f32 %v482_v41, %v481_v38  ;;  %v488_v23 = vsel %vm238_vm1, %v235_v46, 0.0  ;;  %v618_v5 = vmul.f32 %v1877_v34, %v1877_v34 }
 0x109   : > { %v877_v41 = vsel %vm238_vm1, %v625_v1, 0.0 }
 0x10a   : > { %v834_v3 = vadd.f32 %v833_v32, %v832_v14  ;;  %v485_v54 = vadd.f32 %v484_v48, %v483_v47  ;;  %v619_v32 = vmul.f32 %v229_v6, %v229_v6  ;;  %v236_v14 = vld [vmem:[%s971_s12 + $0x3f0] sm:$0xff]  ;;  %v622_v6 = vmul.f32 %v232_v27, %v232_v27 }
 0x10b   : > { %v490_v40 = vsel %vm238_vm1, %v236_v14, 0.0 }
 0x10c   : > { %v836_v24 = vadd.f32 %v835_v11, %v834_v3  ;;  %v487_v4 = vadd.f32 %v486_v57, %v485_v54  ;;  %v620_v11 = vmul.f32 %v230_v44, %v230_v44  ;;  %v863_v3 = vsel %vm238_vm1, %v618_v5, 0.0  ;;  %v889_v57 = vld [vmem:[%s1965_s1] sm:$0x3] }
 0x10d   : > { %v865_v15 = vsel %vm238_vm1, %v619_v32, 0.0  ;;  %v871_v36 = vsel %vm238_vm1, %v622_v6, 0.0 }
 0x10e   : > { %v838_v51 = vadd.f32 %v837_v21, %v836_v24  ;;  %v489_v17 = vadd.f32 %v488_v23, %v487_v4  ;;  %v621_v21 = vmul.f32 %v231_v13, %v231_v13  ;;  %v237_v24 = vld [vmem:[%s971_s12 + $0x3f8] sm:$0xff] }
 0x10f   : > { %v492_v26 = vsel %vm238_vm1, %v237_v24, 0.0 }
 0x110   : > { %v840_v29 = vadd.f32 %v839_v30, %v838_v51  ;;  %v491_v34 = vadd.f32 %v490_v40, %v489_v17  ;;  %v867_v30 = vsel %vm238_vm1, %v620_v11, 0.0 }
 0x112   : > { %v842_v16 = vadd.f32 %v841_v22, %v840_v29  ;;  %v869_v22 = vsel %vm238_vm1, %v621_v21, 0.0  ;;  %v493_v33 = vadd.f32 %v492_v26, %v491_v34  ;;  %v624_v29 = vmul.f32 %v234_v8, %v234_v8 }
 0x114   : > { %v844_v39 = vadd.f32 %v843_v2, %v842_v16  ;;  %v873_v2 = vsel %vm238_vm1, %v623_v20, 0.0  ;;  %v494_v16 = vrot.slane %v493_v33, 4  ;;  %v875_v27 = vsel %vm238_vm1, %v624_v29, 0.0 }
 0x116   : > { %v846_v25 = vadd.f32 %v845_v35, %v844_v39  ;;  %v626_v35 = vmul.f32 %v236_v14, %v236_v14  ;;  %v627_v39 = vmul.f32 %v237_v24, %v237_v24  ;;  %v495_v7 = vadd.f32 %v494_v16, %v493_v33 }
 0x118   : > { %v848_v55 = vadd.f32 %v847_v52, %v846_v25  ;;  %v879_v25 = vsel %vm238_vm1, %v626_v35, 0.0  ;;  %v496_v45 = vrot.slane %v495_v7, 2 }
 0x11a   : > { %v850_v59 = vadd.f32 %v849_v10, %v848_v55  ;;  %v881_v10 = vsel %vm238_vm1, %v627_v39, 0.0  ;;  %v497_v48 = vadd.f32 %v496_v45, %v495_v7 }
 0x11c   : > { %v852_v63 = vadd.f32 %v851_v31, %v850_v59  ;;  %v498_v59 = vrot.slane %v497_v48, 1 }
 0x11e   : > { %v854_v19 = vadd.f32 %v853_v58, %v852_v63  ;;  %v499_v8 = vadd.f32 %v498_v59, %v497_v48 }
 0x120   : > { %v856_v0 = vadd.f32 %v855_v12, %v854_v19 }
 0x122   : > { %v858_v42 = vadd.f32 %v857_v62, %v856_v0 }
 0x124   : > { %v860_v50 = vadd.f32 %v859_v37, %v858_v42 }
 0x126   : > { %v862_v18 = vadd.f32 %v861_v9, %v860_v50 }
 0x128   : > { %v864_v43 = vadd.f32 %v863_v3, %v862_v18 }
 0x12a   : > { %v866_v51 = vadd.f32 %v865_v15, %v864_v43 }
 0x12c   : > { %v868_v44 = vadd.f32 %v867_v30, %v866_v51 }
 0x12e   : > { %v870_v13 = vadd.f32 %v869_v22, %v868_v44 }
 0x130   : > { %v872_v49 = vadd.f32 %v871_v36, %v870_v13 }
 0x132   : > { %v874_v38 = vadd.f32 %v873_v2, %v872_v49 }
 0x134   : > { %v876_v52 = vadd.f32 %v875_v27, %v874_v38 }
 0x136   : > { %v878_v28 = vadd.f32 %v877_v41, %v876_v52 }
 0x138   : > { %v880_v47 = vadd.f32 %v879_v25, %v878_v28 }
 0x13a   : > { %v882_v55 = vadd.f32 %v881_v10, %v880_v47 }
 0x13c   : > { %v883_v56 = vrot.slane %v882_v55, 4 }
 0x13e   : > { %v884_v31 = vadd.f32 %v883_v56, %v882_v55 }
 0x140   : > { %v885_v53 = vrot.slane %v884_v31, 2 }
 0x142   : > { %v886_v58 = vadd.f32 %v885_v53, %v884_v31 }
 0x144   : > { %v887_v54 = vrot.slane %v886_v58, 1 }
 0x146   : > { %v888_v63 = vadd.f32 %v887_v54, %v886_v58 }
 0x148   : > { %v891_v61 = vsel %vm890_vm2, %v499_v8, %v888_v63 }
 0x149   : > { %v892_v12 = vadd.f32 %v891_v61, %v889_v57 }
 0x14b   : > { %894 = vst.msk [vmem:[%s1965_s1] sm:$0x3] %vm893_vm3, %v892_v12 }
 0x14c PF: > { %s11_s6 = sadd.s32 1, %s947_s6  }
 0x14d   : > { %p8_p5 = scmp.ge.s32.totalorder %s11_s6, 4  }
 0x14f   :  { %10 = sbr.rel (!%p8_p5) target bundleno = 1 (0x1), region = 54 }

// kernel: generator_forward.24
= control target key start
LH: loop header
LB: loop body
LE: loop exit
PB: predicated region body
PF: predicated region fallthrough
CT: control target
= control target key end

     0   :  { %s1107_s15 = smov 0   ;;  %s2221_s0 = inlined_call_operand.vmem [shape: f32[2048,64], index: 0, kind: input, shape index: {}]   ;;  %s2222_s1 = inlined_call_operand.vmem [shape: f32[2,64], index: 1, kind: input, shape index: {}]   ;;  %s2223_s2 = inlined_call_operand.vmem [shape: f32[1,64], index: 2, kind: input, shape index: {}]   ;;  %s2224_s3 = inlined_call_operand.vmem [shape: f32[1,64], index: 3, kind: input, shape index: {}]   ;;  %s2225_s4 = inlined_call_operand.vmem [shape: f32[2048,64], index: 4, kind: output, shape index: {}]  }
   0x1 LB: > { %s1051_s16 = sadd.s32 4294967295, %s1080_s15   ;;  %p1055_p0 = scmp.ge.s32.totalorder %s1080_s15, 1  ;;  %s1080_s15 = sphi %s1107_s15, %s14_s15  }
   0x2   : > { %p163_p1 = scmp.lt.s32.totalorder %s1080_s15, 3 }
   0x4   : > { %p164_p2 = pnand %p1055_p0, %p163_p1 }
   0x5   : > { %s1056_s17 = sshll.u32 (!%p164_p2), %s1051_s16, 7  ;;  %v201_v0 = vld [vmem:[%s2222_s1] sm:$0x1] (!%p164_p2)  ;;  %v203_v1 = vld [vmem:[%s2222_s1 + $0x1] sm:$0x1] (!%p164_p2)  ;;  %v337_v2 = vlaneseq (!%p164_p2)  ;;  %vm866_vm0 = vcmask (!%p164_p2), 523264  }
   0x6   : > { %167 = sbr.rel (%p164_p2) target bundleno = 171 (0xab), region = 36  ;;  %p190_p3 = scmp.lt.s32.totalorder (!%p164_p2), %s1056_s17, 255  ;;  %v202_v3 = vmul.f32 (!%p164_p2), 0.00048828125, %v201_v0  ;;  %v204_v4 = vmul.f32 (!%p164_p2), 0.00048828125, %v203_v1  ;;  %v469_v49 = vld [vmem:[%s2223_s2] sm:$0x1] (!%p164_p2) }
   0x7   : > { %v1121_v5 = vshrl.u32 (!%p164_p2), %v337_v2, 7 }
   0x8   : > { %v205_v6 = vmul.f32 (!%p164_p2), %v202_v3, %v202_v3 }
   0x9   : > { %v339_v7 = vsub.s32 (!%p164_p2), 0, %v1121_v5  ;;  %v1380_v5 = vld [vmem:[%s2224_s3] ss:$0 sm:$0xff] (!%p164_p2) }
   0xa   : > { %v206_v8 = vsub.f32 (!%p164_p2), %v204_v4, %v205_v6 }
   0xb   : > { %v1139_v11 = vrot.slane (!%p164_p2), %v202_v3, %v339_v7 }
   0xc   : > { %v207_v9 = vadd.f32 (!%p164_p2), 1e-05, %v206_v8 }
   0xd   : > { %s2266_s17 = smov (!%p190_p3, %s1056_s17), 255 }
   0xe   : > { %s1057_s22 = sshll.u32 %s2266_s17, 3  ;;  %1071 = vrsqrt.f32 %v207_v9 }
   0xf   : > { %s1132_s25 = scalar_lea.vmem %s2221_s0, %s1057_s22  ;;  %s1431_s6 = scalar_lea.vmem %s2225_s4, %s1057_s22 }
  0x10   : > { %v1135_v10 = vld [vmem:[%s1132_s25] sm:$0xff]  ;;  %v1142_v12 = vld [vmem:[%s1132_s25 + $0x8] sm:$0xff]  ;;  %v1145_v13 = vld [vmem:[%s1132_s25 + $0x10] sm:$0xff] }
  0x11   : > { %v1148_v14 = vld [vmem:[%s1132_s25 + $0x18] sm:$0xff]  ;;  %v1151_v15 = vld [vmem:[%s1132_s25 + $0x20] sm:$0xff]  ;;  %v1154_v16 = vld [vmem:[%s1132_s25 + $0x28] sm:$0xff]  ;;  %v341_v23 = vsub.f32 %v1135_v10, %v1139_v11  ;;  %v342_v24 = vsub.f32 %v1142_v12, %v1139_v11  ;;  %v343_v28 = vsub.f32 %v1145_v13, %v1139_v11 }
  0x12   : > { %v1157_v17 = vld [vmem:[%s1132_s25 + $0x30] sm:$0xff]  ;;  %v1160_v18 = vld [vmem:[%s1132_s25 + $0x38] sm:$0xff]  ;;  %v1163_v19 = vld [vmem:[%s1132_s25 + $0x40] sm:$0xff]  ;;  %v344_v29 = vsub.f32 %v1148_v14, %v1139_v11  ;;  %v345_v30 = vsub.f32 %v1151_v15, %v1139_v11  ;;  %v346_v31 = vsub.f32 %v1154_v16, %v1139_v11 }
  0x13   : > { %v1166_v20 = vld [vmem:[%s1132_s25 + $0x48] sm:$0xff]  ;;  %v1169_v21 = vld [vmem:[%s1132_s25 + $0x50] sm:$0xff]  ;;  %v1172_v22 = vld [vmem:[%s1132_s25 + $0x58] sm:$0xff]  ;;  %v347_v35 = vsub.f32 %v1157_v17, %v1139_v11  ;;  %v348_v36 = vsub.f32 %v1160_v18, %v1139_v11 }
  0x14   : > { %v1179_v25 = vld [vmem:[%s1132_s25 + $0x60] sm:$0xff]  ;;  %v1182_v26 = vld [vmem:[%s1132_s25 + $0x68] sm:$0xff]  ;;  %v1185_v27 = vld [vmem:[%s1132_s25 + $0x70] sm:$0xff] }
  0x15   : > { %v1196_v32 = vld [vmem:[%s1132_s25 + $0x78] sm:$0xff]  ;;  %v1199_v33 = vld [vmem:[%s1132_s25 + $0x80] sm:$0xff]  ;;  %v1202_v34 = vld [vmem:[%s1132_s25 + $0x88] sm:$0xff] }
  0x16   : > { %v1213_v39 = vld [vmem:[%s1132_s25 + $0x90] sm:$0xff]  ;;  %v1216_v40 = vld [vmem:[%s1132_s25 + $0x98] sm:$0xff]  ;;  %v1219_v41 = vld [vmem:[%s1132_s25 + $0xa0] sm:$0xff] }
  0x17   : > { %v1230_v46 = vld [vmem:[%s1132_s25 + $0xa8] sm:$0xff]  ;;  %v1233_v47 = vld [vmem:[%s1132_s25 + $0xb0] sm:$0xff]  ;;  %v1236_v48 = vld [vmem:[%s1132_s25 + $0xb8] sm:$0xff] }
  0x18   : > { %v1250_v54 = vld [vmem:[%s1132_s25 + $0xc0] sm:$0xff]  ;;  %v1253_v55 = vld [vmem:[%s1132_s25 + $0xc8] sm:$0xff]  ;;  %v1256_v56 = vld [vmem:[%s1132_s25 + $0xd0] sm:$0xff]  ;;  %v1072_v58 = vpop.eup %1071 }
  0x19   : > { %v1267_v61 = vld [vmem:[%s1132_s25 + $0xd8] sm:$0xff]  ;;  %v1270_v62 = vld [vmem:[%s1132_s25 + $0xe0] sm:$0xff]  ;;  %v1273_v63 = vld [vmem:[%s1132_s25 + $0xe8] sm:$0xff]  ;;  %v470_v51 = vmul.f32 %v1072_v58, %v469_v49 }
  0x1a   : > { %v1284_v4 = vld [vmem:[%s1132_s25 + $0xf0] sm:$0xff]  ;;  %v1287_v6 = vld [vmem:[%s1132_s25 + $0xf8] sm:$0xff]  ;;  %v1290_v8 = vld [vmem:[%s1132_s25 + $0x100] sm:$0xff] }
  0x1b   : > { %v1301_v0 = vld [vmem:[%s1132_s25 + $0x108] sm:$0xff]  ;;  %v1304_v60 = vld [vmem:[%s1132_s25 + $0x110] sm:$0xff]  ;;  %v1307_v59 = vld [vmem:[%s1132_s25 + $0x118] sm:$0xff]  ;;  %v1360_v42 = vrot.slane %v470_v51, %v339_v7 }
  0x1c   : > { %v1318_v57 = vld [vmem:[%s1132_s25 + $0x120] sm:$0xff]  ;;  %v1321_v53 = vld [vmem:[%s1132_s25 + $0x128] sm:$0xff]  ;;  %v1324_v52 = vld [vmem:[%s1132_s25 + $0x130] sm:$0xff] }
  0x1d   : > { %v1333_v9 = vld [vmem:[%s1132_s25 + $0x138] sm:$0xff]  ;;  %v1336_v50 = vld [vmem:[%s1132_s25 + $0x140] sm:$0xff]  ;;  %v1339_v45 = vld [vmem:[%s1132_s25 + $0x148] sm:$0xff]  ;;  %v475_v49 = vmul.f32 %v1360_v42, %v341_v23  ;;  %v476_v7 = vmul.f32 %v1360_v42, %v342_v24  ;;  %v477_v51 = vmul.f32 %v1360_v42, %v343_v28  ;;  %v478_v58 = vmul.f32 %v1360_v42, %v344_v29 }
  0x1e   : > { %v1350_v1 = vld [vmem:[%s1132_s25 + $0x150] sm:$0xff]  ;;  %v1353_v44 = vld [vmem:[%s1132_s25 + $0x158] sm:$0xff]  ;;  %v1356_v43 = vld [vmem:[%s1132_s25 + $0x160] sm:$0xff]  ;;  %v479_v10 = vmul.f32 %v1360_v42, %v345_v30  ;;  %v480_v12 = vmul.f32 %v1360_v42, %v346_v31  ;;  %v481_v13 = vmul.f32 %v1360_v42, %v347_v35  ;;  %v482_v14 = vmul.f32 %v1360_v42, %v348_v36 }
  0x1f   : > { %v1369_v3 = vld [vmem:[%s1132_s25 + $0x168] sm:$0xff]  ;;  %v1372_v38 = vld [vmem:[%s1132_s25 + $0x170] sm:$0xff]  ;;  %v1375_v37 = vld [vmem:[%s1132_s25 + $0x178] sm:$0xff]  ;;  %v610_v23 = vadd.f32 %v1380_v5, %v475_v49  ;;  %v611_v15 = vadd.f32 %v1380_v5, %v476_v7  ;;  %v612_v24 = vadd.f32 %v1380_v5, %v477_v51  ;;  %v613_v16 = vadd.f32 %v1380_v5, %v478_v58 }
  0x20   : > { %v387_v2 = vsub.f32 %v1372_v38, %v1139_v11  ;;  %v614_v17 = vadd.f32 %v1380_v5, %v479_v10  ;;  %v615_v18 = vadd.f32 %v1380_v5, %v480_v12  ;;  %v616_v28 = vadd.f32 %v1380_v5, %v481_v13  ;;  %v258_v38 = vld [vmem:[%s1132_s25 + $0x188] sm:$0xff] }
  0x21   : > { %v617_v29 = vadd.f32 %v1380_v5, %v482_v14  ;;  %v738_v30 = vmax.f32 %v610_v23, 0.0  ;;  %v739_v31 = vmax.f32 %v611_v15, 0.0  ;;  %v740_v35 = vmax.f32 %v612_v24, 0.0 }
  0x22   : > { %v741_v36 = vmax.f32 %v613_v16, 0.0  ;;  %v742_v49 = vmax.f32 %v614_v17, 0.0  ;;  %v743_v58 = vmax.f32 %v615_v18, 0.0  ;;  %v744_v7 = vmax.f32 %v616_v28, 0.0 }
  0x23   : > { %v745_v51 = vmax.f32 %v617_v29, 0.0  ;;  %867 = vst.msk [vmem:[%s1431_s6] sm:$0xff] %vm866_vm0, %v738_v30  ;;  %868 = vst.msk [vmem:[%s1431_s6 + $0x8] sm:$0xff] %vm866_vm0, %v739_v31  ;;  %v2226_v10 = vsub.f32 %v1163_v19, %v1139_v11  ;;  %v2227_v13 = vsub.f32 %v1166_v20, %v1139_v11  ;;  %v2228_v23 = vsub.f32 %v1169_v21, %v1139_v11 }
  0x24   : > { %869 = vst.msk [vmem:[%s1431_s6 + $0x10] sm:$0xff] %vm866_vm0, %v740_v35  ;;  %870 = vst.msk [vmem:[%s1431_s6 + $0x18] sm:$0xff] %vm866_vm0, %v741_v36  ;;  %v2229_v24 = vsub.f32 %v1172_v22, %v1139_v11  ;;  %v2230_v19 = vsub.f32 %v1179_v25, %v1139_v11  ;;  %v2231_v21 = vsub.f32 %v1182_v26, %v1139_v11 }
  0x25   : > { %v483_v12 = vmul.f32 %v1360_v42, %v2226_v10  ;;  %v484_v14 = vmul.f32 %v1360_v42, %v2227_v13  ;;  %v485_v15 = vmul.f32 %v1360_v42, %v2228_v23  ;;  %871 = vst.msk [vmem:[%s1431_s6 + $0x20] sm:$0xff] %vm866_vm0, %v742_v49  ;;  %872 = vst.msk [vmem:[%s1431_s6 + $0x28] sm:$0xff] %vm866_vm0, %v743_v58 }
  0x26   : > { %v486_v16 = vmul.f32 %v1360_v42, %v2229_v24  ;;  %873 = vst.msk [vmem:[%s1431_s6 + $0x30] sm:$0xff] %vm866_vm0, %v744_v7  ;;  %874 = vst.msk [vmem:[%s1431_s6 + $0x38] sm:$0xff] %vm866_vm0, %v745_v51  ;;  %v487_v20 = vmul.f32 %v1360_v42, %v2230_v19  ;;  %v488_v22 = vmul.f32 %v1360_v42, %v2231_v21 }
  0x27   : > { %v2232_v17 = vsub.f32 %v1185_v27, %v1139_v11  ;;  %v2233_v28 = vsub.f32 %v1196_v32, %v1139_v11  ;;  %v618_v30 = vadd.f32 %v1380_v5, %v483_v12  ;;  %v619_v25 = vadd.f32 %v1380_v5, %v484_v14 }
  0x28   : > { %v620_v26 = vadd.f32 %v1380_v5, %v485_v15  ;;  %v621_v31 = vadd.f32 %v1380_v5, %v486_v16  ;;  %v622_v27 = vadd.f32 %v1380_v5, %v487_v20  ;;  %v623_v35 = vadd.f32 %v1380_v5, %v488_v22 }
  0x29   : > { %v489_v18 = vmul.f32 %v1360_v42, %v2232_v17  ;;  %v490_v29 = vmul.f32 %v1360_v42, %v2233_v28  ;;  %v746_v49 = vmax.f32 %v618_v30, 0.0  ;;  %v747_v58 = vmax.f32 %v619_v25, 0.0 }
  0x2a   : > { %v748_v7 = vmax.f32 %v620_v26, 0.0  ;;  %v749_v51 = vmax.f32 %v621_v31, 0.0  ;;  %v750_v10 = vmax.f32 %v622_v27, 0.0  ;;  %v751_v12 = vmax.f32 %v623_v35, 0.0 }
  0x2b   : > { %v624_v32 = vadd.f32 %v1380_v5, %v489_v18  ;;  %v625_v36 = vadd.f32 %v1380_v5, %v490_v29  ;;  %875 = vst.msk [vmem:[%s1431_s6 + $0x40] sm:$0xff] %vm866_vm0, %v746_v49  ;;  %876 = vst.msk [vmem:[%s1431_s6 + $0x48] sm:$0xff] %vm866_vm0, %v747_v58  ;;  %v2234_v23 = vsub.f32 %v1199_v33, %v1139_v11 }
  0x2c   : > { %877 = vst.msk [vmem:[%s1431_s6 + $0x50] sm:$0xff] %vm866_vm0, %v748_v7  ;;  %878 = vst.msk [vmem:[%s1431_s6 + $0x58] sm:$0xff] %vm866_vm0, %v749_v51  ;;  %v2235_v24 = vsub.f32 %v1202_v34, %v1139_v11  ;;  %v2236_v19 = vsub.f32 %v1213_v39, %v1139_v11  ;;  %v2237_v21 = vsub.f32 %v1216_v40, %v1139_v11 }
  0x2d   : > { %v752_v13 = vmax.f32 %v624_v32, 0.0  ;;  %v753_v14 = vmax.f32 %v625_v36, 0.0  ;;  %v491_v15 = vmul.f32 %v1360_v42, %v2234_v23  ;;  %879 = vst.msk [vmem:[%s1431_s6 + $0x60] sm:$0xff] %vm866_vm0, %v750_v10  ;;  %880 = vst.msk [vmem:[%s1431_s6 + $0x68] sm:$0xff] %vm866_vm0, %v751_v12  ;;  %v2238_v33 = vsub.f32 %v1219_v41, %v1139_v11 }
  0x2e   : > { %v492_v16 = vmul.f32 %v1360_v42, %v2235_v24  ;;  %v493_v20 = vmul.f32 %v1360_v42, %v2236_v19  ;;  %v494_v22 = vmul.f32 %v1360_v42, %v2237_v21  ;;  %v2239_v39 = vsub.f32 %v1230_v46, %v1139_v11 }
  0x2f   : > { %881 = vst.msk [vmem:[%s1431_s6 + $0x70] sm:$0xff] %vm866_vm0, %v752_v13  ;;  %882 = vst.msk [vmem:[%s1431_s6 + $0x78] sm:$0xff] %vm866_vm0, %v753_v14  ;;  %v495_v34 = vmul.f32 %v1360_v42, %v2238_v33  ;;  %v2240_v17 = vsub.f32 %v1233_v47, %v1139_v11  ;;  %v2241_v28 = vsub.f32 %v1236_v48, %v1139_v11 }
  0x30   : > { %v496_v40 = vmul.f32 %v1360_v42, %v2239_v39  ;;  %v626_v30 = vadd.f32 %v1380_v5, %v491_v15  ;;  %v627_v41 = vadd.f32 %v1380_v5, %v492_v16  ;;  %v628_v46 = vadd.f32 %v1380_v5, %v493_v20 }
  0x31   : > { %v497_v18 = vmul.f32 %v1360_v42, %v2240_v17  ;;  %v498_v29 = vmul.f32 %v1360_v42, %v2241_v28  ;;  %v629_v25 = vadd.f32 %v1380_v5, %v494_v22  ;;  %v630_v47 = vadd.f32 %v1380_v5, %v495_v34 }
  0x32   : > { %v631_v26 = vadd.f32 %v1380_v5, %v496_v40  ;;  %v754_v27 = vmax.f32 %v626_v30, 0.0  ;;  %v755_v35 = vmax.f32 %v627_v41, 0.0  ;;  %v756_v32 = vmax.f32 %v628_v46, 0.0 }
  0x33   : > { %v632_v48 = vadd.f32 %v1380_v5, %v497_v18  ;;  %v633_v31 = vadd.f32 %v1380_v5, %v498_v29  ;;  %v757_v36 = vmax.f32 %v629_v25, 0.0  ;;  %v758_v49 = vmax.f32 %v630_v47, 0.0 }
  0x34   : > { %v759_v58 = vmax.f32 %v631_v26, 0.0  ;;  %883 = vst.msk [vmem:[%s1431_s6 + $0x80] sm:$0xff] %vm866_vm0, %v754_v27  ;;  %884 = vst.msk [vmem:[%s1431_s6 + $0x88] sm:$0xff] %vm866_vm0, %v755_v35  ;;  %v2242_v10 = vsub.f32 %v1250_v54, %v1139_v11  ;;  %v2243_v13 = vsub.f32 %v1253_v55, %v1139_v11  ;;  %v2244_v23 = vsub.f32 %v1256_v56, %v1139_v11 }
  0x35   : > { %v760_v7 = vmax.f32 %v632_v48, 0.0  ;;  %v761_v51 = vmax.f32 %v633_v31, 0.0  ;;  %885 = vst.msk [vmem:[%s1431_s6 + $0x90] sm:$0xff] %vm866_vm0, %v756_v32  ;;  %886 = vst.msk [vmem:[%s1431_s6 + $0x98] sm:$0xff] %vm866_vm0, %v757_v36  ;;  %v2245_v24 = vsub.f32 %v1267_v61, %v1139_v11  ;;  %v2246_v54 = vsub.f32 %v1270_v62, %v1139_v11 }
  0x36   : > { %v499_v12 = vmul.f32 %v1360_v42, %v2242_v10  ;;  %v500_v14 = vmul.f32 %v1360_v42, %v2243_v13  ;;  %v501_v15 = vmul.f32 %v1360_v42, %v2244_v23  ;;  %887 = vst.msk [vmem:[%s1431_s6 + $0xa0] sm:$0xff] %vm866_vm0, %v758_v49  ;;  %888 = vst.msk [vmem:[%s1431_s6 + $0xa8] sm:$0xff] %vm866_vm0, %v759_v58 }
  0x37   : > { %v502_v16 = vmul.f32 %v1360_v42, %v2245_v24  ;;  %889 = vst.msk [vmem:[%s1431_s6 + $0xb0] sm:$0xff] %vm866_vm0, %v760_v7  ;;  %890 = vst.msk [vmem:[%s1431_s6 + $0xb8] sm:$0xff] %vm866_vm0, %v761_v51  ;;  %v503_v55 = vmul.f32 %v1360_v42, %v2246_v54  ;;  %v2247_v56 = vsub.f32 %v1273_v63, %v1139_v11 }
  0x38   : > { %v2248_v19 = vsub.f32 %v1284_v4, %v1139_v11  ;;  %v2249_v21 = vsub.f32 %v1287_v6, %v1139_v11  ;;  %v634_v33 = vadd.f32 %v1380_v5, %v499_v12  ;;  %v635_v62 = vadd.f32 %v1380_v5, %v500_v14 }
  0x39   : > { %v504_v61 = vmul.f32 %v1360_v42, %v2247_v56  ;;  %v636_v63 = vadd.f32 %v1380_v5, %v501_v15  ;;  %v637_v34 = vadd.f32 %v1380_v5, %v502_v16  ;;  %v638_v4 = vadd.f32 %v1380_v5, %v503_v55 }
  0x3a   : > { %v505_v20 = vmul.f32 %v1360_v42, %v2248_v19  ;;  %v506_v22 = vmul.f32 %v1360_v42, %v2249_v21  ;;  %v762_v17 = vmax.f32 %v634_v33, 0.0  ;;  %v763_v18 = vmax.f32 %v635_v62, 0.0 }
  0x3b   : > { %v639_v39 = vadd.f32 %v1380_v5, %v504_v61  ;;  %v764_v28 = vmax.f32 %v636_v63, 0.0  ;;  %v765_v29 = vmax.f32 %v637_v34, 0.0  ;;  %v766_v30 = vmax.f32 %v638_v4, 0.0 }
  0x3c   : > { %v640_v6 = vadd.f32 %v1380_v5, %v505_v20  ;;  %v641_v40 = vadd.f32 %v1380_v5, %v506_v22  ;;  %891 = vst.msk [vmem:[%s1431_s6 + $0xc0] sm:$0xff] %vm866_vm0, %v762_v17  ;;  %892 = vst.msk [vmem:[%s1431_s6 + $0xc8] sm:$0xff] %vm866_vm0, %v763_v18  ;;  %v2250_v47 = vsub.f32 %v1290_v8, %v1139_v11  ;;  %v257_v18 = vld [vmem:[%s1132_s25 + $0x180] sm:$0xff] }
  0x3d   : > { %v767_v41 = vmax.f32 %v639_v39, 0.0  ;;  %893 = vst.msk [vmem:[%s1431_s6 + $0xd0] sm:$0xff] %vm866_vm0, %v764_v28  ;;  %894 = vst.msk [vmem:[%s1431_s6 + $0xd8] sm:$0xff] %vm866_vm0, %v765_v29  ;;  %v2251_v48 = vsub.f32 %v1301_v0, %v1139_v11  ;;  %v2252_v27 = vsub.f32 %v1304_v60, %v1139_v11  ;;  %v2253_v32 = vsub.f32 %v1307_v59, %v1139_v11  ;;  %v259_v28 = vld [vmem:[%s1132_s25 + $0x190] sm:$0xff] }
  0x3e   : > { %v768_v46 = vmax.f32 %v640_v6, 0.0  ;;  %v769_v25 = vmax.f32 %v641_v40, 0.0  ;;  %v507_v26 = vmul.f32 %v1360_v42, %v2250_v47  ;;  %895 = vst.msk [vmem:[%s1431_s6 + $0xe0] sm:$0xff] %vm866_vm0, %v766_v30  ;;  %v2254_v0 = vsub.f32 %v1318_v57, %v1139_v11 }
  0x3f   : > { %v508_v31 = vmul.f32 %v1360_v42, %v2251_v48  ;;  %v509_v35 = vmul.f32 %v1360_v42, %v2252_v27  ;;  %v510_v36 = vmul.f32 %v1360_v42, %v2253_v32  ;;  %896 = vst.msk [vmem:[%s1431_s6 + $0xe8] sm:$0xff] %vm866_vm0, %v767_v41  ;;  %v2255_v8 = vsub.f32 %v1321_v53, %v1139_v11  ;;  %v260_v41 = vld [vmem:[%s1132_s25 + $0x198] sm:$0xff]  ;;  %v263_v27 = vld [vmem:[%s1132_s25 + $0x1b0] sm:$0xff] }
  0x40   : > { %897 = vst.msk [vmem:[%s1431_s6 + $0xf0] sm:$0xff] %vm866_vm0, %v768_v46  ;;  %898 = vst.msk [vmem:[%s1431_s6 + $0xf8] sm:$0xff] %vm866_vm0, %v769_v25  ;;  %v511_v60 = vmul.f32 %v1360_v42, %v2254_v0  ;;  %v2256_v49 = vsub.f32 %v1324_v52, %v1139_v11  ;;  %v2257_v7 = vsub.f32 %v1333_v9, %v1139_v11  ;;  %v261_v46 = vld [vmem:[%s1132_s25 + $0x1a0] sm:$0xff]  ;;  %v262_v25 = vld [vmem:[%s1132_s25 + $0x1a8] sm:$0xff] }
  0x41   : > { %v512_v59 = vmul.f32 %v1360_v42, %v2255_v8  ;;  %v642_v10 = vadd.f32 %v1380_v5, %v507_v26  ;;  %v643_v57 = vadd.f32 %v1380_v5, %v508_v31  ;;  %v644_v53 = vadd.f32 %v1380_v5, %v509_v35  ;;  %v264_v35 = vld [vmem:[%s1132_s25 + $0x1b8] sm:$0xff] }
  0x42   : > { %v513_v58 = vmul.f32 %v1360_v42, %v2256_v49  ;;  %v514_v51 = vmul.f32 %v1360_v42, %v2257_v7  ;;  %v645_v12 = vadd.f32 %v1380_v5, %v510_v36  ;;  %v646_v52 = vadd.f32 %v1380_v5, %v511_v60 }
  0x43   : > { %v647_v13 = vadd.f32 %v1380_v5, %v512_v59  ;;  %v770_v23 = vmax.f32 %v642_v10, 0.0  ;;  %v771_v15 = vmax.f32 %v643_v57, 0.0  ;;  %v772_v24 = vmax.f32 %v644_v53, 0.0 }
  0x44   : > { %v648_v9 = vadd.f32 %v1380_v5, %v513_v58  ;;  %v649_v14 = vadd.f32 %v1380_v5, %v514_v51  ;;  %v773_v16 = vmax.f32 %v645_v12, 0.0  ;;  %v774_v54 = vmax.f32 %v646_v52, 0.0 }
  0x45   : > { %v775_v55 = vmax.f32 %v647_v13, 0.0  ;;  %899 = vst.msk [vmem:[%s1431_s6 + $0x100] sm:$0xff] %vm866_vm0, %v770_v23  ;;  %900 = vst.msk [vmem:[%s1431_s6 + $0x108] sm:$0xff] %vm866_vm0, %v771_v15  ;;  %v2258_v19 = vsub.f32 %v1336_v50, %v1139_v11  ;;  %v2259_v21 = vsub.f32 %v1339_v45, %v1139_v11  ;;  %v2260_v33 = vsub.f32 %v1350_v1, %v1139_v11 }
  0x46   : > { %v776_v56 = vmax.f32 %v648_v9, 0.0  ;;  %v777_v61 = vmax.f32 %v649_v14, 0.0  ;;  %901 = vst.msk [vmem:[%s1431_s6 + $0x110] sm:$0xff] %vm866_vm0, %v772_v24  ;;  %902 = vst.msk [vmem:[%s1431_s6 + $0x118] sm:$0xff] %vm866_vm0, %v773_v16  ;;  %v2261_v63 = vsub.f32 %v1353_v44, %v1139_v11  ;;  %v2262_v45 = vsub.f32 %v1356_v43, %v1139_v11 }
  0x47   : > { %v515_v20 = vmul.f32 %v1360_v42, %v2258_v19  ;;  %v516_v22 = vmul.f32 %v1360_v42, %v2259_v21  ;;  %v517_v62 = vmul.f32 %v1360_v42, %v2260_v33  ;;  %903 = vst.msk [vmem:[%s1431_s6 + $0x120] sm:$0xff] %vm866_vm0, %v774_v54  ;;  %904 = vst.msk [vmem:[%s1431_s6 + $0x128] sm:$0xff] %vm866_vm0, %v775_v55  ;;  %v267_v19 = vld [vmem:[%s1132_s25 + $0x1d0] sm:$0xff] }
  0x48   : > { %v518_v50 = vmul.f32 %v1360_v42, %v2261_v63  ;;  %905 = vst.msk [vmem:[%s1431_s6 + $0x130] sm:$0xff] %vm866_vm0, %v776_v56  ;;  %906 = vst.msk [vmem:[%s1431_s6 + $0x138] sm:$0xff] %vm866_vm0, %v777_v61  ;;  %v519_v1 = vmul.f32 %v1360_v42, %v2262_v45  ;;  %v2263_v44 = vsub.f32 %v1369_v3, %v1139_v11  ;;  %v265_v56 = vld [vmem:[%s1132_s25 + $0x1c0] sm:$0xff]  ;;  %v266_v61 = vld [vmem:[%s1132_s25 + $0x1c8] sm:$0xff] }
  0x49   : > { %v521_v4 = vmul.f32 %v1360_v42, %v387_v2  ;;  %v2264_v39 = vsub.f32 %v1375_v37, %v1139_v11  ;;  %v650_v6 = vadd.f32 %v1380_v5, %v515_v20  ;;  %v651_v40 = vadd.f32 %v1380_v5, %v516_v22  ;;  %v269_v63 = vld [vmem:[%s1132_s25 + $0x1e0] sm:$0xff] }
  0x4a   : > { %v520_v34 = vmul.f32 %v1360_v42, %v2263_v44  ;;  %v652_v3 = vadd.f32 %v1380_v5, %v517_v62  ;;  %v653_v17 = vadd.f32 %v1380_v5, %v518_v50  ;;  %v654_v2 = vadd.f32 %v1380_v5, %v519_v1  ;;  %v268_v62 = vld [vmem:[%s1132_s25 + $0x1d8] sm:$0xff]  ;;  %v270_v50 = vld [vmem:[%s1132_s25 + $0x1e8] sm:$0xff] }
  0x4b   : > { %v522_v43 = vmul.f32 %v1360_v42, %v2264_v39  ;;  %v656_v37 = vadd.f32 %v1380_v5, %v521_v4  ;;  %v778_v47 = vmax.f32 %v650_v6, 0.0  ;;  %v779_v26 = vmax.f32 %v651_v40, 0.0  ;;  %v271_v4 = vld [vmem:[%s1132_s25 + $0x1f0] sm:$0xff]  ;;  %v272_v39 = vld [vmem:[%s1132_s25 + $0x1f8] sm:$0xff] }
  0x4c   : > { %v655_v29 = vadd.f32 %v1380_v5, %v520_v34  ;;  %v780_v48 = vmax.f32 %v652_v3, 0.0  ;;  %v781_v31 = vmax.f32 %v653_v17, 0.0  ;;  %v782_v32 = vmax.f32 %v654_v2, 0.0 }
  0x4d   : > { %v657_v30 = vadd.f32 %v1380_v5, %v522_v43  ;;  %v784_v0 = vmax.f32 %v656_v37, 0.0  ;;  %907 = vst.msk [vmem:[%s1431_s6 + $0x140] sm:$0xff] %vm866_vm0, %v778_v47  ;;  %908 = vst.msk [vmem:[%s1431_s6 + $0x148] sm:$0xff] %vm866_vm0, %v779_v26  ;;  %v389_v8 = vsub.f32 %v257_v18, %v1139_v11  ;;  %v390_v59 = vsub.f32 %v258_v38, %v1139_v11 }
  0x4e   : > { %v783_v36 = vmax.f32 %v655_v29, 0.0  ;;  %909 = vst.msk [vmem:[%s1431_s6 + $0x150] sm:$0xff] %vm866_vm0, %v780_v48  ;;  %910 = vst.msk [vmem:[%s1431_s6 + $0x158] sm:$0xff] %vm866_vm0, %v781_v31  ;;  %v391_v49 = vsub.f32 %v259_v28, %v1139_v11  ;;  %v392_v58 = vsub.f32 %v260_v41, %v1139_v11  ;;  %v393_v7 = vsub.f32 %v261_v46, %v1139_v11 }
  0x4f   : > { %v785_v60 = vmax.f32 %v657_v30, 0.0  ;;  %911 = vst.msk [vmem:[%s1431_s6 + $0x160] sm:$0xff] %vm866_vm0, %v782_v32  ;;  %913 = vst.msk [vmem:[%s1431_s6 + $0x170] sm:$0xff] %vm866_vm0, %v784_v0  ;;  %v394_v51 = vsub.f32 %v262_v25, %v1139_v11  ;;  %v395_v10 = vsub.f32 %v263_v27, %v1139_v11  ;;  %v396_v57 = vsub.f32 %v264_v35, %v1139_v11 }
  0x50   : > { %912 = vst.msk [vmem:[%s1431_s6 + $0x168] sm:$0xff] %vm866_vm0, %v783_v36  ;;  %v523_v53 = vmul.f32 %v1360_v42, %v389_v8  ;;  %v524_v12 = vmul.f32 %v1360_v42, %v390_v59  ;;  %v525_v52 = vmul.f32 %v1360_v42, %v391_v49  ;;  %v526_v13 = vmul.f32 %v1360_v42, %v392_v58  ;;  %v274_v8 = vld [vmem:[%s1132_s25 + $0x208] sm:$0xff]  ;;  %v275_v59 = vld [vmem:[%s1132_s25 + $0x210] sm:$0xff] }
  0x51   : > { %914 = vst.msk [vmem:[%s1431_s6 + $0x178] sm:$0xff] %vm866_vm0, %v785_v60  ;;  %v527_v9 = vmul.f32 %v1360_v42, %v393_v7  ;;  %v528_v14 = vmul.f32 %v1360_v42, %v394_v51  ;;  %v529_v23 = vmul.f32 %v1360_v42, %v395_v10  ;;  %v530_v15 = vmul.f32 %v1360_v42, %v396_v57  ;;  %v273_v60 = vld [vmem:[%s1132_s25 + $0x200] sm:$0xff]  ;;  %v276_v10 = vld [vmem:[%s1132_s25 + $0x218] sm:$0xff] }
  0x52   : > { %v658_v24 = vadd.f32 %v1380_v5, %v523_v53  ;;  %v659_v16 = vadd.f32 %v1380_v5, %v524_v12  ;;  %v660_v54 = vadd.f32 %v1380_v5, %v525_v52  ;;  %v661_v55 = vadd.f32 %v1380_v5, %v526_v13  ;;  %v277_v57 = vld [vmem:[%s1132_s25 + $0x220] sm:$0xff]  ;;  %v278_v53 = vld [vmem:[%s1132_s25 + $0x228] sm:$0xff] }
  0x53   : > { %v662_v20 = vadd.f32 %v1380_v5, %v527_v9  ;;  %v663_v21 = vadd.f32 %v1380_v5, %v528_v14  ;;  %v664_v22 = vadd.f32 %v1380_v5, %v529_v23  ;;  %v665_v33 = vadd.f32 %v1380_v5, %v530_v15  ;;  %v279_v14 = vld [vmem:[%s1132_s25 + $0x230] sm:$0xff]  ;;  %v280_v23 = vld [vmem:[%s1132_s25 + $0x238] sm:$0xff] }
  0x54   : > { %v786_v45 = vmax.f32 %v658_v24, 0.0  ;;  %v787_v1 = vmax.f32 %v659_v16, 0.0  ;;  %v788_v44 = vmax.f32 %v660_v54, 0.0  ;;  %v789_v34 = vmax.f32 %v661_v55, 0.0 }
  0x55   : > { %v790_v43 = vmax.f32 %v662_v20, 0.0  ;;  %v791_v6 = vmax.f32 %v663_v21, 0.0  ;;  %v792_v40 = vmax.f32 %v664_v22, 0.0  ;;  %v793_v3 = vmax.f32 %v665_v33, 0.0 }
  0x56   : > { %915 = vst.msk [vmem:[%s1431_s6 + $0x180] sm:$0xff] %vm866_vm0, %v786_v45  ;;  %916 = vst.msk [vmem:[%s1431_s6 + $0x188] sm:$0xff] %vm866_vm0, %v787_v1  ;;  %v397_v17 = vsub.f32 %v265_v56, %v1139_v11  ;;  %v398_v18 = vsub.f32 %v266_v61, %v1139_v11  ;;  %v399_v38 = vsub.f32 %v267_v19, %v1139_v11 }
  0x57   : > { %917 = vst.msk [vmem:[%s1431_s6 + $0x190] sm:$0xff] %vm866_vm0, %v788_v44  ;;  %918 = vst.msk [vmem:[%s1431_s6 + $0x198] sm:$0xff] %vm866_vm0, %v789_v34  ;;  %v400_v28 = vsub.f32 %v268_v62, %v1139_v11  ;;  %v401_v2 = vsub.f32 %v269_v63, %v1139_v11  ;;  %v402_v29 = vsub.f32 %v270_v50, %v1139_v11 }
  0x58   : > { %919 = vst.msk [vmem:[%s1431_s6 + $0x1a0] sm:$0xff] %vm866_vm0, %v790_v43  ;;  %920 = vst.msk [vmem:[%s1431_s6 + $0x1a8] sm:$0xff] %vm866_vm0, %v791_v6  ;;  %v403_v37 = vsub.f32 %v271_v4, %v1139_v11  ;;  %v404_v30 = vsub.f32 %v272_v39, %v1139_v11  ;;  %v531_v41 = vmul.f32 %v1360_v42, %v397_v17  ;;  %v282_v17 = vld [vmem:[%s1132_s25 + $0x248] sm:$0xff] }
  0x59   : > { %921 = vst.msk [vmem:[%s1431_s6 + $0x1b0] sm:$0xff] %vm866_vm0, %v792_v40  ;;  %922 = vst.msk [vmem:[%s1431_s6 + $0x1b8] sm:$0xff] %vm866_vm0, %v793_v3  ;;  %v532_v46 = vmul.f32 %v1360_v42, %v398_v18  ;;  %v533_v25 = vmul.f32 %v1360_v42, %v399_v38  ;;  %v534_v47 = vmul.f32 %v1360_v42, %v400_v28  ;;  %v281_v3 = vld [vmem:[%s1132_s25 + $0x240] sm:$0xff]  ;;  %v283_v18 = vld [vmem:[%s1132_s25 + $0x250] sm:$0xff] }
  0x5a   : > { %v535_v26 = vmul.f32 %v1360_v42, %v401_v2  ;;  %v536_v48 = vmul.f32 %v1360_v42, %v402_v29  ;;  %v537_v31 = vmul.f32 %v1360_v42, %v403_v37  ;;  %v538_v27 = vmul.f32 %v1360_v42, %v404_v30  ;;  %v284_v37 = vld [vmem:[%s1132_s25 + $0x258] sm:$0xff]  ;;  %v285_v30 = vld [vmem:[%s1132_s25 + $0x260] sm:$0xff] }
  0x5b   : > { %v666_v35 = vadd.f32 %v1380_v5, %v531_v41  ;;  %v667_v32 = vadd.f32 %v1380_v5, %v532_v46  ;;  %v668_v36 = vadd.f32 %v1380_v5, %v533_v25  ;;  %v669_v0 = vadd.f32 %v1380_v5, %v534_v47  ;;  %v286_v41 = vld [vmem:[%s1132_s25 + $0x268] sm:$0xff] }
  0x5c   : > { %v670_v49 = vadd.f32 %v1380_v5, %v535_v26  ;;  %v671_v58 = vadd.f32 %v1380_v5, %v536_v48  ;;  %v672_v7 = vadd.f32 %v1380_v5, %v537_v31  ;;  %v673_v51 = vadd.f32 %v1380_v5, %v538_v27  ;;  %v287_v48 = vld [vmem:[%s1132_s25 + $0x270] sm:$0xff]  ;;  %v288_v31 = vld [vmem:[%s1132_s25 + $0x278] sm:$0xff] }
  0x5d   : > { %v794_v12 = vmax.f32 %v666_v35, 0.0  ;;  %v795_v52 = vmax.f32 %v667_v32, 0.0  ;;  %v796_v13 = vmax.f32 %v668_v36, 0.0  ;;  %v797_v9 = vmax.f32 %v669_v0, 0.0 }
  0x5e   : > { %v798_v15 = vmax.f32 %v670_v49, 0.0  ;;  %v799_v24 = vmax.f32 %v671_v58, 0.0  ;;  %v800_v16 = vmax.f32 %v672_v7, 0.0  ;;  %v801_v54 = vmax.f32 %v673_v51, 0.0 }
  0x5f   : > { %923 = vst.msk [vmem:[%s1431_s6 + $0x1c0] sm:$0xff] %vm866_vm0, %v794_v12  ;;  %924 = vst.msk [vmem:[%s1431_s6 + $0x1c8] sm:$0xff] %vm866_vm0, %v795_v52  ;;  %v405_v55 = vsub.f32 %v273_v60, %v1139_v11  ;;  %v406_v56 = vsub.f32 %v274_v8, %v1139_v11  ;;  %v407_v61 = vsub.f32 %v275_v59, %v1139_v11 }
  0x60   : > { %925 = vst.msk [vmem:[%s1431_s6 + $0x1d0] sm:$0xff] %vm866_vm0, %v796_v13  ;;  %926 = vst.msk [vmem:[%s1431_s6 + $0x1d8] sm:$0xff] %vm866_vm0, %v797_v9  ;;  %v408_v19 = vsub.f32 %v276_v10, %v1139_v11  ;;  %v409_v20 = vsub.f32 %v277_v57, %v1139_v11  ;;  %v410_v21 = vsub.f32 %v278_v53, %v1139_v11 }
  0x61   : > { %927 = vst.msk [vmem:[%s1431_s6 + $0x1e0] sm:$0xff] %vm866_vm0, %v798_v15  ;;  %928 = vst.msk [vmem:[%s1431_s6 + $0x1e8] sm:$0xff] %vm866_vm0, %v799_v24  ;;  %v411_v22 = vsub.f32 %v279_v14, %v1139_v11  ;;  %v412_v33 = vsub.f32 %v280_v23, %v1139_v11  ;;  %v539_v62 = vmul.f32 %v1360_v42, %v405_v55  ;;  %v290_v55 = vld [vmem:[%s1132_s25 + $0x288] sm:$0xff] }
  0x62   : > { %929 = vst.msk [vmem:[%s1431_s6 + $0x1f0] sm:$0xff] %vm866_vm0, %v800_v16  ;;  %930 = vst.msk [vmem:[%s1431_s6 + $0x1f8] sm:$0xff] %vm866_vm0, %v801_v54  ;;  %v540_v63 = vmul.f32 %v1360_v42, %v406_v56  ;;  %v541_v50 = vmul.f32 %v1360_v42, %v407_v61  ;;  %v542_v45 = vmul.f32 %v1360_v42, %v408_v19  ;;  %v289_v54 = vld [vmem:[%s1132_s25 + $0x280] sm:$0xff]  ;;  %v291_v56 = vld [vmem:[%s1132_s25 + $0x290] sm:$0xff] }
  0x63   : > { %v543_v1 = vmul.f32 %v1360_v42, %v409_v20  ;;  %v544_v44 = vmul.f32 %v1360_v42, %v410_v21  ;;  %v545_v34 = vmul.f32 %v1360_v42, %v411_v22  ;;  %v546_v4 = vmul.f32 %v1360_v42, %v412_v33  ;;  %v292_v22 = vld [vmem:[%s1132_s25 + $0x298] sm:$0xff]  ;;  %v293_v33 = vld [vmem:[%s1132_s25 + $0x2a0] sm:$0xff] }
  0x64   : > { %v674_v39 = vadd.f32 %v1380_v5, %v539_v62  ;;  %v675_v43 = vadd.f32 %v1380_v5, %v540_v63  ;;  %v676_v6 = vadd.f32 %v1380_v5, %v541_v50  ;;  %v677_v40 = vadd.f32 %v1380_v5, %v542_v45  ;;  %v294_v62 = vld [vmem:[%s1132_s25 + $0x2a8] sm:$0xff] }
  0x65   : > { %v678_v38 = vadd.f32 %v1380_v5, %v543_v1  ;;  %v679_v28 = vadd.f32 %v1380_v5, %v544_v44  ;;  %v680_v2 = vadd.f32 %v1380_v5, %v545_v34  ;;  %v681_v29 = vadd.f32 %v1380_v5, %v546_v4  ;;  %v295_v44 = vld [vmem:[%s1132_s25 + $0x2b0] sm:$0xff]  ;;  %v296_v34 = vld [vmem:[%s1132_s25 + $0x2b8] sm:$0xff] }
  0x66   : > { %v802_v46 = vmax.f32 %v674_v39, 0.0  ;;  %v803_v25 = vmax.f32 %v675_v43, 0.0  ;;  %v804_v47 = vmax.f32 %v676_v6, 0.0  ;;  %v805_v26 = vmax.f32 %v677_v40, 0.0 }
  0x67   : > { %v806_v27 = vmax.f32 %v678_v38, 0.0  ;;  %v807_v35 = vmax.f32 %v679_v28, 0.0  ;;  %v808_v32 = vmax.f32 %v680_v2, 0.0  ;;  %v809_v36 = vmax.f32 %v681_v29, 0.0 }
  0x68   : > { %931 = vst.msk [vmem:[%s1431_s6 + $0x200] sm:$0xff] %vm866_vm0, %v802_v46  ;;  %932 = vst.msk [vmem:[%s1431_s6 + $0x208] sm:$0xff] %vm866_vm0, %v803_v25  ;;  %v413_v0 = vsub.f32 %v281_v3, %v1139_v11  ;;  %v414_v60 = vsub.f32 %v282_v17, %v1139_v11  ;;  %v415_v8 = vsub.f32 %v283_v18, %v1139_v11 }
  0x69   : > { %933 = vst.msk [vmem:[%s1431_s6 + $0x210] sm:$0xff] %vm866_vm0, %v804_v47  ;;  %934 = vst.msk [vmem:[%s1431_s6 + $0x218] sm:$0xff] %vm866_vm0, %v805_v26  ;;  %v416_v59 = vsub.f32 %v284_v37, %v1139_v11  ;;  %v417_v49 = vsub.f32 %v285_v30, %v1139_v11  ;;  %v418_v58 = vsub.f32 %v286_v41, %v1139_v11 }
  0x6a   : > { %935 = vst.msk [vmem:[%s1431_s6 + $0x220] sm:$0xff] %vm866_vm0, %v806_v27  ;;  %936 = vst.msk [vmem:[%s1431_s6 + $0x228] sm:$0xff] %vm866_vm0, %v807_v35  ;;  %v419_v7 = vsub.f32 %v287_v48, %v1139_v11  ;;  %v420_v51 = vsub.f32 %v288_v31, %v1139_v11  ;;  %v547_v10 = vmul.f32 %v1360_v42, %v413_v0  ;;  %v298_v0 = vld [vmem:[%s1132_s25 + $0x2c8] sm:$0xff] }
  0x6b   : > { %937 = vst.msk [vmem:[%s1431_s6 + $0x230] sm:$0xff] %vm866_vm0, %v808_v32  ;;  %938 = vst.msk [vmem:[%s1431_s6 + $0x238] sm:$0xff] %vm866_vm0, %v809_v36  ;;  %v548_v57 = vmul.f32 %v1360_v42, %v414_v60  ;;  %v549_v53 = vmul.f32 %v1360_v42, %v415_v8  ;;  %v550_v12 = vmul.f32 %v1360_v42, %v416_v59  ;;  %v297_v36 = vld [vmem:[%s1132_s25 + $0x2c0] sm:$0xff]  ;;  %v299_v60 = vld [vmem:[%s1132_s25 + $0x2d0] sm:$0xff] }
  0x6c   : > { %v551_v52 = vmul.f32 %v1360_v42, %v417_v49  ;;  %v552_v13 = vmul.f32 %v1360_v42, %v418_v58  ;;  %v553_v9 = vmul.f32 %v1360_v42, %v419_v7  ;;  %v554_v14 = vmul.f32 %v1360_v42, %v420_v51  ;;  %v300_v7 = vld [vmem:[%s1132_s25 + $0x2d8] sm:$0xff]  ;;  %v301_v51 = vld [vmem:[%s1132_s25 + $0x2e0] sm:$0xff] }
  0x6d   : > { %v682_v23 = vadd.f32 %v1380_v5, %v547_v10  ;;  %v683_v15 = vadd.f32 %v1380_v5, %v548_v57  ;;  %v684_v24 = vadd.f32 %v1380_v5, %v549_v53  ;;  %v685_v16 = vadd.f32 %v1380_v5, %v550_v12  ;;  %v302_v10 = vld [vmem:[%s1132_s25 + $0x2e8] sm:$0xff] }
  0x6e   : > { %v686_v61 = vadd.f32 %v1380_v5, %v551_v52  ;;  %v687_v19 = vadd.f32 %v1380_v5, %v552_v13  ;;  %v688_v20 = vadd.f32 %v1380_v5, %v553_v9  ;;  %v689_v21 = vadd.f32 %v1380_v5, %v554_v14  ;;  %v303_v13 = vld [vmem:[%s1132_s25 + $0x2f0] sm:$0xff]  ;;  %v304_v9 = vld [vmem:[%s1132_s25 + $0x2f8] sm:$0xff] }
  0x6f   : > { %v810_v63 = vmax.f32 %v682_v23, 0.0  ;;  %v811_v50 = vmax.f32 %v683_v15, 0.0  ;;  %v812_v45 = vmax.f32 %v684_v24, 0.0  ;;  %v813_v1 = vmax.f32 %v685_v16, 0.0 }
  0x70   : > { %v814_v4 = vmax.f32 %v686_v61, 0.0  ;;  %v815_v39 = vmax.f32 %v687_v19, 0.0  ;;  %v816_v43 = vmax.f32 %v688_v20, 0.0  ;;  %v817_v6 = vmax.f32 %v689_v21, 0.0 }
  0x71   : > { %939 = vst.msk [vmem:[%s1431_s6 + $0x240] sm:$0xff] %vm866_vm0, %v810_v63  ;;  %940 = vst.msk [vmem:[%s1431_s6 + $0x248] sm:$0xff] %vm866_vm0, %v811_v50  ;;  %v421_v40 = vsub.f32 %v289_v54, %v1139_v11  ;;  %v422_v3 = vsub.f32 %v290_v55, %v1139_v11  ;;  %v423_v17 = vsub.f32 %v291_v56, %v1139_v11 }
  0x72   : > { %941 = vst.msk [vmem:[%s1431_s6 + $0x250] sm:$0xff] %vm866_vm0, %v812_v45  ;;  %942 = vst.msk [vmem:[%s1431_s6 + $0x258] sm:$0xff] %vm866_vm0, %v813_v1  ;;  %v424_v18 = vsub.f32 %v292_v22, %v1139_v11  ;;  %v425_v38 = vsub.f32 %v293_v33, %v1139_v11  ;;  %v426_v28 = vsub.f32 %v294_v62, %v1139_v11 }
  0x73   : > { %943 = vst.msk [vmem:[%s1431_s6 + $0x260] sm:$0xff] %vm866_vm0, %v814_v4  ;;  %944 = vst.msk [vmem:[%s1431_s6 + $0x268] sm:$0xff] %vm866_vm0, %v815_v39  ;;  %v427_v2 = vsub.f32 %v295_v44, %v1139_v11  ;;  %v428_v29 = vsub.f32 %v296_v34, %v1139_v11  ;;  %v555_v37 = vmul.f32 %v1360_v42, %v421_v40  ;;  %v306_v40 = vld [vmem:[%s1132_s25 + $0x308] sm:$0xff] }
  0x74   : > { %945 = vst.msk [vmem:[%s1431_s6 + $0x270] sm:$0xff] %vm866_vm0, %v816_v43  ;;  %946 = vst.msk [vmem:[%s1431_s6 + $0x278] sm:$0xff] %vm866_vm0, %v817_v6  ;;  %v556_v30 = vmul.f32 %v1360_v42, %v422_v3  ;;  %v557_v41 = vmul.f32 %v1360_v42, %v423_v17  ;;  %v558_v46 = vmul.f32 %v1360_v42, %v424_v18  ;;  %v305_v6 = vld [vmem:[%s1132_s25 + $0x300] sm:$0xff]  ;;  %v307_v3 = vld [vmem:[%s1132_s25 + $0x310] sm:$0xff] }
  0x75   : > { %v559_v25 = vmul.f32 %v1360_v42, %v425_v38  ;;  %v560_v47 = vmul.f32 %v1360_v42, %v426_v28  ;;  %v561_v26 = vmul.f32 %v1360_v42, %v427_v2  ;;  %v562_v48 = vmul.f32 %v1360_v42, %v428_v29  ;;  %v308_v2 = vld [vmem:[%s1132_s25 + $0x318] sm:$0xff]  ;;  %v309_v29 = vld [vmem:[%s1132_s25 + $0x320] sm:$0xff] }
  0x76   : > { %v690_v31 = vadd.f32 %v1380_v5, %v555_v37  ;;  %v691_v27 = vadd.f32 %v1380_v5, %v556_v30  ;;  %v692_v35 = vadd.f32 %v1380_v5, %v557_v41  ;;  %v693_v32 = vadd.f32 %v1380_v5, %v558_v46  ;;  %v310_v37 = vld [vmem:[%s1132_s25 + $0x328] sm:$0xff] }
  0x77   : > { %v694_v8 = vadd.f32 %v1380_v5, %v559_v25  ;;  %v695_v59 = vadd.f32 %v1380_v5, %v560_v47  ;;  %v696_v49 = vadd.f32 %v1380_v5, %v561_v26  ;;  %v697_v58 = vadd.f32 %v1380_v5, %v562_v48  ;;  %v311_v47 = vld [vmem:[%s1132_s25 + $0x330] sm:$0xff]  ;;  %v312_v26 = vld [vmem:[%s1132_s25 + $0x338] sm:$0xff] }
  0x78   : > { %v818_v57 = vmax.f32 %v690_v31, 0.0  ;;  %v819_v53 = vmax.f32 %v691_v27, 0.0  ;;  %v820_v12 = vmax.f32 %v692_v35, 0.0  ;;  %v821_v52 = vmax.f32 %v693_v32, 0.0 }
  0x79   : > { %v822_v14 = vmax.f32 %v694_v8, 0.0  ;;  %v823_v23 = vmax.f32 %v695_v59, 0.0  ;;  %v824_v15 = vmax.f32 %v696_v49, 0.0  ;;  %v825_v24 = vmax.f32 %v697_v58, 0.0 }
  0x7a   : > { %947 = vst.msk [vmem:[%s1431_s6 + $0x280] sm:$0xff] %vm866_vm0, %v818_v57  ;;  %948 = vst.msk [vmem:[%s1431_s6 + $0x288] sm:$0xff] %vm866_vm0, %v819_v53  ;;  %v429_v16 = vsub.f32 %v297_v36, %v1139_v11  ;;  %v430_v54 = vsub.f32 %v298_v0, %v1139_v11  ;;  %v431_v55 = vsub.f32 %v299_v60, %v1139_v11 }
  0x7b   : > { %949 = vst.msk [vmem:[%s1431_s6 + $0x290] sm:$0xff] %vm866_vm0, %v820_v12  ;;  %950 = vst.msk [vmem:[%s1431_s6 + $0x298] sm:$0xff] %vm866_vm0, %v821_v52  ;;  %v432_v56 = vsub.f32 %v300_v7, %v1139_v11  ;;  %v433_v61 = vsub.f32 %v301_v51, %v1139_v11  ;;  %v434_v19 = vsub.f32 %v302_v10, %v1139_v11 }
  0x7c   : > { %951 = vst.msk [vmem:[%s1431_s6 + $0x2a0] sm:$0xff] %vm866_vm0, %v822_v14  ;;  %952 = vst.msk [vmem:[%s1431_s6 + $0x2a8] sm:$0xff] %vm866_vm0, %v823_v23  ;;  %v435_v20 = vsub.f32 %v303_v13, %v1139_v11  ;;  %v436_v21 = vsub.f32 %v304_v9, %v1139_v11  ;;  %v563_v22 = vmul.f32 %v1360_v42, %v429_v16  ;;  %v2050_v23 = vld [vmem:[%s2224_s3] ss:$0 sm:$0xff] }
  0x7d   : > { %953 = vst.msk [vmem:[%s1431_s6 + $0x2b0] sm:$0xff] %vm866_vm0, %v824_v15  ;;  %954 = vst.msk [vmem:[%s1431_s6 + $0x2b8] sm:$0xff] %vm866_vm0, %v825_v24  ;;  %v564_v33 = vmul.f32 %v1360_v42, %v430_v54  ;;  %v565_v62 = vmul.f32 %v1360_v42, %v431_v55  ;;  %v566_v63 = vmul.f32 %v1360_v42, %v432_v56  ;;  %v313_v16 = vld [vmem:[%s1132_s25 + $0x340] sm:$0xff]  ;;  %v314_v54 = vld [vmem:[%s1132_s25 + $0x348] sm:$0xff] }
  0x7e   : > { %v567_v50 = vmul.f32 %v1360_v42, %v433_v61  ;;  %v568_v45 = vmul.f32 %v1360_v42, %v434_v19  ;;  %v569_v1 = vmul.f32 %v1360_v42, %v435_v20  ;;  %v570_v44 = vmul.f32 %v1360_v42, %v436_v21  ;;  %v315_v55 = vld [vmem:[%s1132_s25 + $0x350] sm:$0xff]  ;;  %v316_v20 = vld [vmem:[%s1132_s25 + $0x358] sm:$0xff]  ;;  %v317_v21 = vld [vmem:[%s1132_s25 + $0x360] sm:$0xff] }
  0x7f   : > { %v698_v34 = vadd.f32 %v1380_v5, %v563_v22  ;;  %v699_v4 = vadd.f32 %v1380_v5, %v564_v33  ;;  %v700_v39 = vadd.f32 %v1380_v5, %v565_v62  ;;  %v701_v43 = vadd.f32 %v1380_v5, %v566_v63  ;;  %v318_v22 = vld [vmem:[%s1132_s25 + $0x368] sm:$0xff] }
  0x80   : > { %v702_v17 = vadd.f32 %v1380_v5, %v567_v50  ;;  %v703_v18 = vadd.f32 %v1380_v5, %v568_v45  ;;  %v704_v38 = vadd.f32 %v1380_v5, %v569_v1  ;;  %v705_v28 = vadd.f32 %v1380_v5, %v570_v44  ;;  %v319_v45 = vld [vmem:[%s1132_s25 + $0x370] sm:$0xff]  ;;  %v320_v1 = vld [vmem:[%s1132_s25 + $0x378] sm:$0xff] }
  0x81   : > { %v826_v30 = vmax.f32 %v698_v34, 0.0  ;;  %v827_v41 = vmax.f32 %v699_v4, 0.0  ;;  %v828_v46 = vmax.f32 %v700_v39, 0.0  ;;  %v829_v25 = vmax.f32 %v701_v43, 0.0 }
  0x82   : > { %v830_v48 = vmax.f32 %v702_v17, 0.0  ;;  %v831_v31 = vmax.f32 %v703_v18, 0.0  ;;  %v832_v27 = vmax.f32 %v704_v38, 0.0  ;;  %v833_v35 = vmax.f32 %v705_v28, 0.0 }
  0x83   : > { %955 = vst.msk [vmem:[%s1431_s6 + $0x2c0] sm:$0xff] %vm866_vm0, %v826_v30  ;;  %956 = vst.msk [vmem:[%s1431_s6 + $0x2c8] sm:$0xff] %vm866_vm0, %v827_v41  ;;  %v437_v32 = vsub.f32 %v305_v6, %v1139_v11  ;;  %v438_v36 = vsub.f32 %v306_v40, %v1139_v11  ;;  %v439_v0 = vsub.f32 %v307_v3, %v1139_v11 }
  0x84   : > { %957 = vst.msk [vmem:[%s1431_s6 + $0x2d0] sm:$0xff] %vm866_vm0, %v828_v46  ;;  %958 = vst.msk [vmem:[%s1431_s6 + $0x2d8] sm:$0xff] %vm866_vm0, %v829_v25  ;;  %v440_v60 = vsub.f32 %v308_v2, %v1139_v11  ;;  %v441_v8 = vsub.f32 %v309_v29, %v1139_v11  ;;  %v442_v59 = vsub.f32 %v310_v37, %v1139_v11 }
  0x85   : > { %959 = vst.msk [vmem:[%s1431_s6 + $0x2e0] sm:$0xff] %vm866_vm0, %v830_v48  ;;  %960 = vst.msk [vmem:[%s1431_s6 + $0x2e8] sm:$0xff] %vm866_vm0, %v831_v31  ;;  %v443_v49 = vsub.f32 %v311_v47, %v1139_v11  ;;  %v444_v58 = vsub.f32 %v312_v26, %v1139_v11  ;;  %v571_v7 = vmul.f32 %v1360_v42, %v437_v32  ;;  %v322_v32 = vld [vmem:[%s1132_s25 + $0x388] sm:$0xff] }
  0x86   : > { %961 = vst.msk [vmem:[%s1431_s6 + $0x2f0] sm:$0xff] %vm866_vm0, %v832_v27  ;;  %962 = vst.msk [vmem:[%s1431_s6 + $0x2f8] sm:$0xff] %vm866_vm0, %v833_v35  ;;  %v572_v51 = vmul.f32 %v1360_v42, %v438_v36  ;;  %v573_v10 = vmul.f32 %v1360_v42, %v439_v0  ;;  %v574_v57 = vmul.f32 %v1360_v42, %v440_v60  ;;  %v321_v35 = vld [vmem:[%s1132_s25 + $0x380] sm:$0xff]  ;;  %v323_v36 = vld [vmem:[%s1132_s25 + $0x390] sm:$0xff] }
  0x87   : > { %v575_v53 = vmul.f32 %v1360_v42, %v441_v8  ;;  %v576_v12 = vmul.f32 %v1360_v42, %v442_v59  ;;  %v577_v52 = vmul.f32 %v1360_v42, %v443_v49  ;;  %v578_v13 = vmul.f32 %v1360_v42, %v444_v58  ;;  %v324_v49 = vld [vmem:[%s1132_s25 + $0x398] sm:$0xff]  ;;  %v325_v58 = vld [vmem:[%s1132_s25 + $0x3a0] sm:$0xff] }
  0x88   : > { %v706_v9 = vadd.f32 %v1380_v5, %v571_v7  ;;  %v707_v14 = vadd.f32 %v1380_v5, %v572_v51  ;;  %v708_v15 = vadd.f32 %v2050_v23, %v573_v10  ;;  %v709_v24 = vadd.f32 %v2050_v23, %v574_v57  ;;  %v326_v7 = vld [vmem:[%s1132_s25 + $0x3a8] sm:$0xff] }
  0x89   : > { %v710_v56 = vadd.f32 %v2050_v23, %v575_v53  ;;  %v711_v61 = vadd.f32 %v2050_v23, %v576_v12  ;;  %v712_v5 = vadd.f32 %v2050_v23, %v577_v52  ;;  %v713_v19 = vadd.f32 %v2050_v23, %v578_v13  ;;  %v327_v12 = vld [vmem:[%s1132_s25 + $0x3b0] sm:$0xff]  ;;  %v328_v52 = vld [vmem:[%s1132_s25 + $0x3b8] sm:$0xff] }
  0x8a   : > { %v834_v33 = vmax.f32 %v706_v9, 0.0  ;;  %v835_v62 = vmax.f32 %v707_v14, 0.0  ;;  %v836_v63 = vmax.f32 %v708_v15, 0.0  ;;  %v837_v50 = vmax.f32 %v709_v24, 0.0 }
  0x8b   : > { %v838_v44 = vmax.f32 %v710_v56, 0.0  ;;  %v839_v34 = vmax.f32 %v711_v61, 0.0  ;;  %v840_v4 = vmax.f32 %v712_v5, 0.0  ;;  %v841_v39 = vmax.f32 %v713_v19, 0.0 }
  0x8c   : > { %963 = vst.msk [vmem:[%s1431_s6 + $0x300] sm:$0xff] %vm866_vm0, %v834_v33  ;;  %964 = vst.msk [vmem:[%s1431_s6 + $0x308] sm:$0xff] %vm866_vm0, %v835_v62  ;;  %v445_v43 = vsub.f32 %v313_v16, %v1139_v11  ;;  %v446_v6 = vsub.f32 %v314_v54, %v1139_v11  ;;  %v447_v40 = vsub.f32 %v315_v55, %v1139_v11 }
  0x8d   : > { %965 = vst.msk [vmem:[%s1431_s6 + $0x310] sm:$0xff] %vm866_vm0, %v836_v63  ;;  %966 = vst.msk [vmem:[%s1431_s6 + $0x318] sm:$0xff] %vm866_vm0, %v837_v50  ;;  %v448_v3 = vsub.f32 %v316_v20, %v1139_v11  ;;  %v449_v17 = vsub.f32 %v317_v21, %v1139_v11  ;;  %v450_v18 = vsub.f32 %v318_v22, %v1139_v11 }
  0x8e   : > { %967 = vst.msk [vmem:[%s1431_s6 + $0x320] sm:$0xff] %vm866_vm0, %v838_v44  ;;  %968 = vst.msk [vmem:[%s1431_s6 + $0x328] sm:$0xff] %vm866_vm0, %v839_v34  ;;  %v451_v38 = vsub.f32 %v319_v45, %v1139_v11  ;;  %v452_v28 = vsub.f32 %v320_v1, %v1139_v11  ;;  %v579_v2 = vmul.f32 %v1360_v42, %v445_v43  ;;  %v330_v43 = vld [vmem:[%s1132_s25 + $0x3c8] sm:$0xff] }
  0x8f   : > { %969 = vst.msk [vmem:[%s1431_s6 + $0x330] sm:$0xff] %vm866_vm0, %v840_v4  ;;  %970 = vst.msk [vmem:[%s1431_s6 + $0x338] sm:$0xff] %vm866_vm0, %v841_v39  ;;  %v580_v29 = vmul.f32 %v1360_v42, %v446_v6  ;;  %v581_v37 = vmul.f32 %v1360_v42, %v447_v40  ;;  %v582_v30 = vmul.f32 %v1360_v42, %v448_v3  ;;  %v329_v39 = vld [vmem:[%s1132_s25 + $0x3c0] sm:$0xff]  ;;  %v331_v6 = vld [vmem:[%s1132_s25 + $0x3d0] sm:$0xff] }
  0x90   : > { %v583_v41 = vmul.f32 %v1360_v42, %v449_v17  ;;  %v584_v46 = vmul.f32 %v1360_v42, %v450_v18  ;;  %v585_v25 = vmul.f32 %v1360_v42, %v451_v38  ;;  %v586_v47 = vmul.f32 %v1360_v42, %v452_v28  ;;  %v332_v38 = vld [vmem:[%s1132_s25 + $0x3d8] sm:$0xff]  ;;  %v333_v28 = vld [vmem:[%s1132_s25 + $0x3e0] sm:$0xff] }
  0x91   : > { %v714_v26 = vadd.f32 %v2050_v23, %v579_v2  ;;  %v715_v48 = vadd.f32 %v2050_v23, %v580_v29  ;;  %v716_v31 = vadd.f32 %v2050_v23, %v581_v37  ;;  %v717_v27 = vadd.f32 %v2050_v23, %v582_v30  ;;  %v334_v2 = vld [vmem:[%s1132_s25 + $0x3e8] sm:$0xff] }
  0x92   : > { %v718_v0 = vadd.f32 %v2050_v23, %v583_v41  ;;  %v719_v60 = vadd.f32 %v2050_v23, %v584_v46  ;;  %v720_v8 = vadd.f32 %v2050_v23, %v585_v25  ;;  %v721_v59 = vadd.f32 %v2050_v23, %v586_v47  ;;  %v335_v46 = vld [vmem:[%s1132_s25 + $0x3f0] sm:$0xff]  ;;  %v336_v25 = vld [vmem:[%s1132_s25 + $0x3f8] sm:$0xff] }
  0x93   : > { %v842_v51 = vmax.f32 %v714_v26, 0.0  ;;  %v843_v10 = vmax.f32 %v715_v48, 0.0  ;;  %v844_v57 = vmax.f32 %v716_v31, 0.0  ;;  %v845_v53 = vmax.f32 %v717_v27, 0.0 }
  0x94   : > { %v846_v13 = vmax.f32 %v718_v0, 0.0  ;;  %v847_v9 = vmax.f32 %v719_v60, 0.0  ;;  %v848_v14 = vmax.f32 %v720_v8, 0.0  ;;  %v849_v15 = vmax.f32 %v721_v59, 0.0 }
  0x95   : > { %971 = vst.msk [vmem:[%s1431_s6 + $0x340] sm:$0xff] %vm866_vm0, %v842_v51  ;;  %972 = vst.msk [vmem:[%s1431_s6 + $0x348] sm:$0xff] %vm866_vm0, %v843_v10  ;;  %v453_v24 = vsub.f32 %v321_v35, %v1139_v11  ;;  %v454_v16 = vsub.f32 %v322_v32, %v1139_v11  ;;  %v455_v54 = vsub.f32 %v323_v36, %v1139_v11 }
  0x96   : > { %973 = vst.msk [vmem:[%s1431_s6 + $0x350] sm:$0xff] %vm866_vm0, %v844_v57  ;;  %974 = vst.msk [vmem:[%s1431_s6 + $0x358] sm:$0xff] %vm866_vm0, %v845_v53  ;;  %v456_v55 = vsub.f32 %v324_v49, %v1139_v11  ;;  %v457_v56 = vsub.f32 %v325_v58, %v1139_v11  ;;  %v458_v61 = vsub.f32 %v326_v7, %v1139_v11 }
  0x97   : > { %975 = vst.msk [vmem:[%s1431_s6 + $0x360] sm:$0xff] %vm866_vm0, %v846_v13  ;;  %976 = vst.msk [vmem:[%s1431_s6 + $0x368] sm:$0xff] %vm866_vm0, %v847_v9  ;;  %v459_v5 = vsub.f32 %v327_v12, %v1139_v11  ;;  %v460_v19 = vsub.f32 %v328_v52, %v1139_v11  ;;  %v587_v20 = vmul.f32 %v1360_v42, %v453_v24 }
  0x98   : > { %977 = vst.msk [vmem:[%s1431_s6 + $0x370] sm:$0xff] %vm866_vm0, %v848_v14  ;;  %978 = vst.msk [vmem:[%s1431_s6 + $0x378] sm:$0xff] %vm866_vm0, %v849_v15  ;;  %v588_v21 = vmul.f32 %v1360_v42, %v454_v16  ;;  %v589_v22 = vmul.f32 %v1360_v42, %v455_v54  ;;  %v590_v33 = vmul.f32 %v1360_v42, %v456_v55 }
  0x99   : > { %v591_v62 = vmul.f32 %v1360_v42, %v457_v56  ;;  %v592_v63 = vmul.f32 %v1360_v42, %v458_v61  ;;  %v593_v50 = vmul.f32 %v1360_v42, %v459_v5  ;;  %v594_v45 = vmul.f32 %v1360_v42, %v460_v19 }
  0x9a   : > { %v722_v1 = vadd.f32 %v2050_v23, %v587_v20  ;;  %v723_v44 = vadd.f32 %v2050_v23, %v588_v21  ;;  %v724_v34 = vadd.f32 %v2050_v23, %v589_v22  ;;  %v725_v4 = vadd.f32 %v2050_v23, %v590_v33 }
  0x9b   : > { %v726_v40 = vadd.f32 %v2050_v23, %v591_v62  ;;  %v727_v3 = vadd.f32 %v2050_v23, %v592_v63  ;;  %v728_v17 = vadd.f32 %v2050_v23, %v593_v50  ;;  %v729_v18 = vadd.f32 %v2050_v23, %v594_v45 }
  0x9c   : > { %v850_v29 = vmax.f32 %v722_v1, 0.0  ;;  %v851_v37 = vmax.f32 %v723_v44, 0.0  ;;  %v852_v30 = vmax.f32 %v724_v34, 0.0  ;;  %v853_v41 = vmax.f32 %v725_v4, 0.0 }
  0x9d   : > { %v854_v47 = vmax.f32 %v726_v40, 0.0  ;;  %v855_v26 = vmax.f32 %v727_v3, 0.0  ;;  %v856_v48 = vmax.f32 %v728_v17, 0.0  ;;  %v857_v31 = vmax.f32 %v729_v18, 0.0 }
  0x9e   : > { %979 = vst.msk [vmem:[%s1431_s6 + $0x380] sm:$0xff] %vm866_vm0, %v850_v29  ;;  %980 = vst.msk [vmem:[%s1431_s6 + $0x388] sm:$0xff] %vm866_vm0, %v851_v37  ;;  %v461_v27 = vsub.f32 %v329_v39, %v1139_v11  ;;  %v462_v35 = vsub.f32 %v330_v43, %v1139_v11  ;;  %v463_v32 = vsub.f32 %v331_v6, %v1139_v11 }
  0x9f   : > { %981 = vst.msk [vmem:[%s1431_s6 + $0x390] sm:$0xff] %vm866_vm0, %v852_v30  ;;  %982 = vst.msk [vmem:[%s1431_s6 + $0x398] sm:$0xff] %vm866_vm0, %v853_v41  ;;  %v464_v36 = vsub.f32 %v332_v38, %v1139_v11  ;;  %v465_v0 = vsub.f32 %v333_v28, %v1139_v11  ;;  %v466_v60 = vsub.f32 %v334_v2, %v1139_v11 }
  0xa0   : > { %983 = vst.msk [vmem:[%s1431_s6 + $0x3a0] sm:$0xff] %vm866_vm0, %v854_v47  ;;  %984 = vst.msk [vmem:[%s1431_s6 + $0x3a8] sm:$0xff] %vm866_vm0, %v855_v26  ;;  %v467_v8 = vsub.f32 %v335_v46, %v1139_v11  ;;  %v468_v59 = vsub.f32 %v336_v25, %v1139_v11  ;;  %v595_v49 = vmul.f32 %v1360_v42, %v461_v27 }
  0xa1   : > { %985 = vst.msk [vmem:[%s1431_s6 + $0x3b0] sm:$0xff] %vm866_vm0, %v856_v48  ;;  %986 = vst.msk [vmem:[%s1431_s6 + $0x3b8] sm:$0xff] %vm866_vm0, %v857_v31  ;;  %v596_v58 = vmul.f32 %v1360_v42, %v462_v35  ;;  %v597_v7 = vmul.f32 %v1360_v42, %v463_v32  ;;  %v598_v51 = vmul.f32 %v1360_v42, %v464_v36 }
  0xa2   : > { %v599_v10 = vmul.f32 %v1360_v42, %v465_v0  ;;  %v600_v57 = vmul.f32 %v1360_v42, %v466_v60  ;;  %v601_v53 = vmul.f32 %v1360_v42, %v467_v8  ;;  %v602_v12 = vmul.f32 %v1360_v42, %v468_v59 }
  0xa3   : > { %v730_v52 = vadd.f32 %v2050_v23, %v595_v49  ;;  %v731_v11 = vadd.f32 %v2050_v23, %v596_v58  ;;  %v732_v13 = vadd.f32 %v2050_v23, %v597_v7  ;;  %v733_v9 = vadd.f32 %v2050_v23, %v598_v51 }
  0xa4   : > { %v734_v14 = vadd.f32 %v2050_v23, %v599_v10  ;;  %v735_v15 = vadd.f32 %v2050_v23, %v600_v57  ;;  %v736_v42 = vadd.f32 %v2050_v23, %v601_v53  ;;  %v737_v24 = vadd.f32 %v2050_v23, %v602_v12 }
  0xa5   : > { %v858_v16 = vmax.f32 %v730_v52, 0.0  ;;  %v859_v54 = vmax.f32 %v731_v11, 0.0  ;;  %v860_v55 = vmax.f32 %v732_v13, 0.0  ;;  %v861_v56 = vmax.f32 %v733_v9, 0.0 }
  0xa6   : > { %v862_v61 = vmax.f32 %v734_v14, 0.0  ;;  %v863_v5 = vmax.f32 %v735_v15, 0.0  ;;  %v864_v19 = vmax.f32 %v736_v42, 0.0  ;;  %v865_v20 = vmax.f32 %v737_v24, 0.0 }
  0xa7   : > { %987 = vst.msk [vmem:[%s1431_s6 + $0x3c0] sm:$0xff] %vm866_vm0, %v858_v16  ;;  %988 = vst.msk [vmem:[%s1431_s6 + $0x3c8] sm:$0xff] %vm866_vm0, %v859_v54 }
  0xa8   : > { %989 = vst.msk [vmem:[%s1431_s6 + $0x3d0] sm:$0xff] %vm866_vm0, %v860_v55  ;;  %990 = vst.msk [vmem:[%s1431_s6 + $0x3d8] sm:$0xff] %vm866_vm0, %v861_v56 }
  0xa9   : > { %991 = vst.msk [vmem:[%s1431_s6 + $0x3e0] sm:$0xff] %vm866_vm0, %v862_v61  ;;  %992 = vst.msk [vmem:[%s1431_s6 + $0x3e8] sm:$0xff] %vm866_vm0, %v863_v5 }
  0xaa   : > { %993 = vst.msk [vmem:[%s1431_s6 + $0x3f0] sm:$0xff] %vm866_vm0, %v864_v19  ;;  %994 = vst.msk [vmem:[%s1431_s6 + $0x3f8] sm:$0xff] %vm866_vm0, %v865_v20 }
  0xab PF: > { %s14_s15 = sadd.s32 1, %s1080_s15  }
  0xac   : > { %p11_p4 = scmp.ge.s32.totalorder %s14_s15, 4  }
  0xae   :  { %13 = sbr.rel (!%p11_p4) target bundleno = 1 (0x1), region = 66 }

// kernel: generator_forward.25
= control target key start
LH: loop header
LB: loop body
LE: loop exit
PB: predicated region body
PF: predicated region fallthrough
CT: control target
= control target key end

     0   :  { %s1204_s9 = smov 0   ;;  %s1206_s10 = smov 0   ;;  %s1360_s0 = inlined_call_operand.vmem [shape: bf16[2304,256], index: 0, kind: input, shape index: {}]   ;;  %s1361_s1 = inlined_call_operand.vmem [shape: bf16[256,128], index: 1, kind: input, shape index: {}]   ;;  %s1362_s2 = inlined_call_operand.vmem [shape: f32[2304,128], index: 2, kind: output, shape index: {}]  }
   0x1   :  { %s1208_s11 = smov 0  }
   0x2 LB: > { %s24_s12 = sadd.s32 1, %s1183_s10  ;;  %p828_p0 = scmp.ge.s32.totalorder %s1187_s11, 1  ;;  %s1187_s11 = sphi %s1208_s11, %s12_s11   ;;  %s1183_s10 = sphi %s1206_s10, %s1364_s10   ;;  %s1179_s9 = sphi %s1204_s9, %s1363_s9  }
   0x3   : > { %p26_p1 = scmp.ge.s32.totalorder %s24_s12, 9  ;;  %p137_p2 = scmp.lt.s32.totalorder %s1187_s11, 10 }
   0x5   : > { %s1366_s12 = smov (%p26_p1, %s24_s12), 0  ;;  %p138_p3 = pnand %p828_p0, %p137_p2 }
   0x6   : > { %v1037_v0 = vld [vmem:[%s1361_s1 + $0x40] sm:$0xff] (!%p138_p3)   ;;  %s829_s15 = sshll.u32 (!%p138_p3), %s1179_s9, 5  ;;  %v1039_v2 = vld [vmem:[%s1361_s1 + $0x48] sm:$0xff] (!%p138_p3)   ;;  %v1041_v4 = vld [vmem:[%s1361_s1 + $0x50] sm:$0xff] (!%p138_p3)  }
   0x7   : > { %141 = sbr.rel (%p138_p3) target bundleno = 326 (0x146), region = 28  ;;  %v1038_v1 = vld [vmem:[%s1361_s1] sm:$0xff] (!%p138_p3)   ;;  %885 = vmatprep.subr.bf16.mxu0 (!%p138_p3), %v1037_v0  ;;  %997 = vmatprep.subr.bf16.mxu1 (!%p138_p3), %v1037_v0  ;;  %v1040_v3 = vld [vmem:[%s1361_s1 + $0x8] sm:$0xff] (!%p138_p3)   ;;  %p168_p4 = scmp.lt.s32.totalorder (!%p138_p3), %s829_s15, 287  ;;  %v1042_v5 = vld [vmem:[%s1361_s1 + $0x10] sm:$0xff] (!%p138_p3)  }
   0x8   : > { %886 = vmatpush3.bf16.msra.mxu0 (!%p138_p3), %v1038_v1  ;;  %1005 = vmatpush3.bf16.msra.mxu1 (!%p138_p3), %v1038_v1  ;;  %v1043_v6 = vld [vmem:[%s1361_s1 + $0x58] sm:$0xff] (!%p138_p3)   ;;  %v1045_v8 = vld [vmem:[%s1361_s1 + $0x60] sm:$0xff] (!%p138_p3)   ;;  %v1047_v10 = vld [vmem:[%s1361_s1 + $0x68] sm:$0xff] (!%p138_p3)  }
   0x9   : > { %887 = vmatprep.subr.bf16.mxu0 (!%p138_p3), %v1039_v2  ;;  %998 = vmatprep.subr.bf16.mxu1 (!%p138_p3), %v1039_v2  ;;  %v1044_v7 = vld [vmem:[%s1361_s1 + $0x18] sm:$0xff] (!%p138_p3)   ;;  %v1046_v9 = vld [vmem:[%s1361_s1 + $0x20] sm:$0xff] (!%p138_p3)   ;;  %v1048_v13 = vld [vmem:[%s1361_s1 + $0x28] sm:$0xff] (!%p138_p3)  }
   0xa   : > { %v1049_v14 = vld [vmem:[%s1361_s1 + $0x70] sm:$0xff] (!%p138_p3)   ;;  %v1051_v16 = vld [vmem:[%s1361_s1 + $0x78] sm:$0xff] (!%p138_p3)  }
   0xb   : > { %v1050_v15 = vld [vmem:[%s1361_s1 + $0x30] sm:$0xff] (!%p138_p3)   ;;  %v1052_v17 = vld [vmem:[%s1361_s1 + $0x38] sm:$0xff] (!%p138_p3)  }
   0xc   : > { %888 = vmatpush3.bf16.msra.mxu0 (!%p138_p3), %v1040_v3  ;;  %1006 = vmatpush3.bf16.msra.mxu1 (!%p138_p3), %v1040_v3 }
   0xd   : > { %889 = vmatprep.subr.bf16.mxu0 (!%p138_p3), %v1041_v4  ;;  %999 = vmatprep.subr.bf16.mxu1 (!%p138_p3), %v1041_v4 }
   0xe   : > { %s1368_s15 = smov (!%p168_p4, %s829_s15), 287 }
   0xf   : > { %s884_s30 = sshll.u32 %s1368_s15, 3 }
  0x10   : > { %890 = vmatpush3.bf16.msra.mxu0 %v1042_v5  ;;  %1007 = vmatpush3.bf16.msra.mxu1 %v1042_v5  ;;  %s1257_s7 = scalar_lea.vmem %s1360_s0, %s884_s30  ;;  %s1317_s28 = scalar_lea.vmem %s1362_s2, %s884_s30 }
  0x11   : > { %891 = vmatprep.subr.bf16.mxu0 %v1043_v6  ;;  %1000 = vmatprep.subr.bf16.mxu1 %v1043_v6  ;;  %v1055_v11 = vld [vmem:[%s1257_s7 + $0x4] ss:$8 sps:$4 sm:$0xff]   ;;  %v1053_v18 = vld [vmem:[%s1257_s7] ss:$8 sps:$4 sm:$0xff]   ;;  %v1059_v20 = vld [vmem:[%s1257_s7 + $0x14] ss:$8 sps:$4 sm:$0xff]  }
  0x12   : > { %v1058_v12 = vld [vmem:[%s1257_s7 + $0x84] ss:$8 sps:$4 sm:$0xff]   ;;  %540 = vmatprep.mubr.bf16.mxu0 %v1055_v11  ;;  %v1056_v19 = vld [vmem:[%s1257_s7 + $0x80] ss:$8 sps:$4 sm:$0xff]   ;;  %v1061_v21 = vld [vmem:[%s1257_s7 + $0x94] ss:$8 sps:$4 sm:$0xff]  }
  0x13   : > { %604 = vmatprep.mubr.bf16.mxu1 %v1058_v12  ;;  %v1063_v22 = vld [vmem:[%s1257_s7 + $0x10] ss:$8 sps:$4 sm:$0xff]   ;;  %v1065_v24 = vld [vmem:[%s1257_s7 + $0x24] ss:$8 sps:$4 sm:$0xff]   ;;  %v1069_v26 = vld [vmem:[%s1257_s7 + $0x20] ss:$8 sps:$4 sm:$0xff]  }
  0x14   : > { %892 = vmatpush3.bf16.msra.mxu0 %v1044_v7  ;;  %1008 = vmatpush3.bf16.msra.mxu1 %v1044_v7  ;;  %v1064_v23 = vld [vmem:[%s1257_s7 + $0x90] ss:$8 sps:$4 sm:$0xff]   ;;  %v1067_v25 = vld [vmem:[%s1257_s7 + $0xa4] ss:$8 sps:$4 sm:$0xff]   ;;  %v1070_v27 = vld [vmem:[%s1257_s7 + $0xa0] ss:$8 sps:$4 sm:$0xff]  }
  0x15   : > { %893 = vmatprep.subr.bf16.mxu0 %v1045_v8  ;;  %1001 = vmatprep.subr.bf16.mxu1 %v1045_v8  ;;  %v1071_v28 = vld [vmem:[%s1257_s7 + $0x34] ss:$8 sps:$4 sm:$0xff]   ;;  %v1075_v30 = vld [vmem:[%s1257_s7 + $0x30] ss:$8 sps:$4 sm:$0xff]   ;;  %v1077_v32 = vld [vmem:[%s1257_s7 + $0x44] ss:$8 sps:$4 sm:$0xff]  }
  0x16   : > { %v1073_v29 = vld [vmem:[%s1257_s7 + $0xb4] ss:$8 sps:$4 sm:$0xff]   ;;  %v1076_v31 = vld [vmem:[%s1257_s7 + $0xb0] ss:$8 sps:$4 sm:$0xff]   ;;  %v1079_v33 = vld [vmem:[%s1257_s7 + $0xc4] ss:$8 sps:$4 sm:$0xff]  }
  0x17   : > { %v1081_v34 = vld [vmem:[%s1257_s7 + $0x40] ss:$8 sps:$4 sm:$0xff]   ;;  %v1083_v36 = vld [vmem:[%s1257_s7 + $0x54] ss:$8 sps:$4 sm:$0xff]   ;;  %v1087_v38 = vld [vmem:[%s1257_s7 + $0x50] ss:$8 sps:$4 sm:$0xff]  }
  0x18   : > { %894 = vmatpush3.bf16.msra.mxu0 %v1046_v9  ;;  %1009 = vmatpush3.bf16.msra.mxu1 %v1046_v9  ;;  %v1082_v35 = vld [vmem:[%s1257_s7 + $0xc0] ss:$8 sps:$4 sm:$0xff]   ;;  %v1085_v37 = vld [vmem:[%s1257_s7 + $0xd4] ss:$8 sps:$4 sm:$0xff]   ;;  %v1088_v39 = vld [vmem:[%s1257_s7 + $0xd0] ss:$8 sps:$4 sm:$0xff]  }
  0x19   : > { %895 = vmatprep.subr.bf16.mxu0 %v1047_v10  ;;  %1002 = vmatprep.subr.bf16.mxu1 %v1047_v10  ;;  %v1089_v40 = vld [vmem:[%s1257_s7 + $0x64] ss:$8 sps:$4 sm:$0xff]   ;;  %v1093_v42 = vld [vmem:[%s1257_s7 + $0x60] ss:$8 sps:$4 sm:$0xff]   ;;  %v1095_v44 = vld [vmem:[%s1257_s7 + $0x74] ss:$8 sps:$4 sm:$0xff]  }
  0x1a   : > { %v1091_v41 = vld [vmem:[%s1257_s7 + $0xe4] ss:$8 sps:$4 sm:$0xff]   ;;  %v1094_v43 = vld [vmem:[%s1257_s7 + $0xe0] ss:$8 sps:$4 sm:$0xff]   ;;  %v1097_v45 = vld [vmem:[%s1257_s7 + $0xf4] ss:$8 sps:$4 sm:$0xff]  }
  0x1b   : > { %v1099_v46 = vld [vmem:[%s1257_s7 + $0x70] ss:$8 sps:$4 sm:$0xff]  }
  0x1c   : > { %896 = vmatpush3.bf16.msra.mxu0 %v1048_v13  ;;  %1010 = vmatpush3.bf16.msra.mxu1 %v1048_v13  ;;  %v1100_v47 = vld [vmem:[%s1257_s7 + $0xf0] ss:$8 sps:$4 sm:$0xff]  }
  0x1d   : > { %897 = vmatprep.subr.bf16.mxu0 %v1049_v14  ;;  %1003 = vmatprep.subr.bf16.mxu1 %v1049_v14 }
  0x20   : > { %898 = vmatpush3.bf16.msra.mxu0 %v1050_v15  ;;  %1011 = vmatpush3.bf16.msra.mxu1 %v1050_v15 }
  0x21   : > { %899 = vmatprep.subr.bf16.mxu0 %v1051_v16  ;;  %1004 = vmatprep.subr.bf16.mxu1 %v1051_v16 }
  0x24   : > { %900 = vmatpush3.bf16.msra.mxu0 %v1052_v17  ;;  %1012 = vmatpush3.bf16.msra.mxu1 %v1052_v17 }
  0x27   : > { %541 = vmatmul.mubr.bf16.vlgmr.msra.gmra.mrb[0].mxu0 %v1053_v18  ;;  %605 = vmatmul.mubr.bf16.vlgmr.msra.gmra.mrb[0].mxu1 %v1056_v19 }
  0x28   : > { %548 = vmatprep.mubr.bf16.mxu0 %v1059_v20  ;;  %612 = vmatprep.mubr.bf16.mxu1 %v1061_v21 }
  0x2f   : > { %549 = vmatmul.mubr.bf16.gmra.mrb[4].mxu0 %v1063_v22  ;;  %613 = vmatmul.mubr.bf16.gmra.mrb[4].mxu1 %v1064_v23 }
  0x30   : > { %556 = vmatprep.mubr.bf16.mxu0 %v1065_v24  ;;  %620 = vmatprep.mubr.bf16.mxu1 %v1067_v25 }
  0x37   : > { %557 = vmatmul.mubr.bf16.gmra.mrb[8].mxu0 %v1069_v26  ;;  %621 = vmatmul.mubr.bf16.gmra.mrb[8].mxu1 %v1070_v27 }
  0x38   : > { %564 = vmatprep.mubr.bf16.mxu0 %v1071_v28  ;;  %628 = vmatprep.mubr.bf16.mxu1 %v1073_v29 }
  0x3f   : > { %565 = vmatmul.mubr.bf16.gmra.mrb[12].mxu0 %v1075_v30  ;;  %629 = vmatmul.mubr.bf16.gmra.mrb[12].mxu1 %v1076_v31 }
  0x40   : > { %572 = vmatprep.mubr.bf16.mxu0 %v1077_v32  ;;  %636 = vmatprep.mubr.bf16.mxu1 %v1079_v33 }
  0x47   : > { %573 = vmatmul.mubr.bf16.gmra.mrb[16].mxu0 %v1081_v34  ;;  %637 = vmatmul.mubr.bf16.gmra.mrb[16].mxu1 %v1082_v35 }
  0x48   : > { %580 = vmatprep.mubr.bf16.mxu0 %v1083_v36  ;;  %644 = vmatprep.mubr.bf16.mxu1 %v1085_v37 }
  0x4f   : > { %581 = vmatmul.mubr.bf16.gmra.mrb[20].mxu0 %v1087_v38  ;;  %645 = vmatmul.mubr.bf16.gmra.mrb[20].mxu1 %v1088_v39 }
  0x50   : > { %588 = vmatprep.mubr.bf16.mxu0 %v1089_v40  ;;  %652 = vmatprep.mubr.bf16.mxu1 %v1091_v41 }
  0x57   : > { %589 = vmatmul.mubr.bf16.gmra.mrb[24].mxu0 %v1093_v42  ;;  %653 = vmatmul.mubr.bf16.gmra.mrb[24].mxu1 %v1094_v43 }
  0x58   : > { %596 = vmatprep.mubr.bf16.mxu0 %v1095_v44  ;;  %660 = vmatprep.mubr.bf16.mxu1 %v1097_v45 }
  0x5f   : > { %597 = vmatmul.mubr.bf16.gmra.mrb[28].mxu0 %v1099_v46  ;;  %661 = vmatmul.mubr.bf16.gmra.mrb[28].mxu1 %v1100_v47 }
  0xfa   : > { %v901_v48 = vpop.f32.mrb[0].mxu0  ;;  %v949_v49 = vpop.f32.mrb[0].mxu1 }
  0xfb   : > { %v902_v50 = vpop.f32.mrb[1].mxu0  ;;  %v950_v51 = vpop.f32.mrb[1].mxu1 }
  0xfc   : > { %v903_v52 = vadd.f32 %v902_v50, %v901_v48  ;;  %v951_v53 = vadd.f32 %v950_v51, %v949_v49  ;;  %v904_v54 = vpop.f32.mrb[2].mxu0  ;;  %v952_v55 = vpop.f32.mrb[2].mxu1 }
  0xfd   : > { %v905_v56 = vpop.f32.mrb[3].mxu0  ;;  %v953_v57 = vpop.f32.mrb[3].mxu1 }
  0xfe   : > { %1101 = vtanh.f32 %v903_v52  ;;  %v906_v58 = vadd.f32 %v905_v56, %v904_v54  ;;  %v954_v59 = vadd.f32 %v953_v57, %v952_v55 }
  0xff   : > { %1103 = vtanh.f32 %v951_v53 }
 0x100   : > { %1105 = vtanh.f32 %v906_v58 }
 0x101   : > { %1107 = vtanh.f32 %v954_v59 }
 0x102   : > { %v907_v60 = vpop.f32.mrb[4].mxu0  ;;  %v955_v61 = vpop.f32.mrb[4].mxu1 }
 0x103   : > { %v908_v62 = vpop.f32.mrb[5].mxu0  ;;  %v956_v63 = vpop.f32.mrb[5].mxu1 }
 0x104   : > { %v909_v0 = vadd.f32 %v908_v62, %v907_v60  ;;  %v957_v1 = vadd.f32 %v956_v63, %v955_v61  ;;  %v910_v2 = vpop.f32.mrb[6].mxu0  ;;  %v958_v3 = vpop.f32.mrb[6].mxu1 }
 0x105   : > { %v911_v4 = vpop.f32.mrb[7].mxu0  ;;  %v959_v5 = vpop.f32.mrb[7].mxu1 }
 0x106   : > { %1109 = vtanh.f32 %v909_v0  ;;  %v912_v6 = vadd.f32 %v911_v4, %v910_v2  ;;  %v960_v7 = vadd.f32 %v959_v5, %v958_v3 }
 0x107   : > { %1111 = vtanh.f32 %v957_v1 }
 0x108   : > { %v1102_v8 = vpop.eup %1101  ;;  %1113 = vtanh.f32 %v912_v6 }
 0x109   : > { %v1104_v9 = vpop.eup %1103  ;;  %701 = vst [vmem:[%s1317_s28] sm:$0xff] %v1102_v8  ;;  %1115 = vtanh.f32 %v960_v7 }
 0x10a   : > { %v1106_v10 = vpop.eup %1105  ;;  %717 = vst [vmem:[%s1317_s28 + $0x80] sm:$0xff] %v1104_v9  ;;  %v913_v11 = vpop.f32.mrb[8].mxu0 }
 0x10b   : > { %v961_v12 = vpop.f32.mrb[8].mxu1  ;;  %v1108_v13 = vpop.eup %1107  ;;  %702 = vst [vmem:[%s1317_s28 + $0x8] sm:$0xff] %v1106_v10 }
 0x10c   : > { %v914_v14 = vpop.f32.mrb[9].mxu0  ;;  %v962_v15 = vpop.f32.mrb[9].mxu1  ;;  %718 = vst [vmem:[%s1317_s28 + $0x88] sm:$0xff] %v1108_v13 }
 0x10d   : > { %v915_v16 = vadd.f32 %v914_v14, %v913_v11  ;;  %v963_v17 = vadd.f32 %v962_v15, %v961_v12  ;;  %v916_v18 = vpop.f32.mrb[10].mxu0  ;;  %v964_v19 = vpop.f32.mrb[10].mxu1 }
 0x10e   : > { %v917_v20 = vpop.f32.mrb[11].mxu0  ;;  %v965_v21 = vpop.f32.mrb[11].mxu1 }
 0x10f   : > { %1117 = vtanh.f32 %v915_v16  ;;  %v918_v22 = vadd.f32 %v917_v20, %v916_v18  ;;  %v966_v23 = vadd.f32 %v965_v21, %v964_v19 }
 0x110   : > { %1119 = vtanh.f32 %v963_v17  ;;  %v1110_v24 = vpop.eup %1109 }
 0x111   : > { %1121 = vtanh.f32 %v918_v22  ;;  %v1112_v25 = vpop.eup %1111  ;;  %703 = vst [vmem:[%s1317_s28 + $0x10] sm:$0xff] %v1110_v24 }
 0x112   : > { %1123 = vtanh.f32 %v966_v23  ;;  %v1114_v26 = vpop.eup %1113  ;;  %719 = vst [vmem:[%s1317_s28 + $0x90] sm:$0xff] %v1112_v25  ;;  %v919_v27 = vpop.f32.mrb[12].mxu0 }
 0x113   : > { %v967_v28 = vpop.f32.mrb[12].mxu1  ;;  %v1116_v29 = vpop.eup %1115  ;;  %704 = vst [vmem:[%s1317_s28 + $0x18] sm:$0xff] %v1114_v26 }
 0x114   : > { %v920_v30 = vpop.f32.mrb[13].mxu0  ;;  %v968_v31 = vpop.f32.mrb[13].mxu1  ;;  %720 = vst [vmem:[%s1317_s28 + $0x98] sm:$0xff] %v1116_v29 }
 0x115   : > { %v921_v32 = vadd.f32 %v920_v30, %v919_v27  ;;  %v969_v33 = vadd.f32 %v968_v31, %v967_v28  ;;  %v922_v34 = vpop.f32.mrb[14].mxu0  ;;  %v970_v35 = vpop.f32.mrb[14].mxu1 }
 0x116   : > { %v923_v36 = vpop.f32.mrb[15].mxu0  ;;  %v971_v37 = vpop.f32.mrb[15].mxu1 }
 0x117   : > { %1125 = vtanh.f32 %v921_v32  ;;  %v924_v38 = vadd.f32 %v923_v36, %v922_v34  ;;  %v972_v39 = vadd.f32 %v971_v37, %v970_v35 }
 0x118   : > { %1127 = vtanh.f32 %v969_v33 }
 0x119   : > { %v1118_v40 = vpop.eup %1117  ;;  %1129 = vtanh.f32 %v924_v38 }
 0x11a   : > { %v1120_v41 = vpop.eup %1119  ;;  %705 = vst [vmem:[%s1317_s28 + $0x20] sm:$0xff] %v1118_v40  ;;  %1131 = vtanh.f32 %v972_v39  ;;  %v925_v43 = vpop.f32.mrb[16].mxu0 }
 0x11b   : > { %v1122_v42 = vpop.eup %1121  ;;  %721 = vst [vmem:[%s1317_s28 + $0xa0] sm:$0xff] %v1120_v41  ;;  %v973_v44 = vpop.f32.mrb[16].mxu1 }
 0x11c   : > { %v1124_v45 = vpop.eup %1123  ;;  %706 = vst [vmem:[%s1317_s28 + $0x28] sm:$0xff] %v1122_v42  ;;  %v926_v46 = vpop.f32.mrb[17].mxu0 }
 0x11d   : > { %v974_v47 = vpop.f32.mrb[17].mxu1  ;;  %722 = vst [vmem:[%s1317_s28 + $0xa8] sm:$0xff] %v1124_v45  ;;  %v927_v48 = vadd.f32 %v926_v46, %v925_v43  ;;  %v928_v50 = vpop.f32.mrb[18].mxu0 }
 0x11e   : > { %v975_v49 = vadd.f32 %v974_v47, %v973_v44  ;;  %v976_v51 = vpop.f32.mrb[18].mxu1  ;;  %v929_v52 = vpop.f32.mrb[19].mxu0 }
 0x11f   : > { %v977_v53 = vpop.f32.mrb[19].mxu1  ;;  %1133 = vtanh.f32 %v927_v48  ;;  %v930_v54 = vadd.f32 %v929_v52, %v928_v50 }
 0x120   : > { %v978_v55 = vadd.f32 %v977_v53, %v976_v51  ;;  %1135 = vtanh.f32 %v975_v49 }
 0x121   : > { %v1126_v56 = vpop.eup %1125  ;;  %1137 = vtanh.f32 %v930_v54 }
 0x122   : > { %v1128_v57 = vpop.eup %1127  ;;  %707 = vst [vmem:[%s1317_s28 + $0x30] sm:$0xff] %v1126_v56  ;;  %1139 = vtanh.f32 %v978_v55  ;;  %v931_v59 = vpop.f32.mrb[20].mxu0 }
 0x123   : > { %v1130_v58 = vpop.eup %1129  ;;  %723 = vst [vmem:[%s1317_s28 + $0xb0] sm:$0xff] %v1128_v57  ;;  %v979_v60 = vpop.f32.mrb[20].mxu1 }
 0x124   : > { %v1132_v61 = vpop.eup %1131  ;;  %708 = vst [vmem:[%s1317_s28 + $0x38] sm:$0xff] %v1130_v58  ;;  %v932_v62 = vpop.f32.mrb[21].mxu0 }
 0x125   : > { %v980_v63 = vpop.f32.mrb[21].mxu1  ;;  %724 = vst [vmem:[%s1317_s28 + $0xb8] sm:$0xff] %v1132_v61  ;;  %v933_v0 = vadd.f32 %v932_v62, %v931_v59  ;;  %v934_v2 = vpop.f32.mrb[22].mxu0 }
 0x126   : > { %v981_v1 = vadd.f32 %v980_v63, %v979_v60  ;;  %v982_v3 = vpop.f32.mrb[22].mxu1  ;;  %v935_v4 = vpop.f32.mrb[23].mxu0 }
 0x127   : > { %v983_v5 = vpop.f32.mrb[23].mxu1  ;;  %1141 = vtanh.f32 %v933_v0  ;;  %v936_v6 = vadd.f32 %v935_v4, %v934_v2 }
 0x128   : > { %v984_v7 = vadd.f32 %v983_v5, %v982_v3  ;;  %1143 = vtanh.f32 %v981_v1 }
 0x129   : > { %v1134_v8 = vpop.eup %1133  ;;  %1145 = vtanh.f32 %v936_v6 }
 0x12a   : > { %v1136_v9 = vpop.eup %1135  ;;  %709 = vst [vmem:[%s1317_s28 + $0x40] sm:$0xff] %v1134_v8  ;;  %1147 = vtanh.f32 %v984_v7  ;;  %v937_v11 = vpop.f32.mrb[24].mxu0 }
 0x12b   : > { %v1138_v10 = vpop.eup %1137  ;;  %725 = vst [vmem:[%s1317_s28 + $0xc0] sm:$0xff] %v1136_v9  ;;  %v985_v12 = vpop.f32.mrb[24].mxu1 }
 0x12c   : > { %v1140_v13 = vpop.eup %1139  ;;  %710 = vst [vmem:[%s1317_s28 + $0x48] sm:$0xff] %v1138_v10  ;;  %v938_v14 = vpop.f32.mrb[25].mxu0 }
 0x12d   : > { %v986_v15 = vpop.f32.mrb[25].mxu1  ;;  %726 = vst [vmem:[%s1317_s28 + $0xc8] sm:$0xff] %v1140_v13  ;;  %v939_v16 = vadd.f32 %v938_v14, %v937_v11  ;;  %v940_v18 = vpop.f32.mrb[26].mxu0 }
 0x12e   : > { %v987_v17 = vadd.f32 %v986_v15, %v985_v12  ;;  %v988_v19 = vpop.f32.mrb[26].mxu1  ;;  %v941_v20 = vpop.f32.mrb[27].mxu0 }
 0x12f   : > { %v989_v21 = vpop.f32.mrb[27].mxu1  ;;  %1149 = vtanh.f32 %v939_v16  ;;  %v942_v22 = vadd.f32 %v941_v20, %v940_v18 }
 0x130   : > { %v990_v23 = vadd.f32 %v989_v21, %v988_v19  ;;  %1151 = vtanh.f32 %v987_v17 }
 0x131   : > { %v1142_v24 = vpop.eup %1141  ;;  %1153 = vtanh.f32 %v942_v22 }
 0x132   : > { %v1144_v25 = vpop.eup %1143  ;;  %711 = vst [vmem:[%s1317_s28 + $0x50] sm:$0xff] %v1142_v24  ;;  %1155 = vtanh.f32 %v990_v23  ;;  %v943_v27 = vpop.f32.mrb[28].mxu0 }
 0x133   : > { %v1146_v26 = vpop.eup %1145  ;;  %727 = vst [vmem:[%s1317_s28 + $0xd0] sm:$0xff] %v1144_v25  ;;  %v991_v28 = vpop.f32.mrb[28].mxu1 }
 0x134   : > { %v1148_v29 = vpop.eup %1147  ;;  %712 = vst [vmem:[%s1317_s28 + $0x58] sm:$0xff] %v1146_v26  ;;  %v944_v30 = vpop.f32.mrb[29].mxu0 }
 0x135   : > { %v992_v31 = vpop.f32.mrb[29].mxu1  ;;  %728 = vst [vmem:[%s1317_s28 + $0xd8] sm:$0xff] %v1148_v29  ;;  %v945_v32 = vadd.f32 %v944_v30, %v943_v27  ;;  %v946_v34 = vpop.f32.mrb[30].mxu0 }
 0x136   : > { %v993_v33 = vadd.f32 %v992_v31, %v991_v28  ;;  %v994_v35 = vpop.f32.mrb[30].mxu1  ;;  %v947_v36 = vpop.f32.mrb[31].mxu0 }
 0x137   : > { %v995_v37 = vpop.f32.mrb[31].mxu1  ;;  %1157 = vtanh.f32 %v945_v32  ;;  %v948_v38 = vadd.f32 %v947_v36, %v946_v34 }
 0x138   : > { %v996_v39 = vadd.f32 %v995_v37, %v994_v35  ;;  %1159 = vtanh.f32 %v993_v33 }
 0x139   : > { %v1150_v40 = vpop.eup %1149  ;;  %1161 = vtanh.f32 %v948_v38 }
 0x13a   : > { %v1152_v41 = vpop.eup %1151  ;;  %713 = vst [vmem:[%s1317_s28 + $0x60] sm:$0xff] %v1150_v40  ;;  %1163 = vtanh.f32 %v996_v39 }
 0x13b   : > { %v1154_v42 = vpop.eup %1153  ;;  %729 = vst [vmem:[%s1317_s28 + $0xe0] sm:$0xff] %v1152_v41 }
 0x13c   : > { %v1156_v43 = vpop.eup %1155  ;;  %714 = vst [vmem:[%s1317_s28 + $0x68] sm:$0xff] %v1154_v42 }
 0x13d   : > { %730 = vst [vmem:[%s1317_s28 + $0xe8] sm:$0xff] %v1156_v43 }
 0x141   : > { %v1158_v44 = vpop.eup %1157 }
 0x142   : > { %v1160_v45 = vpop.eup %1159  ;;  %715 = vst [vmem:[%s1317_s28 + $0x70] sm:$0xff] %v1158_v44 }
 0x143   : > { %v1162_v46 = vpop.eup %1161  ;;  %731 = vst [vmem:[%s1317_s28 + $0xf0] sm:$0xff] %v1160_v45 }
 0x144   : > { %v1164_v47 = vpop.eup %1163  ;;  %716 = vst [vmem:[%s1317_s28 + $0x78] sm:$0xff] %v1162_v46 }
 0x145   : > { %732 = vst [vmem:[%s1317_s28 + $0xf8] sm:$0xff] %v1164_v47 }
 0x146 PF: > { %s12_s11 = sadd.s32 1, %s1187_s11   ;;  %s1363_s9 = smov %s1183_s10 }
 0x147   : > { %p9_p5 = scmp.ge.s32.totalorder %s12_s11, 11   ;;  %s1364_s10 = smov %s1366_s12 }
 0x149   :  { %11 = sbr.rel (!%p9_p5) target bundleno = 2 (0x2), region = 61 }

</bundles_post_ra>
